<compile_context>
chip_gen: v6e
topology: v6e:2x2x1
jax: 0.10.0
libtpu: 0.0.40
codegen_flags: <defaults>
</compile_context>

<pallas_src>
import numpy as np
import jax
import jax.numpy as jnp
from jax.experimental import pallas as pl
from jax.experimental.pallas import tpu as pltpu


def _silu(x):
    return x * jax.nn.sigmoid(x)


# -----------------------------------------------------------------------------
# Weight quantization (per-output-column symmetric scales)
# -----------------------------------------------------------------------------
def _weight_qdtype():
    """int8 on v5e/v6e; fp8-e4m3 on v7x (whose MXU has no int path)."""
    try:
        kind = jax.devices()[0].device_kind.lower()
    except Exception:
        kind = ""
    if "v7" in kind or "7x" in kind:
        return jnp.float8_e4m3fn, 448.0
    return jnp.int8, 127.0


def _quantize_cols(w, qdtype, qmax):
    """w: (in, out) f32 -> (q: (in, out) qdtype, scale: (out,) f32), w ≈ q * scale."""
    amax = jnp.max(jnp.abs(w), axis=0)
    scale = jnp.maximum(amax, 1e-12) / qmax
    if np.dtype(qdtype) == np.dtype(jnp.int8):
        q = jnp.clip(jnp.round(w / scale), -qmax, qmax).astype(jnp.int8)
    else:
        q = (w / scale).astype(qdtype)
    return q, scale.astype(jnp.float32)


def _dequantize(w, qdtype, qmax):
    q, scale = _quantize_cols(w, qdtype, qmax)
    return q.astype(jnp.float32) * scale[None, :]


def _fold_bn(bn, eps=1e-5):
    scale = bn["gamma"] / jnp.sqrt(bn["var"] + eps)
    shift = bn["beta"] - bn["mean"] * scale
    return scale.astype(jnp.float32), shift.astype(jnp.float32)


# -----------------------------------------------------------------------------
# Kernel: one (model, branch) MLP per parallel grid cell.
#   grid = (G = 2*n_models [parallel], J = H//tile_h [arbitrary reduction])
#   y_ref (the (1, B, F) output block) accumulates across the reduction axis.
# -----------------------------------------------------------------------------
def _branch_mlp_kernel(x_ref, s1_ref, b1_ref,        # input + folded BN1 (scale, shift)
                       w1_ref, s2_ref, b2_ref,       # W1 tile (quantized), folded BN2*scale1
                       w2_ref,                        # W2 tile (quantized)
                       y_ref,                         # (1, B, F) f32 accumulator output
                       h_ref):                        # (B, F) bf16 scratch
    j = pl.program_id(1)

    @pl.when(j == 0)
    def _init():
        # BatchNorm1d (eval, folded) + SiLU; Dropout(eval) = identity.
        h_ref[...] = _silu(x_ref[0] * s1_ref[0] + b1_ref[0]).astype(jnp.bfloat16)
        y_ref[...] = jnp.zeros_like(y_ref)

    # Linear(F, 4F) tile; W1's per-column dequant scale is folded into s2.
    w1 = w1_ref[0, 0].astype(jnp.bfloat16)
    z = jnp.dot(h_ref[...], w1, preferred_element_type=jnp.float32)
    # BatchNorm1d (eval, folded, incl. dequant scale) + SiLU.
    a = _silu(z * s2_ref[0] + b2_ref[0]).astype(jnp.bfloat16)
    # Linear(4F, F) tile; W2's per-column dequant scale is applied in the JAX
    # epilogue (before the L2 normalize).
    w2 = w2_ref[0].astype(jnp.bfloat16)
    y_ref[0] = y_ref[0] + jnp.dot(a, w2, preferred_element_type=jnp.float32)


# -----------------------------------------------------------------------------
# Wrapper: a group of `net_one` models sharing the same feature size F.
# -----------------------------------------------------------------------------
def net_group_forward(texts, images, model_params, *, tile_h=None):
    """texts/images: lists of (B, F) arrays (one per model).
    Returns (n_models, B) logits: (cos * exp(tau) + b) * 100."""
    n = len(model_params)
    assert len(texts) == len(images) == n
    B, F = texts[0].shape
    H = 4 * F
    if tile_h is None:
        # H/2: big DMAs, few grid steps, and double-buffered quantized weight
        # tiles stay well under 48 MiB (safe on v7x's 64 MiB/TC VMEM too).
        tile_h = H // 2 if (H // 2) % 128 == 0 else H
    assert H % tile_h == 0 and tile_h % 128 == 0
    J = H // tile_h
    G = 2 * n                                   # (model, branch): 0=text, 1=image
    qdtype, qmax = _weight_qdtype()

    xs, s1s, b1s, w1qs, s2s, b2s, w2qs, sc2s = [], [], [], [], [], [], [], []
    for m, p in enumerate(model_params):
        for branch, xin in (("text", texts[m]), ("image", images[m])):
            bp = p[branch]
            s1, b1 = _fold_bn(bp["bn1"])
            s2, b2 = _fold_bn(bp["bn2"])
            w1q, sc1 = _quantize_cols(bp["w1"], qdtype, qmax)
            w2q, sc2 = _quantize_cols(bp["w2"], qdtype, qmax)
            xs.append(xin.astype(jnp.float32))
            s1s.append(s1); b1s.append(b1)
            w1qs.append(w1q)
            s2s.append(s2 * sc1)                # fold W1 dequant scale into BN2 scale
            b2s.append(b2)
            w2qs.append(w2q)
            sc2s.append(sc2)

    x = jnp.stack(xs)                            # (G, B, F) f32
    s1 = jnp.stack(s1s)[:, None, :]              # (G, 1, F)
    b1 = jnp.stack(b1s)[:, None, :]
    s2 = jnp.stack(s2s)[:, None, :]              # (G, 1, H)
    b2 = jnp.stack(b2s)[:, None, :]
    sc2 = jnp.stack(sc2s)[:, None, :]            # (G, 1, F)  (epilogue only)
    # Pre-tile W1 so each streamed (F, tile_h) block is contiguous in HBM.
    w1 = jnp.stack(w1qs).reshape(G, F, J, tile_h).transpose(0, 2, 1, 3)  # (G,J,F,tile_h)
    w2 = jnp.stack(w2qs)                         # (G, H, F): tiles already contiguous

    yq = pl.pallas_call(
        _branch_mlp_kernel,
        out_shape=jax.ShapeDtypeStruct((G, B, F), jnp.float32),
        grid_spec=pltpu.PrefetchScalarGridSpec(
            num_scalar_prefetch=0,
            grid=(G, J),
            in_specs=[
                pl.BlockSpec((1, B, F), lambda g, j: (g, 0, 0)),             # x
                pl.BlockSpec((1, 1, F), lambda g, j: (g, 0, 0)),             # bn1 scale
                pl.BlockSpec((1, 1, F), lambda g, j: (g, 0, 0)),             # bn1 shift
                pl.BlockSpec((1, 1, F, tile_h), lambda g, j: (g, j, 0, 0)),  # W1 tile
                pl.BlockSpec((1, 1, tile_h), lambda g, j: (g, 0, j)),        # bn2 scale*sc1
                pl.BlockSpec((1, 1, tile_h), lambda g, j: (g, 0, j)),        # bn2 shift
                pl.BlockSpec((1, tile_h, F), lambda g, j: (g, j, 0)),        # W2 tile
            ],
            out_specs=pl.BlockSpec((1, B, F), lambda g, j: (g, 0, 0)),
            scratch_shapes=[pltpu.VMEM((B, F), jnp.bfloat16)],
        ),
        compiler_params=pltpu.CompilerParams(
            dimension_semantics=("parallel", "arbitrary"),
            vmem_limit_bytes=48 * 1024 * 1024,
        ),
    )(x, s1, b1, w1, s2, b2, w2)

    # Tiny plain-JAX epilogue: W2 dequant scale (before normalize!), L2
    # normalize, cosine, temperature / bias scaling.
    y = (yq * sc2).reshape(n, 2, B, F)
    yt, yi = y[:, 0], y[:, 1]
    ytn = yt / jnp.maximum(jnp.linalg.norm(yt, axis=-1, keepdims=True), 1e-12)
    yin = yi / jnp.maximum(jnp.linalg.norm(yi, axis=-1, keepdims=True), 1e-12)
    cos = jnp.sum(yin * ytn, axis=-1)                                    # (n, B)
    tau = jnp.stack([p["t_prime"] for p in model_params])[:, None]
    bb = jnp.stack([p["b"] for p in model_params])[:, None]
    return (cos * jnp.exp(tau) + bb) * 100.0                             # (n, B)


def net_forward(text1, image1, text2, image2, text3, image3, image_features, params):
    # model0 & model1 share F=1024 -> one pallas_call with parallel extent 4
    # (2 models x 2 branches); model2 (F=1152) gets parallel extent 2.
    o01 = net_group_forward([text1, text2], [image1, image2],
                            [params["model0"], params["model1"]])
    o2 = net_group_forward([text3], [image3], [params["model2"]])
    x = jnp.concatenate(
        [o01[0][:, None], o01[1][:, None], o2[0][:, None], image_features], axis=-1)  # (B, 7)
    # fuse: Linear(7, 1) — negligible glue matmul kept in plain JAX.
    out = x @ params["fuse_w"] + params["fuse_b"]                                      # (B, 1)
    return out[:, 0]


# -----------------------------------------------------------------------------
# Deterministic parameter construction
# -----------------------------------------------------------------------------
def make_net_one_params(key, feature_size):
    H = 4 * feature_size
    ks = jax.random.split(key, 8)

    def bn(k, n):
        k1, k2, k3, k4 = jax.random.split(k, 4)
        return dict(
            gamma=jax.random.uniform(k1, (n,), jnp.float32, 0.5, 1.5),
            beta=0.1 * jax.random.normal(k2, (n,), jnp.float32),
            mean=0.1 * jax.random.normal(k3, (n,), jnp.float32),
            var=jax.random.uniform(k4, (n,), jnp.float32, 0.5, 1.5),
        )

    def lin(k, nin, nout):
        return 0.02 * jax.random.normal(k, (nin, nout), jnp.float32)

    return dict(
        text=dict(bn1=bn(ks[0], feature_size), w1=lin(ks[1], feature_size, H),
                  bn2=bn(ks[2], H), w2=lin(ks[3], H, feature_size)),
        image=dict(bn1=bn(ks[4], feature_size), w1=lin(ks[5], feature_size, H),
                   bn2=bn(ks[6], H), w2=lin(ks[7], H, feature_size)),
        t_prime=jnp.float32(np.log(5.0)),   # init_tau
        b=jnp.float32(0.0),                 # init_b
    )


# -----------------------------------------------------------------------------
# Pure-JAX f32 references (for correctness checks)
# -----------------------------------------------------------------------------
def _mlp_ref(x, bn1, w1, bn2, w2, eps=1e-5):
    h = _silu((x - bn1["mean"]) / jnp.sqrt(bn1["var"] + eps) * bn1["gamma"] + bn1["beta"])
    z = h @ w1
    a = _silu((z - bn2["mean"]) / jnp.sqrt(bn2["var"] + eps) * bn2["gamma"] + bn2["beta"])
    return a @ w2


def net_one_ref(text, image, p):
    yt = _mlp_ref(text, p["text"]["bn1"], p["text"]["w1"], p["text"]["bn2"], p["text"]["w2"])
    yi = _mlp_ref(image, p["image"]["bn1"], p["image"]["w1"], p["image"]["bn2"], p["image"]["w2"])
    ytn = yt / jnp.maximum(jnp.linalg.norm(yt, axis=-1, keepdims=True), 1e-12)
    yin = yi / jnp.maximum(jnp.linalg.norm(yi, axis=-1, keepdims=True), 1e-12)
    cos = jnp.sum(yin * ytn, axis=-1)
    return (cos * jnp.exp(p["t_prime"]) + p["b"]) * 100.0


def net_ref(text1, image1, text2, image2, text3, image3, image_features, params):
    x0 = net_one_ref(text1, image1, params["model0"])
    x1 = net_one_ref(text2, image2, params["model1"])
    x2 = net_one_ref(text3, image3, params["model2"])
    x = jnp.concatenate([x0[:, None], x1[:, None], x2[:, None], image_features], axis=-1)
    return (x @ params["fuse_w"] + params["fuse_b"])[:, 0]


def _dequantized_params(params):
    """Params with weights replaced by quantize->dequantize copies (for the
    tight kernel-math check: only bf16 activation rounding remains)."""
    qdtype, qmax = _weight_qdtype()

    def dq_branch(bp):
        return dict(bn1=bp["bn1"], w1=_dequantize(bp["w1"], qdtype, qmax),
                    bn2=bp["bn2"], w2=_dequantize(bp["w2"], qdtype, qmax))

    out = dict(params)
    for mk in ("model0", "model1", "model2"):
        p = params[mk]
        out[mk] = dict(text=dq_branch(p["text"]), image=dq_branch(p["image"]),
                       t_prime=p["t_prime"], b=p["b"])
    return out


if __name__ == "__main__":
    key = jax.random.PRNGKey(0)
    ks = jax.random.split(key, 12)
    B = 8   # small batch; feature sizes (1024/1024/1152) are fixed by the module

    params = dict(
        model0=make_net_one_params(ks[0], 1024),
        model1=make_net_one_params(ks[1], 1024),
        model2=make_net_one_params(ks[2], 1152),
        fuse_w=0.1 * jax.random.normal(ks[3], (7, 1), jnp.float32),
        fuse_b=0.1 * jax.random.normal(ks[4], (1,), jnp.float32),
    )

    text1 = jax.random.normal(ks[5], (B, 1024), jnp.float32)
    image1 = jax.random.normal(ks[6], (B, 1024), jnp.float32)
    text2 = jax.random.normal(ks[7], (B, 1024), jnp.float32)
    image2 = jax.random.normal(ks[8], (B, 1024), jnp.float32)
    text3 = jax.random.normal(ks[9], (B, 1152), jnp.float32)
    image3 = jax.random.normal(ks[10], (B, 1152), jnp.float32)
    image_features = jax.random.normal(ks[11], (B, 4), jnp.float32)

    out = jax.block_until_ready(
        net_forward(text1, image1, text2, image2, text3, image3, image_features, params))

    # Tight check: f32 reference using the *same* quantized->dequantized
    # weights the kernel uses; remaining diff is bf16 activation rounding only.
    ref_dq = jax.block_until_ready(
        net_ref(text1, image1, text2, image2, text3, image3, image_features,
                _dequantized_params(params)))
    np.testing.assert_allclose(np.asarray(out), np.asarray(ref_dq), rtol=1e-2, atol=0.35)

    # Loose check vs the full-f32 reference: includes the intentional
    # weight-quantization error (int8 or fp8 depending on TPU generation).
    ref_f32 = jax.block_until_ready(
        net_ref(text1, image1, text2, image2, text3, image3, image_features, params))
    qdtype, _ = _weight_qdtype()
    loose_atol = 1.0 if np.dtype(qdtype) == np.dtype(jnp.int8) else 2.0
    np.testing.assert_allclose(np.asarray(out), np.asarray(ref_f32), rtol=2e-2, atol=loose_atol)

    assert out.shape == (B,)
    print("KERNEL_OK")
</pallas_src>

<mosaic_0001>
module attributes {stable_mosaic.version = 11 : i64} {
  func.func @_branch_mlp_kernel(%arg0: i32, %arg1: i32, %arg2: memref<1x8x1024xf32, #tpu.memory_space<vmem>>, %arg3: memref<1x1x1024xf32, #tpu.memory_space<vmem>>, %arg4: memref<1x1x1024xf32, #tpu.memory_space<vmem>>, %arg5: memref<1x1x1024x2048xi8, #tpu.memory_space<vmem>>, %arg6: memref<1x1x2048xf32, #tpu.memory_space<vmem>>, %arg7: memref<1x1x2048xf32, #tpu.memory_space<vmem>>, %arg8: memref<1x2048x1024xi8, #tpu.memory_space<vmem>>, %arg9: memref<1x8x1024xf32, #tpu.memory_space<vmem>>, %arg10: memref<8x1024xbf16, #tpu.memory_space<vmem>>) attributes {dimension_semantics = [#tpu.dimension_semantics<parallel>, #tpu.dimension_semantics<arbitrary>], iteration_bounds = array<i64: 4, 2>, scalar_prefetch = 0 : i64, scratch_operands = 1 : i64, tpu.core_type = #tpu.core_type<tc>, window_params = [{transform_indices = @transform_0, window_bounds = array<i64: 1, 8, 1024>}, {transform_indices = @transform_1, window_bounds = array<i64: 1, 1, 1024>}, {transform_indices = @transform_2, window_bounds = array<i64: 1, 1, 1024>}, {transform_indices = @transform_3, window_bounds = array<i64: 1, 1, 1024, 2048>}, {transform_indices = @transform_4, window_bounds = array<i64: 1, 1, 2048>}, {transform_indices = @transform_5, window_bounds = array<i64: 1, 1, 2048>}, {transform_indices = @transform_6, window_bounds = array<i64: 1, 2048, 1024>}, {transform_indices = @transform_7, window_bounds = array<i64: 1, 8, 1024>}]} {
    %c0_i32 = arith.constant 0 : i32
    %0 = arith.cmpi eq, %arg1, %c0_i32 : i32
    %1 = arith.extui %0 : i1 to i32
    %c0_i32_0 = arith.constant 0 : i32
    %2 = arith.cmpi ne, %1, %c0_i32_0 : i32
    scf.if %2 {
      %c0_23 = arith.constant 0 : index
      %c0_24 = arith.constant 0 : index
      %c0_25 = arith.constant 0 : index
      %33 = vector.load %arg2[%c0_23, %c0_24, %c0_25] : memref<1x8x1024xf32, #tpu.memory_space<vmem>>, vector<1x8x1024xf32>
      %34 = vector.shape_cast %33 : vector<1x8x1024xf32> to vector<8x1024xf32>
      %c0_26 = arith.constant 0 : index
      %c0_27 = arith.constant 0 : index
      %c0_28 = arith.constant 0 : index
      %35 = vector.load %arg3[%c0_26, %c0_27, %c0_28] : memref<1x1x1024xf32, #tpu.memory_space<vmem>>, vector<1x1x1024xf32>
      %36 = vector.shape_cast %35 : vector<1x1x1024xf32> to vector<1x1024xf32>
      %37 = vector.broadcast %36 : vector<1x1024xf32> to vector<8x1024xf32>
      %38 = arith.mulf %34, %37 : vector<8x1024xf32>
      %c0_29 = arith.constant 0 : index
      %c0_30 = arith.constant 0 : index
      %c0_31 = arith.constant 0 : index
      %39 = vector.load %arg4[%c0_29, %c0_30, %c0_31] : memref<1x1x1024xf32, #tpu.memory_space<vmem>>, vector<1x1x1024xf32>
      %40 = vector.shape_cast %39 : vector<1x1x1024xf32> to vector<1x1024xf32>
      %41 = vector.broadcast %40 : vector<1x1024xf32> to vector<8x1024xf32>
      %42 = arith.addf %38, %41 : vector<8x1024xf32>
      %43 = arith.negf %42 : vector<8x1024xf32>
      %44 = math.exp %43 : vector<8x1024xf32>
      %cst_32 = arith.constant 1.000000e+00 : f32
      %45 = vector.broadcast %cst_32 : f32 to vector<8x1024xf32>
      %46 = arith.addf %45, %44 : vector<8x1024xf32>
      %47 = arith.divf %45, %46 : vector<8x1024xf32>
      %48 = arith.mulf %42, %47 : vector<8x1024xf32>
      %49 = arith.truncf %48 : vector<8x1024xf32> to vector<8x1024xbf16>
      %c0_33 = arith.constant 0 : index
      %c0_34 = arith.constant 0 : index
      %50 = vector.load %arg10[%c0_33, %c0_34] : memref<8x1024xbf16, #tpu.memory_space<vmem>>, vector<8x1024xbf16>
      tpu.vector_store %arg10[%c0_33, %c0_34], %49 {strides = array<i32>} : memref<8x1024xbf16, #tpu.memory_space<vmem>>, vector<8x1024xbf16>,
      %cst_35 = arith.constant 0.000000e+00 : f32
      %51 = vector.broadcast %cst_35 : f32 to vector<1x8x1024xf32>
      %c0_36 = arith.constant 0 : index
      %c0_37 = arith.constant 0 : index
      %c0_38 = arith.constant 0 : index
      %52 = vector.load %arg9[%c0_36, %c0_37, %c0_38] : memref<1x8x1024xf32, #tpu.memory_space<vmem>>, vector<1x8x1024xf32>
      tpu.vector_store %arg9[%c0_36, %c0_37, %c0_38], %51 {strides = array<i32>} : memref<1x8x1024xf32, #tpu.memory_space<vmem>>, vector<1x8x1024xf32>,
    } else {
    }
    %c0 = arith.constant 0 : index
    %c0_1 = arith.constant 0 : index
    %c0_2 = arith.constant 0 : index
    %c0_3 = arith.constant 0 : index
    %3 = vector.load %arg5[%c0, %c0_1, %c0_2, %c0_3] : memref<1x1x1024x2048xi8, #tpu.memory_space<vmem>>, vector<1x1x1024x2048xi8>
    %4 = vector.shape_cast %3 : vector<1x1x1024x2048xi8> to vector<1024x2048xi8>
    %5 = arith.sitofp %4 : vector<1024x2048xi8> to vector<1024x2048xbf16>
    %c0_4 = arith.constant 0 : index
    %c0_5 = arith.constant 0 : index
    %6 = vector.load %arg10[%c0_4, %c0_5] : memref<8x1024xbf16, #tpu.memory_space<vmem>>, vector<8x1024xbf16>
    %cst = arith.constant dense<0.000000e+00> : vector<8x2048xf32>
    %7 = tpu.matmul %6, %5, %cst {dimension_numbers = #tpu.dot_dimension_numbers<[1], [0], [0], [1], [0, 0, 1, 1], [], []>} : vector<8x1024xbf16>, vector<1024x2048xbf16>, vector<8x2048xf32> -> vector<8x2048xf32>
    %c0_6 = arith.constant 0 : index
    %c0_7 = arith.constant 0 : index
    %c0_8 = arith.constant 0 : index
    %8 = vector.load %arg6[%c0_6, %c0_7, %c0_8] : memref<1x1x2048xf32, #tpu.memory_space<vmem>>, vector<1x1x2048xf32>
    %9 = vector.shape_cast %8 : vector<1x1x2048xf32> to vector<1x2048xf32>
    %10 = vector.broadcast %9 : vector<1x2048xf32> to vector<8x2048xf32>
    %11 = arith.mulf %7, %10 : vector<8x2048xf32>
    %c0_9 = arith.constant 0 : index
    %c0_10 = arith.constant 0 : index
    %c0_11 = arith.constant 0 : index
    %12 = vector.load %arg7[%c0_9, %c0_10, %c0_11] : memref<1x1x2048xf32, #tpu.memory_space<vmem>>, vector<1x1x2048xf32>
    %13 = vector.shape_cast %12 : vector<1x1x2048xf32> to vector<1x2048xf32>
    %14 = vector.broadcast %13 : vector<1x2048xf32> to vector<8x2048xf32>
    %15 = arith.addf %11, %14 : vector<8x2048xf32>
    %16 = arith.negf %15 : vector<8x2048xf32>
    %17 = math.exp %16 : vector<8x2048xf32>
    %cst_12 = arith.constant 1.000000e+00 : f32
    %18 = vector.broadcast %cst_12 : f32 to vector<8x2048xf32>
    %19 = arith.addf %18, %17 : vector<8x2048xf32>
    %20 = arith.divf %18, %19 : vector<8x2048xf32>
    %21 = arith.mulf %15, %20 : vector<8x2048xf32>
    %22 = arith.truncf %21 : vector<8x2048xf32> to vector<8x2048xbf16>
    %c0_13 = arith.constant 0 : index
    %c0_14 = arith.constant 0 : index
    %c0_15 = arith.constant 0 : index
    %23 = vector.load %arg8[%c0_13, %c0_14, %c0_15] : memref<1x2048x1024xi8, #tpu.memory_space<vmem>>, vector<1x2048x1024xi8>
    %24 = vector.shape_cast %23 : vector<1x2048x1024xi8> to vector<2048x1024xi8>
    %25 = arith.sitofp %24 : vector<2048x1024xi8> to vector<2048x1024xbf16>
    %c0_16 = arith.constant 0 : index
    %c0_17 = arith.constant 0 : index
    %c0_18 = arith.constant 0 : index
    %26 = vector.load %arg9[%c0_16, %c0_17, %c0_18] : memref<1x8x1024xf32, #tpu.memory_space<vmem>>, vector<1x8x1024xf32>
    %27 = vector.shape_cast %26 : vector<1x8x1024xf32> to vector<8x1024xf32>
    %cst_19 = arith.constant dense<0.000000e+00> : vector<8x1024xf32>
    %28 = tpu.matmul %22, %25, %cst_19 {dimension_numbers = #tpu.dot_dimension_numbers<[1], [0], [0], [1], [0, 0, 1, 1], [], []>} : vector<8x2048xbf16>, vector<2048x1024xbf16>, vector<8x1024xf32> -> vector<8x1024xf32>
    %29 = arith.addf %27, %28 : vector<8x1024xf32>
    %c0_20 = arith.constant 0 : index
    %c0_21 = arith.constant 0 : index
    %c0_22 = arith.constant 0 : index
    %30 = vector.load %arg9[%c0_20, %c0_21, %c0_22] : memref<1x8x1024xf32, #tpu.memory_space<vmem>>, vector<1x8x1024xf32>
    %31 = vector.shape_cast %30 : vector<1x8x1024xf32> to vector<8x1024xf32>
    %32 = vector.shape_cast %29 : vector<8x1024xf32> to vector<1x8x1024xf32>
    tpu.vector_store %arg9[%c0_20, %c0_21, %c0_22], %32 {strides = array<i32>} : memref<1x8x1024xf32, #tpu.memory_space<vmem>>, vector<1x8x1024xf32>,
    return
  }
  func.func @transform_0(%arg0: i32, %arg1: i32) -> (i32, i32, i32) {
    %c0_i32 = arith.constant 0 : i32
    %c0_i32_0 = arith.constant 0 : i32
    %c0_i32_1 = arith.constant 0 : i32
    return %arg0, %c0_i32, %c0_i32_0 : i32, i32, i32
  }
  func.func @transform_1(%arg0: i32, %arg1: i32) -> (i32, i32, i32) {
    %c0_i32 = arith.constant 0 : i32
    %c0_i32_0 = arith.constant 0 : i32
    %c0_i32_1 = arith.constant 0 : i32
    return %arg0, %c0_i32, %c0_i32_0 : i32, i32, i32
  }
  func.func @transform_2(%arg0: i32, %arg1: i32) -> (i32, i32, i32) {
    %c0_i32 = arith.constant 0 : i32
    %c0_i32_0 = arith.constant 0 : i32
    %c0_i32_1 = arith.constant 0 : i32
    return %arg0, %c0_i32, %c0_i32_0 : i32, i32, i32
  }
  func.func @transform_3(%arg0: i32, %arg1: i32) -> (i32, i32, i32, i32) {
    %c0_i32 = arith.constant 0 : i32
    %c0_i32_0 = arith.constant 0 : i32
    %c0_i32_1 = arith.constant 0 : i32
    return %arg0, %arg1, %c0_i32, %c0_i32_0 : i32, i32, i32, i32
  }
  func.func @transform_4(%arg0: i32, %arg1: i32) -> (i32, i32, i32) {
    %c0_i32 = arith.constant 0 : i32
    %c0_i32_0 = arith.constant 0 : i32
    return %arg0, %c0_i32, %arg1 : i32, i32, i32
  }
  func.func @transform_5(%arg0: i32, %arg1: i32) -> (i32, i32, i32) {
    %c0_i32 = arith.constant 0 : i32
    %c0_i32_0 = arith.constant 0 : i32
    return %arg0, %c0_i32, %arg1 : i32, i32, i32
  }
  func.func @transform_6(%arg0: i32, %arg1: i32) -> (i32, i32, i32) {
    %c0_i32 = arith.constant 0 : i32
    %c0_i32_0 = arith.constant 0 : i32
    return %arg0, %arg1, %c0_i32 : i32, i32, i32
  }
  func.func @transform_7(%arg0: i32, %arg1: i32) -> (i32, i32, i32) {
    %c0_i32 = arith.constant 0 : i32
    %c0_i32_0 = arith.constant 0 : i32
    %c0_i32_1 = arith.constant 0 : i32
    return %arg0, %c0_i32, %c0_i32_0 : i32, i32, i32
  }
}

</mosaic_0001>

<bundles_post_ra>
// kernel: tpu_custom_call.1
= control target key start
LH: loop header
LB: loop body
LE: loop exit
PB: predicated region body
PF: predicated region fallthrough
CT: control target
= control target key end

     0   :  { %s9767_s0 = inlined_call_operand.hbm [shape: f32[4,8,1024], index: 0, kind: input, shape index: {}]   ;;  %s9768_s1 = inlined_call_operand.hbm [shape: f32[4,1,1024], index: 1, kind: input, shape index: {}]   ;;  %s9769_s2 = inlined_call_operand.hbm [shape: f32[4,1,1024], index: 2, kind: input, shape index: {}]   ;;  %s9770_s3 = inlined_call_operand.hbm [shape: s8[4,2,1024,2048], index: 3, kind: input, shape index: {}]   ;;  %s9771_s4 = inlined_call_operand.hbm [shape: f32[4,1,4096], index: 4, kind: input, shape index: {}]   ;;  %s9772_s5 = inlined_call_operand.hbm [shape: f32[4,1,4096], index: 5, kind: input, shape index: {}]   ;;  %s9773_s6 = inlined_call_operand.hbm [shape: s8[4,4096,1024], index: 6, kind: input, shape index: {}]   ;;  %s9774_s7 = inlined_call_operand.hbm [shape: f32[4,8,1024], index: 7, kind: output, shape index: {}]  }
   0x1   :  { %9801 = sst [smem:[#allocation38_spill]] %s9768_s1 }
   0x2   :  { %9802 = sst [smem:[#allocation39_spill]] %s9769_s2 }
   0x3   :  { %9803 = sst [smem:[#allocation40_spill]] %s9770_s3 }
   0x4   :  { %9804 = sst [smem:[#allocation41_spill]] %s9774_s7 }
   0x5   :  { %12 = vsyncpa [#allocation4], 0 }
   0x6   :  { %14 = vsyncpa [#allocation4 + $0x1], 0 }
   0x7   :  { %15 = vsyncpa [#allocation7], 0 }
   0x8   :  { %17 = vsyncpa [#allocation7 + $0x1], 0 }
   0x9   :  { %18 = vsyncpa [#allocation10], 0 }
   0xa   :  { %20 = vsyncpa [#allocation10 + $0x1], 0 }
   0xb   :  { %21 = vsyncpa [#allocation13], 0 }
   0xc   :  { %23 = vsyncpa [#allocation13 + $0x1], 0 }
   0xd   :  { %24 = vsyncpa [#allocation5], 0 }
   0xe   :  { %26 = vsyncpa [#allocation5 + $0x1], 0  ;;  %s7793_s24 = smov 0   ;;  %s7795_s25 = smov 0  }
   0xf   :  { %s7797_s26 = smov 0   ;;  %s7799_s27 = smov 0  }
  0x10   :  { %s7801_s28 = smov 0   ;;  %s7803_s29 = smov 0  }
  0x11   :  { %s7805_s30 = smov 0   ;;  %s7807_s8 = smov 0  }
  0x12   :  { %s7809_s9 = smov 0   ;;  %s7811_s10 = smov 0  }
  0x13   :  { %s7813_s11 = smov 0  }
  0x14 LB: > { %9805 = sst [smem:[#allocation21_spill]] %s7702_s25  ;;  %s7847_s12 = sadd.s32 4294967295, %s7738_s11   ;;  %s7738_s11 = sphi %s7813_s11, %s32_s11   ;;  %s7734_s10 = sphi %s7811_s10, %s9874_s10   ;;  %s7730_s9 = sphi %s7809_s9, %s9873_s9   ;;  %s7726_s8 = sphi %s7807_s8, %s9872_s8   ;;  %s7722_s30 = sphi %s7805_s30, %s9871_s30   ;;  %s7718_s29 = sphi %s7803_s29, %s9866_s29   ;;  %s7714_s28 = sphi %s7801_s28, %s9865_s28   ;;  %s7710_s27 = sphi %s7799_s27, %s9864_s27   ;;  %s7706_s26 = sphi %s7797_s26, %s9870_s26   ;;  %s7702_s25 = sphi %s7795_s25, %s9869_s25   ;;  %s7698_s24 = sphi %s7793_s24, %s9862_s24  }
  0x15   : > { %9806 = sst [smem:[#allocation22_spill]] %s7710_s27  ;;  %s7080_s13 = sadd.s32 4294967294, %s7738_s11  }
  0x16   : > { %9807 = sst [smem:[#allocation23_spill]] %s7714_s28  ;;  %p58_p0 = scmp.ne.s32.totalorder %s7718_s29, %s7714_s28 }
  0x17   : > { %9808 = sst [smem:[#allocation24_spill]] %s7718_s29  ;;  %p59_p1 = scmp.eq.s32.totalorder %s7738_s11, 0 }
  0x18   : > { %9809 = sst [smem:[#allocation25_spill]] %s7722_s30  ;;  %p64_p2 = scmp.ne.s32.totalorder %s7714_s28, %s7710_s27 }
  0x19   : > { %9810 = sst [smem:[#allocation26_spill]] %s7726_s8  ;;  %p65_p3 = scmp.eq.s32.totalorder %s7847_s12, 0 }
  0x1a   : > { %9811 = sst [smem:[#allocation27_spill]] %s7738_s11  ;;  %p7861_p4 = por %p59_p1, %p58_p0 }
  0x1b   : > { %9812 = sst [smem:[#allocation28_spill]] %s7847_s12  ;;  %p7866_p5 = por %p65_p3, %p64_p2 }
  0x1c   : > { %p138_p6 = scmp.ne.s32.totalorder %s7706_s26, %s7702_s25  ;;  %p144_p7 = scmp.ne.s32.totalorder %s7702_s25, %s7698_s24 }
  0x1d   : > { %s9814_s18 = scalar_select %p7866_p5, 1, 0 }
  0x1e   : > { %p252_p8 = scmp.eq.s32.totalorder %s7847_s12, 7  ;;  %p7874_p9 = por %p138_p6, %p59_p1 }
  0x1f   : > { %9815 = sst [smem:[#allocation29_spill]] %s9814_s18  ;;  %p258_p10 = scmp.eq.s32.totalorder %s7080_s13, 7 }
  0x20   : > { %p7878_p11 = por %p144_p7, %p65_p3  ;;  %p7885_p12 = por %p252_p8, %p58_p0 }
  0x21   : > { %p7889_p13 = por %p258_p10, %p64_p2  ;;  %p7211_p5 = scmp.lt.s32.totalorder %s7738_s11, 8 }
  0x22   : > { %s9817_s20 = scalar_select %p7878_p11, 1, 0 }
  0x23   : > { %s9819_s21 = scalar_select %p7885_p12, 1, 0 }
  0x24   : > { %9818 = sst [smem:[#allocation30_spill]] %s9817_s20  ;;  %s7895_s23 = sand.u32 1, %s7718_s29  }
  0x25   : > { %9820 = sst [smem:[#allocation31_spill]] %s9819_s21  ;;  %s7898_s24 = sand.u32 1, %s7738_s11  }
  0x26   : > { %s9821_s22 = scalar_select %p7889_p13, 1, 0 }
  0x27   : > { %s9784_s13 = sshll.u32 %s7895_s23, 3  ;;  %p7905_p1 = pnand %p7211_p5, %p7861_p4 }
  0x28   : > { %9822 = sst [smem:[#allocation32_spill]] %s9821_s22  ;;  %s7161_s15 = sshll.u32 %s7734_s10, 7 }
  0x29   : > { %s9824_s1 = sld [smem:[#allocation38_spill]]  ;;  %s301_s7 = scalar_lea.vmem [#allocation6], %s9784_s13 }
  0x2a   : > { %s309_s21 = sshll.u32 %s301_s7, 4  ;;  %s9825_s2 = sld [smem:[#allocation39_spill]]  ;;  %s310_s21 = int_to_ptr.vmem [resolvable:$true] %s309_s21 }
  0x2b   : > { %s9785_s20 = scalar_lea.sflag [#allocation7], %s7898_s24  ;;  %p9796_p0 = pneg %p7905_p1 }
  0x2c   : > { %s7423_s25 = scalar_lea.vmem %s310_s21, 128  ;;  %s7740_s14 = smov [#allocation6]  }
  0x2d   : > { %p7424_p2 = scmp.ne.s32.totalorder %s310_s21, %s7423_s25  ;;  %s7428_s22 = sshll.u32 %s7740_s14, 4  ;;  %s7429_s22 = int_to_ptr.vmem [resolvable:$false] %s7428_s22 }
  0x2e   : > { %s7430_s13 = scalar_lea.vmem %s7429_s22, 256  ;;  %p7431_p6 = scmp.lt.s32.totalorder %s310_s21, %s7429_s22 }
  0x2f   : > { %s307_s27 = scalar_lea.hbm %s9824_s1, %s7161_s15  ;;  %p7426_p3 = pnand %p7424_p2, %p9796_p0 }
  0x30   : > { %s7918_s16 = scalar_lea.hbm %s9825_s2, %s7161_s15  ;;  %p7432_p7 = scmp.lt.s32.totalorder %s7430_s13, %s7423_s25 }
  0x31   : > { %p7427_p4 = pneg %p7426_p3 }
  0x32   : > { %p7433_p8 = por %p7432_p7, %p7431_p6 }
  0x34   : > { %p7434_p10 = pnand %p7433_p8, %p7427_p4 }
  0x36   : > { %7437 = shalt.err (!%p7434_p10)
}
  0x37   : > { %7191 = dma.hbm_to_vmem [thread:$0]  (!%p7905_p1), %s307_s27, 128, %s310_s21, %s9785_s20  }
  0x38   : > { %p7934_p2 = pnand %p7211_p5, %p7874_p9  ;;  %p7109_p3 = scmp.ge.s32.totalorder %s7738_s11, 1 }
  0x39   : > { %p422_p4 = scmp.lt.s32.totalorder %s7738_s11, 9  ;;  %s41_s30 = sadd.s32 1, %s7730_s9 }
  0x3a   : > { %s9790_s8 = sshll.u32 %s7734_s10, 10  ;;  %p42_p7 = scmp.ge.s32.totalorder %s41_s30, 2 }
  0x3b   : > { %p7940_p6 = pnand %p7109_p3, %p422_p4  ;;  %s9786_s15 = sand.u32 1, %s7706_s26  }
  0x3c   : > { %s7949_s13 = sshll.u32 %s9786_s15, 12  ;;  %s7093_s27 = sshll.u32 %s7730_s9, 9 }
  0x3d   : > { %s9827_s25 = scalar_select %p7940_p6, 1, 0 }
  0x3e   : > { %s9876_s30 = smov (%p42_p7, %s41_s30), 0  ;;  %s9830_s19 = sadd.s32 1, %s7734_s10 }
  0x3f   : > { %9828 = sst [smem:[#allocation33_spill]] %s9827_s25  ;;  %s9878_s19 = smov (!%p42_p7, %s9830_s19), %s7734_s10 }
  0x40   : > { %9829 = sst [smem:[#allocation34_spill]] %s9876_s30  ;;  %s127_s21 = ssub.s32 %s7730_s9, %s9876_s30 }
  0x41   : > { %p46_p5 = scmp.ge.s32.totalorder %s9878_s19, 4  ;;  %s7961_s14 = sadd.s32 %s9790_s8, %s7093_s27 }
  0x42   : > { %s7095_s22 = sshll.u32 %s7961_s14, 7  ;;  %s339_s20 = scalar_lea.vmem [#allocation9], %s7949_s13 }
  0x43   : > { %s348_s15 = sshll.u32 %s339_s20, 4  ;;  %s9880_s19 = smov (%p46_p5, %s9878_s19), 0  ;;  %s349_s15 = int_to_ptr.vmem [resolvable:$true] %s348_s15 }
  0x44   : > { %9831 = sst [smem:[#allocation35_spill]] %s9880_s19  ;;  %s48_s30 = ssub.s32 %s7734_s10, %s9880_s19 }
  0x45   : > { %s9832_s3 = sld [smem:[#allocation40_spill]]  ;;  %p49_p9 = scmp.eq.s32.totalorder %s48_s30, 0 }
  0x46   : > { %s128_s27 = sor.u32 %s127_s21, %s48_s30  ;;  %s9833_s8 = sadd.s32 1, %s7718_s29 }
  0x47   : > { %p129_p8 = scmp.eq.s32.totalorder %s128_s27, 0  ;;  %s9835_s18 = sadd.s32 1, %s7706_s26 }
  0x48   : > { %s7979_s12 = scalar_select %p49_p9, %s7718_s29, %s9833_s8  }
  0x49   : > { %s7984_s28 = scalar_select %p129_p8, %s7706_s26, %s9835_s18  }
  0x4a   : > { %9834 = sst [smem:[#allocation36_spill]] %s7979_s12  ;;  %s9799_s20 = scalar_lea.sflag [#allocation10], %s7898_s24 }
  0x4b   : > { %s7972_s11 = scalar_lea.hbm %s9832_s3, %s7095_s22  ;;  %9836 = sst [smem:[#allocation37_spill]] %s7984_s28 }
  0x4c   : > { %p9800_p10 = pneg %p7934_p2  ;;  %s7451_s25 = scalar_lea.vmem %s349_s15, 65536 }
  0x4d   : > { %p7452_p3 = scmp.ne.s32.totalorder %s349_s15, %s7451_s25  ;;  %s7741_s1 = smov [#allocation9]  }
  0x4e   : > { %s7456_s2 = sshll.u32 %s7741_s1, 4  ;;  %s7457_s2 = int_to_ptr.vmem [resolvable:$false] %s7456_s2 }
  0x4f   : > { %p7454_p4 = pnand %p7452_p3, %p9800_p10  ;;  %s7458_s30 = scalar_lea.vmem %s7457_s2, 131072 }
  0x50   : > { %p7459_p5 = scmp.lt.s32.totalorder %s349_s15, %s7457_s2  ;;  %p7460_p0 = scmp.lt.s32.totalorder %s7458_s30, %s7451_s25 }
  0x51   : > { %p7455_p7 = pneg %p7454_p4 }
  0x52   : > { %p7461_p9 = por %p7460_p0, %p7459_p5 }
  0x54   : > { %p7462_p13 = pnand %p7461_p9, %p7455_p7 }
  0x56   : > { %7465 = shalt.err (!%p7462_p13)
}
  0x57   : > { %s7742_s18 = smov 2048   ;;  %s7743_s8 = smov 128  }
  0x58   : > { %7197 = dma.hbm_to_vmem [thread:$0]  (!%p7934_p2), %s7972_s11, 65536, %s349_s15, %s9799_s20, %s7742_s18, %s7742_s18, %s7743_s8  }
  0x59   : > { %s8002_s27 = scalar_lea.hbm %s9773_s6, %s7095_s22  ;;  %s404_s1 = scalar_lea.vmem [#allocation14], %s7949_s13 }
  0x5a   : > { %s414_s2 = sshll.u32 %s404_s1, 4  ;;  %s9837_s30 = sand.u32 1, %s7706_s26   ;;  %s8009_s2 = int_to_ptr.vmem [resolvable:$true] %s414_s2 }
  0x5b   : > { %s8007_s3 = sshll.u32 %s9837_s30, 4  ;;  %s7097_s19 = sshll.u32 %s7730_s9, 4 }
  0x5c   : > { %s7098_s12 = sshll.u32 %s7734_s10, 5  ;;  %s383_s8 = scalar_lea.vmem [#allocation12], %s8007_s3 }
  0x5d   : > { %s368_s29 = sadd.s32 %s7098_s12, %s7097_s19  ;;  %s393_s21 = sshll.u32 %s383_s8, 4  ;;  %s394_s21 = int_to_ptr.vmem [resolvable:$true] %s393_s21 }
  0x5e   : > { %s7099_s28 = sshll.u32 %s368_s29, 4  ;;  %s380_s25 = scalar_lea.sflag [#allocation13], %s7898_s24 }
  0x5f   : > { %s8016_s14 = scalar_lea.hbm %s9771_s4, %s7099_s28  ;;  %s391_s13 = scalar_lea.hbm %s9772_s5, %s7099_s28 }
  0x60   : > { %s7479_s1 = scalar_lea.vmem %s394_s21, 256  ;;  %s7744_s29 = smov [#allocation12]  }
  0x61   : > { %p7480_p13 = scmp.ne.s32.totalorder %s394_s21, %s7479_s1  ;;  %s7484_s12 = sshll.u32 %s7744_s29, 4  ;;  %s7485_s12 = int_to_ptr.vmem [resolvable:$false] %s7484_s12 }
  0x62   : > { %s7486_s19 = scalar_lea.vmem %s7485_s12, 512  ;;  %p7487_p3 = scmp.lt.s32.totalorder %s394_s21, %s7485_s12 }
  0x63   : > { %p7482_p0 = pnand %p7480_p13, %p9800_p10  ;;  %p7488_p4 = scmp.lt.s32.totalorder %s7486_s19, %s7479_s1 }
  0x65   : > { %p7483_p8 = pneg %p7482_p0  ;;  %p7489_p7 = por %p7488_p4, %p7487_p3 }
  0x67   : > { %p7490_p5 = pnand %p7489_p7, %p7483_p8 }
  0x69   : > { %7493 = shalt.err (!%p7490_p5)
}
  0x6a   : > { %7203 = dma.hbm_to_vmem [thread:$0]  (!%p7934_p2), %s391_s13, 256, %s394_s21, %s380_s25  }
  0x6b   : > { %s7083_s28 = sshll.u32 %s7895_s23, 6  ;;  %s9838_s30 = sshll.u32 %s7734_s10, 10 }
  0x6c   : > { %s288_s22 = scalar_lea.hbm %s9767_s0, %s9838_s30  ;;  %s282_s18 = scalar_lea.vmem [#allocation3], %s7083_s28 }
  0x6d   : > { %s290_s8 = sshll.u32 %s282_s18, 4  ;;  %s9839_s1 = sshll.u32 %s7895_s23, 3  ;;  %s291_s8 = int_to_ptr.vmem [resolvable:$true] %s290_s8 }
  0x6e   : > { %s320_s29 = scalar_lea.vmem [#allocation8], %s9839_s1  ;;  %s279_s19 = scalar_lea.sflag [#allocation4], %s7895_s23 }
  0x6f   : > { %s328_s12 = sshll.u32 %s320_s29, 4  ;;  %s7507_s20 = scalar_lea.vmem %s291_s8, 1024  ;;  %s8038_s12 = int_to_ptr.vmem [resolvable:$true] %s328_s12 }
  0x70   : > { %p7508_p9 = scmp.ne.s32.totalorder %s291_s8, %s7507_s20  ;;  %p9840_p13 = pneg %p7905_p1 }
  0x71   : > { %s7745_s13 = smov [#allocation3]  }
  0x72   : > { %p7510_p0 = pnand %p7508_p9, %p9840_p13  ;;  %s7512_s21 = sshll.u32 %s7745_s13, 4  ;;  %s7513_s21 = int_to_ptr.vmem [resolvable:$false] %s7512_s21 }
  0x73   : > { %s7514_s11 = scalar_lea.vmem %s7513_s21, 2048  ;;  %p7515_p3 = scmp.lt.s32.totalorder %s291_s8, %s7513_s21 }
  0x74   : > { %p7511_p8 = pneg %p7510_p0  ;;  %p7516_p4 = scmp.lt.s32.totalorder %s7514_s11, %s7507_s20 }
  0x76   : > { %p7517_p7 = por %p7516_p4, %p7515_p3 }
  0x78   : > { %p7518_p5 = pnand %p7517_p7, %p7511_p8 }
  0x7a   : > { %7521 = shalt.err (!%p7518_p5)
}
  0x7b   : > { %7188 = dma.hbm_to_vmem [thread:$0]  (!%p7905_p1), %s288_s22, 1024, %s291_s8, %s279_s19  }
  0x7c   : > { %s7535_s23 = scalar_lea.vmem %s8038_s12, 128  ;;  %p9841_p9 = pmov %p9840_p13 }
  0x7d   : > { %p7536_p10 = scmp.ne.s32.totalorder %s8038_s12, %s7535_s23  ;;  %s7746_s28 = smov [#allocation8]  }
  0x7e   : > { %s7540_s30 = sshll.u32 %s7746_s28, 4  ;;  %s7541_s30 = int_to_ptr.vmem [resolvable:$false] %s7540_s30 }
  0x7f   : > { %p7538_p13 = pnand %p7536_p10, %p9841_p9  ;;  %s7542_s20 = scalar_lea.vmem %s7541_s30, 256 }
  0x80   : > { %p7543_p3 = scmp.lt.s32.totalorder %s8038_s12, %s7541_s30  ;;  %p7544_p8 = scmp.lt.s32.totalorder %s7542_s20, %s7535_s23 }
  0x81   : > { %p7539_p0 = pneg %p7538_p13 }
  0x82   : > { %p7545_p4 = por %p7544_p8, %p7543_p3 }
  0x84   : > { %p7546_p7 = pnand %p7545_p4, %p7539_p0 }
  0x86   : > { %7549 = shalt.err (!%p7546_p7)
}
  0x87   : > { %s9842_s15 = scalar_lea.sflag [#allocation7], %s7898_s24  ;;  %s362_s22 = scalar_lea.vmem [#allocation11], %s8007_s3 }
  0x88   : > { %7194 = dma.hbm_to_vmem [thread:$0]  (!%p7905_p1), %s7918_s16, 128, %s8038_s12, %s9842_s15  }
  0x89   : > { %s372_s18 = sshll.u32 %s362_s22, 4  ;;  %p9843_p5 = pneg %p7934_p2  ;;  %s373_s18 = int_to_ptr.vmem [resolvable:$true] %s372_s18 }
  0x8a   : > { %s7563_s8 = scalar_lea.vmem %s373_s18, 256  ;;  %s7747_s1 = smov [#allocation11]  }
  0x8b   : > { %p7564_p10 = scmp.ne.s32.totalorder %s373_s18, %s7563_s8  ;;  %s7568_s29 = sshll.u32 %s7747_s1, 4  ;;  %s7569_s29 = int_to_ptr.vmem [resolvable:$false] %s7568_s29 }
  0x8c   : > { %s7570_s17 = scalar_lea.vmem %s7569_s29, 512  ;;  %p7571_p0 = scmp.lt.s32.totalorder %s373_s18, %s7569_s29 }
  0x8d   : > { %p7566_p9 = pnand %p7564_p10, %p9843_p5  ;;  %p7572_p3 = scmp.lt.s32.totalorder %s7570_s17, %s7563_s8 }
  0x8f   : > { %p7567_p13 = pneg %p7566_p9  ;;  %p7573_p8 = por %p7572_p3, %p7571_p0 }
  0x91   : > { %p7574_p4 = pnand %p7573_p8, %p7567_p13 }
  0x93   : > { %7577 = shalt.err (!%p7574_p4)
}
  0x94   : > { %s9844_s3 = scalar_lea.sflag [#allocation10], %s7898_s24  ;;  %s7591_s16 = scalar_lea.vmem %s8009_s2, 65536 }
  0x95   : > { %7200 = dma.hbm_to_vmem [thread:$0]  (!%p7934_p2), %s8016_s14, 256, %s373_s18, %s9844_s3  }
  0x96   : > { %p7592_p1 = scmp.ne.s32.totalorder %s8009_s2, %s7591_s16  ;;  %p9845_p7 = pmov %p9843_p5 }
  0x97   : > { %s7748_s12 = smov [#allocation14]  }
  0x98   : > { %p7594_p10 = pnand %p7592_p1, %p9845_p7  ;;  %s7596_s19 = sshll.u32 %s7748_s12, 4  ;;  %s7597_s19 = int_to_ptr.vmem [resolvable:$false] %s7596_s19 }
  0x99   : > { %s7598_s13 = scalar_lea.vmem %s7597_s19, 131072  ;;  %p7599_p9 = scmp.lt.s32.totalorder %s8009_s2, %s7597_s19 }
  0x9a   : > { %p7595_p5 = pneg %p7594_p10  ;;  %p7600_p13 = scmp.lt.s32.totalorder %s7598_s13, %s7591_s16 }
  0x9c   : > { %p7601_p0 = por %p7600_p13, %p7599_p9 }
  0x9e   : > { %p7602_p3 = pnand %p7601_p0, %p7595_p5 }
  0xa0   : > { %7605 = shalt.err (!%p7602_p3)
}
  0xa1   : > { %s7749_s21 = smov 1024   ;;  %s7750_s14 = smov 64  }
  0xa2   : > { %7206 = dma.hbm_to_vmem [thread:$0]  (!%p7934_p2), %s8002_s27, 65536, %s8009_s2, %s380_s25, %s7749_s21, %s7749_s21, %s7750_s14  }
  0xa3   : > { %426 = sbr.rel (%p7940_p6) target bundleno = 2531 (0x9e3), region = 48  ;;  %s9847_s23 = sld [smem:[#allocation23_spill]] (!%p7940_p6) }
  0xa4   : > { %s9848_s28 = sld [smem:[#allocation29_spill]] (!%p7940_p6) }
  0xa9   : > { %s8082_s30 = sand.u32 1, %s9847_s23  }
  0xaa   : > { %s7110_s20 = sshll.u32 %s8082_s30, 6  ;;  %s429_s15 = scalar_lea.sflag [#allocation4], %s8082_s30 }
  0xab   : > { %s8086_s22 = scalar_lea.vmem [#allocation3], %s7110_s20  ;;  %p9849_p8 = scmp.ne.s32.totalorder %s9848_s28, 0 }
  0xad   : > { %7677 = dma.done.wait (%p9849_p8), %s429_s15, 1024  }
  0xae   : > { %7679 = vsyncadd (%p9849_p8), %s429_s15, 4294966272  ;;  %s9850_s24 = sld [smem:[#allocation28_spill]]  ;;  %s7111_s27 = sshll.u32 %s8082_s30, 3 }
  0xaf   : > { %s8094_s25 = scalar_lea.vmem [#allocation6], %s7111_s27 }
  0xb4   : > { %s437_s7 = sand.u32 1, %s9850_s24  }
  0xb5   : > { %s438_s2 = scalar_lea.sflag [#allocation7], %s437_s7 }
  0xb6   : > { %7681 = dma.done.wait (%p9849_p8), %s438_s2, 256  }
  0xb7   : > { %7683 = vsyncadd (%p9849_p8), %s438_s2, 4294967040  ;;  %s9851_s18 = sld [smem:[#allocation21_spill]]  ;;  %s450_s17 = scalar_lea.vmem [#allocation8], %s7111_s27 }
  0xb8   : > { %s456_s3 = scalar_lea.sflag [#allocation10], %s437_s7 }
  0xbd   : > { %s457_s1 = sand.u32 1, %s9851_s18  }
  0xbe   : > { %s7113_s29 = sshll.u32 %s457_s1, 12 }
  0xbf   : > { %s8101_s16 = scalar_lea.vmem [#allocation9], %s7113_s29 }
  0xc0   : > { %7685 = dma.done.wait (%p7878_p11), %s456_s3, 65792  }
  0xc1   : > { %7687 = vsyncadd (%p7878_p11), %s456_s3, 4294901504  ;;  %s8107_s12 = sshll.u32 %s457_s1, 4  ;;  %s474_s13 = scalar_lea.sflag [#allocation13], %s437_s7 }
  0xc2   : > { %s468_s19 = scalar_lea.vmem [#allocation11], %s8107_s12  ;;  %s477_s21 = scalar_lea.vmem [#allocation12], %s8107_s12 }
  0xc3   : > { %7689 = dma.done.wait (%p7878_p11), %s474_s13, 65792  }
  0xc4   : > { %7691 = vsyncadd (%p7878_p11), %s474_s13, 4294901504  ;;  %s8115_s14 = scalar_lea.vmem [#allocation14], %s7113_s29  ;;  %s8117_s11 = scalar_lea.vmem [#allocation15], %s7110_s20 }
  0xc5   : > { %s9853_s23 = sld [smem:[#allocation25_spill]] }
  0xcb   : > { %p7118_p2 = scmp.ne.s32.totalorder %s9853_s23, 0 }
  0xcd   : > { %553 = sbr.rel (%p7118_p2) target bundleno = 266 (0x10a), region = 80 }
  0xd2   : > { %v564_v0 = vlaneseq  ;;  %v7751_v1 = vmov 0.0   ;;  %v562_v3 = vld [vmem:[%s8094_s25] sm:$0xff]  ;;  %v612_v4 = vld [vmem:[%s450_s17] sm:$0xff] }
  0xd3   : > { %754 = vst [vmem:[%s8117_s11] sm:$0xff] %v7751_v1  ;;  %755 = vst [vmem:[%s8117_s11 + $0x8] sm:$0xff] %v7751_v1  ;;  %v554_v9 = vld [vmem:[%s8086_s22] sm:$0xff]  ;;  %v555_v10 = vld [vmem:[%s8086_s22 + $0x8] sm:$0xff] }
  0xd4   : > { %756 = vst [vmem:[%s8117_s11 + $0x10] sm:$0xff] %v7751_v1  ;;  %757 = vst [vmem:[%s8117_s11 + $0x18] sm:$0xff] %v7751_v1  ;;  %v565_v2 = vshrl.u32 %v564_v0, 7  ;;  %v556_v19 = vld [vmem:[%s8086_s22 + $0x10] sm:$0xff]  ;;  %v557_v20 = vld [vmem:[%s8086_s22 + $0x18] sm:$0xff] }
  0xd5   : > { %758 = vst [vmem:[%s8117_s11 + $0x20] sm:$0xff] %v7751_v1  ;;  %759 = vst [vmem:[%s8117_s11 + $0x28] sm:$0xff] %v7751_v1  ;;  %v558_v25 = vld [vmem:[%s8086_s22 + $0x20] sm:$0xff]  ;;  %v559_v26 = vld [vmem:[%s8086_s22 + $0x28] sm:$0xff] }
  0xd6   : > { %760 = vst [vmem:[%s8117_s11 + $0x30] sm:$0xff] %v7751_v1  ;;  %761 = vst [vmem:[%s8117_s11 + $0x38] sm:$0xff] %v7751_v1  ;;  %v566_v5 = vsub.s32 0, %v565_v2  ;;  %v570_v6 = vsub.s32 1, %v565_v2  ;;  %v574_v7 = vsub.s32 2, %v565_v2  ;;  %v578_v8 = vsub.s32 3, %v565_v2 }
  0xd7   : > { %v582_v11 = vsub.s32 4, %v565_v2  ;;  %v586_v12 = vsub.s32 5, %v565_v2  ;;  %v590_v13 = vsub.s32 6, %v565_v2  ;;  %v594_v14 = vsub.s32 7, %v565_v2  ;;  %v560_v39 = vld [vmem:[%s8086_s22 + $0x30] sm:$0xff]  ;;  %v561_v40 = vld [vmem:[%s8086_s22 + $0x38] sm:$0xff] }
  0xd8   : > { %v567_v15 = vrot.slane %v562_v3, %v566_v5  ;;  %v571_v16 = vrot.slane %v562_v3, %v570_v6  ;;  %v617_v17 = vrot.slane %v612_v4, %v566_v5  ;;  %v621_v18 = vrot.slane %v612_v4, %v570_v6 }
  0xd9   : > { %v575_v21 = vrot.slane %v562_v3, %v574_v7  ;;  %v579_v22 = vrot.slane %v562_v3, %v578_v8  ;;  %v625_v23 = vrot.slane %v612_v4, %v574_v7  ;;  %v629_v24 = vrot.slane %v612_v4, %v578_v8 }
  0xda   : > { %v604_v27 = vmul.f32 %v567_v15, %v554_v9  ;;  %v605_v28 = vmul.f32 %v571_v16, %v555_v10  ;;  %v583_v29 = vrot.slane %v562_v3, %v582_v11  ;;  %v587_v30 = vrot.slane %v562_v3, %v586_v12 }
  0xdb   : > { %v606_v31 = vmul.f32 %v575_v21, %v556_v19  ;;  %v607_v32 = vmul.f32 %v579_v22, %v557_v20  ;;  %v633_v33 = vrot.slane %v612_v4, %v582_v11  ;;  %v637_v34 = vrot.slane %v612_v4, %v586_v12 }
  0xdc   : > { %v654_v35 = vadd.f32 %v617_v17, %v604_v27  ;;  %v655_v36 = vadd.f32 %v621_v18, %v605_v28  ;;  %v608_v37 = vmul.f32 %v583_v29, %v558_v25  ;;  %v609_v38 = vmul.f32 %v587_v30, %v559_v26 }
  0xdd   : > { %v656_v41 = vadd.f32 %v625_v23, %v606_v31  ;;  %v657_v42 = vadd.f32 %v629_v24, %v607_v32  ;;  %v591_v43 = vrot.slane %v562_v3, %v590_v13  ;;  %v595_v44 = vrot.slane %v562_v3, %v594_v14 }
  0xde   : > { %v7119_v45 = vmul.f32 -1.442695, %v654_v35  ;;  %v7120_v46 = vmul.f32 -1.442695, %v655_v36  ;;  %v658_v47 = vadd.f32 %v633_v33, %v608_v37  ;;  %v659_v48 = vadd.f32 %v637_v34, %v609_v38 }
  0xdf   : > { %v7121_v49 = vmul.f32 -1.442695, %v656_v41  ;;  %v7122_v50 = vmul.f32 -1.442695, %v657_v42  ;;  %v610_v51 = vmul.f32 %v591_v43, %v560_v39  ;;  %v611_v52 = vmul.f32 %v595_v44, %v561_v40 }
  0xe0   : > { %7306 = vpow2.f32 %v7119_v45  ;;  %v7123_v53 = vmul.f32 -1.442695, %v658_v47  ;;  %v641_v54 = vrot.slane %v612_v4, %v590_v13  ;;  %v7124_v55 = vmul.f32 -1.442695, %v659_v48 }
  0xe1   : > { %7308 = vpow2.f32 %v7120_v46  ;;  %v645_v56 = vrot.slane %v612_v4, %v594_v14 }
  0xe2   : > { %7310 = vpow2.f32 %v7121_v49  ;;  %v660_v57 = vadd.f32 %v641_v54, %v610_v51 }
  0xe3   : > { %7312 = vpow2.f32 %v7122_v50  ;;  %v661_v58 = vadd.f32 %v645_v56, %v611_v52 }
  0xe4   : > { %7314 = vpow2.f32 %v7123_v53  ;;  %v7125_v59 = vmul.f32 -1.442695, %v660_v57 }
  0xe5   : > { %7316 = vpow2.f32 %v7124_v55  ;;  %v7126_v60 = vmul.f32 -1.442695, %v661_v58 }
  0xe6   : > { %7318 = vpow2.f32 %v7125_v59 }
  0xe7   : > { %7320 = vpow2.f32 %v7126_v60 }
  0xed   : > { %v7307_v61 = vpop.eup %7306 }
  0xee   : > { %v7309_v62 = vpop.eup %7308  ;;  %v686_v63 = vadd.f32 1.0, %v7307_v61 }
  0xef   : > { %v7311_v0 = vpop.eup %7310  ;;  %v687_v1 = vadd.f32 1.0, %v7309_v62 }
  0xf0   : > { %v7313_v2 = vpop.eup %7312  ;;  %7322 = vrcp.f32 %v686_v63  ;;  %v688_v3 = vadd.f32 1.0, %v7311_v0 }
  0xf1   : > { %v7315_v5 = vpop.eup %7314  ;;  %7324 = vrcp.f32 %v687_v1  ;;  %v689_v4 = vadd.f32 1.0, %v7313_v2 }
  0xf2   : > { %v7317_v6 = vpop.eup %7316  ;;  %7326 = vrcp.f32 %v688_v3  ;;  %v690_v7 = vadd.f32 1.0, %v7315_v5 }
  0xf3   : > { %v7319_v8 = vpop.eup %7318  ;;  %7328 = vrcp.f32 %v689_v4  ;;  %v691_v9 = vadd.f32 1.0, %v7317_v6 }
  0xf4   : > { %v7321_v10 = vpop.eup %7320  ;;  %7330 = vrcp.f32 %v690_v7  ;;  %v692_v11 = vadd.f32 1.0, %v7319_v8 }
  0xf5   : > { %7332 = vrcp.f32 %v691_v9  ;;  %v693_v12 = vadd.f32 1.0, %v7321_v10 }
  0xf6   : > { %7334 = vrcp.f32 %v692_v11 }
  0xf7   : > { %7336 = vrcp.f32 %v693_v12 }
  0xfd   : > { %v7323_v13 = vpop.eup %7322 }
  0xfe   : > { %v7325_v14 = vpop.eup %7324  ;;  %v710_v15 = vmul.f32 %v7323_v13, %v654_v35 }
  0xff   : > { %v7327_v16 = vpop.eup %7326  ;;  %v711_v17 = vmul.f32 %v7325_v14, %v655_v36 }
 0x100   : > { %v7329_v18 = vpop.eup %7328  ;;  %v712_v19 = vmul.f32 %v7327_v16, %v656_v41 }
 0x101   : > { %v7331_v20 = vpop.eup %7330  ;;  %v7164_v21 = vpack.c.bf16 %v711_v17, %v710_v15  ;;  %v713_v22 = vmul.f32 %v7329_v18, %v657_v42 }
 0x102   : > { %v7333_v23 = vpop.eup %7332  ;;  %v714_v24 = vmul.f32 %v7331_v20, %v658_v47 }
 0x103   : > { %v7335_v25 = vpop.eup %7334  ;;  %750 = vst [vmem:[#allocation2 + $0x10] sm:$0xff] %v7164_v21  ;;  %v7165_v26 = vpack.c.bf16 %v713_v22, %v712_v19  ;;  %v715_v27 = vmul.f32 %v7333_v23, %v659_v48 }
 0x104   : > { %v7337_v28 = vpop.eup %7336  ;;  %v716_v29 = vmul.f32 %v7335_v25, %v660_v57 }
 0x105   : > { %751 = vst [vmem:[#allocation2] sm:$0xff] %v7165_v26  ;;  %v7166_v30 = vpack.c.bf16 %v715_v27, %v714_v24  ;;  %v717_v31 = vmul.f32 %v7337_v28, %v661_v58 }
 0x107   : > { %752 = vst [vmem:[#allocation2 + $0x18] sm:$0xff] %v7166_v30  ;;  %v7167_v32 = vpack.c.bf16 %v717_v31, %v716_v29 }
 0x109   : > { %753 = vst [vmem:[#allocation2 + $0x8] sm:$0xff] %v7167_v32 }
 0x10a PF: > { %v811_v33 = vld [vmem:[%s8101_s16 + $0x188] sm:$0xff]  ;;  %v810_v35 = vld [vmem:[%s8101_s16 + $0x180] sm:$0xff]  ;;  %v8149_v63 = vld [vmem:[#allocation2 + $0x10] sm:$0xff]  ;;  %s9854_s28 = sld [smem:[#allocation26_spill]]  ;;  %s6857_s22 = sshll.u32 %s8117_s11, 4  ;;  %s6858_s22 = int_to_ptr.vmem [resolvable:$true] %s6857_s22 }
 0x10b   : > { %v939_v34 = vld [vmem:[%s8101_s16 + $0x588] sm:$0xff]  ;;  %v1371_v36 = vunpack.c.l.s8.bf16 %v811_v33  ;;  %v1387_v37 = vunpack.c.h.s8.bf16 %v811_v33  ;;  %v938_v40 = vld [vmem:[%s8101_s16 + $0x580] sm:$0xff]  ;;  %v1386_v41 = vunpack.c.h.s8.bf16 %v810_v35  ;;  %v1370_v45 = vunpack.c.l.s8.bf16 %v810_v35  ;;  %s9856_s27 = sld [smem:[#allocation41_spill]]  ;;  %s6843_s18 = scalar_lea.sflag [#allocation5], %s8082_s30 }
 0x10c   : > { %v1627_v38 = vunpack.c.l.s8.bf16 %v939_v34  ;;  %v1643_v39 = vunpack.c.h.s8.bf16 %v939_v34  ;;  %v1642_v42 = vunpack.c.h.s8.bf16 %v938_v40  ;;  %v795_v43 = vld [vmem:[%s8101_s16 + $0x108] sm:$0xff]  ;;  %v1626_v46 = vunpack.c.l.s8.bf16 %v938_v40  ;;  %v794_v49 = vld [vmem:[%s8101_s16 + $0x100] sm:$0xff]  ;;  %s7606_s8 = scalar_lea.vmem %s6858_s22, 1024  ;;  %s7752_s1 = smov [#allocation15]  }
 0x10d   : > { %v923_v44 = vld [vmem:[%s8101_s16 + $0x508] sm:$0xff]  ;;  %2330 = vmatprep.subr.bf16.mxu0 %v1387_v37  ;;  %v1355_v47 = vunpack.c.h.s8.bf16 %v795_v43  ;;  %v922_v50 = vld [vmem:[%s8101_s16 + $0x500] sm:$0xff]  ;;  %v1354_v51 = vunpack.c.h.s8.bf16 %v794_v49  ;;  %v1339_v53 = vunpack.c.l.s8.bf16 %v795_v43  ;;  %v1338_v57 = vunpack.c.l.s8.bf16 %v794_v49  ;;  %p7607_p11 = scmp.ne.s32.totalorder %s6858_s22, %s7606_s8  ;;  %s7610_s29 = sshll.u32 %s7752_s1, 4  ;;  %s7611_s29 = int_to_ptr.vmem [resolvable:$false] %s7610_s29 }
 0x10e   : > { %2371 = vmatprep.subr.bf16.mxu1 %v1643_v39  ;;  %2331 = vmatpush1.bf16.msra.mxu0 %v1386_v41  ;;  %v1611_v48 = vunpack.c.h.s8.bf16 %v923_v44  ;;  %v1610_v52 = vunpack.c.h.s8.bf16 %v922_v50  ;;  %v1595_v54 = vunpack.c.l.s8.bf16 %v923_v44  ;;  %v779_v55 = vld [vmem:[%s8101_s16 + $0x88] sm:$0xff]  ;;  %v1594_v58 = vunpack.c.l.s8.bf16 %v922_v50  ;;  %v778_v61 = vld [vmem:[%s8101_s16 + $0x80] sm:$0xff]  ;;  %s7612_s17 = scalar_lea.vmem %s7611_s29, 2048  ;;  %p7613_p1 = scmp.lt.s32.totalorder %s6858_s22, %s7611_s29 }
 0x10f   : > { %2372 = vmatpush1.bf16.msra.mxu1 %v1642_v42  ;;  %2332 = vmatprep.subr.bf16.mxu0 %v1371_v36  ;;  %v907_v56 = vld [vmem:[%s8101_s16 + $0x488] sm:$0xff]  ;;  %v1323_v59 = vunpack.c.h.s8.bf16 %v779_v55  ;;  %v906_v62 = vld [vmem:[%s8101_s16 + $0x480] sm:$0xff]  ;;  %v1322_v1 = vunpack.c.h.s8.bf16 %v778_v61  ;;  %v1307_v3 = vunpack.c.l.s8.bf16 %v779_v55  ;;  %v8155_v4 = vcombine.high %v8149_v63, %v8149_v63  ;;  %p7608_p6 = pnand %p7607_p11, %p7885_p12  ;;  %p7614_p7 = scmp.lt.s32.totalorder %s7612_s17, %s7606_s8 }
 0x110   : > { %2373 = vmatprep.subr.bf16.mxu1 %v1627_v38  ;;  %v1579_v60 = vunpack.c.h.s8.bf16 %v907_v56  ;;  %v8151_v0 = vld [vmem:[#allocation2] sm:$0xff]  ;;  %v1578_v2 = vunpack.c.h.s8.bf16 %v906_v62  ;;  %v1563_v5 = vunpack.c.l.s8.bf16 %v907_v56  ;;  %v763_v7 = vld [vmem:[%s8101_s16 + $0x8] sm:$0xff]  ;;  %v1306_v9 = vunpack.c.l.s8.bf16 %v778_v61  ;;  %s7168_s15 = sshll.u32 %s9854_s28, 10 }
 0x111   : > { %v8159_v6 = vcombine.high %v8151_v0, %v8151_v0  ;;  %v891_v8 = vld [vmem:[%s8101_s16 + $0x408] sm:$0xff]  ;;  %2362 = vmatprep.mubr.bf16.mxu0 %v8155_v4  ;;  %v1562_v10 = vunpack.c.l.s8.bf16 %v906_v62  ;;  %v1291_v11 = vunpack.c.h.s8.bf16 %v763_v7  ;;  %v762_v13 = vld [vmem:[%s8101_s16] sm:$0xff]  ;;  %v1275_v17 = vunpack.c.l.s8.bf16 %v763_v7  ;;  %s9857_s2 = smov %s9856_s27  ;;  %s6855_s25 = scalar_lea.hbm %s9856_s27, %s7168_s15 }
 0x112   : > { %2333 = vmatpush1.bf16.msra.mxu0 %v1370_v45  ;;  %v1547_v12 = vunpack.c.h.s8.bf16 %v891_v8  ;;  %v890_v14 = vld [vmem:[%s8101_s16 + $0x400] sm:$0xff]  ;;  %v1290_v15 = vunpack.c.h.s8.bf16 %v762_v13  ;;  %v1531_v18 = vunpack.c.l.s8.bf16 %v891_v8  ;;  %v875_v19 = vld [vmem:[%s8101_s16 + $0x388] sm:$0xff]  ;;  %v1274_v21 = vunpack.c.l.s8.bf16 %v762_v13  ;;  %p7609_p4 = pneg %p7608_p6  ;;  %p7615_p10 = por %p7614_p7, %p7613_p1 }
 0x113   : > { %2374 = vmatpush1.bf16.msra.mxu1 %v1626_v46  ;;  %2334 = vmatprep.subr.bf16.mxu0 %v1355_v47  ;;  %v1546_v16 = vunpack.c.h.s8.bf16 %v890_v14  ;;  %v1003_v20 = vld [vmem:[%s8101_s16 + $0x788] sm:$0xff]  ;;  %v1530_v22 = vunpack.c.l.s8.bf16 %v890_v14  ;;  %v1515_v23 = vunpack.c.h.s8.bf16 %v875_v19  ;;  %v874_v25 = vld [vmem:[%s8101_s16 + $0x380] sm:$0xff]  ;;  %v1499_v29 = vunpack.c.l.s8.bf16 %v875_v19 }
 0x114   : > { %2375 = vmatprep.subr.bf16.mxu1 %v1611_v48  ;;  %2403 = vmatprep.mubr.bf16.mxu1 %v8159_v6  ;;  %v1771_v24 = vunpack.c.h.s8.bf16 %v1003_v20  ;;  %v1002_v26 = vld [vmem:[%s8101_s16 + $0x780] sm:$0xff]  ;;  %v1514_v27 = vunpack.c.h.s8.bf16 %v874_v25  ;;  %v1755_v30 = vunpack.c.l.s8.bf16 %v1003_v20  ;;  %v859_v31 = vld [vmem:[%s8101_s16 + $0x308] sm:$0xff]  ;;  %v1498_v33 = vunpack.c.l.s8.bf16 %v874_v25  ;;  %p7616_p5 = pnand %p7615_p10, %p7609_p4 }
 0x115   : > { %v1770_v28 = vunpack.c.h.s8.bf16 %v1002_v26  ;;  %v987_v32 = vld [vmem:[%s8101_s16 + $0x708] sm:$0xff]  ;;  %v1754_v34 = vunpack.c.l.s8.bf16 %v1002_v26  ;;  %v1483_v35 = vunpack.c.h.s8.bf16 %v859_v31  ;;  %v858_v37 = vld [vmem:[%s8101_s16 + $0x300] sm:$0xff]  ;;  %v1467_v41 = vunpack.c.l.s8.bf16 %v859_v31 }
 0x116   : > { %2335 = vmatpush1.bf16.msra.mxu0 %v1354_v51  ;;  %v1739_v36 = vunpack.c.h.s8.bf16 %v987_v32  ;;  %v986_v38 = vld [vmem:[%s8101_s16 + $0x700] sm:$0xff]  ;;  %v1482_v39 = vunpack.c.h.s8.bf16 %v858_v37  ;;  %v1723_v42 = vunpack.c.l.s8.bf16 %v987_v32  ;;  %v843_v43 = vld [vmem:[%s8101_s16 + $0x288] sm:$0xff]  ;;  %v1466_v45 = vunpack.c.l.s8.bf16 %v858_v37 }
 0x117   : > { %2376 = vmatpush1.bf16.msra.mxu1 %v1610_v52  ;;  %2336 = vmatprep.subr.bf16.mxu0 %v1339_v53  ;;  %v1738_v40 = vunpack.c.h.s8.bf16 %v986_v38  ;;  %v971_v44 = vld [vmem:[%s8101_s16 + $0x688] sm:$0xff]  ;;  %v1722_v46 = vunpack.c.l.s8.bf16 %v986_v38  ;;  %v1451_v47 = vunpack.c.h.s8.bf16 %v843_v43  ;;  %v842_v49 = vld [vmem:[%s8101_s16 + $0x280] sm:$0xff]  ;;  %v1435_v53 = vunpack.c.l.s8.bf16 %v843_v43 }
 0x118   : > { %2377 = vmatprep.subr.bf16.mxu1 %v1595_v54  ;;  %v1707_v48 = vunpack.c.h.s8.bf16 %v971_v44  ;;  %v970_v50 = vld [vmem:[%s8101_s16 + $0x680] sm:$0xff]  ;;  %v1450_v51 = vunpack.c.h.s8.bf16 %v842_v49  ;;  %v1691_v54 = vunpack.c.l.s8.bf16 %v971_v44  ;;  %v827_v55 = vld [vmem:[%s8101_s16 + $0x208] sm:$0xff] }
 0x119   : > { %v1706_v52 = vunpack.c.h.s8.bf16 %v970_v50  ;;  %v955_v56 = vld [vmem:[%s8101_s16 + $0x608] sm:$0xff]  ;;  %v826_v61 = vld [vmem:[%s8101_s16 + $0x200] sm:$0xff] }
 0x11a   : > { %2337 = vmatpush1.bf16.msra.mxu0 %v1338_v57  ;;  %v1434_v57 = vunpack.c.l.s8.bf16 %v842_v49  ;;  %v954_v62 = vld [vmem:[%s8101_s16 + $0x600] sm:$0xff]  ;;  %v1067_v7 = vld [vmem:[%s8101_s16 + $0x988] sm:$0xff] }
 0x11b   : > { %2378 = vmatpush1.bf16.msra.mxu1 %v1594_v58  ;;  %2338 = vmatprep.subr.bf16.mxu0 %v1323_v59  ;;  %v1690_v58 = vunpack.c.l.s8.bf16 %v970_v50  ;;  %v1419_v59 = vunpack.c.h.s8.bf16 %v827_v55  ;;  %v1195_v8 = vld [vmem:[%s8101_s16 + $0xd88] sm:$0xff]  ;;  %v1066_v13 = vld [vmem:[%s8101_s16 + $0x980] sm:$0xff] }
 0x11c   : > { %2379 = vmatprep.subr.bf16.mxu1 %v1579_v60  ;;  %v1675_v60 = vunpack.c.h.s8.bf16 %v955_v56  ;;  %v1194_v14 = vld [vmem:[%s8101_s16 + $0xd80] sm:$0xff]  ;;  %v1898_v19 = vunpack.c.h.s8.bf16 %v1066_v13  ;;  %v1882_v25 = vunpack.c.l.s8.bf16 %v1066_v13 }
 0x11d   : > { %v2154_v20 = vunpack.c.h.s8.bf16 %v1194_v14  ;;  %v2138_v26 = vunpack.c.l.s8.bf16 %v1194_v14 }
 0x11e   : > { %2339 = vmatpush1.bf16.msra.mxu0 %v1322_v1  ;;  %v1418_v1 = vunpack.c.h.s8.bf16 %v826_v61 }
 0x11f   : > { %2380 = vmatpush1.bf16.msra.mxu1 %v1578_v2  ;;  %2340 = vmatprep.subr.bf16.mxu0 %v1307_v3  ;;  %v1674_v2 = vunpack.c.h.s8.bf16 %v954_v62  ;;  %v1403_v3 = vunpack.c.l.s8.bf16 %v827_v55 }
 0x120   : > { %2381 = vmatprep.subr.bf16.mxu1 %v1563_v5  ;;  %v1659_v5 = vunpack.c.l.s8.bf16 %v955_v56 }
 0x122   : > { %2341 = vmatpush1.bf16.msra.mxu0 %v1306_v9  ;;  %v1402_v9 = vunpack.c.l.s8.bf16 %v826_v61 }
 0x123   : > { %2382 = vmatpush1.bf16.msra.mxu1 %v1562_v10  ;;  %2342 = vmatprep.subr.bf16.mxu0 %v1291_v11  ;;  %v1658_v10 = vunpack.c.l.s8.bf16 %v954_v62  ;;  %v1899_v11 = vunpack.c.h.s8.bf16 %v1067_v7 }
 0x124   : > { %2383 = vmatprep.subr.bf16.mxu1 %v1547_v12  ;;  %v2155_v12 = vunpack.c.h.s8.bf16 %v1195_v8 }
 0x126   : > { %2343 = vmatpush1.bf16.msra.mxu0 %v1290_v15  ;;  %v8189_v15 = vcombine.low %v8149_v63, %v8149_v63  ;;  %v1051_v63 = vld [vmem:[%s8101_s16 + $0x908] sm:$0xff] }
 0x127   : > { %2384 = vmatpush1.bf16.msra.mxu1 %v1546_v16  ;;  %2344 = vmatprep.subr.bf16.mxu0 %v1275_v17  ;;  %v8193_v16 = vcombine.low %v8151_v0, %v8151_v0  ;;  %v8195_v17 = vld [vmem:[#allocation2 + $0x18] sm:$0xff] }
 0x128   : > { %2385 = vmatprep.subr.bf16.mxu1 %v1531_v18  ;;  %v8197_v18 = vld [vmem:[#allocation2 + $0x8] sm:$0xff]  ;;  %v8203_v0 = vcombine.high %v8195_v17, %v8195_v17 }
 0x12a   : > { %2345 = vmatpush1.bf16.msra.mxu0 %v1274_v21  ;;  %v1883_v21 = vunpack.c.l.s8.bf16 %v1067_v7 }
 0x12b   : > { %2386 = vmatpush1.bf16.msra.mxu1 %v1530_v22  ;;  %2346 = vmatprep.subr.bf16.mxu0 %v1515_v23  ;;  %v2139_v22 = vunpack.c.l.s8.bf16 %v1195_v8  ;;  %v1179_v23 = vld [vmem:[%s8101_s16 + $0xd08] sm:$0xff] }
 0x12c   : > { %2387 = vmatprep.subr.bf16.mxu1 %v1771_v24  ;;  %v8207_v24 = vcombine.high %v8197_v18, %v8197_v18 }
 0x12e   : > { %2347 = vmatpush2.bf16.msra.mxu0 %v1514_v27  ;;  %v1867_v27 = vunpack.c.h.s8.bf16 %v1051_v63 }
 0x12f   : > { %2388 = vmatpush2.bf16.msra.mxu1 %v1770_v28  ;;  %2348 = vmatprep.subr.bf16.mxu0 %v1499_v29  ;;  %v2123_v28 = vunpack.c.h.s8.bf16 %v1179_v23  ;;  %v1050_v29 = vld [vmem:[%s8101_s16 + $0x900] sm:$0xff] }
 0x130   : > { %2389 = vmatprep.subr.bf16.mxu1 %v1755_v30  ;;  %v1178_v30 = vld [vmem:[%s8101_s16 + $0xd00] sm:$0xff]  ;;  %v1866_v31 = vunpack.c.h.s8.bf16 %v1050_v29  ;;  %v1850_v37 = vunpack.c.l.s8.bf16 %v1050_v29 }
 0x131   : > { %v2122_v32 = vunpack.c.h.s8.bf16 %v1178_v30  ;;  %v2106_v38 = vunpack.c.l.s8.bf16 %v1178_v30 }
 0x132   : > { %2349 = vmatpush2.bf16.msra.mxu0 %v1498_v33  ;;  %v1851_v33 = vunpack.c.l.s8.bf16 %v1051_v63 }
 0x133   : > { %2390 = vmatpush2.bf16.msra.mxu1 %v1754_v34  ;;  %2350 = vmatprep.subr.bf16.mxu0 %v1483_v35  ;;  %v2107_v34 = vunpack.c.l.s8.bf16 %v1179_v23  ;;  %v1035_v35 = vld [vmem:[%s8101_s16 + $0x888] sm:$0xff] }
 0x134   : > { %2391 = vmatprep.subr.bf16.mxu1 %v1739_v36  ;;  %v1163_v36 = vld [vmem:[%s8101_s16 + $0xc88] sm:$0xff] }
 0x136   : > { %2351 = vmatpush2.bf16.msra.mxu0 %v1482_v39  ;;  %v1835_v39 = vunpack.c.h.s8.bf16 %v1035_v35 }
 0x137   : > { %2392 = vmatpush2.bf16.msra.mxu1 %v1738_v40  ;;  %2352 = vmatprep.subr.bf16.mxu0 %v1467_v41  ;;  %v2091_v40 = vunpack.c.h.s8.bf16 %v1163_v36  ;;  %v1034_v41 = vld [vmem:[%s8101_s16 + $0x880] sm:$0xff] }
 0x138   : > { %2393 = vmatprep.subr.bf16.mxu1 %v1723_v42  ;;  %v1162_v42 = vld [vmem:[%s8101_s16 + $0xc80] sm:$0xff]  ;;  %v1834_v43 = vunpack.c.h.s8.bf16 %v1034_v41  ;;  %v1818_v49 = vunpack.c.l.s8.bf16 %v1034_v41 }
 0x139   : > { %v2090_v44 = vunpack.c.h.s8.bf16 %v1162_v42  ;;  %v2074_v50 = vunpack.c.l.s8.bf16 %v1162_v42 }
 0x13a   : > { %2353 = vmatpush2.bf16.msra.mxu0 %v1466_v45  ;;  %v1819_v45 = vunpack.c.l.s8.bf16 %v1035_v35 }
 0x13b   : > { %2394 = vmatpush2.bf16.msra.mxu1 %v1722_v46  ;;  %2354 = vmatprep.subr.bf16.mxu0 %v1451_v47  ;;  %v2075_v46 = vunpack.c.l.s8.bf16 %v1163_v36  ;;  %v1019_v47 = vld [vmem:[%s8101_s16 + $0x808] sm:$0xff] }
 0x13c   : > { %2395 = vmatprep.subr.bf16.mxu1 %v1707_v48  ;;  %v1147_v48 = vld [vmem:[%s8101_s16 + $0xc08] sm:$0xff] }
 0x13e   : > { %2355 = vmatpush2.bf16.msra.mxu0 %v1450_v51  ;;  %v1803_v51 = vunpack.c.h.s8.bf16 %v1019_v47 }
 0x13f   : > { %2396 = vmatpush2.bf16.msra.mxu1 %v1706_v52  ;;  %2356 = vmatprep.subr.bf16.mxu0 %v1435_v53  ;;  %v2059_v52 = vunpack.c.h.s8.bf16 %v1147_v48  ;;  %v1018_v53 = vld [vmem:[%s8101_s16 + $0x800] sm:$0xff] }
 0x140   : > { %2397 = vmatprep.subr.bf16.mxu1 %v1691_v54  ;;  %v1146_v54 = vld [vmem:[%s8101_s16 + $0xc00] sm:$0xff]  ;;  %v1802_v55 = vunpack.c.h.s8.bf16 %v1018_v53  ;;  %v1786_v61 = vunpack.c.l.s8.bf16 %v1018_v53 }
 0x141   : > { %v2058_v56 = vunpack.c.h.s8.bf16 %v1146_v54  ;;  %v2042_v62 = vunpack.c.l.s8.bf16 %v1146_v54 }
 0x142   : > { %2357 = vmatpush2.bf16.msra.mxu0 %v1434_v57  ;;  %v1787_v57 = vunpack.c.l.s8.bf16 %v1019_v47 }
 0x143   : > { %2398 = vmatpush2.bf16.msra.mxu1 %v1690_v58  ;;  %2358 = vmatprep.subr.bf16.mxu0 %v1419_v59  ;;  %v2043_v58 = vunpack.c.l.s8.bf16 %v1147_v48  ;;  %v1131_v59 = vld [vmem:[%s8101_s16 + $0xb88] sm:$0xff] }
 0x144   : > { %2399 = vmatprep.subr.bf16.mxu1 %v1675_v60  ;;  %v1259_v60 = vld [vmem:[%s8101_s16 + $0xf88] sm:$0xff] }
 0x146   : > { %2359 = vmatpush2.bf16.msra.mxu0 %v1418_v1  ;;  %v2027_v1 = vunpack.c.h.s8.bf16 %v1131_v59 }
 0x147   : > { %2400 = vmatpush2.bf16.msra.mxu1 %v1674_v2  ;;  %2360 = vmatprep.subr.bf16.mxu0 %v1403_v3  ;;  %v2283_v2 = vunpack.c.h.s8.bf16 %v1259_v60  ;;  %v1130_v3 = vld [vmem:[%s8101_s16 + $0xb80] sm:$0xff] }
 0x148   : > { %2401 = vmatprep.subr.bf16.mxu1 %v1659_v5  ;;  %v1258_v5 = vld [vmem:[%s8101_s16 + $0xf80] sm:$0xff]  ;;  %v2026_v7 = vunpack.c.h.s8.bf16 %v1130_v3  ;;  %v2010_v13 = vunpack.c.l.s8.bf16 %v1130_v3  ;;  %v797_v3 = vld [vmem:[%s8101_s16 + $0x118] sm:$0xff] }
 0x149   : > { %v2282_v8 = vunpack.c.h.s8.bf16 %v1258_v5  ;;  %v2266_v14 = vunpack.c.l.s8.bf16 %v1258_v5  ;;  %v925_v5 = vld [vmem:[%s8101_s16 + $0x518] sm:$0xff] }
 0x14a   : > { %2361 = vmatpush2.bf16.msra.mxu0 %v1402_v9  ;;  %v2011_v9 = vunpack.c.l.s8.bf16 %v1131_v59  ;;  %v8245_v59 = vcombine.low %v8195_v17, %v8195_v17 }
 0x14b   : > { %2402 = vmatpush2.bf16.msra.mxu1 %v1658_v10  ;;  %2412 = vmatprep.subr.bf16.mxu0 %v1899_v11  ;;  %v2267_v10 = vunpack.c.l.s8.bf16 %v1259_v60  ;;  %v1115_v11 = vld [vmem:[%s8101_s16 + $0xb08] sm:$0xff]  ;;  %v8249_v60 = vcombine.low %v8197_v18, %v8197_v18 }
 0x14c   : > { %2453 = vmatprep.subr.bf16.mxu1 %v2155_v12  ;;  %v1243_v12 = vld [vmem:[%s8101_s16 + $0xf08] sm:$0xff] }
 0x14d   : > { %2363 = vmatmul.mubr.bf16.vlgmr.msra.gmra.mxu0 %v8189_v15 }
 0x14e   : > { %2404 = vmatmul.mubr.bf16.vlgmr.msra.gmra.mxu1 %v8193_v16  ;;  %2413 = vmatpush1.bf16.msra.mxu0 %v1898_v19  ;;  %v1995_v19 = vunpack.c.h.s8.bf16 %v1115_v11 }
 0x14f   : > { %2454 = vmatpush1.bf16.msra.mxu1 %v2154_v20  ;;  %2414 = vmatprep.subr.bf16.mxu0 %v1883_v21  ;;  %v2251_v20 = vunpack.c.h.s8.bf16 %v1243_v12  ;;  %v1114_v21 = vld [vmem:[%s8101_s16 + $0xb00] sm:$0xff] }
 0x150   : > { %2455 = vmatprep.subr.bf16.mxu1 %v2139_v22  ;;  %2444 = vmatprep.mubr.bf16.mxu0 %v8203_v0  ;;  %v1242_v22 = vld [vmem:[%s8101_s16 + $0xf00] sm:$0xff]  ;;  %v1994_v63 = vunpack.c.h.s8.bf16 %v1114_v21  ;;  %v1978_v29 = vunpack.c.l.s8.bf16 %v1114_v21 }
 0x151   : > { %2485 = vmatprep.mubr.bf16.mxu1 %v8207_v24  ;;  %v2250_v23 = vunpack.c.h.s8.bf16 %v1242_v22  ;;  %v2234_v30 = vunpack.c.l.s8.bf16 %v1242_v22 }
 0x152   : > { %2415 = vmatpush1.bf16.msra.mxu0 %v1882_v25  ;;  %v1979_v25 = vunpack.c.l.s8.bf16 %v1115_v11 }
 0x153   : > { %2456 = vmatpush1.bf16.msra.mxu1 %v2138_v26  ;;  %2416 = vmatprep.subr.bf16.mxu0 %v1867_v27  ;;  %v2235_v26 = vunpack.c.l.s8.bf16 %v1243_v12  ;;  %v1099_v27 = vld [vmem:[%s8101_s16 + $0xa88] sm:$0xff] }
 0x154   : > { %2457 = vmatprep.subr.bf16.mxu1 %v2123_v28  ;;  %v1227_v28 = vld [vmem:[%s8101_s16 + $0xe88] sm:$0xff] }
 0x156   : > { %2417 = vmatpush1.bf16.msra.mxu0 %v1866_v31  ;;  %v1963_v31 = vunpack.c.h.s8.bf16 %v1099_v27 }
 0x157   : > { %2458 = vmatpush1.bf16.msra.mxu1 %v2122_v32  ;;  %2418 = vmatprep.subr.bf16.mxu0 %v1851_v33  ;;  %v2219_v32 = vunpack.c.h.s8.bf16 %v1227_v28  ;;  %v1098_v33 = vld [vmem:[%s8101_s16 + $0xa80] sm:$0xff] }
 0x158   : > { %2459 = vmatprep.subr.bf16.mxu1 %v2107_v34  ;;  %v1226_v34 = vld [vmem:[%s8101_s16 + $0xe80] sm:$0xff]  ;;  %v1962_v35 = vunpack.c.h.s8.bf16 %v1098_v33  ;;  %v1946_v41 = vunpack.c.l.s8.bf16 %v1098_v33 }
 0x159   : > { %v2218_v36 = vunpack.c.h.s8.bf16 %v1226_v34  ;;  %v2202_v42 = vunpack.c.l.s8.bf16 %v1226_v34 }
 0x15a   : > { %2419 = vmatpush1.bf16.msra.mxu0 %v1850_v37  ;;  %v1947_v37 = vunpack.c.l.s8.bf16 %v1099_v27 }
 0x15b   : > { %2460 = vmatpush1.bf16.msra.mxu1 %v2106_v38  ;;  %2420 = vmatprep.subr.bf16.mxu0 %v1835_v39  ;;  %v2203_v38 = vunpack.c.l.s8.bf16 %v1227_v28  ;;  %v1083_v39 = vld [vmem:[%s8101_s16 + $0xa08] sm:$0xff] }
 0x15c   : > { %2461 = vmatprep.subr.bf16.mxu1 %v2091_v40  ;;  %v1211_v40 = vld [vmem:[%s8101_s16 + $0xe08] sm:$0xff] }
 0x15e   : > { %2421 = vmatpush1.bf16.msra.mxu0 %v1834_v43  ;;  %v1931_v43 = vunpack.c.h.s8.bf16 %v1083_v39 }
 0x15f   : > { %2462 = vmatpush1.bf16.msra.mxu1 %v2090_v44  ;;  %2422 = vmatprep.subr.bf16.mxu0 %v1819_v45  ;;  %v2187_v44 = vunpack.c.h.s8.bf16 %v1211_v40  ;;  %v1082_v45 = vld [vmem:[%s8101_s16 + $0xa00] sm:$0xff] }
 0x160   : > { %2463 = vmatprep.subr.bf16.mxu1 %v2075_v46  ;;  %v1210_v46 = vld [vmem:[%s8101_s16 + $0xe00] sm:$0xff]  ;;  %v1930_v47 = vunpack.c.h.s8.bf16 %v1082_v45  ;;  %v1914_v53 = vunpack.c.l.s8.bf16 %v1082_v45 }
 0x161   : > { %v2186_v48 = vunpack.c.h.s8.bf16 %v1210_v46  ;;  %v2170_v54 = vunpack.c.l.s8.bf16 %v1210_v46 }
 0x162   : > { %2423 = vmatpush1.bf16.msra.mxu0 %v1818_v49  ;;  %v1915_v49 = vunpack.c.l.s8.bf16 %v1083_v39 }
 0x163   : > { %2464 = vmatpush1.bf16.msra.mxu1 %v2074_v50  ;;  %2424 = vmatprep.subr.bf16.mxu0 %v1803_v51  ;;  %v2171_v50 = vunpack.c.l.s8.bf16 %v1211_v40  ;;  %v813_v51 = vld [vmem:[%s8101_s16 + $0x198] sm:$0xff] }
 0x164   : > { %2465 = vmatprep.subr.bf16.mxu1 %v2059_v52  ;;  %v941_v52 = vld [vmem:[%s8101_s16 + $0x598] sm:$0xff] }
 0x166   : > { %2425 = vmatpush1.bf16.msra.mxu0 %v1802_v55  ;;  %v1389_v55 = vunpack.c.h.s8.bf16 %v813_v51 }
 0x167   : > { %2466 = vmatpush1.bf16.msra.mxu1 %v2058_v56  ;;  %2426 = vmatprep.subr.bf16.mxu0 %v1787_v57  ;;  %v1645_v56 = vunpack.c.h.s8.bf16 %v941_v52  ;;  %v812_v57 = vld [vmem:[%s8101_s16 + $0x190] sm:$0xff] }
 0x168   : > { %2467 = vmatprep.subr.bf16.mxu1 %v2043_v58  ;;  %v940_v58 = vld [vmem:[%s8101_s16 + $0x590] sm:$0xff]  ;;  %v1372_v17 = vunpack.c.l.s8.bf16 %v812_v57 }
 0x169   : > { %v1628_v18 = vunpack.c.l.s8.bf16 %v940_v58 }
 0x16a   : > { %2427 = vmatpush1.bf16.msra.mxu0 %v1786_v61  ;;  %v1388_v61 = vunpack.c.h.s8.bf16 %v812_v57 }
 0x16b   : > { %2468 = vmatpush1.bf16.msra.mxu1 %v2042_v62  ;;  %2428 = vmatprep.subr.bf16.mxu0 %v2027_v1  ;;  %v1644_v62 = vunpack.c.h.s8.bf16 %v940_v58  ;;  %v1373_v1 = vunpack.c.l.s8.bf16 %v813_v51 }
 0x16c   : > { %2469 = vmatprep.subr.bf16.mxu1 %v2283_v2  ;;  %v1629_v2 = vunpack.c.l.s8.bf16 %v941_v52 }
 0x16e   : > { %2429 = vmatpush2.bf16.msra.mxu0 %v2026_v7  ;;  %v1357_v7 = vunpack.c.h.s8.bf16 %v797_v3 }
 0x16f   : > { %2470 = vmatpush2.bf16.msra.mxu1 %v2282_v8  ;;  %2430 = vmatprep.subr.bf16.mxu0 %v2011_v9  ;;  %v1613_v8 = vunpack.c.h.s8.bf16 %v925_v5  ;;  %v796_v9 = vld [vmem:[%s8101_s16 + $0x110] sm:$0xff] }
 0x170   : > { %2471 = vmatprep.subr.bf16.mxu1 %v2267_v10  ;;  %v924_v10 = vld [vmem:[%s8101_s16 + $0x510] sm:$0xff]  ;;  %v1356_v11 = vunpack.c.h.s8.bf16 %v796_v9  ;;  %v1340_v21 = vunpack.c.l.s8.bf16 %v796_v9 }
 0x171   : > { %v1612_v12 = vunpack.c.h.s8.bf16 %v924_v10  ;;  %v1596_v22 = vunpack.c.l.s8.bf16 %v924_v10 }
 0x172   : > { %2431 = vmatpush2.bf16.msra.mxu0 %v2010_v13  ;;  %v1341_v13 = vunpack.c.l.s8.bf16 %v797_v3 }
 0x173   : > { %2472 = vmatpush2.bf16.msra.mxu1 %v2266_v14  ;;  %2432 = vmatprep.subr.bf16.mxu0 %v1995_v19  ;;  %v1597_v14 = vunpack.c.l.s8.bf16 %v925_v5  ;;  %v781_v19 = vld [vmem:[%s8101_s16 + $0x98] sm:$0xff] }
 0x174   : > { %2473 = vmatprep.subr.bf16.mxu1 %v2251_v20  ;;  %v909_v20 = vld [vmem:[%s8101_s16 + $0x498] sm:$0xff] }
 0x176   : > { %2433 = vmatpush2.bf16.msra.mxu0 %v1994_v63  ;;  %v1325_v63 = vunpack.c.h.s8.bf16 %v781_v19 }
 0x177   : > { %2474 = vmatpush2.bf16.msra.mxu1 %v2250_v23  ;;  %2434 = vmatprep.subr.bf16.mxu0 %v1979_v25  ;;  %v1581_v23 = vunpack.c.h.s8.bf16 %v909_v20  ;;  %v780_v25 = vld [vmem:[%s8101_s16 + $0x90] sm:$0xff] }
 0x178   : > { %2475 = vmatprep.subr.bf16.mxu1 %v2235_v26  ;;  %v908_v26 = vld [vmem:[%s8101_s16 + $0x490] sm:$0xff]  ;;  %v1324_v27 = vunpack.c.h.s8.bf16 %v780_v25  ;;  %v1308_v33 = vunpack.c.l.s8.bf16 %v780_v25 }
 0x179   : > { %v1580_v28 = vunpack.c.h.s8.bf16 %v908_v26  ;;  %v1564_v34 = vunpack.c.l.s8.bf16 %v908_v26 }
 0x17a   : > { %2435 = vmatpush2.bf16.msra.mxu0 %v1978_v29  ;;  %v1309_v29 = vunpack.c.l.s8.bf16 %v781_v19 }
 0x17b   : > { %2476 = vmatpush2.bf16.msra.mxu1 %v2234_v30  ;;  %2436 = vmatprep.subr.bf16.mxu0 %v1963_v31  ;;  %v1565_v30 = vunpack.c.l.s8.bf16 %v909_v20  ;;  %v765_v31 = vld [vmem:[%s8101_s16 + $0x18] sm:$0xff] }
 0x17c   : > { %2477 = vmatprep.subr.bf16.mxu1 %v2219_v32  ;;  %v893_v32 = vld [vmem:[%s8101_s16 + $0x418] sm:$0xff] }
 0x17e   : > { %2437 = vmatpush2.bf16.msra.mxu0 %v1962_v35  ;;  %v1293_v35 = vunpack.c.h.s8.bf16 %v765_v31 }
 0x17f   : > { %2478 = vmatpush2.bf16.msra.mxu1 %v2218_v36  ;;  %2438 = vmatprep.subr.bf16.mxu0 %v1947_v37  ;;  %v1549_v36 = vunpack.c.h.s8.bf16 %v893_v32  ;;  %v764_v37 = vld [vmem:[%s8101_s16 + $0x10] sm:$0xff] }
 0x180   : > { %2479 = vmatprep.subr.bf16.mxu1 %v2203_v38  ;;  %v892_v38 = vld [vmem:[%s8101_s16 + $0x410] sm:$0xff]  ;;  %v1292_v39 = vunpack.c.h.s8.bf16 %v764_v37  ;;  %v1276_v45 = vunpack.c.l.s8.bf16 %v764_v37 }
 0x181   : > { %v1548_v40 = vunpack.c.h.s8.bf16 %v892_v38  ;;  %v1532_v46 = vunpack.c.l.s8.bf16 %v892_v38 }
 0x182   : > { %2439 = vmatpush2.bf16.msra.mxu0 %v1946_v41  ;;  %v1277_v41 = vunpack.c.l.s8.bf16 %v765_v31 }
 0x183   : > { %2480 = vmatpush2.bf16.msra.mxu1 %v2202_v42  ;;  %2440 = vmatprep.subr.bf16.mxu0 %v1931_v43  ;;  %v1533_v42 = vunpack.c.l.s8.bf16 %v893_v32  ;;  %v877_v43 = vld [vmem:[%s8101_s16 + $0x398] sm:$0xff] }
 0x184   : > { %2481 = vmatprep.subr.bf16.mxu1 %v2187_v44  ;;  %v1005_v44 = vld [vmem:[%s8101_s16 + $0x798] sm:$0xff] }
 0x186   : > { %2441 = vmatpush2.bf16.msra.mxu0 %v1930_v47  ;;  %v1517_v47 = vunpack.c.h.s8.bf16 %v877_v43 }
 0x187   : > { %2482 = vmatpush2.bf16.msra.mxu1 %v2186_v48  ;;  %2442 = vmatprep.subr.bf16.mxu0 %v1915_v49  ;;  %v1773_v48 = vunpack.c.h.s8.bf16 %v1005_v44  ;;  %v876_v49 = vld [vmem:[%s8101_s16 + $0x390] sm:$0xff] }
 0x188   : > { %2483 = vmatprep.subr.bf16.mxu1 %v2171_v50  ;;  %v1004_v50 = vld [vmem:[%s8101_s16 + $0x790] sm:$0xff]  ;;  %v1516_v51 = vunpack.c.h.s8.bf16 %v876_v49  ;;  %v1500_v57 = vunpack.c.l.s8.bf16 %v876_v49 }
 0x189   : > { %v1772_v52 = vunpack.c.h.s8.bf16 %v1004_v50  ;;  %v1756_v58 = vunpack.c.l.s8.bf16 %v1004_v50 }
 0x18a   : > { %2443 = vmatpush2.bf16.msra.mxu0 %v1914_v53  ;;  %v1501_v53 = vunpack.c.l.s8.bf16 %v877_v43 }
 0x18b   : > { %2484 = vmatpush2.bf16.msra.mxu1 %v2170_v54  ;;  %2494 = vmatprep.subr.bf16.mxu0 %v1389_v55  ;;  %v1757_v54 = vunpack.c.l.s8.bf16 %v1005_v44  ;;  %v861_v55 = vld [vmem:[%s8101_s16 + $0x318] sm:$0xff] }
 0x18c   : > { %2535 = vmatprep.subr.bf16.mxu1 %v1645_v56  ;;  %v989_v56 = vld [vmem:[%s8101_s16 + $0x718] sm:$0xff] }
 0x18d   : > { %2445 = vmatmul.mubr.bf16.vlgmr.msra.gmra.mxu0 %v8245_v59 }
 0x18e   : > { %2486 = vmatmul.mubr.bf16.vlgmr.msra.gmra.mxu1 %v8249_v60  ;;  %2495 = vmatpush1.bf16.msra.mxu0 %v1388_v61  ;;  %v1485_v61 = vunpack.c.h.s8.bf16 %v861_v55 }
 0x18f   : > { %2536 = vmatpush1.bf16.msra.mxu1 %v1644_v62  ;;  %2496 = vmatprep.subr.bf16.mxu0 %v1373_v1  ;;  %v1741_v62 = vunpack.c.h.s8.bf16 %v989_v56  ;;  %v860_v1 = vld [vmem:[%s8101_s16 + $0x310] sm:$0xff] }
 0x190   : > { %2537 = vmatprep.subr.bf16.mxu1 %v1629_v2  ;;  %2526 = vmatprep.mubr.bf16.mxu0 %v8155_v4  ;;  %v988_v2 = vld [vmem:[%s8101_s16 + $0x710] sm:$0xff]  ;;  %v1484_v3 = vunpack.c.h.s8.bf16 %v860_v1  ;;  %v1468_v9 = vunpack.c.l.s8.bf16 %v860_v1 }
 0x191   : > { %2567 = vmatprep.mubr.bf16.mxu1 %v8159_v6  ;;  %v1740_v5 = vunpack.c.h.s8.bf16 %v988_v2  ;;  %v1724_v10 = vunpack.c.l.s8.bf16 %v988_v2 }
 0x192   : > { %2497 = vmatpush1.bf16.msra.mxu0 %v1372_v17  ;;  %v1469_v17 = vunpack.c.l.s8.bf16 %v861_v55 }
 0x193   : > { %2538 = vmatpush1.bf16.msra.mxu1 %v1628_v18  ;;  %2498 = vmatprep.subr.bf16.mxu0 %v1357_v7  ;;  %v1725_v18 = vunpack.c.l.s8.bf16 %v989_v56  ;;  %v845_v7 = vld [vmem:[%s8101_s16 + $0x298] sm:$0xff] }
 0x194   : > { %2539 = vmatprep.subr.bf16.mxu1 %v1613_v8  ;;  %v973_v8 = vld [vmem:[%s8101_s16 + $0x698] sm:$0xff] }
 0x196   : > { %2499 = vmatpush1.bf16.msra.mxu0 %v1356_v11  ;;  %v1453_v11 = vunpack.c.h.s8.bf16 %v845_v7 }
 0x197   : > { %2540 = vmatpush1.bf16.msra.mxu1 %v1612_v12  ;;  %2500 = vmatprep.subr.bf16.mxu0 %v1341_v13  ;;  %v1709_v12 = vunpack.c.h.s8.bf16 %v973_v8  ;;  %v844_v13 = vld [vmem:[%s8101_s16 + $0x290] sm:$0xff] }
 0x198   : > { %2541 = vmatprep.subr.bf16.mxu1 %v1597_v14  ;;  %v972_v14 = vld [vmem:[%s8101_s16 + $0x690] sm:$0xff]  ;;  %v1452_v19 = vunpack.c.h.s8.bf16 %v844_v13  ;;  %v1436_v25 = vunpack.c.l.s8.bf16 %v844_v13 }
 0x199   : > { %v1708_v20 = vunpack.c.h.s8.bf16 %v972_v14  ;;  %v1692_v26 = vunpack.c.l.s8.bf16 %v972_v14 }
 0x19a   : > { %2501 = vmatpush1.bf16.msra.mxu0 %v1340_v21  ;;  %v1437_v21 = vunpack.c.l.s8.bf16 %v845_v7 }
 0x19b   : > { %2542 = vmatpush1.bf16.msra.mxu1 %v1596_v22  ;;  %2502 = vmatprep.subr.bf16.mxu0 %v1325_v63  ;;  %v1693_v22 = vunpack.c.l.s8.bf16 %v973_v8  ;;  %v829_v63 = vld [vmem:[%s8101_s16 + $0x218] sm:$0xff] }
 0x19c   : > { %2543 = vmatprep.subr.bf16.mxu1 %v1581_v23  ;;  %v957_v23 = vld [vmem:[%s8101_s16 + $0x618] sm:$0xff] }
 0x19e   : > { %2503 = vmatpush1.bf16.msra.mxu0 %v1324_v27  ;;  %v1421_v27 = vunpack.c.h.s8.bf16 %v829_v63 }
 0x19f   : > { %2544 = vmatpush1.bf16.msra.mxu1 %v1580_v28  ;;  %2504 = vmatprep.subr.bf16.mxu0 %v1309_v29  ;;  %v1677_v28 = vunpack.c.h.s8.bf16 %v957_v23  ;;  %v828_v29 = vld [vmem:[%s8101_s16 + $0x210] sm:$0xff] }
 0x1a0   : > { %2545 = vmatprep.subr.bf16.mxu1 %v1565_v30  ;;  %v956_v30 = vld [vmem:[%s8101_s16 + $0x610] sm:$0xff]  ;;  %v1420_v31 = vunpack.c.h.s8.bf16 %v828_v29  ;;  %v1404_v37 = vunpack.c.l.s8.bf16 %v828_v29 }
 0x1a1   : > { %v1676_v32 = vunpack.c.h.s8.bf16 %v956_v30  ;;  %v1660_v38 = vunpack.c.l.s8.bf16 %v956_v30 }
 0x1a2   : > { %2505 = vmatpush1.bf16.msra.mxu0 %v1308_v33  ;;  %v1405_v33 = vunpack.c.l.s8.bf16 %v829_v63 }
 0x1a3   : > { %2546 = vmatpush1.bf16.msra.mxu1 %v1564_v34  ;;  %2506 = vmatprep.subr.bf16.mxu0 %v1293_v35  ;;  %v1661_v34 = vunpack.c.l.s8.bf16 %v957_v23  ;;  %v1069_v35 = vld [vmem:[%s8101_s16 + $0x998] sm:$0xff] }
 0x1a4   : > { %2547 = vmatprep.subr.bf16.mxu1 %v1549_v36  ;;  %v1197_v36 = vld [vmem:[%s8101_s16 + $0xd98] sm:$0xff] }
 0x1a6   : > { %2507 = vmatpush1.bf16.msra.mxu0 %v1292_v39  ;;  %v1901_v39 = vunpack.c.h.s8.bf16 %v1069_v35 }
 0x1a7   : > { %2548 = vmatpush1.bf16.msra.mxu1 %v1548_v40  ;;  %2508 = vmatprep.subr.bf16.mxu0 %v1277_v41  ;;  %v2157_v40 = vunpack.c.h.s8.bf16 %v1197_v36  ;;  %v1068_v41 = vld [vmem:[%s8101_s16 + $0x990] sm:$0xff] }
 0x1a8   : > { %2549 = vmatprep.subr.bf16.mxu1 %v1533_v42  ;;  %v1196_v42 = vld [vmem:[%s8101_s16 + $0xd90] sm:$0xff]  ;;  %v1900_v43 = vunpack.c.h.s8.bf16 %v1068_v41  ;;  %v1884_v49 = vunpack.c.l.s8.bf16 %v1068_v41 }
 0x1a9   : > { %v2156_v44 = vunpack.c.h.s8.bf16 %v1196_v42  ;;  %v2140_v50 = vunpack.c.l.s8.bf16 %v1196_v42 }
 0x1aa   : > { %2509 = vmatpush1.bf16.msra.mxu0 %v1276_v45  ;;  %v1885_v45 = vunpack.c.l.s8.bf16 %v1069_v35 }
 0x1ab   : > { %2550 = vmatpush1.bf16.msra.mxu1 %v1532_v46  ;;  %2510 = vmatprep.subr.bf16.mxu0 %v1517_v47  ;;  %v2141_v46 = vunpack.c.l.s8.bf16 %v1197_v36  ;;  %v1053_v47 = vld [vmem:[%s8101_s16 + $0x918] sm:$0xff] }
 0x1ac   : > { %2551 = vmatprep.subr.bf16.mxu1 %v1773_v48  ;;  %v1181_v48 = vld [vmem:[%s8101_s16 + $0xd18] sm:$0xff] }
 0x1ae   : > { %2511 = vmatpush2.bf16.msra.mxu0 %v1516_v51  ;;  %v1869_v51 = vunpack.c.h.s8.bf16 %v1053_v47 }
 0x1af   : > { %2552 = vmatpush2.bf16.msra.mxu1 %v1772_v52  ;;  %2512 = vmatprep.subr.bf16.mxu0 %v1501_v53  ;;  %v2125_v52 = vunpack.c.h.s8.bf16 %v1181_v48  ;;  %v1052_v53 = vld [vmem:[%s8101_s16 + $0x910] sm:$0xff] }
 0x1b0   : > { %2553 = vmatprep.subr.bf16.mxu1 %v1757_v54  ;;  %v1180_v54 = vld [vmem:[%s8101_s16 + $0xd10] sm:$0xff]  ;;  %v1868_v55 = vunpack.c.h.s8.bf16 %v1052_v53  ;;  %v1852_v1 = vunpack.c.l.s8.bf16 %v1052_v53 }
 0x1b1   : > { %v2124_v56 = vunpack.c.h.s8.bf16 %v1180_v54  ;;  %v2108_v2 = vunpack.c.l.s8.bf16 %v1180_v54 }
 0x1b2   : > { %2513 = vmatpush2.bf16.msra.mxu0 %v1500_v57  ;;  %v1853_v57 = vunpack.c.l.s8.bf16 %v1053_v47 }
 0x1b3   : > { %2554 = vmatpush2.bf16.msra.mxu1 %v1756_v58  ;;  %2514 = vmatprep.subr.bf16.mxu0 %v1485_v61  ;;  %v2109_v58 = vunpack.c.l.s8.bf16 %v1181_v48  ;;  %v1037_v61 = vld [vmem:[%s8101_s16 + $0x898] sm:$0xff] }
 0x1b4   : > { %2555 = vmatprep.subr.bf16.mxu1 %v1741_v62  ;;  %v1165_v62 = vld [vmem:[%s8101_s16 + $0xc98] sm:$0xff] }
 0x1b6   : > { %2515 = vmatpush2.bf16.msra.mxu0 %v1484_v3  ;;  %v1837_v3 = vunpack.c.h.s8.bf16 %v1037_v61 }
 0x1b7   : > { %2556 = vmatpush2.bf16.msra.mxu1 %v1740_v5  ;;  %2516 = vmatprep.subr.bf16.mxu0 %v1469_v17  ;;  %v2093_v5 = vunpack.c.h.s8.bf16 %v1165_v62  ;;  %v1036_v17 = vld [vmem:[%s8101_s16 + $0x890] sm:$0xff] }
 0x1b8   : > { %2557 = vmatprep.subr.bf16.mxu1 %v1725_v18  ;;  %v1164_v18 = vld [vmem:[%s8101_s16 + $0xc90] sm:$0xff]  ;;  %v1836_v7 = vunpack.c.h.s8.bf16 %v1036_v17  ;;  %v1820_v13 = vunpack.c.l.s8.bf16 %v1036_v17 }
 0x1b9   : > { %v2092_v8 = vunpack.c.h.s8.bf16 %v1164_v18  ;;  %v2076_v14 = vunpack.c.l.s8.bf16 %v1164_v18 }
 0x1ba   : > { %2517 = vmatpush2.bf16.msra.mxu0 %v1468_v9  ;;  %v1821_v9 = vunpack.c.l.s8.bf16 %v1037_v61 }
 0x1bb   : > { %2558 = vmatpush2.bf16.msra.mxu1 %v1724_v10  ;;  %2518 = vmatprep.subr.bf16.mxu0 %v1453_v11  ;;  %v2077_v10 = vunpack.c.l.s8.bf16 %v1165_v62  ;;  %v1021_v11 = vld [vmem:[%s8101_s16 + $0x818] sm:$0xff] }
 0x1bc   : > { %2559 = vmatprep.subr.bf16.mxu1 %v1709_v12  ;;  %v1149_v12 = vld [vmem:[%s8101_s16 + $0xc18] sm:$0xff] }
 0x1be   : > { %2519 = vmatpush2.bf16.msra.mxu0 %v1452_v19  ;;  %v1805_v19 = vunpack.c.h.s8.bf16 %v1021_v11 }
 0x1bf   : > { %2560 = vmatpush2.bf16.msra.mxu1 %v1708_v20  ;;  %2520 = vmatprep.subr.bf16.mxu0 %v1437_v21  ;;  %v2061_v20 = vunpack.c.h.s8.bf16 %v1149_v12  ;;  %v1020_v21 = vld [vmem:[%s8101_s16 + $0x810] sm:$0xff] }
 0x1c0   : > { %2561 = vmatprep.subr.bf16.mxu1 %v1693_v22  ;;  %v1148_v22 = vld [vmem:[%s8101_s16 + $0xc10] sm:$0xff]  ;;  %v1804_v63 = vunpack.c.h.s8.bf16 %v1020_v21  ;;  %v1788_v29 = vunpack.c.l.s8.bf16 %v1020_v21 }
 0x1c1   : > { %v2060_v23 = vunpack.c.h.s8.bf16 %v1148_v22  ;;  %v2044_v30 = vunpack.c.l.s8.bf16 %v1148_v22 }
 0x1c2   : > { %2521 = vmatpush2.bf16.msra.mxu0 %v1436_v25  ;;  %v1789_v25 = vunpack.c.l.s8.bf16 %v1021_v11 }
 0x1c3   : > { %2562 = vmatpush2.bf16.msra.mxu1 %v1692_v26  ;;  %2522 = vmatprep.subr.bf16.mxu0 %v1421_v27  ;;  %v2045_v26 = vunpack.c.l.s8.bf16 %v1149_v12  ;;  %v1133_v27 = vld [vmem:[%s8101_s16 + $0xb98] sm:$0xff] }
 0x1c4   : > { %2563 = vmatprep.subr.bf16.mxu1 %v1677_v28  ;;  %v1261_v28 = vld [vmem:[%s8101_s16 + $0xf98] sm:$0xff] }
 0x1c6   : > { %2523 = vmatpush2.bf16.msra.mxu0 %v1420_v31  ;;  %v2029_v31 = vunpack.c.h.s8.bf16 %v1133_v27 }
 0x1c7   : > { %2564 = vmatpush2.bf16.msra.mxu1 %v1676_v32  ;;  %2524 = vmatprep.subr.bf16.mxu0 %v1405_v33  ;;  %v2285_v32 = vunpack.c.h.s8.bf16 %v1261_v28  ;;  %v1132_v33 = vld [vmem:[%s8101_s16 + $0xb90] sm:$0xff] }
 0x1c8   : > { %2565 = vmatprep.subr.bf16.mxu1 %v1661_v34  ;;  %v1260_v34 = vld [vmem:[%s8101_s16 + $0xf90] sm:$0xff]  ;;  %v2028_v35 = vunpack.c.h.s8.bf16 %v1132_v33  ;;  %v2012_v41 = vunpack.c.l.s8.bf16 %v1132_v33 }
 0x1c9   : > { %v2284_v36 = vunpack.c.h.s8.bf16 %v1260_v34  ;;  %v2268_v42 = vunpack.c.l.s8.bf16 %v1260_v34 }
 0x1ca   : > { %2525 = vmatpush2.bf16.msra.mxu0 %v1404_v37  ;;  %v2013_v37 = vunpack.c.l.s8.bf16 %v1133_v27 }
 0x1cb   : > { %2566 = vmatpush2.bf16.msra.mxu1 %v1660_v38  ;;  %2576 = vmatprep.subr.bf16.mxu0 %v1901_v39  ;;  %v2269_v38 = vunpack.c.l.s8.bf16 %v1261_v28  ;;  %v1117_v39 = vld [vmem:[%s8101_s16 + $0xb18] sm:$0xff] }
 0x1cc   : > { %2617 = vmatprep.subr.bf16.mxu1 %v2157_v40  ;;  %v1245_v40 = vld [vmem:[%s8101_s16 + $0xf18] sm:$0xff] }
 0x1cd   : > { %2527 = vmatmul.mubr.bf16.vlgmr.msra.gmra.mxu0 %v8189_v15 }
 0x1ce   : > { %2568 = vmatmul.mubr.bf16.vlgmr.msra.gmra.mxu1 %v8193_v16  ;;  %2577 = vmatpush1.bf16.msra.mxu0 %v1900_v43  ;;  %v1997_v43 = vunpack.c.h.s8.bf16 %v1117_v39 }
 0x1cf   : > { %2618 = vmatpush1.bf16.msra.mxu1 %v2156_v44  ;;  %2578 = vmatprep.subr.bf16.mxu0 %v1885_v45  ;;  %v2253_v44 = vunpack.c.h.s8.bf16 %v1245_v40  ;;  %v1116_v45 = vld [vmem:[%s8101_s16 + $0xb10] sm:$0xff] }
 0x1d0   : > { %2619 = vmatprep.subr.bf16.mxu1 %v2141_v46  ;;  %2608 = vmatprep.mubr.bf16.mxu0 %v8203_v0  ;;  %v1244_v46 = vld [vmem:[%s8101_s16 + $0xf10] sm:$0xff]  ;;  %v1996_v47 = vunpack.c.h.s8.bf16 %v1116_v45  ;;  %v1980_v53 = vunpack.c.l.s8.bf16 %v1116_v45 }
 0x1d1   : > { %2649 = vmatprep.mubr.bf16.mxu1 %v8207_v24  ;;  %v2252_v48 = vunpack.c.h.s8.bf16 %v1244_v46  ;;  %v2236_v54 = vunpack.c.l.s8.bf16 %v1244_v46 }
 0x1d2   : > { %2579 = vmatpush1.bf16.msra.mxu0 %v1884_v49  ;;  %v1981_v49 = vunpack.c.l.s8.bf16 %v1117_v39 }
 0x1d3   : > { %2620 = vmatpush1.bf16.msra.mxu1 %v2140_v50  ;;  %2580 = vmatprep.subr.bf16.mxu0 %v1869_v51  ;;  %v2237_v50 = vunpack.c.l.s8.bf16 %v1245_v40  ;;  %v1101_v51 = vld [vmem:[%s8101_s16 + $0xa98] sm:$0xff] }
 0x1d4   : > { %2621 = vmatprep.subr.bf16.mxu1 %v2125_v52  ;;  %v1229_v52 = vld [vmem:[%s8101_s16 + $0xe98] sm:$0xff] }
 0x1d6   : > { %2581 = vmatpush1.bf16.msra.mxu0 %v1868_v55  ;;  %v1965_v55 = vunpack.c.h.s8.bf16 %v1101_v51 }
 0x1d7   : > { %2622 = vmatpush1.bf16.msra.mxu1 %v2124_v56  ;;  %2582 = vmatprep.subr.bf16.mxu0 %v1853_v57  ;;  %v2221_v56 = vunpack.c.h.s8.bf16 %v1229_v52  ;;  %v1100_v57 = vld [vmem:[%s8101_s16 + $0xa90] sm:$0xff] }
 0x1d8   : > { %2623 = vmatprep.subr.bf16.mxu1 %v2109_v58  ;;  %v1228_v58 = vld [vmem:[%s8101_s16 + $0xe90] sm:$0xff]  ;;  %v1964_v61 = vunpack.c.h.s8.bf16 %v1100_v57  ;;  %v1948_v17 = vunpack.c.l.s8.bf16 %v1100_v57 }
 0x1d9   : > { %v2220_v62 = vunpack.c.h.s8.bf16 %v1228_v58  ;;  %v2204_v18 = vunpack.c.l.s8.bf16 %v1228_v58 }
 0x1da   : > { %2583 = vmatpush1.bf16.msra.mxu0 %v1852_v1  ;;  %v1949_v1 = vunpack.c.l.s8.bf16 %v1101_v51 }
 0x1db   : > { %2624 = vmatpush1.bf16.msra.mxu1 %v2108_v2  ;;  %2584 = vmatprep.subr.bf16.mxu0 %v1837_v3  ;;  %v2205_v2 = vunpack.c.l.s8.bf16 %v1229_v52  ;;  %v1085_v3 = vld [vmem:[%s8101_s16 + $0xa18] sm:$0xff] }
 0x1dc   : > { %2625 = vmatprep.subr.bf16.mxu1 %v2093_v5  ;;  %v1213_v5 = vld [vmem:[%s8101_s16 + $0xe18] sm:$0xff] }
 0x1de   : > { %2585 = vmatpush1.bf16.msra.mxu0 %v1836_v7  ;;  %v1933_v7 = vunpack.c.h.s8.bf16 %v1085_v3 }
 0x1df   : > { %2626 = vmatpush1.bf16.msra.mxu1 %v2092_v8  ;;  %2586 = vmatprep.subr.bf16.mxu0 %v1821_v9  ;;  %v2189_v8 = vunpack.c.h.s8.bf16 %v1213_v5  ;;  %v1084_v9 = vld [vmem:[%s8101_s16 + $0xa10] sm:$0xff] }
 0x1e0   : > { %2627 = vmatprep.subr.bf16.mxu1 %v2077_v10  ;;  %v1212_v10 = vld [vmem:[%s8101_s16 + $0xe10] sm:$0xff]  ;;  %v1932_v11 = vunpack.c.h.s8.bf16 %v1084_v9  ;;  %v1916_v21 = vunpack.c.l.s8.bf16 %v1084_v9 }
 0x1e1   : > { %v2188_v12 = vunpack.c.h.s8.bf16 %v1212_v10  ;;  %v2172_v22 = vunpack.c.l.s8.bf16 %v1212_v10 }
 0x1e2   : > { %2587 = vmatpush1.bf16.msra.mxu0 %v1820_v13  ;;  %v1917_v13 = vunpack.c.l.s8.bf16 %v1085_v3 }
 0x1e3   : > { %2628 = vmatpush1.bf16.msra.mxu1 %v2076_v14  ;;  %2588 = vmatprep.subr.bf16.mxu0 %v1805_v19  ;;  %v2173_v14 = vunpack.c.l.s8.bf16 %v1213_v5  ;;  %v815_v19 = vld [vmem:[%s8101_s16 + $0x1a8] sm:$0xff] }
 0x1e4   : > { %2629 = vmatprep.subr.bf16.mxu1 %v2061_v20  ;;  %v943_v20 = vld [vmem:[%s8101_s16 + $0x5a8] sm:$0xff] }
 0x1e6   : > { %2589 = vmatpush1.bf16.msra.mxu0 %v1804_v63  ;;  %v1391_v63 = vunpack.c.h.s8.bf16 %v815_v19 }
 0x1e7   : > { %2630 = vmatpush1.bf16.msra.mxu1 %v2060_v23  ;;  %2590 = vmatprep.subr.bf16.mxu0 %v1789_v25  ;;  %v1647_v23 = vunpack.c.h.s8.bf16 %v943_v20  ;;  %v814_v25 = vld [vmem:[%s8101_s16 + $0x1a0] sm:$0xff] }
 0x1e8   : > { %2631 = vmatprep.subr.bf16.mxu1 %v2045_v26  ;;  %v942_v26 = vld [vmem:[%s8101_s16 + $0x5a0] sm:$0xff]  ;;  %v1390_v27 = vunpack.c.h.s8.bf16 %v814_v25 }
 0x1e9   : > { %v1646_v28 = vunpack.c.h.s8.bf16 %v942_v26 }
 0x1ea   : > { %2591 = vmatpush1.bf16.msra.mxu0 %v1788_v29  ;;  %v1375_v29 = vunpack.c.l.s8.bf16 %v815_v19 }
 0x1eb   : > { %2632 = vmatpush1.bf16.msra.mxu1 %v2044_v30  ;;  %2592 = vmatprep.subr.bf16.mxu0 %v2029_v31  ;;  %v1631_v30 = vunpack.c.l.s8.bf16 %v943_v20  ;;  %v799_v31 = vld [vmem:[%s8101_s16 + $0x128] sm:$0xff] }
 0x1ec   : > { %2633 = vmatprep.subr.bf16.mxu1 %v2285_v32  ;;  %v927_v32 = vld [vmem:[%s8101_s16 + $0x528] sm:$0xff]  ;;  %v1359_v40 = vunpack.c.h.s8.bf16 %v799_v31  ;;  %v1343_v51 = vunpack.c.l.s8.bf16 %v799_v31 }
 0x1ed   : > { %v1599_v52 = vunpack.c.l.s8.bf16 %v927_v32 }
 0x1ee   : > { %2593 = vmatpush2.bf16.msra.mxu0 %v2028_v35 }
 0x1ef   : > { %2634 = vmatpush2.bf16.msra.mxu1 %v2284_v36  ;;  %2594 = vmatprep.subr.bf16.mxu0 %v2013_v37  ;;  %v1374_v36 = vunpack.c.l.s8.bf16 %v814_v25  ;;  %v1630_v37 = vunpack.c.l.s8.bf16 %v942_v26 }
 0x1f0   : > { %2635 = vmatprep.subr.bf16.mxu1 %v2269_v38 }
 0x1f2   : > { %2595 = vmatpush2.bf16.msra.mxu0 %v2012_v41  ;;  %v1615_v41 = vunpack.c.h.s8.bf16 %v927_v32 }
 0x1f3   : > { %2636 = vmatpush2.bf16.msra.mxu1 %v2268_v42  ;;  %2596 = vmatprep.subr.bf16.mxu0 %v1997_v43  ;;  %v798_v42 = vld [vmem:[%s8101_s16 + $0x120] sm:$0xff] }
 0x1f4   : > { %2637 = vmatprep.subr.bf16.mxu1 %v2253_v44  ;;  %v926_v43 = vld [vmem:[%s8101_s16 + $0x520] sm:$0xff] }
 0x1f6   : > { %2597 = vmatpush2.bf16.msra.mxu0 %v1996_v47  ;;  %v1358_v47 = vunpack.c.h.s8.bf16 %v798_v42 }
 0x1f7   : > { %2638 = vmatpush2.bf16.msra.mxu1 %v2252_v48  ;;  %2598 = vmatprep.subr.bf16.mxu0 %v1981_v49  ;;  %v1614_v48 = vunpack.c.h.s8.bf16 %v926_v43 }
 0x1f8   : > { %2639 = vmatprep.subr.bf16.mxu1 %v2237_v50 }
 0x1fa   : > { %2599 = vmatpush2.bf16.msra.mxu0 %v1980_v53  ;;  %v783_v53 = vld [vmem:[%s8101_s16 + $0xa8] sm:$0xff] }
 0x1fb   : > { %2640 = vmatpush2.bf16.msra.mxu1 %v2236_v54  ;;  %2600 = vmatprep.subr.bf16.mxu0 %v1965_v55  ;;  %v911_v54 = vld [vmem:[%s8101_s16 + $0x4a8] sm:$0xff]  ;;  %v1342_v55 = vunpack.c.l.s8.bf16 %v798_v42  ;;  %v1327_v57 = vunpack.c.h.s8.bf16 %v783_v53  ;;  %v1311_v3 = vunpack.c.l.s8.bf16 %v783_v53  ;;  %v846_v53 = vld [vmem:[%s8101_s16 + $0x2a0] sm:$0xff] }
 0x1fc   : > { %2641 = vmatprep.subr.bf16.mxu1 %v2221_v56  ;;  %v1598_v56 = vunpack.c.l.s8.bf16 %v926_v43  ;;  %v1583_v58 = vunpack.c.h.s8.bf16 %v911_v54  ;;  %v1567_v5 = vunpack.c.l.s8.bf16 %v911_v54  ;;  %v974_v54 = vld [vmem:[%s8101_s16 + $0x6a0] sm:$0xff] }
 0x1fe   : > { %2601 = vmatpush2.bf16.msra.mxu0 %v1964_v61  ;;  %v782_v61 = vld [vmem:[%s8101_s16 + $0xa0] sm:$0xff] }
 0x1ff   : > { %2642 = vmatpush2.bf16.msra.mxu1 %v2220_v62  ;;  %2602 = vmatprep.subr.bf16.mxu0 %v1949_v1  ;;  %v910_v62 = vld [vmem:[%s8101_s16 + $0x4a0] sm:$0xff]  ;;  %v1326_v1 = vunpack.c.h.s8.bf16 %v782_v61 }
 0x200   : > { %2643 = vmatprep.subr.bf16.mxu1 %v2205_v2  ;;  %v1582_v2 = vunpack.c.h.s8.bf16 %v910_v62 }
 0x202   : > { %2603 = vmatpush2.bf16.msra.mxu0 %v1948_v17  ;;  %v767_v17 = vld [vmem:[%s8101_s16 + $0x28] sm:$0xff] }
 0x203   : > { %2644 = vmatpush2.bf16.msra.mxu1 %v2204_v18  ;;  %2604 = vmatprep.subr.bf16.mxu0 %v1933_v7  ;;  %v895_v18 = vld [vmem:[%s8101_s16 + $0x428] sm:$0xff]  ;;  %v1310_v7 = vunpack.c.l.s8.bf16 %v782_v61  ;;  %v1295_v9 = vunpack.c.h.s8.bf16 %v767_v17  ;;  %v1279_v19 = vunpack.c.l.s8.bf16 %v767_v17  ;;  %v830_v17 = vld [vmem:[%s8101_s16 + $0x220] sm:$0xff] }
 0x204   : > { %2645 = vmatprep.subr.bf16.mxu1 %v2189_v8  ;;  %v1566_v8 = vunpack.c.l.s8.bf16 %v910_v62  ;;  %v1551_v10 = vunpack.c.h.s8.bf16 %v895_v18  ;;  %v1535_v20 = vunpack.c.l.s8.bf16 %v895_v18  ;;  %v831_v61 = vld [vmem:[%s8101_s16 + $0x228] sm:$0xff]  ;;  %v958_v18 = vld [vmem:[%s8101_s16 + $0x620] sm:$0xff] }
 0x205   : > { %v959_v62 = vld [vmem:[%s8101_s16 + $0x628] sm:$0xff] }
 0x206   : > { %2605 = vmatpush2.bf16.msra.mxu0 %v1932_v11  ;;  %v766_v11 = vld [vmem:[%s8101_s16 + $0x20] sm:$0xff] }
 0x207   : > { %2646 = vmatpush2.bf16.msra.mxu1 %v2188_v12  ;;  %2606 = vmatprep.subr.bf16.mxu0 %v1917_v13  ;;  %v894_v12 = vld [vmem:[%s8101_s16 + $0x420] sm:$0xff]  ;;  %v1294_v13 = vunpack.c.h.s8.bf16 %v766_v11 }
 0x208   : > { %2647 = vmatprep.subr.bf16.mxu1 %v2173_v14  ;;  %v1550_v14 = vunpack.c.h.s8.bf16 %v894_v12 }
 0x20a   : > { %2607 = vmatpush2.bf16.msra.mxu0 %v1916_v21  ;;  %v879_v21 = vld [vmem:[%s8101_s16 + $0x3a8] sm:$0xff] }
 0x20b   : > { %2648 = vmatpush2.bf16.msra.mxu1 %v2172_v22  ;;  %2658 = vmatprep.subr.bf16.mxu0 %v1391_v63  ;;  %v1007_v22 = vld [vmem:[%s8101_s16 + $0x7a8] sm:$0xff]  ;;  %v1278_v63 = vunpack.c.l.s8.bf16 %v766_v11  ;;  %v1519_v25 = vunpack.c.h.s8.bf16 %v879_v21  ;;  %v1503_v31 = vunpack.c.l.s8.bf16 %v879_v21  ;;  %v1070_v21 = vld [vmem:[%s8101_s16 + $0x9a0] sm:$0xff] }
 0x20c   : > { %2699 = vmatprep.subr.bf16.mxu1 %v1647_v23  ;;  %v1534_v23 = vunpack.c.l.s8.bf16 %v894_v12  ;;  %v1775_v26 = vunpack.c.h.s8.bf16 %v1007_v22  ;;  %v1759_v32 = vunpack.c.l.s8.bf16 %v1007_v22  ;;  %v1071_v11 = vld [vmem:[%s8101_s16 + $0x9a8] sm:$0xff]  ;;  %v1198_v22 = vld [vmem:[%s8101_s16 + $0xda0] sm:$0xff] }
 0x20d   : > { %v2364_v33 = vpop.f32.mrf.mxu0  ;;  %2609 = vmatmul.mubr.bf16.vlgmr.msra.gmra.mxu0 %v8245_v59  ;;  %v1199_v12 = vld [vmem:[%s8101_s16 + $0xda8] sm:$0xff] }
 0x20e   : > { %v2405_v34 = vpop.f32.mrf.mxu1  ;;  %2650 = vmatmul.mubr.bf16.vlgmr.msra.gmra.mxu1 %v8249_v60  ;;  %2659 = vmatpush1.bf16.msra.mxu0 %v1390_v27  ;;  %v878_v27 = vld [vmem:[%s8101_s16 + $0x3a0] sm:$0xff] }
 0x20f   : > { %v8327_v35 = vadd.f32 %v2405_v34, %v2364_v33  ;;  %2700 = vmatpush1.bf16.msra.mxu1 %v1646_v28  ;;  %v2366_v38 = vpop.f32.mrf.mxu0  ;;  %2660 = vmatprep.subr.bf16.mxu0 %v1375_v29  ;;  %v1006_v28 = vld [vmem:[%s8101_s16 + $0x7a0] sm:$0xff]  ;;  %v1518_v29 = vunpack.c.h.s8.bf16 %v878_v27  ;;  %v863_v33 = vld [vmem:[%s8101_s16 + $0x328] sm:$0xff] }
 0x210   : > { %v2407_v39 = vpop.f32.mrf.mxu1  ;;  %2701 = vmatprep.subr.bf16.mxu1 %v1631_v30  ;;  %2690 = vmatprep.mubr.bf16.mxu0 %v8155_v4  ;;  %v1774_v30 = vunpack.c.h.s8.bf16 %v1006_v28  ;;  %v991_v34 = vld [vmem:[%s8101_s16 + $0x728] sm:$0xff] }
 0x211   : > { %v8331_v44 = vadd.f32 %v2407_v39, %v2366_v38  ;;  %2731 = vmatprep.mubr.bf16.mxu1 %v8159_v6  ;;  %v2368_v45 = vpop.f32.mrf.mxu0  ;;  %v1487_v38 = vunpack.c.h.s8.bf16 %v863_v33  ;;  %v1743_v39 = vunpack.c.h.s8.bf16 %v991_v34 }
 0x212   : > { %v2409_v46 = vpop.f32.mrf.mxu1  ;;  %2661 = vmatpush1.bf16.msra.mxu0 %v1374_v36  ;;  %v1502_v36 = vunpack.c.l.s8.bf16 %v878_v27  ;;  %v1471_v45 = vunpack.c.l.s8.bf16 %v863_v33  ;;  %v1055_v27 = vld [vmem:[%s8101_s16 + $0x928] sm:$0xff]  ;;  %v2142_v33 = vunpack.c.l.s8.bf16 %v1198_v22 }
 0x213   : > { %2702 = vmatpush1.bf16.msra.mxu1 %v1630_v37  ;;  %v2369_v49 = vpop.f32.mrf.mxu0  ;;  %2662 = vmatprep.subr.bf16.mxu0 %v1359_v40  ;;  %v1758_v37 = vunpack.c.l.s8.bf16 %v1006_v28  ;;  %v862_v40 = vld [vmem:[%s8101_s16 + $0x320] sm:$0xff]  ;;  %v1727_v46 = vunpack.c.l.s8.bf16 %v991_v34  ;;  %v1183_v28 = vld [vmem:[%s8101_s16 + $0xd28] sm:$0xff] }
 0x214   : > { %v2410_v50 = vpop.f32.mrf.mxu1  ;;  %2703 = vmatprep.subr.bf16.mxu1 %v1615_v41  ;;  %v990_v41 = vld [vmem:[%s8101_s16 + $0x720] sm:$0xff]  ;;  %v1486_v42 = vunpack.c.h.s8.bf16 %v862_v40  ;;  %v1470_v49 = vunpack.c.l.s8.bf16 %v862_v40 }
 0x215   : > { %v1742_v43 = vunpack.c.h.s8.bf16 %v990_v41  ;;  %v1726_v50 = vunpack.c.l.s8.bf16 %v990_v41  ;;  %v1182_v40 = vld [vmem:[%s8101_s16 + $0xd20] sm:$0xff] }
 0x216   : > { %2663 = vmatpush1.bf16.msra.mxu0 %v1358_v47  ;;  %v847_v47 = vld [vmem:[%s8101_s16 + $0x2a8] sm:$0xff] }
 0x217   : > { %2704 = vmatpush1.bf16.msra.mxu1 %v1614_v48  ;;  %2664 = vmatprep.subr.bf16.mxu0 %v1343_v51  ;;  %v975_v48 = vld [vmem:[%s8101_s16 + $0x6a8] sm:$0xff]  ;;  %v1455_v51 = vunpack.c.h.s8.bf16 %v847_v47 }
 0x218   : > { %2705 = vmatprep.subr.bf16.mxu1 %v1599_v52  ;;  %v1711_v52 = vunpack.c.h.s8.bf16 %v975_v48 }
 0x21a   : > { %2665 = vmatpush1.bf16.msra.mxu0 %v1342_v55  ;;  %v1454_v55 = vunpack.c.h.s8.bf16 %v846_v53 }
 0x21b   : > { %2706 = vmatpush1.bf16.msra.mxu1 %v1598_v56  ;;  %2666 = vmatprep.subr.bf16.mxu0 %v1327_v57  ;;  %v1710_v56 = vunpack.c.h.s8.bf16 %v974_v54  ;;  %v1439_v57 = vunpack.c.l.s8.bf16 %v847_v47  ;;  %v2126_v47 = vunpack.c.h.s8.bf16 %v1182_v40 }
 0x21c   : > { %2707 = vmatprep.subr.bf16.mxu1 %v1583_v58  ;;  %v1695_v58 = vunpack.c.l.s8.bf16 %v975_v48 }
 0x21e   : > { %2667 = vmatpush1.bf16.msra.mxu0 %v1326_v1  ;;  %v1438_v1 = vunpack.c.l.s8.bf16 %v846_v53 }
 0x21f   : > { %2708 = vmatpush1.bf16.msra.mxu1 %v1582_v2  ;;  %2668 = vmatprep.subr.bf16.mxu0 %v1311_v3  ;;  %v1694_v2 = vunpack.c.l.s8.bf16 %v974_v54  ;;  %v1423_v3 = vunpack.c.h.s8.bf16 %v831_v61  ;;  %v2110_v54 = vunpack.c.l.s8.bf16 %v1182_v40 }
 0x220   : > { %2709 = vmatprep.subr.bf16.mxu1 %v1567_v5  ;;  %v1679_v5 = vunpack.c.h.s8.bf16 %v959_v62 }
 0x222   : > { %2669 = vmatpush1.bf16.msra.mxu0 %v1310_v7  ;;  %v1422_v7 = vunpack.c.h.s8.bf16 %v830_v17 }
 0x223   : > { %2710 = vmatpush1.bf16.msra.mxu1 %v1566_v8  ;;  %2670 = vmatprep.subr.bf16.mxu0 %v1295_v9  ;;  %v1678_v8 = vunpack.c.h.s8.bf16 %v958_v18  ;;  %v1407_v9 = vunpack.c.l.s8.bf16 %v831_v61 }
 0x224   : > { %2711 = vmatprep.subr.bf16.mxu1 %v1551_v10  ;;  %v1663_v10 = vunpack.c.l.s8.bf16 %v959_v62 }
 0x226   : > { %2671 = vmatpush1.bf16.msra.mxu0 %v1294_v13  ;;  %v1406_v13 = vunpack.c.l.s8.bf16 %v830_v17 }
 0x227   : > { %2712 = vmatpush1.bf16.msra.mxu1 %v1550_v14  ;;  %2672 = vmatprep.subr.bf16.mxu0 %v1279_v19  ;;  %v1662_v14 = vunpack.c.l.s8.bf16 %v958_v18  ;;  %v1903_v19 = vunpack.c.h.s8.bf16 %v1071_v11 }
 0x228   : > { %2713 = vmatprep.subr.bf16.mxu1 %v1535_v20  ;;  %v2159_v20 = vunpack.c.h.s8.bf16 %v1199_v12 }
 0x22a   : > { %2673 = vmatpush1.bf16.msra.mxu0 %v1278_v63  ;;  %v1902_v63 = vunpack.c.h.s8.bf16 %v1070_v21 }
 0x22b   : > { %2714 = vmatpush1.bf16.msra.mxu1 %v1534_v23  ;;  %2674 = vmatprep.subr.bf16.mxu0 %v1519_v25  ;;  %v2158_v23 = vunpack.c.h.s8.bf16 %v1198_v22  ;;  %v1887_v25 = vunpack.c.l.s8.bf16 %v1071_v11 }
 0x22c   : > { %2715 = vmatprep.subr.bf16.mxu1 %v1775_v26  ;;  %v2143_v26 = vunpack.c.l.s8.bf16 %v1199_v12 }
 0x22e   : > { %2675 = vmatpush2.bf16.msra.mxu0 %v1518_v29 }
 0x22f   : > { %2716 = vmatpush2.bf16.msra.mxu1 %v1774_v30  ;;  %2676 = vmatprep.subr.bf16.mxu0 %v1503_v31 }
 0x230   : > { %2717 = vmatprep.subr.bf16.mxu1 %v1759_v32  ;;  %v1886_v32 = vunpack.c.l.s8.bf16 %v1070_v21 }
 0x232   : > { %2677 = vmatpush2.bf16.msra.mxu0 %v1502_v36 }
 0x233   : > { %2718 = vmatpush2.bf16.msra.mxu1 %v1758_v37  ;;  %2678 = vmatprep.subr.bf16.mxu0 %v1487_v38  ;;  %v1871_v37 = vunpack.c.h.s8.bf16 %v1055_v27  ;;  %v2127_v38 = vunpack.c.h.s8.bf16 %v1183_v28 }
 0x234   : > { %2719 = vmatprep.subr.bf16.mxu1 %v1743_v39  ;;  %v1054_v39 = vld [vmem:[%s8101_s16 + $0x920] sm:$0xff] }
 0x235   : > { %v1854_v53 = vunpack.c.l.s8.bf16 %v1054_v39 }
 0x236   : > { %2679 = vmatpush2.bf16.msra.mxu0 %v1486_v42 }
 0x237   : > { %2720 = vmatpush2.bf16.msra.mxu1 %v1742_v43  ;;  %2680 = vmatprep.subr.bf16.mxu0 %v1471_v45 }
 0x238   : > { %2721 = vmatprep.subr.bf16.mxu1 %v1727_v46  ;;  %v1870_v46 = vunpack.c.h.s8.bf16 %v1054_v39  ;;  %v1246_v39 = vld [vmem:[%s8101_s16 + $0xf20] sm:$0xff] }
 0x23a   : > { %2681 = vmatpush2.bf16.msra.mxu0 %v1470_v49 }
 0x23b   : > { %2722 = vmatpush2.bf16.msra.mxu1 %v1726_v50  ;;  %2682 = vmatprep.subr.bf16.mxu0 %v1455_v51  ;;  %v2111_v50 = vunpack.c.l.s8.bf16 %v1183_v28  ;;  %v1039_v51 = vld [vmem:[%s8101_s16 + $0x8a8] sm:$0xff] }
 0x23c   : > { %2723 = vmatprep.subr.bf16.mxu1 %v1711_v52  ;;  %v1167_v52 = vld [vmem:[%s8101_s16 + $0xca8] sm:$0xff] }
 0x23e   : > { %2683 = vmatpush2.bf16.msra.mxu0 %v1454_v55  ;;  %v1839_v55 = vunpack.c.h.s8.bf16 %v1039_v51 }
 0x23f   : > { %2724 = vmatpush2.bf16.msra.mxu1 %v1710_v56  ;;  %2684 = vmatprep.subr.bf16.mxu0 %v1439_v57  ;;  %v2095_v56 = vunpack.c.h.s8.bf16 %v1167_v52  ;;  %v1038_v57 = vld [vmem:[%s8101_s16 + $0x8a0] sm:$0xff] }
 0x240   : > { %2725 = vmatprep.subr.bf16.mxu1 %v1695_v58  ;;  %v1166_v58 = vld [vmem:[%s8101_s16 + $0xca0] sm:$0xff]  ;;  %v1838_v61 = vunpack.c.h.s8.bf16 %v1038_v57  ;;  %v1822_v17 = vunpack.c.l.s8.bf16 %v1038_v57  ;;  %v1087_v57 = vld [vmem:[%s8101_s16 + $0xa28] sm:$0xff] }
 0x241   : > { %v2094_v62 = vunpack.c.h.s8.bf16 %v1166_v58  ;;  %v2078_v18 = vunpack.c.l.s8.bf16 %v1166_v58  ;;  %v1215_v58 = vld [vmem:[%s8101_s16 + $0xe28] sm:$0xff] }
 0x242   : > { %2685 = vmatpush2.bf16.msra.mxu0 %v1438_v1  ;;  %v1823_v1 = vunpack.c.l.s8.bf16 %v1039_v51  ;;  %v1102_v51 = vld [vmem:[%s8101_s16 + $0xaa0] sm:$0xff] }
 0x243   : > { %2726 = vmatpush2.bf16.msra.mxu1 %v1694_v2  ;;  %2686 = vmatprep.subr.bf16.mxu0 %v1423_v3  ;;  %v2079_v2 = vunpack.c.l.s8.bf16 %v1167_v52  ;;  %v1023_v3 = vld [vmem:[%s8101_s16 + $0x828] sm:$0xff]  ;;  %v1230_v52 = vld [vmem:[%s8101_s16 + $0xea0] sm:$0xff] }
 0x244   : > { %2727 = vmatprep.subr.bf16.mxu1 %v1679_v5  ;;  %v1151_v5 = vld [vmem:[%s8101_s16 + $0xc28] sm:$0xff] }
 0x246   : > { %2687 = vmatpush2.bf16.msra.mxu0 %v1422_v7  ;;  %v1807_v7 = vunpack.c.h.s8.bf16 %v1023_v3 }
 0x247   : > { %2728 = vmatpush2.bf16.msra.mxu1 %v1678_v8  ;;  %2688 = vmatprep.subr.bf16.mxu0 %v1407_v9  ;;  %v2063_v8 = vunpack.c.h.s8.bf16 %v1151_v5  ;;  %v1022_v9 = vld [vmem:[%s8101_s16 + $0x820] sm:$0xff] }
 0x248   : > { %2729 = vmatprep.subr.bf16.mxu1 %v1663_v10  ;;  %v1150_v10 = vld [vmem:[%s8101_s16 + $0xc20] sm:$0xff]  ;;  %v1806_v11 = vunpack.c.h.s8.bf16 %v1022_v9  ;;  %v1790_v21 = vunpack.c.l.s8.bf16 %v1022_v9  ;;  %v817_v9 = vld [vmem:[%s8101_s16 + $0x1b8] sm:$0xff] }
 0x249   : > { %v2062_v12 = vunpack.c.h.s8.bf16 %v1150_v10  ;;  %v2046_v22 = vunpack.c.l.s8.bf16 %v1150_v10  ;;  %v945_v10 = vld [vmem:[%s8101_s16 + $0x5b8] sm:$0xff] }
 0x24a   : > { %2689 = vmatpush2.bf16.msra.mxu0 %v1406_v13  ;;  %v1791_v13 = vunpack.c.l.s8.bf16 %v1023_v3  ;;  %v1086_v3 = vld [vmem:[%s8101_s16 + $0xa20] sm:$0xff] }
 0x24b   : > { %2730 = vmatpush2.bf16.msra.mxu1 %v1662_v14  ;;  %2740 = vmatprep.subr.bf16.mxu0 %v1903_v19  ;;  %v2047_v14 = vunpack.c.l.s8.bf16 %v1151_v5  ;;  %v1135_v19 = vld [vmem:[%s8101_s16 + $0xba8] sm:$0xff]  ;;  %v1214_v5 = vld [vmem:[%s8101_s16 + $0xe20] sm:$0xff] }
 0x24c   : > { %2781 = vmatprep.subr.bf16.mxu1 %v2159_v20  ;;  %v1263_v20 = vld [vmem:[%s8101_s16 + $0xfa8] sm:$0xff] }
 0x24d   : > { %v2446_v29 = vpop.f32.mrf.mxu0  ;;  %2691 = vmatmul.mubr.bf16.vlgmr.msra.gmra.mxu0 %v8189_v15 }
 0x24e   : > { %v2487_v30 = vpop.f32.mrf.mxu1  ;;  %2732 = vmatmul.mubr.bf16.vlgmr.msra.gmra.mxu1 %v8193_v16  ;;  %v2447_v31 = vadd.f32 %v2446_v29, %v8327_v35  ;;  %2741 = vmatpush1.bf16.msra.mxu0 %v1902_v63  ;;  %v2031_v63 = vunpack.c.h.s8.bf16 %v1135_v19  ;;  %v2015_v29 = vunpack.c.l.s8.bf16 %v1135_v19  ;;  %v816_v19 = vld [vmem:[%s8101_s16 + $0x1b0] sm:$0xff] }
 0x24f   : > { %2782 = vmatpush1.bf16.msra.mxu1 %v2158_v23  ;;  %v2448_v34 = vpop.f32.mrf.mxu0  ;;  %2742 = vmatprep.subr.bf16.mxu0 %v1887_v25  ;;  %v2287_v23 = vunpack.c.h.s8.bf16 %v1263_v20  ;;  %v1134_v25 = vld [vmem:[%s8101_s16 + $0xba0] sm:$0xff] }
 0x250   : > { %v2489_v36 = vpop.f32.mrf.mxu1  ;;  %2783 = vmatprep.subr.bf16.mxu1 %v2143_v26  ;;  %v8370_v41 = vadd.f32 %v2487_v30, %v2447_v31  ;;  %v2449_v42 = vadd.f32 %v2448_v34, %v8331_v44  ;;  %2772 = vmatprep.mubr.bf16.mxu0 %v8203_v0  ;;  %v1855_v44 = vunpack.c.l.s8.bf16 %v1055_v27  ;;  %v1262_v26 = vld [vmem:[%s8101_s16 + $0xfa0] sm:$0xff]  ;;  %v2030_v27 = vunpack.c.h.s8.bf16 %v1134_v25  ;;  %v1119_v31 = vld [vmem:[%s8101_s16 + $0xb28] sm:$0xff] }
 0x251   : > { %2813 = vmatprep.mubr.bf16.mxu1 %v8207_v24  ;;  %v2450_v35 = vpop.f32.mrf.mxu0  ;;  %v2286_v28 = vunpack.c.h.s8.bf16 %v1262_v26  ;;  %v2271_v30 = vunpack.c.l.s8.bf16 %v1263_v20  ;;  %v2270_v34 = vunpack.c.l.s8.bf16 %v1262_v26  ;;  %v944_v20 = vld [vmem:[%s8101_s16 + $0x5b0] sm:$0xff]  ;;  %v929_v26 = vld [vmem:[%s8101_s16 + $0x538] sm:$0xff] }
 0x252   : > { %v2491_v43 = vpop.f32.mrf.mxu1  ;;  %v8375_v45 = vadd.f32 %v2489_v36, %v2449_v42  ;;  %2743 = vmatpush1.bf16.msra.mxu0 %v1886_v32  ;;  %v1247_v32 = vld [vmem:[%s8101_s16 + $0xf28] sm:$0xff]  ;;  %v1999_v36 = vunpack.c.h.s8.bf16 %v1119_v31  ;;  %v2254_v42 = vunpack.c.h.s8.bf16 %v1246_v39  ;;  %v1983_v35 = vunpack.c.l.s8.bf16 %v1119_v31 }
 0x253   : > { %2784 = vmatpush1.bf16.msra.mxu1 %v2142_v33  ;;  %v2451_v48 = vpop.f32.mrf.mxu0  ;;  %2744 = vmatprep.subr.bf16.mxu0 %v1871_v37  ;;  %v2014_v33 = vunpack.c.l.s8.bf16 %v1134_v25  ;;  %v2255_v37 = vunpack.c.h.s8.bf16 %v1247_v32  ;;  %v2239_v43 = vunpack.c.l.s8.bf16 %v1247_v32  ;;  %v801_v25 = vld [vmem:[%s8101_s16 + $0x138] sm:$0xff]  ;;  %v1632_v31 = vunpack.c.l.s8.bf16 %v944_v20 }
 0x254   : > { %v2492_v49 = vpop.f32.mrf.mxu1  ;;  %2785 = vmatprep.subr.bf16.mxu1 %v2127_v38  ;;  %v1118_v38 = vld [vmem:[%s8101_s16 + $0xb20] sm:$0xff] }
 0x255   : > { %v1998_v40 = vunpack.c.h.s8.bf16 %v1118_v38  ;;  %v1982_v48 = vunpack.c.l.s8.bf16 %v1118_v38  ;;  %v2238_v49 = vunpack.c.l.s8.bf16 %v1246_v39  ;;  %v928_v38 = vld [vmem:[%s8101_s16 + $0x530] sm:$0xff] }
 0x256   : > { %2745 = vmatpush1.bf16.msra.mxu0 %v1870_v46  ;;  %v1103_v46 = vld [vmem:[%s8101_s16 + $0xaa8] sm:$0xff] }
 0x257   : > { %2786 = vmatpush1.bf16.msra.mxu1 %v2126_v47  ;;  %2746 = vmatprep.subr.bf16.mxu0 %v1855_v44  ;;  %v1231_v47 = vld [vmem:[%s8101_s16 + $0xea8] sm:$0xff]  ;;  %v1967_v44 = vunpack.c.h.s8.bf16 %v1103_v46 }
 0x258   : > { %2787 = vmatprep.subr.bf16.mxu1 %v2111_v50  ;;  %v2223_v50 = vunpack.c.h.s8.bf16 %v1231_v47 }
 0x25a   : > { %2747 = vmatpush1.bf16.msra.mxu0 %v1854_v53  ;;  %v1966_v53 = vunpack.c.h.s8.bf16 %v1102_v51 }
 0x25b   : > { %2788 = vmatpush1.bf16.msra.mxu1 %v2110_v54  ;;  %2748 = vmatprep.subr.bf16.mxu0 %v1839_v55  ;;  %v2222_v54 = vunpack.c.h.s8.bf16 %v1230_v52  ;;  %v1951_v55 = vunpack.c.l.s8.bf16 %v1103_v46 }
 0x25c   : > { %2789 = vmatprep.subr.bf16.mxu1 %v2095_v56  ;;  %v2207_v56 = vunpack.c.l.s8.bf16 %v1231_v47 }
 0x25e   : > { %2749 = vmatpush1.bf16.msra.mxu0 %v1838_v61  ;;  %v1950_v61 = vunpack.c.l.s8.bf16 %v1102_v51 }
 0x25f   : > { %2790 = vmatpush1.bf16.msra.mxu1 %v2094_v62  ;;  %2750 = vmatprep.subr.bf16.mxu0 %v1823_v1  ;;  %v2206_v62 = vunpack.c.l.s8.bf16 %v1230_v52  ;;  %v1935_v1 = vunpack.c.h.s8.bf16 %v1087_v57  ;;  %v1600_v52 = vunpack.c.l.s8.bf16 %v928_v38 }
 0x260   : > { %2791 = vmatprep.subr.bf16.mxu1 %v2079_v2  ;;  %v2191_v2 = vunpack.c.h.s8.bf16 %v1215_v58 }
 0x262   : > { %2751 = vmatpush1.bf16.msra.mxu0 %v1822_v17  ;;  %v1934_v17 = vunpack.c.h.s8.bf16 %v1086_v3 }
 0x263   : > { %2792 = vmatpush1.bf16.msra.mxu1 %v2078_v18  ;;  %2752 = vmatprep.subr.bf16.mxu0 %v1807_v7  ;;  %v2190_v18 = vunpack.c.h.s8.bf16 %v1214_v5  ;;  %v1919_v7 = vunpack.c.l.s8.bf16 %v1087_v57 }
 0x264   : > { %2793 = vmatprep.subr.bf16.mxu1 %v2063_v8  ;;  %v2175_v8 = vunpack.c.l.s8.bf16 %v1215_v58 }
 0x266   : > { %2753 = vmatpush1.bf16.msra.mxu0 %v1806_v11  ;;  %v1918_v11 = vunpack.c.l.s8.bf16 %v1086_v3 }
 0x267   : > { %2794 = vmatpush1.bf16.msra.mxu1 %v2062_v12  ;;  %2754 = vmatprep.subr.bf16.mxu0 %v1791_v13  ;;  %v2174_v12 = vunpack.c.l.s8.bf16 %v1214_v5  ;;  %v1393_v13 = vunpack.c.h.s8.bf16 %v817_v9 }
 0x268   : > { %2795 = vmatprep.subr.bf16.mxu1 %v2047_v14  ;;  %v1649_v14 = vunpack.c.h.s8.bf16 %v945_v10 }
 0x26a   : > { %2755 = vmatpush1.bf16.msra.mxu0 %v1790_v21  ;;  %v1392_v21 = vunpack.c.h.s8.bf16 %v816_v19 }
 0x26b   : > { %2796 = vmatpush1.bf16.msra.mxu1 %v2046_v22  ;;  %2756 = vmatprep.subr.bf16.mxu0 %v2031_v63  ;;  %v1648_v22 = vunpack.c.h.s8.bf16 %v944_v20  ;;  %v1377_v63 = vunpack.c.l.s8.bf16 %v817_v9 }
 0x26c   : > { %2797 = vmatprep.subr.bf16.mxu1 %v2287_v23  ;;  %v1633_v23 = vunpack.c.l.s8.bf16 %v945_v10 }
 0x26e   : > { %2757 = vmatpush2.bf16.msra.mxu0 %v2030_v27 }
 0x26f   : > { %2798 = vmatpush2.bf16.msra.mxu1 %v2286_v28  ;;  %2758 = vmatprep.subr.bf16.mxu0 %v2015_v29 }
 0x270   : > { %2799 = vmatprep.subr.bf16.mxu1 %v2271_v30  ;;  %v1376_v30 = vunpack.c.l.s8.bf16 %v816_v19 }
 0x272   : > { %2759 = vmatpush2.bf16.msra.mxu0 %v2014_v33 }
 0x273   : > { %2800 = vmatpush2.bf16.msra.mxu1 %v2270_v34  ;;  %2760 = vmatprep.subr.bf16.mxu0 %v1999_v36  ;;  %v1361_v34 = vunpack.c.h.s8.bf16 %v801_v25  ;;  %v1617_v36 = vunpack.c.h.s8.bf16 %v929_v26 }
 0x274   : > { %2801 = vmatprep.subr.bf16.mxu1 %v2255_v37  ;;  %v800_v37 = vld [vmem:[%s8101_s16 + $0x130] sm:$0xff] }
 0x275   : > { %v1344_v51 = vunpack.c.l.s8.bf16 %v800_v37 }
 0x276   : > { %2761 = vmatpush2.bf16.msra.mxu0 %v1998_v40 }
 0x277   : > { %2802 = vmatpush2.bf16.msra.mxu1 %v2254_v42  ;;  %2762 = vmatprep.subr.bf16.mxu0 %v1983_v35  ;;  %v1360_v35 = vunpack.c.h.s8.bf16 %v800_v37  ;;  %v864_v37 = vld [vmem:[%s8101_s16 + $0x330] sm:$0xff] }
 0x278   : > { %2803 = vmatprep.subr.bf16.mxu1 %v2239_v43  ;;  %v1616_v43 = vunpack.c.h.s8.bf16 %v928_v38  ;;  %v992_v38 = vld [vmem:[%s8101_s16 + $0x730] sm:$0xff] }
 0x27a   : > { %2763 = vmatpush2.bf16.msra.mxu0 %v1982_v48  ;;  %v1345_v48 = vunpack.c.l.s8.bf16 %v801_v25 }
 0x27b   : > { %2804 = vmatpush2.bf16.msra.mxu1 %v2238_v49  ;;  %2764 = vmatprep.subr.bf16.mxu0 %v1967_v44  ;;  %v1601_v49 = vunpack.c.l.s8.bf16 %v929_v26  ;;  %v785_v44 = vld [vmem:[%s8101_s16 + $0xb8] sm:$0xff] }
 0x27c   : > { %2805 = vmatprep.subr.bf16.mxu1 %v2223_v50  ;;  %v913_v50 = vld [vmem:[%s8101_s16 + $0x4b8] sm:$0xff] }
 0x27e   : > { %2765 = vmatpush2.bf16.msra.mxu0 %v1966_v53  ;;  %v1329_v53 = vunpack.c.h.s8.bf16 %v785_v44 }
 0x27f   : > { %2806 = vmatpush2.bf16.msra.mxu1 %v2222_v54  ;;  %2766 = vmatprep.subr.bf16.mxu0 %v1951_v55  ;;  %v1585_v54 = vunpack.c.h.s8.bf16 %v913_v50  ;;  %v784_v55 = vld [vmem:[%s8101_s16 + $0xb0] sm:$0xff] }
 0x280   : > { %2807 = vmatprep.subr.bf16.mxu1 %v2207_v56  ;;  %v912_v56 = vld [vmem:[%s8101_s16 + $0x4b0] sm:$0xff]  ;;  %v1328_v57 = vunpack.c.h.s8.bf16 %v784_v55  ;;  %v1312_v3 = vunpack.c.l.s8.bf16 %v784_v55 }
 0x281   : > { %v1584_v58 = vunpack.c.h.s8.bf16 %v912_v56  ;;  %v1568_v5 = vunpack.c.l.s8.bf16 %v912_v56 }
 0x282   : > { %2767 = vmatpush2.bf16.msra.mxu0 %v1950_v61  ;;  %v1313_v61 = vunpack.c.l.s8.bf16 %v785_v44 }
 0x283   : > { %2808 = vmatpush2.bf16.msra.mxu1 %v2206_v62  ;;  %2768 = vmatprep.subr.bf16.mxu0 %v1935_v1  ;;  %v1569_v62 = vunpack.c.l.s8.bf16 %v913_v50  ;;  %v769_v1 = vld [vmem:[%s8101_s16 + $0x38] sm:$0xff] }
 0x284   : > { %2809 = vmatprep.subr.bf16.mxu1 %v2191_v2  ;;  %v897_v2 = vld [vmem:[%s8101_s16 + $0x438] sm:$0xff] }
 0x286   : > { %2769 = vmatpush2.bf16.msra.mxu0 %v1934_v17  ;;  %v1297_v17 = vunpack.c.h.s8.bf16 %v769_v1 }
 0x287   : > { %2810 = vmatpush2.bf16.msra.mxu1 %v2190_v18  ;;  %2770 = vmatprep.subr.bf16.mxu0 %v1919_v7  ;;  %v1553_v18 = vunpack.c.h.s8.bf16 %v897_v2  ;;  %v768_v7 = vld [vmem:[%s8101_s16 + $0x30] sm:$0xff] }
 0x288   : > { %2811 = vmatprep.subr.bf16.mxu1 %v2175_v8  ;;  %v896_v8 = vld [vmem:[%s8101_s16 + $0x430] sm:$0xff]  ;;  %v1296_v9 = vunpack.c.h.s8.bf16 %v768_v7  ;;  %v1280_v19 = vunpack.c.l.s8.bf16 %v768_v7 }
 0x289   : > { %v1552_v10 = vunpack.c.h.s8.bf16 %v896_v8  ;;  %v1536_v20 = vunpack.c.l.s8.bf16 %v896_v8 }
 0x28a   : > { %2771 = vmatpush2.bf16.msra.mxu0 %v1918_v11  ;;  %v1281_v11 = vunpack.c.l.s8.bf16 %v769_v1 }
 0x28b   : > { %2812 = vmatpush2.bf16.msra.mxu1 %v2174_v12  ;;  %2822 = vmatprep.subr.bf16.mxu0 %v1393_v13  ;;  %v1537_v12 = vunpack.c.l.s8.bf16 %v897_v2  ;;  %v881_v13 = vld [vmem:[%s8101_s16 + $0x3b8] sm:$0xff] }
 0x28c   : > { %2863 = vmatprep.subr.bf16.mxu1 %v1649_v14  ;;  %v1009_v14 = vld [vmem:[%s8101_s16 + $0x7b8] sm:$0xff] }
 0x28d   : > { %v2528_v27 = vpop.f32.mrf.mxu0  ;;  %2773 = vmatmul.mubr.bf16.vlgmr.msra.gmra.mxu0 %v8245_v59 }
 0x28e   : > { %v2569_v28 = vpop.f32.mrf.mxu1  ;;  %2814 = vmatmul.mubr.bf16.vlgmr.msra.gmra.mxu1 %v8249_v60  ;;  %2823 = vmatpush1.bf16.msra.mxu0 %v1392_v21  ;;  %v1521_v21 = vunpack.c.h.s8.bf16 %v881_v13 }
 0x28f   : > { %v8409_v29 = vadd.f32 %v2569_v28, %v2528_v27  ;;  %2864 = vmatpush1.bf16.msra.mxu1 %v1648_v22  ;;  %v2530_v32 = vpop.f32.mrf.mxu0  ;;  %2824 = vmatprep.subr.bf16.mxu0 %v1377_v63  ;;  %v1777_v22 = vunpack.c.h.s8.bf16 %v1009_v14  ;;  %v880_v63 = vld [vmem:[%s8101_s16 + $0x3b0] sm:$0xff]  ;;  %v1505_v27 = vunpack.c.l.s8.bf16 %v881_v13  ;;  %v1761_v28 = vunpack.c.l.s8.bf16 %v1009_v14 }
 0x290   : > { %v2571_v33 = vpop.f32.mrf.mxu1  ;;  %2865 = vmatprep.subr.bf16.mxu1 %v1633_v23  ;;  %2854 = vmatprep.mubr.bf16.mxu0 %v8155_v4  ;;  %v1008_v23 = vld [vmem:[%s8101_s16 + $0x7b0] sm:$0xff]  ;;  %v1520_v25 = vunpack.c.h.s8.bf16 %v880_v63 }
 0x291   : > { %v8413_v39 = vadd.f32 %v2571_v33, %v2530_v32  ;;  %2895 = vmatprep.mubr.bf16.mxu1 %v8159_v6  ;;  %v2532_v40 = vpop.f32.mrf.mxu0  ;;  %v1776_v26 = vunpack.c.h.s8.bf16 %v1008_v23  ;;  %v1504_v32 = vunpack.c.l.s8.bf16 %v880_v63  ;;  %v1760_v33 = vunpack.c.l.s8.bf16 %v1008_v23 }
 0x292   : > { %v2573_v42 = vpop.f32.mrf.mxu1  ;;  %2825 = vmatpush1.bf16.msra.mxu0 %v1376_v30  ;;  %v865_v30 = vld [vmem:[%s8101_s16 + $0x338] sm:$0xff]  ;;  %v1488_v40 = vunpack.c.h.s8.bf16 %v864_v37 }
 0x293   : > { %2866 = vmatpush1.bf16.msra.mxu1 %v1632_v31  ;;  %v2533_v46 = vpop.f32.mrf.mxu0  ;;  %2826 = vmatprep.subr.bf16.mxu0 %v1361_v34  ;;  %v993_v31 = vld [vmem:[%s8101_s16 + $0x738] sm:$0xff]  ;;  %v1489_v34 = vunpack.c.h.s8.bf16 %v865_v30  ;;  %v1744_v42 = vunpack.c.h.s8.bf16 %v992_v38 }
 0x294   : > { %v2574_v47 = vpop.f32.mrf.mxu1  ;;  %2867 = vmatprep.subr.bf16.mxu1 %v1617_v36  ;;  %v1745_v36 = vunpack.c.h.s8.bf16 %v993_v31  ;;  %v849_v46 = vld [vmem:[%s8101_s16 + $0x2b8] sm:$0xff] }
 0x295   : > { %v977_v47 = vld [vmem:[%s8101_s16 + $0x6b8] sm:$0xff]  ;;  %v1457_v44 = vunpack.c.h.s8.bf16 %v849_v46  ;;  %v1441_v55 = vunpack.c.l.s8.bf16 %v849_v46 }
 0x296   : > { %2827 = vmatpush1.bf16.msra.mxu0 %v1360_v35  ;;  %v1473_v35 = vunpack.c.l.s8.bf16 %v865_v30  ;;  %v1713_v50 = vunpack.c.h.s8.bf16 %v977_v47  ;;  %v1697_v56 = vunpack.c.l.s8.bf16 %v977_v47 }
 0x297   : > { %2868 = vmatpush1.bf16.msra.mxu1 %v1616_v43  ;;  %2828 = vmatprep.subr.bf16.mxu0 %v1345_v48  ;;  %v1729_v43 = vunpack.c.l.s8.bf16 %v993_v31  ;;  %v1472_v48 = vunpack.c.l.s8.bf16 %v864_v37 }
 0x298   : > { %2869 = vmatprep.subr.bf16.mxu1 %v1601_v49  ;;  %v1728_v49 = vunpack.c.l.s8.bf16 %v992_v38  ;;  %v1056_v38 = vld [vmem:[%s8101_s16 + $0x930] sm:$0xff] }
 0x299   : > { %v1872_v47 = vunpack.c.h.s8.bf16 %v1056_v38 }
 0x29a   : > { %2829 = vmatpush1.bf16.msra.mxu0 %v1344_v51  ;;  %v848_v51 = vld [vmem:[%s8101_s16 + $0x2b0] sm:$0xff] }
 0x29b   : > { %2870 = vmatpush1.bf16.msra.mxu1 %v1600_v52  ;;  %2830 = vmatprep.subr.bf16.mxu0 %v1329_v53  ;;  %v976_v52 = vld [vmem:[%s8101_s16 + $0x6b0] sm:$0xff]  ;;  %v1456_v53 = vunpack.c.h.s8.bf16 %v848_v51 }
 0x29c   : > { %2871 = vmatprep.subr.bf16.mxu1 %v1585_v54  ;;  %v1712_v54 = vunpack.c.h.s8.bf16 %v976_v52 }
 0x29e   : > { %2831 = vmatpush1.bf16.msra.mxu0 %v1328_v57  ;;  %v833_v57 = vld [vmem:[%s8101_s16 + $0x238] sm:$0xff] }
 0x29f   : > { %2872 = vmatpush1.bf16.msra.mxu1 %v1584_v58  ;;  %2832 = vmatprep.subr.bf16.mxu0 %v1313_v61  ;;  %v961_v58 = vld [vmem:[%s8101_s16 + $0x638] sm:$0xff]  ;;  %v1440_v61 = vunpack.c.l.s8.bf16 %v848_v51  ;;  %v1425_v1 = vunpack.c.h.s8.bf16 %v833_v57  ;;  %v1409_v7 = vunpack.c.l.s8.bf16 %v833_v57  ;;  %v1040_v57 = vld [vmem:[%s8101_s16 + $0x8b0] sm:$0xff] }
 0x2a0   : > { %2873 = vmatprep.subr.bf16.mxu1 %v1569_v62  ;;  %v1696_v62 = vunpack.c.l.s8.bf16 %v976_v52  ;;  %v1681_v2 = vunpack.c.h.s8.bf16 %v961_v58  ;;  %v1665_v8 = vunpack.c.l.s8.bf16 %v961_v58  ;;  %v1041_v51 = vld [vmem:[%s8101_s16 + $0x8b8] sm:$0xff]  ;;  %v1168_v58 = vld [vmem:[%s8101_s16 + $0xcb0] sm:$0xff] }
 0x2a1   : > { %v1169_v52 = vld [vmem:[%s8101_s16 + $0xcb8] sm:$0xff] }
 0x2a2   : > { %2833 = vmatpush1.bf16.msra.mxu0 %v1312_v3  ;;  %v832_v3 = vld [vmem:[%s8101_s16 + $0x230] sm:$0xff] }
 0x2a3   : > { %2874 = vmatpush1.bf16.msra.mxu1 %v1568_v5  ;;  %2834 = vmatprep.subr.bf16.mxu0 %v1297_v17  ;;  %v960_v5 = vld [vmem:[%s8101_s16 + $0x630] sm:$0xff]  ;;  %v1424_v17 = vunpack.c.h.s8.bf16 %v832_v3 }
 0x2a4   : > { %2875 = vmatprep.subr.bf16.mxu1 %v1553_v18  ;;  %v1680_v18 = vunpack.c.h.s8.bf16 %v960_v5 }
 0x2a6   : > { %2835 = vmatpush1.bf16.msra.mxu0 %v1296_v9  ;;  %v1073_v9 = vld [vmem:[%s8101_s16 + $0x9b8] sm:$0xff] }
 0x2a7   : > { %2876 = vmatpush1.bf16.msra.mxu1 %v1552_v10  ;;  %2836 = vmatprep.subr.bf16.mxu0 %v1281_v11  ;;  %v1201_v10 = vld [vmem:[%s8101_s16 + $0xdb8] sm:$0xff]  ;;  %v1408_v11 = vunpack.c.l.s8.bf16 %v832_v3  ;;  %v1905_v13 = vunpack.c.h.s8.bf16 %v1073_v9  ;;  %v1889_v63 = vunpack.c.l.s8.bf16 %v1073_v9  ;;  %v1024_v9 = vld [vmem:[%s8101_s16 + $0x830] sm:$0xff] }
 0x2a8   : > { %2877 = vmatprep.subr.bf16.mxu1 %v1537_v12  ;;  %v1664_v12 = vunpack.c.l.s8.bf16 %v960_v5  ;;  %v2161_v14 = vunpack.c.h.s8.bf16 %v1201_v10  ;;  %v2145_v23 = vunpack.c.l.s8.bf16 %v1201_v10  ;;  %v1025_v3 = vld [vmem:[%s8101_s16 + $0x838] sm:$0xff]  ;;  %v1152_v10 = vld [vmem:[%s8101_s16 + $0xc30] sm:$0xff] }
 0x2a9   : > { %v1153_v5 = vld [vmem:[%s8101_s16 + $0xc38] sm:$0xff] }
 0x2aa   : > { %2837 = vmatpush1.bf16.msra.mxu0 %v1280_v19  ;;  %v1072_v19 = vld [vmem:[%s8101_s16 + $0x9b0] sm:$0xff] }
 0x2ab   : > { %2878 = vmatpush1.bf16.msra.mxu1 %v1536_v20  ;;  %2838 = vmatprep.subr.bf16.mxu0 %v1521_v21  ;;  %v1200_v20 = vld [vmem:[%s8101_s16 + $0xdb0] sm:$0xff]  ;;  %v1904_v21 = vunpack.c.h.s8.bf16 %v1072_v19  ;;  %v1888_v31 = vunpack.c.l.s8.bf16 %v1072_v19  ;;  %v1137_v19 = vld [vmem:[%s8101_s16 + $0xbb8] sm:$0xff] }
 0x2ac   : > { %2879 = vmatprep.subr.bf16.mxu1 %v1777_v22  ;;  %v2160_v22 = vunpack.c.h.s8.bf16 %v1200_v20 }
 0x2ae   : > { %2839 = vmatpush2.bf16.msra.mxu0 %v1520_v25  ;;  %v1057_v25 = vld [vmem:[%s8101_s16 + $0x938] sm:$0xff] }
 0x2af   : > { %2880 = vmatpush2.bf16.msra.mxu1 %v1776_v26  ;;  %2840 = vmatprep.subr.bf16.mxu0 %v1505_v27  ;;  %v1185_v26 = vld [vmem:[%s8101_s16 + $0xd38] sm:$0xff] }
 0x2b0   : > { %2881 = vmatprep.subr.bf16.mxu1 %v1761_v28  ;;  %v2129_v37 = vunpack.c.h.s8.bf16 %v1185_v26 }
 0x2b2   : > { %2841 = vmatpush2.bf16.msra.mxu0 %v1504_v32  ;;  %v2144_v32 = vunpack.c.l.s8.bf16 %v1200_v20  ;;  %v1265_v20 = vld [vmem:[%s8101_s16 + $0xfb8] sm:$0xff] }
 0x2b3   : > { %2882 = vmatpush2.bf16.msra.mxu1 %v1760_v33  ;;  %2842 = vmatprep.subr.bf16.mxu0 %v1489_v34 }
 0x2b4   : > { %2883 = vmatprep.subr.bf16.mxu1 %v1745_v36  ;;  %v1873_v36 = vunpack.c.h.s8.bf16 %v1057_v25 }
 0x2b6   : > { %2843 = vmatpush2.bf16.msra.mxu0 %v1488_v40  ;;  %v1184_v40 = vld [vmem:[%s8101_s16 + $0xd30] sm:$0xff] }
 0x2b7   : > { %2884 = vmatpush2.bf16.msra.mxu1 %v1744_v42  ;;  %2844 = vmatprep.subr.bf16.mxu0 %v1473_v35 }
 0x2b8   : > { %2885 = vmatprep.subr.bf16.mxu1 %v1729_v43 }
 0x2ba   : > { %2845 = vmatpush2.bf16.msra.mxu0 %v1472_v48  ;;  %v2128_v48 = vunpack.c.h.s8.bf16 %v1184_v40 }
 0x2bb   : > { %2886 = vmatpush2.bf16.msra.mxu1 %v1728_v49  ;;  %2846 = vmatprep.subr.bf16.mxu0 %v1457_v44 }
 0x2bc   : > { %2887 = vmatprep.subr.bf16.mxu1 %v1713_v50  ;;  %v2113_v50 = vunpack.c.l.s8.bf16 %v1185_v26  ;;  %v1264_v26 = vld [vmem:[%s8101_s16 + $0xfb0] sm:$0xff] }
 0x2be   : > { %2847 = vmatpush2.bf16.msra.mxu0 %v1456_v53  ;;  %v1856_v53 = vunpack.c.l.s8.bf16 %v1056_v38 }
 0x2bf   : > { %2888 = vmatpush2.bf16.msra.mxu1 %v1712_v54  ;;  %2848 = vmatprep.subr.bf16.mxu0 %v1441_v55  ;;  %v2112_v54 = vunpack.c.l.s8.bf16 %v1184_v40  ;;  %v1841_v55 = vunpack.c.h.s8.bf16 %v1041_v51  ;;  %v1120_v40 = vld [vmem:[%s8101_s16 + $0xb30] sm:$0xff] }
 0x2c0   : > { %2889 = vmatprep.subr.bf16.mxu1 %v1697_v56  ;;  %v2097_v56 = vunpack.c.h.s8.bf16 %v1169_v52 }
 0x2c2   : > { %2849 = vmatpush2.bf16.msra.mxu0 %v1440_v61  ;;  %v1840_v61 = vunpack.c.h.s8.bf16 %v1040_v57 }
 0x2c3   : > { %2890 = vmatpush2.bf16.msra.mxu1 %v1696_v62  ;;  %2850 = vmatprep.subr.bf16.mxu0 %v1425_v1  ;;  %v2096_v62 = vunpack.c.h.s8.bf16 %v1168_v58  ;;  %v1825_v1 = vunpack.c.l.s8.bf16 %v1041_v51 }
 0x2c4   : > { %2891 = vmatprep.subr.bf16.mxu1 %v1681_v2  ;;  %v2081_v2 = vunpack.c.l.s8.bf16 %v1169_v52 }
 0x2c6   : > { %2851 = vmatpush2.bf16.msra.mxu0 %v1424_v17  ;;  %v1824_v17 = vunpack.c.l.s8.bf16 %v1040_v57 }
 0x2c7   : > { %2892 = vmatpush2.bf16.msra.mxu1 %v1680_v18  ;;  %2852 = vmatprep.subr.bf16.mxu0 %v1409_v7  ;;  %v2080_v18 = vunpack.c.l.s8.bf16 %v1168_v58  ;;  %v1809_v7 = vunpack.c.h.s8.bf16 %v1025_v3 }
 0x2c8   : > { %2893 = vmatprep.subr.bf16.mxu1 %v1665_v8  ;;  %v2065_v8 = vunpack.c.h.s8.bf16 %v1153_v5 }
 0x2ca   : > { %2853 = vmatpush2.bf16.msra.mxu0 %v1408_v11  ;;  %v1808_v11 = vunpack.c.h.s8.bf16 %v1024_v9 }
 0x2cb   : > { %2894 = vmatpush2.bf16.msra.mxu1 %v1664_v12  ;;  %2904 = vmatprep.subr.bf16.mxu0 %v1905_v13  ;;  %v2064_v12 = vunpack.c.h.s8.bf16 %v1152_v10  ;;  %v1793_v13 = vunpack.c.l.s8.bf16 %v1025_v3 }
 0x2cc   : > { %2945 = vmatprep.subr.bf16.mxu1 %v2161_v14  ;;  %v2049_v14 = vunpack.c.l.s8.bf16 %v1153_v5 }
 0x2cd   : > { %v2610_v27 = vpop.f32.mrf.mxu0  ;;  %2855 = vmatmul.mubr.bf16.vlgmr.msra.gmra.mxu0 %v8189_v15 }
 0x2ce   : > { %v2651_v28 = vpop.f32.mrf.mxu1  ;;  %2896 = vmatmul.mubr.bf16.vlgmr.msra.gmra.mxu1 %v8193_v16  ;;  %v2611_v30 = vadd.f32 %v2610_v27, %v8409_v29  ;;  %2905 = vmatpush1.bf16.msra.mxu0 %v1904_v21  ;;  %v1792_v21 = vunpack.c.l.s8.bf16 %v1024_v9 }
 0x2cf   : > { %2946 = vmatpush1.bf16.msra.mxu1 %v2160_v22  ;;  %v2612_v33 = vpop.f32.mrf.mxu0  ;;  %2906 = vmatprep.subr.bf16.mxu0 %v1889_v63  ;;  %v2048_v22 = vunpack.c.l.s8.bf16 %v1152_v10  ;;  %v2033_v63 = vunpack.c.h.s8.bf16 %v1137_v19 }
 0x2d0   : > { %v2653_v34 = vpop.f32.mrf.mxu1  ;;  %2947 = vmatprep.subr.bf16.mxu1 %v2145_v23  ;;  %v8452_v42 = vadd.f32 %v2651_v28, %v2611_v30  ;;  %v2613_v35 = vadd.f32 %v2612_v33, %v8413_v39  ;;  %2936 = vmatprep.mubr.bf16.mxu0 %v8203_v0  ;;  %v1857_v39 = vunpack.c.l.s8.bf16 %v1057_v25  ;;  %v2289_v23 = vunpack.c.h.s8.bf16 %v1265_v20  ;;  %v1136_v25 = vld [vmem:[%s8101_s16 + $0xbb0] sm:$0xff]  ;;  %v1249_v33 = vld [vmem:[%s8101_s16 + $0xf38] sm:$0xff] }
 0x2d1   : > { %2977 = vmatprep.mubr.bf16.mxu1 %v8207_v24  ;;  %v2614_v29 = vpop.f32.mrf.mxu0  ;;  %v2032_v27 = vunpack.c.h.s8.bf16 %v1136_v25  ;;  %v2288_v28 = vunpack.c.h.s8.bf16 %v1264_v26  ;;  %v2017_v30 = vunpack.c.l.s8.bf16 %v1137_v19  ;;  %v2257_v38 = vunpack.c.h.s8.bf16 %v1249_v33 }
 0x2d2   : > { %v2655_v43 = vpop.f32.mrf.mxu1  ;;  %v8457_v46 = vadd.f32 %v2653_v34, %v2613_v35  ;;  %2907 = vmatpush1.bf16.msra.mxu0 %v1888_v31  ;;  %v2273_v31 = vunpack.c.l.s8.bf16 %v1265_v20  ;;  %v2016_v34 = vunpack.c.l.s8.bf16 %v1136_v25  ;;  %v1248_v35 = vld [vmem:[%s8101_s16 + $0xf30] sm:$0xff]  ;;  %v2000_v29 = vunpack.c.h.s8.bf16 %v1120_v40 }
 0x2d3   : > { %2948 = vmatpush1.bf16.msra.mxu1 %v2144_v32  ;;  %v2615_v49 = vpop.f32.mrf.mxu0  ;;  %2908 = vmatprep.subr.bf16.mxu0 %v1873_v36  ;;  %v1121_v32 = vld [vmem:[%s8101_s16 + $0xb38] sm:$0xff]  ;;  %v2272_v36 = vunpack.c.l.s8.bf16 %v1264_v26  ;;  %v2256_v43 = vunpack.c.h.s8.bf16 %v1248_v35 }
 0x2d4   : > { %v2656_v44 = vpop.f32.mrf.mxu1  ;;  %2949 = vmatprep.subr.bf16.mxu1 %v2129_v37  ;;  %v2001_v37 = vunpack.c.h.s8.bf16 %v1121_v32  ;;  %v1105_v49 = vld [vmem:[%s8101_s16 + $0xab8] sm:$0xff] }
 0x2d5   : > { %v1233_v44 = vld [vmem:[%s8101_s16 + $0xeb8] sm:$0xff]  ;;  %v1969_v51 = vunpack.c.h.s8.bf16 %v1105_v49  ;;  %v1953_v57 = vunpack.c.l.s8.bf16 %v1105_v49 }
 0x2d6   : > { %2909 = vmatpush1.bf16.msra.mxu0 %v1872_v47  ;;  %v1985_v47 = vunpack.c.l.s8.bf16 %v1121_v32  ;;  %v2225_v52 = vunpack.c.h.s8.bf16 %v1233_v44  ;;  %v2209_v58 = vunpack.c.l.s8.bf16 %v1233_v44 }
 0x2d7   : > { %2950 = vmatpush1.bf16.msra.mxu1 %v2128_v48  ;;  %2910 = vmatprep.subr.bf16.mxu0 %v1857_v39  ;;  %v2241_v48 = vunpack.c.l.s8.bf16 %v1249_v33  ;;  %v1984_v39 = vunpack.c.l.s8.bf16 %v1120_v40 }
 0x2d8   : > { %2951 = vmatprep.subr.bf16.mxu1 %v2113_v50  ;;  %v2240_v50 = vunpack.c.l.s8.bf16 %v1248_v35  ;;  %v802_v35 = vld [vmem:[%s8101_s16 + $0x140] sm:$0xff] }
 0x2d9   : > { %v1362_v49 = vunpack.c.h.s8.bf16 %v802_v35 }
 0x2da   : > { %2911 = vmatpush1.bf16.msra.mxu0 %v1856_v53  ;;  %v1104_v53 = vld [vmem:[%s8101_s16 + $0xab0] sm:$0xff] }
 0x2db   : > { %2952 = vmatpush1.bf16.msra.mxu1 %v2112_v54  ;;  %2912 = vmatprep.subr.bf16.mxu0 %v1841_v55  ;;  %v1232_v54 = vld [vmem:[%s8101_s16 + $0xeb0] sm:$0xff]  ;;  %v1968_v55 = vunpack.c.h.s8.bf16 %v1104_v53 }
 0x2dc   : > { %2953 = vmatprep.subr.bf16.mxu1 %v2097_v56  ;;  %v2224_v56 = vunpack.c.h.s8.bf16 %v1232_v54 }
 0x2de   : > { %2913 = vmatpush1.bf16.msra.mxu0 %v1840_v61  ;;  %v1089_v61 = vld [vmem:[%s8101_s16 + $0xa38] sm:$0xff] }
 0x2df   : > { %2954 = vmatpush1.bf16.msra.mxu1 %v2096_v62  ;;  %2914 = vmatprep.subr.bf16.mxu0 %v1825_v1  ;;  %v1217_v62 = vld [vmem:[%s8101_s16 + $0xe38] sm:$0xff]  ;;  %v1952_v1 = vunpack.c.l.s8.bf16 %v1104_v53  ;;  %v1937_v3 = vunpack.c.h.s8.bf16 %v1089_v61  ;;  %v1921_v9 = vunpack.c.l.s8.bf16 %v1089_v61  ;;  %v787_v53 = vld [vmem:[%s8101_s16 + $0xc8] sm:$0xff]  ;;  %v786_v61 = vld [vmem:[%s8101_s16 + $0xc0] sm:$0xff] }
 0x2e0   : > { %2955 = vmatprep.subr.bf16.mxu1 %v2081_v2  ;;  %v2208_v2 = vunpack.c.l.s8.bf16 %v1232_v54  ;;  %v2193_v5 = vunpack.c.h.s8.bf16 %v1217_v62  ;;  %v2177_v10 = vunpack.c.l.s8.bf16 %v1217_v62  ;;  %v915_v54 = vld [vmem:[%s8101_s16 + $0x4c8] sm:$0xff]  ;;  %v914_v62 = vld [vmem:[%s8101_s16 + $0x4c0] sm:$0xff] }
 0x2e2   : > { %2915 = vmatpush1.bf16.msra.mxu0 %v1824_v17  ;;  %v1088_v17 = vld [vmem:[%s8101_s16 + $0xa30] sm:$0xff] }
 0x2e3   : > { %2956 = vmatpush1.bf16.msra.mxu1 %v2080_v18  ;;  %2916 = vmatprep.subr.bf16.mxu0 %v1809_v7  ;;  %v1216_v18 = vld [vmem:[%s8101_s16 + $0xe30] sm:$0xff]  ;;  %v1936_v7 = vunpack.c.h.s8.bf16 %v1088_v17 }
 0x2e4   : > { %2957 = vmatprep.subr.bf16.mxu1 %v2065_v8  ;;  %v2192_v8 = vunpack.c.h.s8.bf16 %v1216_v18 }
 0x2e6   : > { %2917 = vmatpush1.bf16.msra.mxu0 %v1808_v11  ;;  %v819_v11 = vld [vmem:[%s8101_s16 + $0x1c8] sm:$0xff] }
 0x2e7   : > { %2958 = vmatpush1.bf16.msra.mxu1 %v2064_v12  ;;  %2918 = vmatprep.subr.bf16.mxu0 %v1793_v13  ;;  %v947_v12 = vld [vmem:[%s8101_s16 + $0x5c8] sm:$0xff]  ;;  %v1920_v13 = vunpack.c.l.s8.bf16 %v1088_v17  ;;  %v1395_v19 = vunpack.c.h.s8.bf16 %v819_v11  ;;  %v1379_v25 = vunpack.c.l.s8.bf16 %v819_v11  ;;  %v770_v11 = vld [vmem:[%s8101_s16 + $0x40] sm:$0xff] }
 0x2e8   : > { %2959 = vmatprep.subr.bf16.mxu1 %v2049_v14  ;;  %v2176_v14 = vunpack.c.l.s8.bf16 %v1216_v18  ;;  %v1651_v20 = vunpack.c.h.s8.bf16 %v947_v12  ;;  %v1635_v26 = vunpack.c.l.s8.bf16 %v947_v12  ;;  %v771_v17 = vld [vmem:[%s8101_s16 + $0x48] sm:$0xff]  ;;  %v898_v12 = vld [vmem:[%s8101_s16 + $0x440] sm:$0xff] }
 0x2e9   : > { %v899_v18 = vld [vmem:[%s8101_s16 + $0x448] sm:$0xff] }
 0x2ea   : > { %2919 = vmatpush1.bf16.msra.mxu0 %v1792_v21  ;;  %v818_v21 = vld [vmem:[%s8101_s16 + $0x1c0] sm:$0xff] }
 0x2eb   : > { %2960 = vmatpush1.bf16.msra.mxu1 %v2048_v22  ;;  %2920 = vmatprep.subr.bf16.mxu0 %v2033_v63  ;;  %v946_v22 = vld [vmem:[%s8101_s16 + $0x5c0] sm:$0xff]  ;;  %v1394_v63 = vunpack.c.h.s8.bf16 %v818_v21  ;;  %v1378_v33 = vunpack.c.l.s8.bf16 %v818_v21  ;;  %v883_v21 = vld [vmem:[%s8101_s16 + $0x3c8] sm:$0xff] }
 0x2ec   : > { %2961 = vmatprep.subr.bf16.mxu1 %v2289_v23  ;;  %v1650_v23 = vunpack.c.h.s8.bf16 %v946_v22 }
 0x2ee   : > { %2921 = vmatpush2.bf16.msra.mxu0 %v2032_v27  ;;  %v803_v27 = vld [vmem:[%s8101_s16 + $0x148] sm:$0xff] }
 0x2ef   : > { %2962 = vmatpush2.bf16.msra.mxu1 %v2288_v28  ;;  %2922 = vmatprep.subr.bf16.mxu0 %v2017_v30  ;;  %v931_v28 = vld [vmem:[%s8101_s16 + $0x548] sm:$0xff] }
 0x2f0   : > { %2963 = vmatprep.subr.bf16.mxu1 %v2273_v31  ;;  %v1619_v40 = vunpack.c.h.s8.bf16 %v931_v28 }
 0x2f2   : > { %2923 = vmatpush2.bf16.msra.mxu0 %v2016_v34  ;;  %v1634_v34 = vunpack.c.l.s8.bf16 %v946_v22  ;;  %v1011_v22 = vld [vmem:[%s8101_s16 + $0x7c8] sm:$0xff] }
 0x2f3   : > { %2964 = vmatpush2.bf16.msra.mxu1 %v2272_v36  ;;  %2924 = vmatprep.subr.bf16.mxu0 %v2001_v37 }
 0x2f4   : > { %2965 = vmatprep.subr.bf16.mxu1 %v2257_v38  ;;  %v1363_v38 = vunpack.c.h.s8.bf16 %v803_v27 }
 0x2f6   : > { %2925 = vmatpush2.bf16.msra.mxu0 %v2000_v29  ;;  %v930_v29 = vld [vmem:[%s8101_s16 + $0x540] sm:$0xff] }
 0x2f7   : > { %2966 = vmatpush2.bf16.msra.mxu1 %v2256_v43  ;;  %2926 = vmatprep.subr.bf16.mxu0 %v1985_v47  ;;  %v1618_v44 = vunpack.c.h.s8.bf16 %v930_v29 }
 0x2f8   : > { %2967 = vmatprep.subr.bf16.mxu1 %v2241_v48 }
 0x2fa   : > { %2927 = vmatpush2.bf16.msra.mxu0 %v1984_v39 }
 0x2fb   : > { %2968 = vmatpush2.bf16.msra.mxu1 %v2240_v50  ;;  %2928 = vmatprep.subr.bf16.mxu0 %v1969_v51  ;;  %v1347_v51 = vunpack.c.l.s8.bf16 %v803_v27  ;;  %v882_v27 = vld [vmem:[%s8101_s16 + $0x3c0] sm:$0xff] }
 0x2fc   : > { %2969 = vmatprep.subr.bf16.mxu1 %v2225_v52  ;;  %v1603_v52 = vunpack.c.l.s8.bf16 %v931_v28  ;;  %v1010_v28 = vld [vmem:[%s8101_s16 + $0x7c0] sm:$0xff] }
 0x2fe   : > { %2929 = vmatpush2.bf16.msra.mxu0 %v1968_v55  ;;  %v1346_v55 = vunpack.c.l.s8.bf16 %v802_v35 }
 0x2ff   : > { %2970 = vmatpush2.bf16.msra.mxu1 %v2224_v56  ;;  %2930 = vmatprep.subr.bf16.mxu0 %v1953_v57  ;;  %v1602_v56 = vunpack.c.l.s8.bf16 %v930_v29  ;;  %v1331_v57 = vunpack.c.h.s8.bf16 %v787_v53 }
 0x300   : > { %2971 = vmatprep.subr.bf16.mxu1 %v2209_v58  ;;  %v1587_v58 = vunpack.c.h.s8.bf16 %v915_v54 }
 0x302   : > { %2931 = vmatpush2.bf16.msra.mxu0 %v1952_v1  ;;  %v1330_v1 = vunpack.c.h.s8.bf16 %v786_v61 }
 0x303   : > { %2972 = vmatpush2.bf16.msra.mxu1 %v2208_v2  ;;  %2932 = vmatprep.subr.bf16.mxu0 %v1937_v3  ;;  %v1586_v2 = vunpack.c.h.s8.bf16 %v914_v62  ;;  %v1315_v3 = vunpack.c.l.s8.bf16 %v787_v53 }
 0x304   : > { %2973 = vmatprep.subr.bf16.mxu1 %v2193_v5  ;;  %v1571_v5 = vunpack.c.l.s8.bf16 %v915_v54 }
 0x306   : > { %2933 = vmatpush2.bf16.msra.mxu0 %v1936_v7  ;;  %v1314_v7 = vunpack.c.l.s8.bf16 %v786_v61 }
 0x307   : > { %2974 = vmatpush2.bf16.msra.mxu1 %v2192_v8  ;;  %2934 = vmatprep.subr.bf16.mxu0 %v1921_v9  ;;  %v1570_v8 = vunpack.c.l.s8.bf16 %v914_v62  ;;  %v1299_v9 = vunpack.c.h.s8.bf16 %v771_v17 }
 0x308   : > { %2975 = vmatprep.subr.bf16.mxu1 %v2177_v10  ;;  %v1555_v10 = vunpack.c.h.s8.bf16 %v899_v18 }
 0x30a   : > { %2935 = vmatpush2.bf16.msra.mxu0 %v1920_v13  ;;  %v1298_v13 = vunpack.c.h.s8.bf16 %v770_v11 }
 0x30b   : > { %2976 = vmatpush2.bf16.msra.mxu1 %v2176_v14  ;;  %2986 = vmatprep.subr.bf16.mxu0 %v1395_v19  ;;  %v1554_v14 = vunpack.c.h.s8.bf16 %v898_v12  ;;  %v1283_v19 = vunpack.c.l.s8.bf16 %v771_v17 }
 0x30c   : > { %3027 = vmatprep.subr.bf16.mxu1 %v1651_v20  ;;  %v1539_v20 = vunpack.c.l.s8.bf16 %v899_v18 }
 0x30d   : > { %v2692_v30 = vpop.f32.mrf.mxu0  ;;  %2937 = vmatmul.mubr.bf16.vlgmr.msra.gmra.mxu0 %v8245_v59 }
 0x30e   : > { %v2733_v31 = vpop.f32.mrf.mxu1  ;;  %2978 = vmatmul.mubr.bf16.vlgmr.msra.gmra.mxu1 %v8249_v60  ;;  %2987 = vmatpush1.bf16.msra.mxu0 %v1394_v63  ;;  %v1282_v63 = vunpack.c.l.s8.bf16 %v770_v11 }
 0x30f   : > { %v8491_v32 = vadd.f32 %v2733_v31, %v2692_v30  ;;  %3028 = vmatpush1.bf16.msra.mxu1 %v1650_v23  ;;  %v2694_v36 = vpop.f32.mrf.mxu0  ;;  %2988 = vmatprep.subr.bf16.mxu0 %v1379_v25  ;;  %v1538_v23 = vunpack.c.l.s8.bf16 %v898_v12  ;;  %v1523_v25 = vunpack.c.h.s8.bf16 %v883_v21  ;;  %v1522_v30 = vunpack.c.h.s8.bf16 %v882_v27 }
 0x310   : > { %v2735_v37 = vpop.f32.mrf.mxu1  ;;  %3029 = vmatprep.subr.bf16.mxu1 %v1635_v26  ;;  %3018 = vmatprep.mubr.bf16.mxu0 %v8155_v4  ;;  %v1779_v26 = vunpack.c.h.s8.bf16 %v1011_v22  ;;  %v1778_v31 = vunpack.c.h.s8.bf16 %v1010_v28 }
 0x311   : > { %v8495_v43 = vadd.f32 %v2735_v37, %v2694_v36  ;;  %3059 = vmatprep.mubr.bf16.mxu1 %v8159_v6  ;;  %v2696_v47 = vpop.f32.mrf.mxu0  ;;  %v867_v36 = vld [vmem:[%s8101_s16 + $0x348] sm:$0xff] }
 0x312   : > { %v2737_v48 = vpop.f32.mrf.mxu1  ;;  %2989 = vmatpush1.bf16.msra.mxu0 %v1378_v33  ;;  %v1507_v33 = vunpack.c.l.s8.bf16 %v883_v21  ;;  %v995_v37 = vld [vmem:[%s8101_s16 + $0x748] sm:$0xff]  ;;  %v1491_v35 = vunpack.c.h.s8.bf16 %v867_v36  ;;  %v866_v47 = vld [vmem:[%s8101_s16 + $0x340] sm:$0xff] }
 0x313   : > { %3030 = vmatpush1.bf16.msra.mxu1 %v1634_v34  ;;  %v2697_v39 = vpop.f32.mrf.mxu0  ;;  %2990 = vmatprep.subr.bf16.mxu0 %v1363_v38  ;;  %v1763_v34 = vunpack.c.l.s8.bf16 %v1011_v22  ;;  %v1506_v38 = vunpack.c.l.s8.bf16 %v882_v27  ;;  %v1747_v29 = vunpack.c.h.s8.bf16 %v995_v37  ;;  %v994_v48 = vld [vmem:[%s8101_s16 + $0x740] sm:$0xff]  ;;  %v1474_v53 = vunpack.c.l.s8.bf16 %v866_v47 }
 0x314   : > { %v2738_v50 = vpop.f32.mrf.mxu1  ;;  %3031 = vmatprep.subr.bf16.mxu1 %v1619_v40  ;;  %v1762_v40 = vunpack.c.l.s8.bf16 %v1010_v28  ;;  %v1475_v39 = vunpack.c.l.s8.bf16 %v867_v36  ;;  %v1730_v54 = vunpack.c.l.s8.bf16 %v994_v48 }
 0x315   : > { %v1731_v50 = vunpack.c.l.s8.bf16 %v995_v37 }
 0x316   : > { %2991 = vmatpush1.bf16.msra.mxu0 %v1362_v49  ;;  %v1490_v49 = vunpack.c.h.s8.bf16 %v866_v47 }
 0x317   : > { %3032 = vmatpush1.bf16.msra.mxu1 %v1618_v44  ;;  %2992 = vmatprep.subr.bf16.mxu0 %v1347_v51  ;;  %v1746_v44 = vunpack.c.h.s8.bf16 %v994_v48  ;;  %v851_v51 = vld [vmem:[%s8101_s16 + $0x2c8] sm:$0xff] }
 0x318   : > { %3033 = vmatprep.subr.bf16.mxu1 %v1603_v52  ;;  %v979_v52 = vld [vmem:[%s8101_s16 + $0x6c8] sm:$0xff] }
 0x31a   : > { %2993 = vmatpush1.bf16.msra.mxu0 %v1346_v55  ;;  %v1459_v55 = vunpack.c.h.s8.bf16 %v851_v51 }
 0x31b   : > { %3034 = vmatpush1.bf16.msra.mxu1 %v1602_v56  ;;  %2994 = vmatprep.subr.bf16.mxu0 %v1331_v57  ;;  %v1715_v56 = vunpack.c.h.s8.bf16 %v979_v52  ;;  %v850_v57 = vld [vmem:[%s8101_s16 + $0x2c0] sm:$0xff] }
 0x31c   : > { %3035 = vmatprep.subr.bf16.mxu1 %v1587_v58  ;;  %v978_v58 = vld [vmem:[%s8101_s16 + $0x6c0] sm:$0xff]  ;;  %v1458_v61 = vunpack.c.h.s8.bf16 %v850_v57  ;;  %v1442_v17 = vunpack.c.l.s8.bf16 %v850_v57 }
 0x31d   : > { %v1714_v62 = vunpack.c.h.s8.bf16 %v978_v58  ;;  %v1698_v18 = vunpack.c.l.s8.bf16 %v978_v58 }
 0x31e   : > { %2995 = vmatpush1.bf16.msra.mxu0 %v1330_v1  ;;  %v1443_v1 = vunpack.c.l.s8.bf16 %v851_v51 }
 0x31f   : > { %3036 = vmatpush1.bf16.msra.mxu1 %v1586_v2  ;;  %2996 = vmatprep.subr.bf16.mxu0 %v1315_v3  ;;  %v1699_v2 = vunpack.c.l.s8.bf16 %v979_v52  ;;  %v835_v3 = vld [vmem:[%s8101_s16 + $0x248] sm:$0xff] }
 0x320   : > { %3037 = vmatprep.subr.bf16.mxu1 %v1571_v5  ;;  %v963_v5 = vld [vmem:[%s8101_s16 + $0x648] sm:$0xff] }
 0x322   : > { %2997 = vmatpush1.bf16.msra.mxu0 %v1314_v7  ;;  %v1427_v7 = vunpack.c.h.s8.bf16 %v835_v3 }
 0x323   : > { %3038 = vmatpush1.bf16.msra.mxu1 %v1570_v8  ;;  %2998 = vmatprep.subr.bf16.mxu0 %v1299_v9  ;;  %v1683_v8 = vunpack.c.h.s8.bf16 %v963_v5  ;;  %v834_v9 = vld [vmem:[%s8101_s16 + $0x240] sm:$0xff] }
 0x324   : > { %3039 = vmatprep.subr.bf16.mxu1 %v1555_v10  ;;  %v962_v10 = vld [vmem:[%s8101_s16 + $0x640] sm:$0xff]  ;;  %v1426_v11 = vunpack.c.h.s8.bf16 %v834_v9  ;;  %v1410_v21 = vunpack.c.l.s8.bf16 %v834_v9 }
 0x325   : > { %v1682_v12 = vunpack.c.h.s8.bf16 %v962_v10  ;;  %v1666_v22 = vunpack.c.l.s8.bf16 %v962_v10 }
 0x326   : > { %2999 = vmatpush1.bf16.msra.mxu0 %v1298_v13  ;;  %v1411_v13 = vunpack.c.l.s8.bf16 %v835_v3 }
 0x327   : > { %3040 = vmatpush1.bf16.msra.mxu1 %v1554_v14  ;;  %3000 = vmatprep.subr.bf16.mxu0 %v1283_v19  ;;  %v1667_v14 = vunpack.c.l.s8.bf16 %v963_v5  ;;  %v1075_v19 = vld [vmem:[%s8101_s16 + $0x9c8] sm:$0xff] }
 0x328   : > { %3041 = vmatprep.subr.bf16.mxu1 %v1539_v20  ;;  %v1203_v20 = vld [vmem:[%s8101_s16 + $0xdc8] sm:$0xff] }
 0x32a   : > { %3001 = vmatpush1.bf16.msra.mxu0 %v1282_v63  ;;  %v1907_v63 = vunpack.c.h.s8.bf16 %v1075_v19 }
 0x32b   : > { %3042 = vmatpush1.bf16.msra.mxu1 %v1538_v23  ;;  %3002 = vmatprep.subr.bf16.mxu0 %v1523_v25  ;;  %v2163_v23 = vunpack.c.h.s8.bf16 %v1203_v20  ;;  %v1074_v25 = vld [vmem:[%s8101_s16 + $0x9c0] sm:$0xff] }
 0x32c   : > { %3043 = vmatprep.subr.bf16.mxu1 %v1779_v26  ;;  %v1202_v26 = vld [vmem:[%s8101_s16 + $0xdc0] sm:$0xff]  ;;  %v1906_v27 = vunpack.c.h.s8.bf16 %v1074_v25 }
 0x32d   : > { %v2162_v28 = vunpack.c.h.s8.bf16 %v1202_v26 }
 0x32e   : > { %3003 = vmatpush2.bf16.msra.mxu0 %v1522_v30  ;;  %v1891_v30 = vunpack.c.l.s8.bf16 %v1075_v19 }
 0x32f   : > { %3044 = vmatpush2.bf16.msra.mxu1 %v1778_v31  ;;  %3004 = vmatprep.subr.bf16.mxu0 %v1507_v33  ;;  %v2147_v31 = vunpack.c.l.s8.bf16 %v1203_v20  ;;  %v1059_v33 = vld [vmem:[%s8101_s16 + $0x948] sm:$0xff] }
 0x330   : > { %3045 = vmatprep.subr.bf16.mxu1 %v1763_v34  ;;  %v1187_v34 = vld [vmem:[%s8101_s16 + $0xd48] sm:$0xff]  ;;  %v1875_v48 = vunpack.c.h.s8.bf16 %v1059_v33 }
 0x331   : > { %v2115_v58 = vunpack.c.l.s8.bf16 %v1187_v34 }
 0x332   : > { %3005 = vmatpush2.bf16.msra.mxu0 %v1506_v38 }
 0x333   : > { %3046 = vmatpush2.bf16.msra.mxu1 %v1762_v40  ;;  %3006 = vmatprep.subr.bf16.mxu0 %v1491_v35  ;;  %v1890_v40 = vunpack.c.l.s8.bf16 %v1074_v25  ;;  %v2146_v35 = vunpack.c.l.s8.bf16 %v1202_v26 }
 0x334   : > { %3047 = vmatprep.subr.bf16.mxu1 %v1747_v29 }
 0x336   : > { %3007 = vmatpush2.bf16.msra.mxu0 %v1490_v49  ;;  %v2131_v49 = vunpack.c.h.s8.bf16 %v1187_v34 }
 0x337   : > { %3048 = vmatpush2.bf16.msra.mxu1 %v1746_v44  ;;  %3008 = vmatprep.subr.bf16.mxu0 %v1475_v39  ;;  %v1058_v44 = vld [vmem:[%s8101_s16 + $0x940] sm:$0xff] }
 0x338   : > { %3049 = vmatprep.subr.bf16.mxu1 %v1731_v50  ;;  %v1186_v39 = vld [vmem:[%s8101_s16 + $0xd40] sm:$0xff] }
 0x33a   : > { %3009 = vmatpush2.bf16.msra.mxu0 %v1474_v53 }
 0x33b   : > { %3050 = vmatpush2.bf16.msra.mxu1 %v1730_v54  ;;  %3010 = vmatprep.subr.bf16.mxu0 %v1459_v55  ;;  %v1874_v54 = vunpack.c.h.s8.bf16 %v1058_v44  ;;  %v2130_v55 = vunpack.c.h.s8.bf16 %v1186_v39 }
 0x33c   : > { %3051 = vmatprep.subr.bf16.mxu1 %v1715_v56 }
 0x33e   : > { %3011 = vmatpush2.bf16.msra.mxu0 %v1458_v61  ;;  %v1043_v61 = vld [vmem:[%s8101_s16 + $0x8c8] sm:$0xff] }
 0x33f   : > { %3052 = vmatpush2.bf16.msra.mxu1 %v1714_v62  ;;  %3012 = vmatprep.subr.bf16.mxu0 %v1443_v1  ;;  %v1171_v62 = vld [vmem:[%s8101_s16 + $0xcc8] sm:$0xff]  ;;  %v1858_v1 = vunpack.c.l.s8.bf16 %v1058_v44  ;;  %v1843_v3 = vunpack.c.h.s8.bf16 %v1043_v61  ;;  %v1827_v9 = vunpack.c.l.s8.bf16 %v1043_v61 }
 0x340   : > { %3053 = vmatprep.subr.bf16.mxu1 %v1699_v2  ;;  %v2114_v2 = vunpack.c.l.s8.bf16 %v1186_v39  ;;  %v2099_v5 = vunpack.c.h.s8.bf16 %v1171_v62  ;;  %v2083_v10 = vunpack.c.l.s8.bf16 %v1171_v62 }
 0x342   : > { %3013 = vmatpush2.bf16.msra.mxu0 %v1442_v17  ;;  %v1042_v17 = vld [vmem:[%s8101_s16 + $0x8c0] sm:$0xff] }
 0x343   : > { %3054 = vmatpush2.bf16.msra.mxu1 %v1698_v18  ;;  %3014 = vmatprep.subr.bf16.mxu0 %v1427_v7  ;;  %v1170_v18 = vld [vmem:[%s8101_s16 + $0xcc0] sm:$0xff]  ;;  %v1842_v7 = vunpack.c.h.s8.bf16 %v1042_v17 }
 0x344   : > { %3055 = vmatprep.subr.bf16.mxu1 %v1683_v8  ;;  %v2098_v8 = vunpack.c.h.s8.bf16 %v1170_v18 }
 0x346   : > { %3015 = vmatpush2.bf16.msra.mxu0 %v1426_v11  ;;  %v1027_v11 = vld [vmem:[%s8101_s16 + $0x848] sm:$0xff] }
 0x347   : > { %3056 = vmatpush2.bf16.msra.mxu1 %v1682_v12  ;;  %3016 = vmatprep.subr.bf16.mxu0 %v1411_v13  ;;  %v1155_v12 = vld [vmem:[%s8101_s16 + $0xc48] sm:$0xff]  ;;  %v1826_v13 = vunpack.c.l.s8.bf16 %v1042_v17  ;;  %v1811_v19 = vunpack.c.h.s8.bf16 %v1027_v11  ;;  %v1795_v25 = vunpack.c.l.s8.bf16 %v1027_v11 }
 0x348   : > { %3057 = vmatprep.subr.bf16.mxu1 %v1667_v14  ;;  %v2082_v14 = vunpack.c.l.s8.bf16 %v1170_v18  ;;  %v2067_v20 = vunpack.c.h.s8.bf16 %v1155_v12  ;;  %v2051_v26 = vunpack.c.l.s8.bf16 %v1155_v12 }
 0x34a   : > { %3017 = vmatpush2.bf16.msra.mxu0 %v1410_v21  ;;  %v1026_v21 = vld [vmem:[%s8101_s16 + $0x840] sm:$0xff] }
 0x34b   : > { %3058 = vmatpush2.bf16.msra.mxu1 %v1666_v22  ;;  %3068 = vmatprep.subr.bf16.mxu0 %v1907_v63  ;;  %v1154_v22 = vld [vmem:[%s8101_s16 + $0xc40] sm:$0xff]  ;;  %v1810_v63 = vunpack.c.h.s8.bf16 %v1026_v21 }
 0x34c   : > { %3109 = vmatprep.subr.bf16.mxu1 %v2163_v23  ;;  %v2066_v23 = vunpack.c.h.s8.bf16 %v1154_v22 }
 0x34d   : > { %v2774_v36 = vpop.f32.mrf.mxu0  ;;  %3019 = vmatmul.mubr.bf16.vlgmr.msra.gmra.mxu0 %v8189_v15 }
 0x34e   : > { %v2815_v37 = vpop.f32.mrf.mxu1  ;;  %3060 = vmatmul.mubr.bf16.vlgmr.msra.gmra.mxu1 %v8193_v16  ;;  %v2775_v38 = vadd.f32 %v2774_v36, %v8491_v32  ;;  %3069 = vmatpush1.bf16.msra.mxu0 %v1906_v27  ;;  %v1139_v27 = vld [vmem:[%s8101_s16 + $0xbc8] sm:$0xff]  ;;  %v1138_v36 = vld [vmem:[%s8101_s16 + $0xbc0] sm:$0xff] }
 0x34f   : > { %3110 = vmatpush1.bf16.msra.mxu1 %v2162_v28  ;;  %v2776_v29 = vpop.f32.mrf.mxu0  ;;  %3070 = vmatprep.subr.bf16.mxu0 %v1891_v30  ;;  %v1267_v28 = vld [vmem:[%s8101_s16 + $0xfc8] sm:$0xff]  ;;  %v1794_v30 = vunpack.c.l.s8.bf16 %v1026_v21 }
 0x350   : > { %v2817_v47 = vpop.f32.mrf.mxu1  ;;  %3111 = vmatprep.subr.bf16.mxu1 %v2147_v31  ;;  %v8534_v50 = vadd.f32 %v2815_v37, %v2775_v38  ;;  %v2777_v51 = vadd.f32 %v2776_v29, %v8495_v43  ;;  %3100 = vmatprep.mubr.bf16.mxu0 %v8203_v0  ;;  %v1859_v43 = vunpack.c.l.s8.bf16 %v1059_v33  ;;  %v2050_v31 = vunpack.c.l.s8.bf16 %v1154_v22  ;;  %v1266_v37 = vld [vmem:[%s8101_s16 + $0xfc0] sm:$0xff] }
 0x351   : > { %3141 = vmatprep.mubr.bf16.mxu1 %v8207_v24  ;;  %v2778_v32 = vpop.f32.mrf.mxu0  ;;  %v2035_v33 = vunpack.c.h.s8.bf16 %v1139_v27  ;;  %v2291_v34 = vunpack.c.h.s8.bf16 %v1267_v28  ;;  %v2034_v38 = vunpack.c.h.s8.bf16 %v1138_v36  ;;  %v2275_v29 = vunpack.c.l.s8.bf16 %v1267_v28 }
 0x352   : > { %v2819_v52 = vpop.f32.mrf.mxu1  ;;  %v8539_v53 = vadd.f32 %v2817_v47, %v2777_v51  ;;  %3071 = vmatpush1.bf16.msra.mxu0 %v1890_v40  ;;  %v2290_v40 = vunpack.c.h.s8.bf16 %v1266_v37  ;;  %v1123_v47 = vld [vmem:[%s8101_s16 + $0xb48] sm:$0xff]  ;;  %v2274_v44 = vunpack.c.l.s8.bf16 %v1266_v37  ;;  %v1122_v32 = vld [vmem:[%s8101_s16 + $0xb40] sm:$0xff] }
 0x353   : > { %3112 = vmatpush1.bf16.msra.mxu1 %v2146_v35  ;;  %v2779_v56 = vpop.f32.mrf.mxu0  ;;  %3072 = vmatprep.subr.bf16.mxu0 %v1875_v48  ;;  %v2019_v35 = vunpack.c.l.s8.bf16 %v1139_v27  ;;  %v1251_v48 = vld [vmem:[%s8101_s16 + $0xf48] sm:$0xff]  ;;  %v2003_v39 = vunpack.c.h.s8.bf16 %v1123_v47  ;;  %v1250_v52 = vld [vmem:[%s8101_s16 + $0xf40] sm:$0xff]  ;;  %v1986_v61 = vunpack.c.l.s8.bf16 %v1122_v32 }
 0x354   : > { %v2820_v57 = vpop.f32.mrf.mxu1  ;;  %3113 = vmatprep.subr.bf16.mxu1 %v2131_v49  ;;  %v2018_v49 = vunpack.c.l.s8.bf16 %v1138_v36  ;;  %v2259_v51 = vunpack.c.h.s8.bf16 %v1251_v48  ;;  %v1987_v56 = vunpack.c.l.s8.bf16 %v1123_v47  ;;  %v2242_v62 = vunpack.c.l.s8.bf16 %v1250_v52 }
 0x355   : > { %v2243_v57 = vunpack.c.l.s8.bf16 %v1251_v48 }
 0x356   : > { %3073 = vmatpush1.bf16.msra.mxu0 %v1874_v54  ;;  %v2002_v54 = vunpack.c.h.s8.bf16 %v1122_v32 }
 0x357   : > { %3114 = vmatpush1.bf16.msra.mxu1 %v2130_v55  ;;  %3074 = vmatprep.subr.bf16.mxu0 %v1859_v43  ;;  %v2258_v55 = vunpack.c.h.s8.bf16 %v1250_v52  ;;  %v1107_v43 = vld [vmem:[%s8101_s16 + $0xac8] sm:$0xff] }
 0x358   : > { %3115 = vmatprep.subr.bf16.mxu1 %v2115_v58  ;;  %v1235_v58 = vld [vmem:[%s8101_s16 + $0xec8] sm:$0xff] }
 0x35a   : > { %3075 = vmatpush1.bf16.msra.mxu0 %v1858_v1  ;;  %v1971_v1 = vunpack.c.h.s8.bf16 %v1107_v43 }
 0x35b   : > { %3116 = vmatpush1.bf16.msra.mxu1 %v2114_v2  ;;  %3076 = vmatprep.subr.bf16.mxu0 %v1843_v3  ;;  %v2227_v2 = vunpack.c.h.s8.bf16 %v1235_v58  ;;  %v1106_v3 = vld [vmem:[%s8101_s16 + $0xac0] sm:$0xff] }
 0x35c   : > { %3117 = vmatprep.subr.bf16.mxu1 %v2099_v5  ;;  %v1234_v5 = vld [vmem:[%s8101_s16 + $0xec0] sm:$0xff]  ;;  %v1970_v17 = vunpack.c.h.s8.bf16 %v1106_v3  ;;  %v1954_v11 = vunpack.c.l.s8.bf16 %v1106_v3 }
 0x35d   : > { %v2226_v18 = vunpack.c.h.s8.bf16 %v1234_v5  ;;  %v2210_v12 = vunpack.c.l.s8.bf16 %v1234_v5 }
 0x35e   : > { %3077 = vmatpush1.bf16.msra.mxu0 %v1842_v7  ;;  %v1955_v7 = vunpack.c.l.s8.bf16 %v1107_v43 }
 0x35f   : > { %3118 = vmatpush1.bf16.msra.mxu1 %v2098_v8  ;;  %3078 = vmatprep.subr.bf16.mxu0 %v1827_v9  ;;  %v2211_v8 = vunpack.c.l.s8.bf16 %v1235_v58  ;;  %v1091_v9 = vld [vmem:[%s8101_s16 + $0xa48] sm:$0xff] }
 0x360   : > { %3119 = vmatprep.subr.bf16.mxu1 %v2083_v10  ;;  %v1219_v10 = vld [vmem:[%s8101_s16 + $0xe48] sm:$0xff] }
 0x362   : > { %3079 = vmatpush1.bf16.msra.mxu0 %v1826_v13  ;;  %v1939_v13 = vunpack.c.h.s8.bf16 %v1091_v9 }
 0x363   : > { %3120 = vmatpush1.bf16.msra.mxu1 %v2082_v14  ;;  %3080 = vmatprep.subr.bf16.mxu0 %v1811_v19  ;;  %v2195_v14 = vunpack.c.h.s8.bf16 %v1219_v10  ;;  %v1090_v19 = vld [vmem:[%s8101_s16 + $0xa40] sm:$0xff] }
 0x364   : > { %3121 = vmatprep.subr.bf16.mxu1 %v2067_v20  ;;  %v1218_v20 = vld [vmem:[%s8101_s16 + $0xe40] sm:$0xff]  ;;  %v1938_v21 = vunpack.c.h.s8.bf16 %v1090_v19  ;;  %v1922_v27 = vunpack.c.l.s8.bf16 %v1090_v19 }
 0x365   : > { %v2194_v22 = vunpack.c.h.s8.bf16 %v1218_v20  ;;  %v2178_v28 = vunpack.c.l.s8.bf16 %v1218_v20 }
 0x366   : > { %3081 = vmatpush1.bf16.msra.mxu0 %v1810_v63  ;;  %v1923_v63 = vunpack.c.l.s8.bf16 %v1091_v9 }
 0x367   : > { %3122 = vmatpush1.bf16.msra.mxu1 %v2066_v23  ;;  %3082 = vmatprep.subr.bf16.mxu0 %v1795_v25  ;;  %v2179_v23 = vunpack.c.l.s8.bf16 %v1219_v10  ;;  %v821_v25 = vld [vmem:[%s8101_s16 + $0x1d8] sm:$0xff] }
 0x368   : > { %3123 = vmatprep.subr.bf16.mxu1 %v2051_v26  ;;  %v949_v26 = vld [vmem:[%s8101_s16 + $0x5d8] sm:$0xff] }
 0x36a   : > { %3083 = vmatpush1.bf16.msra.mxu0 %v1794_v30  ;;  %v1397_v30 = vunpack.c.h.s8.bf16 %v821_v25 }
 0x36b   : > { %3124 = vmatpush1.bf16.msra.mxu1 %v2050_v31  ;;  %3084 = vmatprep.subr.bf16.mxu0 %v2035_v33  ;;  %v1653_v31 = vunpack.c.h.s8.bf16 %v949_v26  ;;  %v820_v33 = vld [vmem:[%s8101_s16 + $0x1d0] sm:$0xff] }
 0x36c   : > { %3125 = vmatprep.subr.bf16.mxu1 %v2291_v34  ;;  %v948_v34 = vld [vmem:[%s8101_s16 + $0x5d0] sm:$0xff]  ;;  %v1396_v36 = vunpack.c.h.s8.bf16 %v820_v33 }
 0x36d   : > { %v1652_v37 = vunpack.c.h.s8.bf16 %v948_v34 }
 0x36e   : > { %3085 = vmatpush2.bf16.msra.mxu0 %v2034_v38  ;;  %v1381_v38 = vunpack.c.l.s8.bf16 %v821_v25 }
 0x36f   : > { %3126 = vmatpush2.bf16.msra.mxu1 %v2290_v40  ;;  %3086 = vmatprep.subr.bf16.mxu0 %v2019_v35  ;;  %v1637_v40 = vunpack.c.l.s8.bf16 %v949_v26  ;;  %v805_v35 = vld [vmem:[%s8101_s16 + $0x158] sm:$0xff] }
 0x370   : > { %3127 = vmatprep.subr.bf16.mxu1 %v2275_v29  ;;  %v933_v29 = vld [vmem:[%s8101_s16 + $0x558] sm:$0xff]  ;;  %v1365_v52 = vunpack.c.h.s8.bf16 %v805_v35  ;;  %v1349_v3 = vunpack.c.l.s8.bf16 %v805_v35 }
 0x371   : > { %v1605_v5 = vunpack.c.l.s8.bf16 %v933_v29 }
 0x372   : > { %3087 = vmatpush2.bf16.msra.mxu0 %v2018_v49 }
 0x373   : > { %3128 = vmatpush2.bf16.msra.mxu1 %v2274_v44  ;;  %3088 = vmatprep.subr.bf16.mxu0 %v2003_v39  ;;  %v1380_v44 = vunpack.c.l.s8.bf16 %v820_v33  ;;  %v1636_v39 = vunpack.c.l.s8.bf16 %v948_v34 }
 0x374   : > { %3129 = vmatprep.subr.bf16.mxu1 %v2259_v51 }
 0x376   : > { %3089 = vmatpush2.bf16.msra.mxu0 %v2002_v54  ;;  %v1621_v54 = vunpack.c.h.s8.bf16 %v933_v29 }
 0x377   : > { %3130 = vmatpush2.bf16.msra.mxu1 %v2258_v55  ;;  %3090 = vmatprep.subr.bf16.mxu0 %v1987_v56  ;;  %v804_v55 = vld [vmem:[%s8101_s16 + $0x150] sm:$0xff] }
 0x378   : > { %3131 = vmatprep.subr.bf16.mxu1 %v2243_v57  ;;  %v932_v56 = vld [vmem:[%s8101_s16 + $0x550] sm:$0xff] }
 0x37a   : > { %3091 = vmatpush2.bf16.msra.mxu0 %v1986_v61  ;;  %v1364_v61 = vunpack.c.h.s8.bf16 %v804_v55 }
 0x37b   : > { %3132 = vmatpush2.bf16.msra.mxu1 %v2242_v62  ;;  %3092 = vmatprep.subr.bf16.mxu0 %v1971_v1  ;;  %v1620_v62 = vunpack.c.h.s8.bf16 %v932_v56 }
 0x37c   : > { %3133 = vmatprep.subr.bf16.mxu1 %v2227_v2 }
 0x37e   : > { %3093 = vmatpush2.bf16.msra.mxu0 %v1970_v17  ;;  %v789_v17 = vld [vmem:[%s8101_s16 + $0xd8] sm:$0xff] }
 0x37f   : > { %3134 = vmatpush2.bf16.msra.mxu1 %v2226_v18  ;;  %3094 = vmatprep.subr.bf16.mxu0 %v1955_v7  ;;  %v917_v18 = vld [vmem:[%s8101_s16 + $0x4d8] sm:$0xff]  ;;  %v1348_v7 = vunpack.c.l.s8.bf16 %v804_v55  ;;  %v1333_v9 = vunpack.c.h.s8.bf16 %v789_v17  ;;  %v1317_v19 = vunpack.c.l.s8.bf16 %v789_v17 }
 0x380   : > { %3135 = vmatprep.subr.bf16.mxu1 %v2211_v8  ;;  %v1604_v8 = vunpack.c.l.s8.bf16 %v932_v56  ;;  %v1589_v10 = vunpack.c.h.s8.bf16 %v917_v18  ;;  %v1573_v20 = vunpack.c.l.s8.bf16 %v917_v18  ;;  %v853_v17 = vld [vmem:[%s8101_s16 + $0x2d8] sm:$0xff] }
 0x381   : > { %v981_v18 = vld [vmem:[%s8101_s16 + $0x6d8] sm:$0xff] }
 0x382   : > { %3095 = vmatpush2.bf16.msra.mxu0 %v1954_v11  ;;  %v788_v11 = vld [vmem:[%s8101_s16 + $0xd0] sm:$0xff] }
 0x383   : > { %3136 = vmatpush2.bf16.msra.mxu1 %v2210_v12  ;;  %3096 = vmatprep.subr.bf16.mxu0 %v1939_v13  ;;  %v916_v12 = vld [vmem:[%s8101_s16 + $0x4d0] sm:$0xff]  ;;  %v1332_v13 = vunpack.c.h.s8.bf16 %v788_v11 }
 0x384   : > { %3137 = vmatprep.subr.bf16.mxu1 %v2195_v14  ;;  %v1588_v14 = vunpack.c.h.s8.bf16 %v916_v12 }
 0x386   : > { %3097 = vmatpush2.bf16.msra.mxu0 %v1938_v21  ;;  %v773_v21 = vld [vmem:[%s8101_s16 + $0x58] sm:$0xff] }
 0x387   : > { %3138 = vmatpush2.bf16.msra.mxu1 %v2194_v22  ;;  %3098 = vmatprep.subr.bf16.mxu0 %v1923_v63  ;;  %v901_v22 = vld [vmem:[%s8101_s16 + $0x458] sm:$0xff]  ;;  %v1316_v63 = vunpack.c.l.s8.bf16 %v788_v11  ;;  %v1301_v25 = vunpack.c.h.s8.bf16 %v773_v21  ;;  %v1285_v33 = vunpack.c.l.s8.bf16 %v773_v21  ;;  %v852_v11 = vld [vmem:[%s8101_s16 + $0x2d0] sm:$0xff] }
 0x388   : > { %3139 = vmatprep.subr.bf16.mxu1 %v2179_v23  ;;  %v1572_v23 = vunpack.c.l.s8.bf16 %v916_v12  ;;  %v1557_v26 = vunpack.c.h.s8.bf16 %v901_v22  ;;  %v1541_v34 = vunpack.c.l.s8.bf16 %v901_v22  ;;  %v980_v12 = vld [vmem:[%s8101_s16 + $0x6d0] sm:$0xff]  ;;  %v837_v21 = vld [vmem:[%s8101_s16 + $0x258] sm:$0xff] }
 0x389   : > { %v965_v22 = vld [vmem:[%s8101_s16 + $0x658] sm:$0xff] }
 0x38a   : > { %3099 = vmatpush2.bf16.msra.mxu0 %v1922_v27  ;;  %v772_v27 = vld [vmem:[%s8101_s16 + $0x50] sm:$0xff] }
 0x38b   : > { %3140 = vmatpush2.bf16.msra.mxu1 %v2178_v28  ;;  %3150 = vmatprep.subr.bf16.mxu0 %v1397_v30  ;;  %v900_v28 = vld [vmem:[%s8101_s16 + $0x450] sm:$0xff]  ;;  %v1300_v30 = vunpack.c.h.s8.bf16 %v772_v27 }
 0x38c   : > { %3191 = vmatprep.subr.bf16.mxu1 %v1653_v31  ;;  %v1556_v31 = vunpack.c.h.s8.bf16 %v900_v28 }
 0x38d   : > { %v2856_v47 = vpop.f32.mrf.mxu0  ;;  %3101 = vmatmul.mubr.bf16.vlgmr.msra.gmra.mxu0 %v8245_v59 }
 0x38e   : > { %v2897_v48 = vpop.f32.mrf.mxu1  ;;  %3142 = vmatmul.mubr.bf16.vlgmr.msra.gmra.mxu1 %v8249_v60  ;;  %3151 = vmatpush1.bf16.msra.mxu0 %v1396_v36  ;;  %v885_v36 = vld [vmem:[%s8101_s16 + $0x3d8] sm:$0xff] }
 0x38f   : > { %v8573_v49 = vadd.f32 %v2897_v48, %v2856_v47  ;;  %3192 = vmatpush1.bf16.msra.mxu1 %v1652_v37  ;;  %v2858_v51 = vpop.f32.mrf.mxu0  ;;  %3152 = vmatprep.subr.bf16.mxu0 %v1381_v38  ;;  %v1013_v37 = vld [vmem:[%s8101_s16 + $0x7d8] sm:$0xff]  ;;  %v1284_v38 = vunpack.c.l.s8.bf16 %v772_v27  ;;  %v1525_v35 = vunpack.c.h.s8.bf16 %v885_v36  ;;  %v884_v47 = vld [vmem:[%s8101_s16 + $0x3d0] sm:$0xff] }
 0x390   : > { %v2899_v32 = vpop.f32.mrf.mxu1  ;;  %3193 = vmatprep.subr.bf16.mxu1 %v1637_v40  ;;  %3182 = vmatprep.mubr.bf16.mxu0 %v8155_v4  ;;  %v1540_v40 = vunpack.c.l.s8.bf16 %v900_v28  ;;  %v1781_v29 = vunpack.c.h.s8.bf16 %v1013_v37  ;;  %v1012_v48 = vld [vmem:[%s8101_s16 + $0x7d0] sm:$0xff]  ;;  %v1508_v55 = vunpack.c.l.s8.bf16 %v884_v47 }
 0x391   : > { %v8577_v57 = vadd.f32 %v2899_v32, %v2858_v51  ;;  %3223 = vmatprep.mubr.bf16.mxu1 %v8159_v6  ;;  %v2860_v43 = vpop.f32.mrf.mxu0  ;;  %v1509_v51 = vunpack.c.l.s8.bf16 %v885_v36  ;;  %v1765_v32 = vunpack.c.l.s8.bf16 %v1013_v37  ;;  %v1764_v56 = vunpack.c.l.s8.bf16 %v1012_v48  ;;  %v836_v27 = vld [vmem:[%s8101_s16 + $0x250] sm:$0xff]  ;;  %v1077_v36 = vld [vmem:[%s8101_s16 + $0x9d8] sm:$0xff] }
 0x392   : > { %v2901_v58 = vpop.f32.mrf.mxu1  ;;  %3153 = vmatpush1.bf16.msra.mxu0 %v1380_v44  ;;  %v1524_v44 = vunpack.c.h.s8.bf16 %v884_v47  ;;  %v964_v28 = vld [vmem:[%s8101_s16 + $0x650] sm:$0xff]  ;;  %v1205_v37 = vld [vmem:[%s8101_s16 + $0xdd8] sm:$0xff] }
 0x393   : > { %3194 = vmatpush1.bf16.msra.mxu1 %v1636_v39  ;;  %v2861_v1 = vpop.f32.mrf.mxu0  ;;  %3154 = vmatprep.subr.bf16.mxu0 %v1365_v52  ;;  %v1780_v39 = vunpack.c.h.s8.bf16 %v1012_v48  ;;  %v869_v52 = vld [vmem:[%s8101_s16 + $0x358] sm:$0xff]  ;;  %v1076_v47 = vld [vmem:[%s8101_s16 + $0x9d0] sm:$0xff] }
 0x394   : > { %v2902_v2 = vpop.f32.mrf.mxu1  ;;  %3195 = vmatprep.subr.bf16.mxu1 %v1621_v54  ;;  %v997_v54 = vld [vmem:[%s8101_s16 + $0x758] sm:$0xff]  ;;  %v1493_v43 = vunpack.c.h.s8.bf16 %v869_v52  ;;  %v1204_v48 = vld [vmem:[%s8101_s16 + $0xdd0] sm:$0xff] }
 0x395   : > { %v1749_v58 = vunpack.c.h.s8.bf16 %v997_v54 }
 0x396   : > { %3155 = vmatpush1.bf16.msra.mxu0 %v1364_v61  ;;  %v868_v61 = vld [vmem:[%s8101_s16 + $0x350] sm:$0xff] }
 0x397   : > { %3196 = vmatpush1.bf16.msra.mxu1 %v1620_v62  ;;  %3156 = vmatprep.subr.bf16.mxu0 %v1349_v3  ;;  %v996_v62 = vld [vmem:[%s8101_s16 + $0x750] sm:$0xff]  ;;  %v1492_v1 = vunpack.c.h.s8.bf16 %v868_v61  ;;  %v1477_v3 = vunpack.c.l.s8.bf16 %v869_v52  ;;  %v1061_v52 = vld [vmem:[%s8101_s16 + $0x958] sm:$0xff] }
 0x398   : > { %3197 = vmatprep.subr.bf16.mxu1 %v1605_v5  ;;  %v1748_v2 = vunpack.c.h.s8.bf16 %v996_v62  ;;  %v1733_v5 = vunpack.c.l.s8.bf16 %v997_v54  ;;  %v1189_v54 = vld [vmem:[%s8101_s16 + $0xd58] sm:$0xff] }
 0x39a   : > { %3157 = vmatpush1.bf16.msra.mxu0 %v1348_v7  ;;  %v1476_v7 = vunpack.c.l.s8.bf16 %v868_v61  ;;  %v2148_v61 = vunpack.c.l.s8.bf16 %v1204_v48 }
 0x39b   : > { %3198 = vmatpush1.bf16.msra.mxu1 %v1604_v8  ;;  %3158 = vmatprep.subr.bf16.mxu0 %v1333_v9  ;;  %v1732_v8 = vunpack.c.l.s8.bf16 %v996_v62  ;;  %v1461_v9 = vunpack.c.h.s8.bf16 %v853_v17 }
 0x39c   : > { %3199 = vmatprep.subr.bf16.mxu1 %v1589_v10  ;;  %v1717_v10 = vunpack.c.h.s8.bf16 %v981_v18 }
 0x39e   : > { %3159 = vmatpush1.bf16.msra.mxu0 %v1332_v13  ;;  %v1460_v13 = vunpack.c.h.s8.bf16 %v852_v11 }
 0x39f   : > { %3200 = vmatpush1.bf16.msra.mxu1 %v1588_v14  ;;  %3160 = vmatprep.subr.bf16.mxu0 %v1317_v19  ;;  %v1716_v14 = vunpack.c.h.s8.bf16 %v980_v12  ;;  %v1445_v19 = vunpack.c.l.s8.bf16 %v853_v17  ;;  %v1188_v17 = vld [vmem:[%s8101_s16 + $0xd50] sm:$0xff] }
 0x3a0   : > { %3201 = vmatprep.subr.bf16.mxu1 %v1573_v20  ;;  %v1701_v20 = vunpack.c.l.s8.bf16 %v981_v18 }
 0x3a2   : > { %3161 = vmatpush1.bf16.msra.mxu0 %v1316_v63  ;;  %v1444_v63 = vunpack.c.l.s8.bf16 %v852_v11  ;;  %v2132_v11 = vunpack.c.h.s8.bf16 %v1188_v17 }
 0x3a3   : > { %3202 = vmatpush1.bf16.msra.mxu1 %v1572_v23  ;;  %3162 = vmatprep.subr.bf16.mxu0 %v1301_v25  ;;  %v1700_v23 = vunpack.c.l.s8.bf16 %v980_v12  ;;  %v1429_v25 = vunpack.c.h.s8.bf16 %v837_v21 }
 0x3a4   : > { %3203 = vmatprep.subr.bf16.mxu1 %v1557_v26  ;;  %v1685_v26 = vunpack.c.h.s8.bf16 %v965_v22 }
 0x3a6   : > { %3163 = vmatpush1.bf16.msra.mxu0 %v1300_v30  ;;  %v1428_v30 = vunpack.c.h.s8.bf16 %v836_v27 }
 0x3a7   : > { %3204 = vmatpush1.bf16.msra.mxu1 %v1556_v31  ;;  %3164 = vmatprep.subr.bf16.mxu0 %v1285_v33  ;;  %v1684_v31 = vunpack.c.h.s8.bf16 %v964_v28  ;;  %v1413_v33 = vunpack.c.l.s8.bf16 %v837_v21 }
 0x3a8   : > { %3205 = vmatprep.subr.bf16.mxu1 %v1541_v34  ;;  %v1669_v34 = vunpack.c.l.s8.bf16 %v965_v22  ;;  %v2116_v22 = vunpack.c.l.s8.bf16 %v1188_v17 }
 0x3aa   : > { %3165 = vmatpush1.bf16.msra.mxu0 %v1284_v38  ;;  %v1412_v38 = vunpack.c.l.s8.bf16 %v836_v27 }
 0x3ab   : > { %3206 = vmatpush1.bf16.msra.mxu1 %v1540_v40  ;;  %3166 = vmatprep.subr.bf16.mxu0 %v1525_v35  ;;  %v1668_v40 = vunpack.c.l.s8.bf16 %v964_v28  ;;  %v1909_v35 = vunpack.c.h.s8.bf16 %v1077_v36 }
 0x3ac   : > { %3207 = vmatprep.subr.bf16.mxu1 %v1781_v29  ;;  %v2165_v29 = vunpack.c.h.s8.bf16 %v1205_v37 }
 0x3ae   : > { %3167 = vmatpush2.bf16.msra.mxu0 %v1524_v44  ;;  %v1908_v44 = vunpack.c.h.s8.bf16 %v1076_v47 }
 0x3af   : > { %3208 = vmatpush2.bf16.msra.mxu1 %v1780_v39  ;;  %3168 = vmatprep.subr.bf16.mxu0 %v1509_v51  ;;  %v2164_v39 = vunpack.c.h.s8.bf16 %v1204_v48  ;;  %v1893_v51 = vunpack.c.l.s8.bf16 %v1077_v36 }
 0x3b0   : > { %3209 = vmatprep.subr.bf16.mxu1 %v1765_v32  ;;  %v2149_v32 = vunpack.c.l.s8.bf16 %v1205_v37 }
 0x3b2   : > { %3169 = vmatpush2.bf16.msra.mxu0 %v1508_v55 }
 0x3b3   : > { %3210 = vmatpush2.bf16.msra.mxu1 %v1764_v56  ;;  %3170 = vmatprep.subr.bf16.mxu0 %v1493_v43 }
 0x3b4   : > { %3211 = vmatprep.subr.bf16.mxu1 %v1749_v58  ;;  %v1892_v58 = vunpack.c.l.s8.bf16 %v1076_v47 }
 0x3b6   : > { %3171 = vmatpush2.bf16.msra.mxu0 %v1492_v1 }
 0x3b7   : > { %3212 = vmatpush2.bf16.msra.mxu1 %v1748_v2  ;;  %3172 = vmatprep.subr.bf16.mxu0 %v1477_v3  ;;  %v1877_v2 = vunpack.c.h.s8.bf16 %v1061_v52  ;;  %v2133_v3 = vunpack.c.h.s8.bf16 %v1189_v54 }
 0x3b8   : > { %3213 = vmatprep.subr.bf16.mxu1 %v1733_v5  ;;  %v1060_v5 = vld [vmem:[%s8101_s16 + $0x950] sm:$0xff] }
 0x3b9   : > { %v1860_v21 = vunpack.c.l.s8.bf16 %v1060_v5 }
 0x3ba   : > { %3173 = vmatpush2.bf16.msra.mxu0 %v1476_v7 }
 0x3bb   : > { %3214 = vmatpush2.bf16.msra.mxu1 %v1732_v8  ;;  %3174 = vmatprep.subr.bf16.mxu0 %v1461_v9 }
 0x3bc   : > { %3215 = vmatprep.subr.bf16.mxu1 %v1717_v10  ;;  %v1876_v10 = vunpack.c.h.s8.bf16 %v1060_v5  ;;  %v1253_v5 = vld [vmem:[%s8101_s16 + $0xf58] sm:$0xff] }
 0x3be   : > { %3175 = vmatpush2.bf16.msra.mxu0 %v1460_v13 }
 0x3bf   : > { %3216 = vmatpush2.bf16.msra.mxu1 %v1716_v14  ;;  %3176 = vmatprep.subr.bf16.mxu0 %v1445_v19  ;;  %v2117_v14 = vunpack.c.l.s8.bf16 %v1189_v54  ;;  %v1045_v19 = vld [vmem:[%s8101_s16 + $0x8d8] sm:$0xff] }
 0x3c0   : > { %3217 = vmatprep.subr.bf16.mxu1 %v1701_v20  ;;  %v1173_v20 = vld [vmem:[%s8101_s16 + $0xcd8] sm:$0xff] }
 0x3c2   : > { %3177 = vmatpush2.bf16.msra.mxu0 %v1444_v63  ;;  %v1845_v63 = vunpack.c.h.s8.bf16 %v1045_v19 }
 0x3c3   : > { %3218 = vmatpush2.bf16.msra.mxu1 %v1700_v23  ;;  %3178 = vmatprep.subr.bf16.mxu0 %v1429_v25  ;;  %v2101_v23 = vunpack.c.h.s8.bf16 %v1173_v20  ;;  %v1044_v25 = vld [vmem:[%s8101_s16 + $0x8d0] sm:$0xff] }
 0x3c4   : > { %3219 = vmatprep.subr.bf16.mxu1 %v1685_v26  ;;  %v1172_v26 = vld [vmem:[%s8101_s16 + $0xcd0] sm:$0xff]  ;;  %v1844_v27 = vunpack.c.h.s8.bf16 %v1044_v25  ;;  %v1828_v36 = vunpack.c.l.s8.bf16 %v1044_v25 }
 0x3c5   : > { %v2100_v28 = vunpack.c.h.s8.bf16 %v1172_v26  ;;  %v2084_v37 = vunpack.c.l.s8.bf16 %v1172_v26  ;;  %v1108_v25 = vld [vmem:[%s8101_s16 + $0xad0] sm:$0xff] }
 0x3c6   : > { %3179 = vmatpush2.bf16.msra.mxu0 %v1428_v30  ;;  %v1829_v30 = vunpack.c.l.s8.bf16 %v1045_v19  ;;  %v1109_v19 = vld [vmem:[%s8101_s16 + $0xad8] sm:$0xff]  ;;  %v1236_v26 = vld [vmem:[%s8101_s16 + $0xed0] sm:$0xff] }
 0x3c7   : > { %3220 = vmatpush2.bf16.msra.mxu1 %v1684_v31  ;;  %3180 = vmatprep.subr.bf16.mxu0 %v1413_v33  ;;  %v2085_v31 = vunpack.c.l.s8.bf16 %v1173_v20  ;;  %v1029_v33 = vld [vmem:[%s8101_s16 + $0x858] sm:$0xff] }
 0x3c8   : > { %3221 = vmatprep.subr.bf16.mxu1 %v1669_v34  ;;  %v1157_v34 = vld [vmem:[%s8101_s16 + $0xc58] sm:$0xff] }
 0x3c9   : > { %v1237_v20 = vld [vmem:[%s8101_s16 + $0xed8] sm:$0xff] }
 0x3ca   : > { %3181 = vmatpush2.bf16.msra.mxu0 %v1412_v38  ;;  %v1813_v38 = vunpack.c.h.s8.bf16 %v1029_v33 }
 0x3cb   : > { %3222 = vmatpush2.bf16.msra.mxu1 %v1668_v40  ;;  %3232 = vmatprep.subr.bf16.mxu0 %v1909_v35  ;;  %v2069_v40 = vunpack.c.h.s8.bf16 %v1157_v34  ;;  %v1028_v35 = vld [vmem:[%s8101_s16 + $0x850] sm:$0xff] }
 0x3cc   : > { %3273 = vmatprep.subr.bf16.mxu1 %v2165_v29  ;;  %v1156_v29 = vld [vmem:[%s8101_s16 + $0xc50] sm:$0xff]  ;;  %v1812_v47 = vunpack.c.h.s8.bf16 %v1028_v35 }
 0x3cd   : > { %v2938_v55 = vpop.f32.mrf.mxu0  ;;  %3183 = vmatmul.mubr.bf16.vlgmr.msra.gmra.mxu0 %v8189_v15  ;;  %v2068_v48 = vunpack.c.h.s8.bf16 %v1156_v29  ;;  %v2052_v54 = vunpack.c.l.s8.bf16 %v1156_v29  ;;  %v1220_v29 = vld [vmem:[%s8101_s16 + $0xe50] sm:$0xff] }
 0x3ce   : > { %v2979_v56 = vpop.f32.mrf.mxu1  ;;  %3224 = vmatmul.mubr.bf16.vlgmr.msra.gmra.mxu1 %v8193_v16  ;;  %v2939_v43 = vadd.f32 %v2938_v55, %v8573_v49  ;;  %3233 = vmatpush1.bf16.msra.mxu0 %v1908_v44  ;;  %v1797_v44 = vunpack.c.l.s8.bf16 %v1029_v33  ;;  %v1093_v33 = vld [vmem:[%s8101_s16 + $0xa58] sm:$0xff] }
 0x3cf   : > { %3274 = vmatpush1.bf16.msra.mxu1 %v2164_v39  ;;  %v2940_v62 = vpop.f32.mrf.mxu0  ;;  %3234 = vmatprep.subr.bf16.mxu0 %v1893_v51  ;;  %v2053_v39 = vunpack.c.l.s8.bf16 %v1157_v34  ;;  %v1141_v51 = vld [vmem:[%s8101_s16 + $0xbd8] sm:$0xff] }
 0x3d0   : > { %v2981_v1 = vpop.f32.mrf.mxu1  ;;  %3275 = vmatprep.subr.bf16.mxu1 %v2149_v32  ;;  %v8616_v18 = vadd.f32 %v2979_v56, %v2939_v43  ;;  %v2941_v7 = vadd.f32 %v2940_v62, %v8577_v57  ;;  %3264 = vmatprep.mubr.bf16.mxu0 %v8203_v0  ;;  %v1861_v57 = vunpack.c.l.s8.bf16 %v1061_v52  ;;  %v1269_v32 = vld [vmem:[%s8101_s16 + $0xfd8] sm:$0xff]  ;;  %v1796_v52 = vunpack.c.l.s8.bf16 %v1028_v35  ;;  %v1140_v43 = vld [vmem:[%s8101_s16 + $0xbd0] sm:$0xff] }
 0x3d1   : > { %3305 = vmatprep.mubr.bf16.mxu1 %v8207_v24  ;;  %v2942_v49 = vpop.f32.mrf.mxu0  ;;  %v2037_v55 = vunpack.c.h.s8.bf16 %v1141_v51  ;;  %v2293_v56 = vunpack.c.h.s8.bf16 %v1269_v32  ;;  %v2020_v17 = vunpack.c.l.s8.bf16 %v1140_v43  ;;  %v1221_v34 = vld [vmem:[%s8101_s16 + $0xe58] sm:$0xff]  ;;  %v1092_v35 = vld [vmem:[%s8101_s16 + $0xa50] sm:$0xff] }
 0x3d2   : > { %v2983_v8 = vpop.f32.mrf.mxu1  ;;  %v8621_v9 = vadd.f32 %v2981_v1, %v2941_v7  ;;  %3235 = vmatpush1.bf16.msra.mxu0 %v1892_v58  ;;  %v1268_v58 = vld [vmem:[%s8101_s16 + $0xfd0] sm:$0xff]  ;;  %v2021_v1 = vunpack.c.l.s8.bf16 %v1141_v51  ;;  %v823_v51 = vld [vmem:[%s8101_s16 + $0x1e8] sm:$0xff] }
 0x3d3   : > { %3276 = vmatpush1.bf16.msra.mxu1 %v2148_v61  ;;  %v2943_v12 = vpop.f32.mrf.mxu0  ;;  %3236 = vmatprep.subr.bf16.mxu0 %v1877_v2  ;;  %v2036_v61 = vunpack.c.h.s8.bf16 %v1140_v43  ;;  %v2292_v62 = vunpack.c.h.s8.bf16 %v1268_v58  ;;  %v2277_v2 = vunpack.c.l.s8.bf16 %v1269_v32  ;;  %v2276_v7 = vunpack.c.l.s8.bf16 %v1268_v58  ;;  %v951_v32 = vld [vmem:[%s8101_s16 + $0x5e8] sm:$0xff]  ;;  %v822_v43 = vld [vmem:[%s8101_s16 + $0x1e0] sm:$0xff] }
 0x3d4   : > { %v2984_v13 = vpop.f32.mrf.mxu1  ;;  %3277 = vmatprep.subr.bf16.mxu1 %v2133_v3  ;;  %v1125_v3 = vld [vmem:[%s8101_s16 + $0xb58] sm:$0xff]  ;;  %v2261_v8 = vunpack.c.h.s8.bf16 %v1253_v5  ;;  %v950_v58 = vld [vmem:[%s8101_s16 + $0x5e0] sm:$0xff] }
 0x3d5   : > { %v2005_v49 = vunpack.c.h.s8.bf16 %v1125_v3 }
 0x3d6   : > { %3237 = vmatpush1.bf16.msra.mxu0 %v1876_v10  ;;  %v1124_v10 = vld [vmem:[%s8101_s16 + $0xb50] sm:$0xff] }
 0x3d7   : > { %3278 = vmatpush1.bf16.msra.mxu1 %v2132_v11  ;;  %3238 = vmatprep.subr.bf16.mxu0 %v1861_v57  ;;  %v1252_v11 = vld [vmem:[%s8101_s16 + $0xf50] sm:$0xff]  ;;  %v2004_v12 = vunpack.c.h.s8.bf16 %v1124_v10  ;;  %v1989_v57 = vunpack.c.l.s8.bf16 %v1125_v3  ;;  %v807_v3 = vld [vmem:[%s8101_s16 + $0x168] sm:$0xff] }
 0x3d8   : > { %3279 = vmatprep.subr.bf16.mxu1 %v2117_v14  ;;  %v2260_v13 = vunpack.c.h.s8.bf16 %v1252_v11  ;;  %v2245_v14 = vunpack.c.l.s8.bf16 %v1253_v5  ;;  %v935_v5 = vld [vmem:[%s8101_s16 + $0x568] sm:$0xff] }
 0x3da   : > { %3239 = vmatpush1.bf16.msra.mxu0 %v1860_v21  ;;  %v1988_v21 = vunpack.c.l.s8.bf16 %v1124_v10  ;;  %v1638_v10 = vunpack.c.l.s8.bf16 %v950_v58 }
 0x3db   : > { %3280 = vmatpush1.bf16.msra.mxu1 %v2116_v22  ;;  %3240 = vmatprep.subr.bf16.mxu0 %v1845_v63  ;;  %v2244_v22 = vunpack.c.l.s8.bf16 %v1252_v11  ;;  %v1973_v63 = vunpack.c.h.s8.bf16 %v1109_v19 }
 0x3dc   : > { %3281 = vmatprep.subr.bf16.mxu1 %v2101_v23  ;;  %v2229_v23 = vunpack.c.h.s8.bf16 %v1237_v20 }
 0x3de   : > { %3241 = vmatpush1.bf16.msra.mxu0 %v1844_v27  ;;  %v1972_v27 = vunpack.c.h.s8.bf16 %v1108_v25 }
 0x3df   : > { %3282 = vmatpush1.bf16.msra.mxu1 %v2100_v28  ;;  %3242 = vmatprep.subr.bf16.mxu0 %v1829_v30  ;;  %v2228_v28 = vunpack.c.h.s8.bf16 %v1236_v26  ;;  %v1957_v30 = vunpack.c.l.s8.bf16 %v1109_v19  ;;  %v934_v19 = vld [vmem:[%s8101_s16 + $0x560] sm:$0xff] }
 0x3e0   : > { %3283 = vmatprep.subr.bf16.mxu1 %v2085_v31  ;;  %v2213_v31 = vunpack.c.l.s8.bf16 %v1237_v20 }
 0x3e2   : > { %3243 = vmatpush1.bf16.msra.mxu0 %v1828_v36  ;;  %v1956_v36 = vunpack.c.l.s8.bf16 %v1108_v25 }
 0x3e3   : > { %3284 = vmatpush1.bf16.msra.mxu1 %v2084_v37  ;;  %3244 = vmatprep.subr.bf16.mxu0 %v1813_v38  ;;  %v2212_v37 = vunpack.c.l.s8.bf16 %v1236_v26  ;;  %v1941_v38 = vunpack.c.h.s8.bf16 %v1093_v33 }
 0x3e4   : > { %3285 = vmatprep.subr.bf16.mxu1 %v2069_v40  ;;  %v2197_v40 = vunpack.c.h.s8.bf16 %v1221_v34 }
 0x3e6   : > { %3245 = vmatpush1.bf16.msra.mxu0 %v1812_v47  ;;  %v1940_v47 = vunpack.c.h.s8.bf16 %v1092_v35 }
 0x3e7   : > { %3286 = vmatpush1.bf16.msra.mxu1 %v2068_v48  ;;  %3246 = vmatprep.subr.bf16.mxu0 %v1797_v44  ;;  %v2196_v48 = vunpack.c.h.s8.bf16 %v1220_v29  ;;  %v1925_v44 = vunpack.c.l.s8.bf16 %v1093_v33 }
 0x3e8   : > { %3287 = vmatprep.subr.bf16.mxu1 %v2053_v39  ;;  %v2181_v39 = vunpack.c.l.s8.bf16 %v1221_v34  ;;  %v1606_v34 = vunpack.c.l.s8.bf16 %v934_v19 }
 0x3ea   : > { %3247 = vmatpush1.bf16.msra.mxu0 %v1796_v52  ;;  %v1924_v52 = vunpack.c.l.s8.bf16 %v1092_v35 }
 0x3eb   : > { %3288 = vmatpush1.bf16.msra.mxu1 %v2052_v54  ;;  %3248 = vmatprep.subr.bf16.mxu0 %v2037_v55  ;;  %v2180_v54 = vunpack.c.l.s8.bf16 %v1220_v29  ;;  %v1399_v55 = vunpack.c.h.s8.bf16 %v823_v51 }
 0x3ec   : > { %3289 = vmatprep.subr.bf16.mxu1 %v2293_v56  ;;  %v1655_v56 = vunpack.c.h.s8.bf16 %v951_v32 }
 0x3ee   : > { %3249 = vmatpush2.bf16.msra.mxu0 %v2036_v61  ;;  %v1398_v61 = vunpack.c.h.s8.bf16 %v822_v43 }
 0x3ef   : > { %3290 = vmatpush2.bf16.msra.mxu1 %v2292_v62  ;;  %3250 = vmatprep.subr.bf16.mxu0 %v2021_v1  ;;  %v1654_v62 = vunpack.c.h.s8.bf16 %v950_v58  ;;  %v1383_v1 = vunpack.c.l.s8.bf16 %v823_v51 }
 0x3f0   : > { %3291 = vmatprep.subr.bf16.mxu1 %v2277_v2  ;;  %v1639_v2 = vunpack.c.l.s8.bf16 %v951_v32 }
 0x3f2   : > { %3251 = vmatpush2.bf16.msra.mxu0 %v2020_v17 }
 0x3f3   : > { %3292 = vmatpush2.bf16.msra.mxu1 %v2276_v7  ;;  %3252 = vmatprep.subr.bf16.mxu0 %v2005_v49 }
 0x3f4   : > { %3293 = vmatprep.subr.bf16.mxu1 %v2261_v8  ;;  %v1382_v8 = vunpack.c.l.s8.bf16 %v822_v43 }
 0x3f6   : > { %3253 = vmatpush2.bf16.msra.mxu0 %v2004_v12 }
 0x3f7   : > { %3294 = vmatpush2.bf16.msra.mxu1 %v2260_v13  ;;  %3254 = vmatprep.subr.bf16.mxu0 %v1989_v57  ;;  %v1367_v13 = vunpack.c.h.s8.bf16 %v807_v3  ;;  %v1623_v57 = vunpack.c.h.s8.bf16 %v935_v5 }
 0x3f8   : > { %3295 = vmatprep.subr.bf16.mxu1 %v2245_v14  ;;  %v806_v14 = vld [vmem:[%s8101_s16 + $0x160] sm:$0xff] }
 0x3f9   : > { %v1350_v33 = vunpack.c.l.s8.bf16 %v806_v14 }
 0x3fa   : > { %3255 = vmatpush2.bf16.msra.mxu0 %v1988_v21 }
 0x3fb   : > { %3296 = vmatpush2.bf16.msra.mxu1 %v2244_v22  ;;  %3256 = vmatprep.subr.bf16.mxu0 %v1973_v63  ;;  %v1366_v63 = vunpack.c.h.s8.bf16 %v806_v14  ;;  %v871_v14 = vld [vmem:[%s8101_s16 + $0x368] sm:$0xff] }
 0x3fc   : > { %3297 = vmatprep.subr.bf16.mxu1 %v2229_v23  ;;  %v1622_v23 = vunpack.c.h.s8.bf16 %v934_v19  ;;  %v999_v19 = vld [vmem:[%s8101_s16 + $0x768] sm:$0xff] }
 0x3fe   : > { %3257 = vmatpush2.bf16.msra.mxu0 %v1972_v27  ;;  %v1351_v27 = vunpack.c.l.s8.bf16 %v807_v3 }
 0x3ff   : > { %3298 = vmatpush2.bf16.msra.mxu1 %v2228_v28  ;;  %3258 = vmatprep.subr.bf16.mxu0 %v1957_v30  ;;  %v1607_v28 = vunpack.c.l.s8.bf16 %v935_v5  ;;  %v791_v30 = vld [vmem:[%s8101_s16 + $0xe8] sm:$0xff] }
 0x400   : > { %3299 = vmatprep.subr.bf16.mxu1 %v2213_v31  ;;  %v919_v31 = vld [vmem:[%s8101_s16 + $0x4e8] sm:$0xff] }
 0x402   : > { %3259 = vmatpush2.bf16.msra.mxu0 %v1956_v36  ;;  %v1335_v36 = vunpack.c.h.s8.bf16 %v791_v30 }
 0x403   : > { %3300 = vmatpush2.bf16.msra.mxu1 %v2212_v37  ;;  %3260 = vmatprep.subr.bf16.mxu0 %v1941_v38  ;;  %v1591_v37 = vunpack.c.h.s8.bf16 %v919_v31  ;;  %v790_v38 = vld [vmem:[%s8101_s16 + $0xe0] sm:$0xff] }
 0x404   : > { %3301 = vmatprep.subr.bf16.mxu1 %v2197_v40  ;;  %v918_v40 = vld [vmem:[%s8101_s16 + $0x4e0] sm:$0xff]  ;;  %v1334_v35 = vunpack.c.h.s8.bf16 %v790_v38  ;;  %v1318_v51 = vunpack.c.l.s8.bf16 %v790_v38 }
 0x405   : > { %v1590_v29 = vunpack.c.h.s8.bf16 %v918_v40  ;;  %v1574_v32 = vunpack.c.l.s8.bf16 %v918_v40 }
 0x406   : > { %3261 = vmatpush2.bf16.msra.mxu0 %v1940_v47  ;;  %v1319_v47 = vunpack.c.l.s8.bf16 %v791_v30  ;;  %v1479_v30 = vunpack.c.l.s8.bf16 %v871_v14 }
 0x407   : > { %3302 = vmatpush2.bf16.msra.mxu1 %v2196_v48  ;;  %3262 = vmatprep.subr.bf16.mxu0 %v1925_v44  ;;  %v1575_v48 = vunpack.c.l.s8.bf16 %v919_v31  ;;  %v775_v44 = vld [vmem:[%s8101_s16 + $0x68] sm:$0xff]  ;;  %v1735_v31 = vunpack.c.l.s8.bf16 %v999_v19 }
 0x408   : > { %3303 = vmatprep.subr.bf16.mxu1 %v2181_v39  ;;  %v903_v39 = vld [vmem:[%s8101_s16 + $0x468] sm:$0xff] }
 0x40a   : > { %3263 = vmatpush2.bf16.msra.mxu0 %v1924_v52  ;;  %v1303_v52 = vunpack.c.h.s8.bf16 %v775_v44 }
 0x40b   : > { %3304 = vmatpush2.bf16.msra.mxu1 %v2180_v54  ;;  %3314 = vmatprep.subr.bf16.mxu0 %v1399_v55  ;;  %v1559_v54 = vunpack.c.h.s8.bf16 %v903_v39  ;;  %v774_v55 = vld [vmem:[%s8101_s16 + $0x60] sm:$0xff] }
 0x40c   : > { %3355 = vmatprep.subr.bf16.mxu1 %v1655_v56  ;;  %v902_v56 = vld [vmem:[%s8101_s16 + $0x460] sm:$0xff]  ;;  %v1302_v43 = vunpack.c.h.s8.bf16 %v774_v55  ;;  %v1286_v3 = vunpack.c.l.s8.bf16 %v774_v55 }
 0x40d   : > { %v3020_v17 = vpop.f32.mrf.mxu0  ;;  %3265 = vmatmul.mubr.bf16.vlgmr.msra.gmra.mxu0 %v8245_v59  ;;  %v1558_v58 = vunpack.c.h.s8.bf16 %v902_v56  ;;  %v1542_v5 = vunpack.c.l.s8.bf16 %v902_v56 }
 0x40e   : > { %v3061_v7 = vpop.f32.mrf.mxu1  ;;  %3306 = vmatmul.mubr.bf16.vlgmr.msra.gmra.mxu1 %v8249_v60  ;;  %3315 = vmatpush1.bf16.msra.mxu0 %v1398_v61  ;;  %v1287_v61 = vunpack.c.l.s8.bf16 %v775_v44 }
 0x40f   : > { %v8655_v49 = vadd.f32 %v3061_v7, %v3020_v17  ;;  %3356 = vmatpush1.bf16.msra.mxu1 %v1654_v62  ;;  %v3022_v11 = vpop.f32.mrf.mxu0  ;;  %3316 = vmatprep.subr.bf16.mxu0 %v1383_v1  ;;  %v1543_v62 = vunpack.c.l.s8.bf16 %v903_v39  ;;  %v887_v1 = vld [vmem:[%s8101_s16 + $0x3e8] sm:$0xff] }
 0x410   : > { %v3063_v12 = vpop.f32.mrf.mxu1  ;;  %3357 = vmatprep.subr.bf16.mxu1 %v1639_v2  ;;  %3346 = vmatprep.mubr.bf16.mxu0 %v8155_v4  ;;  %v1015_v2 = vld [vmem:[%s8101_s16 + $0x7e8] sm:$0xff]  ;;  %v1527_v17 = vunpack.c.h.s8.bf16 %v887_v1 }
 0x411   : > { %v8659_v20 = vadd.f32 %v3063_v12, %v3022_v11  ;;  %3387 = vmatprep.mubr.bf16.mxu1 %v8159_v6  ;;  %v3024_v21 = vpop.f32.mrf.mxu0  ;;  %v1783_v7 = vunpack.c.h.s8.bf16 %v1015_v2 }
 0x412   : > { %v3065_v22 = vpop.f32.mrf.mxu1  ;;  %3317 = vmatpush1.bf16.msra.mxu0 %v1382_v8  ;;  %v886_v8 = vld [vmem:[%s8101_s16 + $0x3e0] sm:$0xff] }
 0x413   : > { %3358 = vmatpush1.bf16.msra.mxu1 %v1638_v10  ;;  %v3025_v25 = vpop.f32.mrf.mxu0  ;;  %3318 = vmatprep.subr.bf16.mxu0 %v1367_v13  ;;  %v1014_v10 = vld [vmem:[%s8101_s16 + $0x7e0] sm:$0xff]  ;;  %v1526_v11 = vunpack.c.h.s8.bf16 %v886_v8  ;;  %v1511_v13 = vunpack.c.l.s8.bf16 %v887_v1  ;;  %v1510_v21 = vunpack.c.l.s8.bf16 %v886_v8 }
 0x414   : > { %v3066_v26 = vpop.f32.mrf.mxu1  ;;  %3359 = vmatprep.subr.bf16.mxu1 %v1623_v57  ;;  %v1782_v12 = vunpack.c.h.s8.bf16 %v1014_v10  ;;  %v1767_v57 = vunpack.c.l.s8.bf16 %v1015_v2  ;;  %v1766_v22 = vunpack.c.l.s8.bf16 %v1014_v10  ;;  %v870_v25 = vld [vmem:[%s8101_s16 + $0x360] sm:$0xff] }
 0x415   : > { %v998_v26 = vld [vmem:[%s8101_s16 + $0x760] sm:$0xff] }
 0x416   : > { %3319 = vmatpush1.bf16.msra.mxu0 %v1366_v63  ;;  %v1495_v63 = vunpack.c.h.s8.bf16 %v871_v14 }
 0x417   : > { %3360 = vmatpush1.bf16.msra.mxu1 %v1622_v23  ;;  %3320 = vmatprep.subr.bf16.mxu0 %v1351_v27  ;;  %v1751_v23 = vunpack.c.h.s8.bf16 %v999_v19  ;;  %v1494_v27 = vunpack.c.h.s8.bf16 %v870_v25 }
 0x418   : > { %3361 = vmatprep.subr.bf16.mxu1 %v1607_v28  ;;  %v1750_v28 = vunpack.c.h.s8.bf16 %v998_v26 }
 0x41a   : > { %3321 = vmatpush1.bf16.msra.mxu0 %v1350_v33  ;;  %v855_v33 = vld [vmem:[%s8101_s16 + $0x2e8] sm:$0xff] }
 0x41b   : > { %3362 = vmatpush1.bf16.msra.mxu1 %v1606_v34  ;;  %3322 = vmatprep.subr.bf16.mxu0 %v1335_v36  ;;  %v983_v34 = vld [vmem:[%s8101_s16 + $0x6e8] sm:$0xff]  ;;  %v1478_v36 = vunpack.c.l.s8.bf16 %v870_v25  ;;  %v1463_v38 = vunpack.c.h.s8.bf16 %v855_v33  ;;  %v1447_v44 = vunpack.c.l.s8.bf16 %v855_v33 }
 0x41c   : > { %3363 = vmatprep.subr.bf16.mxu1 %v1591_v37  ;;  %v1734_v37 = vunpack.c.l.s8.bf16 %v998_v26  ;;  %v1719_v40 = vunpack.c.h.s8.bf16 %v983_v34  ;;  %v1703_v39 = vunpack.c.l.s8.bf16 %v983_v34  ;;  %v1062_v34 = vld [vmem:[%s8101_s16 + $0x960] sm:$0xff] }
 0x41e   : > { %3323 = vmatpush1.bf16.msra.mxu0 %v1334_v35  ;;  %v854_v35 = vld [vmem:[%s8101_s16 + $0x2e0] sm:$0xff] }
 0x41f   : > { %3364 = vmatpush1.bf16.msra.mxu1 %v1590_v29  ;;  %3324 = vmatprep.subr.bf16.mxu0 %v1319_v47  ;;  %v982_v29 = vld [vmem:[%s8101_s16 + $0x6e0] sm:$0xff]  ;;  %v1462_v47 = vunpack.c.h.s8.bf16 %v854_v35 }
 0x420   : > { %3365 = vmatprep.subr.bf16.mxu1 %v1575_v48  ;;  %v1718_v48 = vunpack.c.h.s8.bf16 %v982_v29 }
 0x422   : > { %3325 = vmatpush1.bf16.msra.mxu0 %v1318_v51  ;;  %v839_v51 = vld [vmem:[%s8101_s16 + $0x268] sm:$0xff] }
 0x423   : > { %3366 = vmatpush1.bf16.msra.mxu1 %v1574_v32  ;;  %3326 = vmatprep.subr.bf16.mxu0 %v1303_v52  ;;  %v967_v32 = vld [vmem:[%s8101_s16 + $0x668] sm:$0xff]  ;;  %v1446_v52 = vunpack.c.l.s8.bf16 %v854_v35  ;;  %v1431_v55 = vunpack.c.h.s8.bf16 %v839_v51  ;;  %v1415_v1 = vunpack.c.l.s8.bf16 %v839_v51 }
 0x424   : > { %3367 = vmatprep.subr.bf16.mxu1 %v1559_v54  ;;  %v1702_v54 = vunpack.c.l.s8.bf16 %v982_v29  ;;  %v1687_v56 = vunpack.c.h.s8.bf16 %v967_v32  ;;  %v1671_v2 = vunpack.c.l.s8.bf16 %v967_v32  ;;  %v1878_v29 = vunpack.c.h.s8.bf16 %v1062_v34  ;;  %v1047_v51 = vld [vmem:[%s8101_s16 + $0x8e8] sm:$0xff] }
 0x425   : > { %v1175_v32 = vld [vmem:[%s8101_s16 + $0xce8] sm:$0xff] }
 0x426   : > { %3327 = vmatpush1.bf16.msra.mxu0 %v1302_v43  ;;  %v838_v43 = vld [vmem:[%s8101_s16 + $0x260] sm:$0xff] }
 0x427   : > { %3368 = vmatpush1.bf16.msra.mxu1 %v1558_v58  ;;  %3328 = vmatprep.subr.bf16.mxu0 %v1287_v61  ;;  %v966_v58 = vld [vmem:[%s8101_s16 + $0x660] sm:$0xff]  ;;  %v1430_v61 = vunpack.c.h.s8.bf16 %v838_v43 }
 0x428   : > { %3369 = vmatprep.subr.bf16.mxu1 %v1543_v62  ;;  %v1686_v62 = vunpack.c.h.s8.bf16 %v966_v58 }
 0x42a   : > { %3329 = vmatpush1.bf16.msra.mxu0 %v1286_v3  ;;  %v1079_v3 = vld [vmem:[%s8101_s16 + $0x9e8] sm:$0xff] }
 0x42b   : > { %3370 = vmatpush1.bf16.msra.mxu1 %v1542_v5  ;;  %3330 = vmatprep.subr.bf16.mxu0 %v1527_v17  ;;  %v1207_v5 = vld [vmem:[%s8101_s16 + $0xde8] sm:$0xff]  ;;  %v1414_v17 = vunpack.c.l.s8.bf16 %v838_v43  ;;  %v1911_v8 = vunpack.c.h.s8.bf16 %v1079_v3  ;;  %v1895_v14 = vunpack.c.l.s8.bf16 %v1079_v3  ;;  %v1046_v43 = vld [vmem:[%s8101_s16 + $0x8e0] sm:$0xff] }
 0x42c   : > { %3371 = vmatprep.subr.bf16.mxu1 %v1783_v7  ;;  %v1670_v7 = vunpack.c.l.s8.bf16 %v966_v58  ;;  %v2167_v10 = vunpack.c.h.s8.bf16 %v1207_v5  ;;  %v2151_v19 = vunpack.c.l.s8.bf16 %v1207_v5  ;;  %v1174_v58 = vld [vmem:[%s8101_s16 + $0xce0] sm:$0xff]  ;;  %v1031_v3 = vld [vmem:[%s8101_s16 + $0x868] sm:$0xff] }
 0x42d   : > { %v1159_v5 = vld [vmem:[%s8101_s16 + $0xc68] sm:$0xff] }
 0x42e   : > { %3331 = vmatpush2.bf16.msra.mxu0 %v1526_v11  ;;  %v1078_v11 = vld [vmem:[%s8101_s16 + $0x9e0] sm:$0xff] }
 0x42f   : > { %3372 = vmatpush2.bf16.msra.mxu1 %v1782_v12  ;;  %3332 = vmatprep.subr.bf16.mxu0 %v1511_v13  ;;  %v1206_v12 = vld [vmem:[%s8101_s16 + $0xde0] sm:$0xff]  ;;  %v1910_v13 = vunpack.c.h.s8.bf16 %v1078_v11  ;;  %v1894_v26 = vunpack.c.l.s8.bf16 %v1078_v11 }
 0x430   : > { %3373 = vmatprep.subr.bf16.mxu1 %v1767_v57  ;;  %v2166_v57 = vunpack.c.h.s8.bf16 %v1206_v12  ;;  %v1030_v11 = vld [vmem:[%s8101_s16 + $0x860] sm:$0xff] }
 0x432   : > { %3333 = vmatpush2.bf16.msra.mxu0 %v1510_v21  ;;  %v1063_v21 = vld [vmem:[%s8101_s16 + $0x968] sm:$0xff] }
 0x433   : > { %3374 = vmatpush2.bf16.msra.mxu1 %v1766_v22  ;;  %3334 = vmatprep.subr.bf16.mxu0 %v1495_v63  ;;  %v1191_v22 = vld [vmem:[%s8101_s16 + $0xd68] sm:$0xff] }
 0x434   : > { %3375 = vmatprep.subr.bf16.mxu1 %v1751_v23  ;;  %v2135_v33 = vunpack.c.h.s8.bf16 %v1191_v22 }
 0x436   : > { %3335 = vmatpush2.bf16.msra.mxu0 %v1494_v27  ;;  %v2150_v27 = vunpack.c.l.s8.bf16 %v1206_v12  ;;  %v1158_v12 = vld [vmem:[%s8101_s16 + $0xc60] sm:$0xff] }
 0x437   : > { %3376 = vmatpush2.bf16.msra.mxu1 %v1750_v28  ;;  %3336 = vmatprep.subr.bf16.mxu0 %v1479_v30 }
 0x438   : > { %3377 = vmatprep.subr.bf16.mxu1 %v1735_v31  ;;  %v1879_v31 = vunpack.c.h.s8.bf16 %v1063_v21 }
 0x43a   : > { %3337 = vmatpush2.bf16.msra.mxu0 %v1478_v36  ;;  %v1190_v36 = vld [vmem:[%s8101_s16 + $0xd60] sm:$0xff] }
 0x43b   : > { %3378 = vmatpush2.bf16.msra.mxu1 %v1734_v37  ;;  %3338 = vmatprep.subr.bf16.mxu0 %v1463_v38 }
 0x43c   : > { %3379 = vmatprep.subr.bf16.mxu1 %v1719_v40 }
 0x43e   : > { %3339 = vmatpush2.bf16.msra.mxu0 %v1462_v47  ;;  %v2134_v47 = vunpack.c.h.s8.bf16 %v1190_v36 }
 0x43f   : > { %3380 = vmatpush2.bf16.msra.mxu1 %v1718_v48  ;;  %3340 = vmatprep.subr.bf16.mxu0 %v1447_v44 }
 0x440   : > { %3381 = vmatprep.subr.bf16.mxu1 %v1703_v39  ;;  %v2119_v39 = vunpack.c.l.s8.bf16 %v1191_v22  ;;  %v1271_v22 = vld [vmem:[%s8101_s16 + $0xfe8] sm:$0xff] }
 0x442   : > { %3341 = vmatpush2.bf16.msra.mxu0 %v1446_v52  ;;  %v1862_v52 = vunpack.c.l.s8.bf16 %v1062_v34  ;;  %v2279_v34 = vunpack.c.l.s8.bf16 %v1271_v22 }
 0x443   : > { %3382 = vmatpush2.bf16.msra.mxu1 %v1702_v54  ;;  %3342 = vmatprep.subr.bf16.mxu0 %v1431_v55  ;;  %v2118_v54 = vunpack.c.l.s8.bf16 %v1190_v36  ;;  %v1847_v55 = vunpack.c.h.s8.bf16 %v1047_v51  ;;  %v1127_v36 = vld [vmem:[%s8101_s16 + $0xb68] sm:$0xff] }
 0x444   : > { %3383 = vmatprep.subr.bf16.mxu1 %v1687_v56  ;;  %v2103_v56 = vunpack.c.h.s8.bf16 %v1175_v32 }
 0x446   : > { %3343 = vmatpush2.bf16.msra.mxu0 %v1430_v61  ;;  %v1846_v61 = vunpack.c.h.s8.bf16 %v1046_v43 }
 0x447   : > { %3384 = vmatpush2.bf16.msra.mxu1 %v1686_v62  ;;  %3344 = vmatprep.subr.bf16.mxu0 %v1415_v1  ;;  %v2102_v62 = vunpack.c.h.s8.bf16 %v1174_v58  ;;  %v1831_v1 = vunpack.c.l.s8.bf16 %v1047_v51  ;;  %v1991_v51 = vunpack.c.l.s8.bf16 %v1127_v36 }
 0x448   : > { %3385 = vmatprep.subr.bf16.mxu1 %v1671_v2  ;;  %v2087_v2 = vunpack.c.l.s8.bf16 %v1175_v32 }
 0x44a   : > { %3345 = vmatpush2.bf16.msra.mxu0 %v1414_v17  ;;  %v1830_v17 = vunpack.c.l.s8.bf16 %v1046_v43 }
 0x44b   : > { %3386 = vmatpush2.bf16.msra.mxu1 %v1670_v7  ;;  %3396 = vmatprep.subr.bf16.mxu0 %v1911_v8  ;;  %v2086_v7 = vunpack.c.l.s8.bf16 %v1174_v58  ;;  %v1815_v8 = vunpack.c.h.s8.bf16 %v1031_v3 }
 0x44c   : > { %3437 = vmatprep.subr.bf16.mxu1 %v2167_v10  ;;  %v2071_v10 = vunpack.c.h.s8.bf16 %v1159_v5 }
 0x44d   : > { %v3102_v63 = vpop.f32.mrf.mxu0  ;;  %3347 = vmatmul.mubr.bf16.vlgmr.msra.gmra.mxu0 %v8189_v15 }
 0x44e   : > { %v3143_v23 = vpop.f32.mrf.mxu1  ;;  %3388 = vmatmul.mubr.bf16.vlgmr.msra.gmra.mxu1 %v8193_v16  ;;  %v3103_v25 = vadd.f32 %v3102_v63, %v8655_v49  ;;  %3397 = vmatpush1.bf16.msra.mxu0 %v1910_v13  ;;  %v1814_v13 = vunpack.c.h.s8.bf16 %v1030_v11  ;;  %v1798_v63 = vunpack.c.l.s8.bf16 %v1030_v11 }
 0x44f   : > { %3438 = vmatpush1.bf16.msra.mxu1 %v2166_v57  ;;  %v3104_v28 = vpop.f32.mrf.mxu0  ;;  %3398 = vmatprep.subr.bf16.mxu0 %v1895_v14  ;;  %v2070_v57 = vunpack.c.h.s8.bf16 %v1158_v12  ;;  %v1799_v14 = vunpack.c.l.s8.bf16 %v1031_v3 }
 0x450   : > { %v3145_v30 = vpop.f32.mrf.mxu1  ;;  %3439 = vmatprep.subr.bf16.mxu1 %v2151_v19  ;;  %v8698_v37 = vadd.f32 %v3143_v23, %v3103_v25  ;;  %v3105_v38 = vadd.f32 %v3104_v28, %v8659_v20  ;;  %3428 = vmatprep.mubr.bf16.mxu0 %v8203_v0  ;;  %v1863_v20 = vunpack.c.l.s8.bf16 %v1063_v21  ;;  %v2055_v19 = vunpack.c.l.s8.bf16 %v1159_v5  ;;  %v1143_v21 = vld [vmem:[%s8101_s16 + $0xbe8] sm:$0xff]  ;;  %v1270_v28 = vld [vmem:[%s8101_s16 + $0xfe0] sm:$0xff] }
 0x451   : > { %3469 = vmatprep.mubr.bf16.mxu1 %v8207_v24  ;;  %v3106_v49 = vpop.f32.mrf.mxu0  ;;  %v2054_v23 = vunpack.c.l.s8.bf16 %v1158_v12  ;;  %v2039_v25 = vunpack.c.h.s8.bf16 %v1143_v21 }
 0x452   : > { %v3147_v40 = vpop.f32.mrf.mxu1  ;;  %v8703_v35 = vadd.f32 %v3145_v30, %v3105_v38  ;;  %3399 = vmatpush1.bf16.msra.mxu0 %v1894_v26  ;;  %v2295_v26 = vunpack.c.h.s8.bf16 %v1271_v22  ;;  %v1255_v38 = vld [vmem:[%s8101_s16 + $0xf68] sm:$0xff] }
 0x453   : > { %3440 = vmatpush1.bf16.msra.mxu1 %v2150_v27  ;;  %v3107_v48 = vpop.f32.mrf.mxu0  ;;  %3400 = vmatprep.subr.bf16.mxu0 %v1879_v31  ;;  %v1142_v27 = vld [vmem:[%s8101_s16 + $0xbe0] sm:$0xff]  ;;  %v2294_v31 = vunpack.c.h.s8.bf16 %v1270_v28  ;;  %v2278_v40 = vunpack.c.l.s8.bf16 %v1270_v28  ;;  %v2247_v32 = vunpack.c.l.s8.bf16 %v1255_v38 }
 0x454   : > { %v3148_v44 = vpop.f32.mrf.mxu1  ;;  %3441 = vmatprep.subr.bf16.mxu1 %v2135_v33  ;;  %v2038_v30 = vunpack.c.h.s8.bf16 %v1142_v27  ;;  %v2023_v33 = vunpack.c.l.s8.bf16 %v1143_v21  ;;  %v2022_v49 = vunpack.c.l.s8.bf16 %v1142_v27  ;;  %v1126_v48 = vld [vmem:[%s8101_s16 + $0xb60] sm:$0xff] }
 0x455   : > { %v1254_v44 = vld [vmem:[%s8101_s16 + $0xf60] sm:$0xff] }
 0x456   : > { %3401 = vmatpush1.bf16.msra.mxu0 %v1878_v29  ;;  %v2007_v29 = vunpack.c.h.s8.bf16 %v1127_v36 }
 0x457   : > { %3442 = vmatpush1.bf16.msra.mxu1 %v2134_v47  ;;  %3402 = vmatprep.subr.bf16.mxu0 %v1863_v20  ;;  %v2263_v47 = vunpack.c.h.s8.bf16 %v1255_v38  ;;  %v2006_v20 = vunpack.c.h.s8.bf16 %v1126_v48 }
 0x458   : > { %3443 = vmatprep.subr.bf16.mxu1 %v2119_v39  ;;  %v2262_v39 = vunpack.c.h.s8.bf16 %v1254_v44 }
 0x45a   : > { %3403 = vmatpush1.bf16.msra.mxu0 %v1862_v52  ;;  %v1111_v52 = vld [vmem:[%s8101_s16 + $0xae8] sm:$0xff] }
 0x45b   : > { %3444 = vmatpush1.bf16.msra.mxu1 %v2118_v54  ;;  %3404 = vmatprep.subr.bf16.mxu0 %v1847_v55  ;;  %v1239_v54 = vld [vmem:[%s8101_s16 + $0xee8] sm:$0xff]  ;;  %v1990_v55 = vunpack.c.l.s8.bf16 %v1126_v48  ;;  %v1975_v43 = vunpack.c.h.s8.bf16 %v1111_v52  ;;  %v1959_v3 = vunpack.c.l.s8.bf16 %v1111_v52 }
 0x45c   : > { %3445 = vmatprep.subr.bf16.mxu1 %v2103_v56  ;;  %v2246_v56 = vunpack.c.l.s8.bf16 %v1254_v44  ;;  %v2231_v58 = vunpack.c.h.s8.bf16 %v1239_v54  ;;  %v2215_v5 = vunpack.c.l.s8.bf16 %v1239_v54  ;;  %v808_v54 = vld [vmem:[%s8101_s16 + $0x170] sm:$0xff] }
 0x45e   : > { %3405 = vmatpush1.bf16.msra.mxu0 %v1846_v61  ;;  %v1110_v61 = vld [vmem:[%s8101_s16 + $0xae0] sm:$0xff] }
 0x45f   : > { %3446 = vmatpush1.bf16.msra.mxu1 %v2102_v62  ;;  %3406 = vmatprep.subr.bf16.mxu0 %v1831_v1  ;;  %v1238_v62 = vld [vmem:[%s8101_s16 + $0xee0] sm:$0xff]  ;;  %v1974_v1 = vunpack.c.h.s8.bf16 %v1110_v61 }
 0x460   : > { %3447 = vmatprep.subr.bf16.mxu1 %v2087_v2  ;;  %v2230_v2 = vunpack.c.h.s8.bf16 %v1238_v62 }
 0x462   : > { %3407 = vmatpush1.bf16.msra.mxu0 %v1830_v17  ;;  %v1095_v17 = vld [vmem:[%s8101_s16 + $0xa68] sm:$0xff] }
 0x463   : > { %3448 = vmatpush1.bf16.msra.mxu1 %v2086_v7  ;;  %3408 = vmatprep.subr.bf16.mxu0 %v1815_v8  ;;  %v1223_v7 = vld [vmem:[%s8101_s16 + $0xe68] sm:$0xff]  ;;  %v1958_v8 = vunpack.c.l.s8.bf16 %v1110_v61  ;;  %v1943_v11 = vunpack.c.h.s8.bf16 %v1095_v17  ;;  %v1927_v21 = vunpack.c.l.s8.bf16 %v1095_v17  ;;  %v1368_v61 = vunpack.c.h.s8.bf16 %v808_v54  ;;  %v793_v17 = vld [vmem:[%s8101_s16 + $0xf8] sm:$0xff] }
 0x464   : > { %3449 = vmatprep.subr.bf16.mxu1 %v2071_v10  ;;  %v2214_v10 = vunpack.c.l.s8.bf16 %v1238_v62  ;;  %v2199_v12 = vunpack.c.h.s8.bf16 %v1223_v7  ;;  %v2183_v22 = vunpack.c.l.s8.bf16 %v1223_v7  ;;  %v921_v7 = vld [vmem:[%s8101_s16 + $0x4f8] sm:$0xff] }
 0x466   : > { %3409 = vmatpush1.bf16.msra.mxu0 %v1814_v13  ;;  %v1094_v13 = vld [vmem:[%s8101_s16 + $0xa60] sm:$0xff] }
 0x467   : > { %3450 = vmatpush1.bf16.msra.mxu1 %v2070_v57  ;;  %3410 = vmatprep.subr.bf16.mxu0 %v1799_v14  ;;  %v1222_v57 = vld [vmem:[%s8101_s16 + $0xe60] sm:$0xff]  ;;  %v1942_v14 = vunpack.c.h.s8.bf16 %v1094_v13 }
 0x468   : > { %3451 = vmatprep.subr.bf16.mxu1 %v2055_v19  ;;  %v2198_v19 = vunpack.c.h.s8.bf16 %v1222_v57 }
 0x46a   : > { %3411 = vmatpush1.bf16.msra.mxu0 %v1798_v63  ;;  %v825_v63 = vld [vmem:[%s8101_s16 + $0x1f8] sm:$0xff] }
 0x46b   : > { %3452 = vmatpush1.bf16.msra.mxu1 %v2054_v23  ;;  %3412 = vmatprep.subr.bf16.mxu0 %v2039_v25  ;;  %v953_v23 = vld [vmem:[%s8101_s16 + $0x5f8] sm:$0xff]  ;;  %v1926_v25 = vunpack.c.l.s8.bf16 %v1094_v13  ;;  %v1401_v27 = vunpack.c.h.s8.bf16 %v825_v63  ;;  %v1385_v36 = vunpack.c.l.s8.bf16 %v825_v63 }
 0x46c   : > { %3453 = vmatprep.subr.bf16.mxu1 %v2295_v26  ;;  %v2182_v26 = vunpack.c.l.s8.bf16 %v1222_v57  ;;  %v1657_v28 = vunpack.c.h.s8.bf16 %v953_v23  ;;  %v1641_v38 = vunpack.c.l.s8.bf16 %v953_v23 }
 0x46e   : > { %3413 = vmatpush2.bf16.msra.mxu0 %v2038_v30  ;;  %v824_v30 = vld [vmem:[%s8101_s16 + $0x1f0] sm:$0xff] }
 0x46f   : > { %3454 = vmatpush2.bf16.msra.mxu1 %v2294_v31  ;;  %3414 = vmatprep.subr.bf16.mxu0 %v2023_v33  ;;  %v952_v31 = vld [vmem:[%s8101_s16 + $0x5f0] sm:$0xff]  ;;  %v1400_v33 = vunpack.c.h.s8.bf16 %v824_v30  ;;  %v1384_v44 = vunpack.c.l.s8.bf16 %v824_v30 }
 0x470   : > { %3455 = vmatprep.subr.bf16.mxu1 %v2279_v34  ;;  %v1656_v34 = vunpack.c.h.s8.bf16 %v952_v31 }
 0x472   : > { %3415 = vmatpush2.bf16.msra.mxu0 %v2022_v49  ;;  %v809_v49 = vld [vmem:[%s8101_s16 + $0x178] sm:$0xff] }
 0x473   : > { %3456 = vmatpush2.bf16.msra.mxu1 %v2278_v40  ;;  %3416 = vmatprep.subr.bf16.mxu0 %v2007_v29  ;;  %v937_v40 = vld [vmem:[%s8101_s16 + $0x578] sm:$0xff] }
 0x474   : > { %3457 = vmatprep.subr.bf16.mxu1 %v2263_v47  ;;  %v1625_v52 = vunpack.c.h.s8.bf16 %v937_v40 }
 0x476   : > { %3417 = vmatpush2.bf16.msra.mxu0 %v2006_v20  ;;  %v1640_v20 = vunpack.c.l.s8.bf16 %v952_v31 }
 0x477   : > { %3458 = vmatpush2.bf16.msra.mxu1 %v2262_v39  ;;  %3418 = vmatprep.subr.bf16.mxu0 %v1991_v51 }
 0x478   : > { %3459 = vmatprep.subr.bf16.mxu1 %v2247_v32  ;;  %v1369_v32 = vunpack.c.h.s8.bf16 %v809_v49 }
 0x47a   : > { %3419 = vmatpush2.bf16.msra.mxu0 %v1990_v55  ;;  %v936_v55 = vld [vmem:[%s8101_s16 + $0x570] sm:$0xff] }
 0x47b   : > { %3460 = vmatpush2.bf16.msra.mxu1 %v2246_v56  ;;  %3420 = vmatprep.subr.bf16.mxu0 %v1975_v43  ;;  %v1624_v62 = vunpack.c.h.s8.bf16 %v936_v55 }
 0x47c   : > { %3461 = vmatprep.subr.bf16.mxu1 %v2231_v58 }
 0x47e   : > { %3421 = vmatpush2.bf16.msra.mxu0 %v1974_v1 }
 0x47f   : > { %3462 = vmatpush2.bf16.msra.mxu1 %v2230_v2  ;;  %3422 = vmatprep.subr.bf16.mxu0 %v1959_v3  ;;  %v1353_v3 = vunpack.c.l.s8.bf16 %v809_v49 }
 0x480   : > { %3463 = vmatprep.subr.bf16.mxu1 %v2215_v5  ;;  %v1609_v5 = vunpack.c.l.s8.bf16 %v937_v40 }
 0x482   : > { %3423 = vmatpush2.bf16.msra.mxu0 %v1958_v8  ;;  %v1337_v8 = vunpack.c.h.s8.bf16 %v793_v17 }
 0x483   : > { %3464 = vmatpush2.bf16.msra.mxu1 %v2214_v10  ;;  %3424 = vmatprep.subr.bf16.mxu0 %v1943_v11  ;;  %v1593_v10 = vunpack.c.h.s8.bf16 %v921_v7  ;;  %v792_v11 = vld [vmem:[%s8101_s16 + $0xf0] sm:$0xff] }
 0x484   : > { %3465 = vmatprep.subr.bf16.mxu1 %v2199_v12  ;;  %v920_v12 = vld [vmem:[%s8101_s16 + $0x4f0] sm:$0xff]  ;;  %v1336_v13 = vunpack.c.h.s8.bf16 %v792_v11  ;;  %v1320_v63 = vunpack.c.l.s8.bf16 %v792_v11 }
 0x485   : > { %v1592_v57 = vunpack.c.h.s8.bf16 %v920_v12  ;;  %v1576_v23 = vunpack.c.l.s8.bf16 %v920_v12 }
 0x486   : > { %3425 = vmatpush2.bf16.msra.mxu0 %v1942_v14  ;;  %v1321_v14 = vunpack.c.l.s8.bf16 %v793_v17 }
 0x487   : > { %3466 = vmatpush2.bf16.msra.mxu1 %v2198_v19  ;;  %3426 = vmatprep.subr.bf16.mxu0 %v1927_v21  ;;  %v1577_v19 = vunpack.c.l.s8.bf16 %v921_v7  ;;  %v777_v21 = vld [vmem:[%s8101_s16 + $0x78] sm:$0xff] }
 0x488   : > { %3467 = vmatprep.subr.bf16.mxu1 %v2183_v22  ;;  %v905_v22 = vld [vmem:[%s8101_s16 + $0x478] sm:$0xff] }
 0x48a   : > { %3427 = vmatpush2.bf16.msra.mxu0 %v1926_v25  ;;  %v1305_v25 = vunpack.c.h.s8.bf16 %v777_v21 }
 0x48b   : > { %3468 = vmatpush2.bf16.msra.mxu1 %v2182_v26  ;;  %3478 = vmatprep.subr.bf16.mxu0 %v1401_v27  ;;  %v1561_v26 = vunpack.c.h.s8.bf16 %v905_v22  ;;  %v776_v27 = vld [vmem:[%s8101_s16 + $0x70] sm:$0xff] }
 0x48c   : > { %3519 = vmatprep.subr.bf16.mxu1 %v1657_v28  ;;  %v904_v28 = vld [vmem:[%s8101_s16 + $0x470] sm:$0xff]  ;;  %v1304_v30 = vunpack.c.h.s8.bf16 %v776_v27  ;;  %v1288_v49 = vunpack.c.l.s8.bf16 %v776_v27 }
 0x48d   : > { %v3184_v29 = vpop.f32.mrf.mxu0  ;;  %3429 = vmatmul.mubr.bf16.vlgmr.msra.gmra.mxu0 %v8245_v59  ;;  %v1560_v31 = vunpack.c.h.s8.bf16 %v904_v28  ;;  %v1544_v40 = vunpack.c.l.s8.bf16 %v904_v28 }
 0x48e   : > { %v3225_v47 = vpop.f32.mrf.mxu1  ;;  %3470 = vmatmul.mubr.bf16.vlgmr.msra.gmra.mxu1 %v8249_v60  ;;  %3479 = vmatpush1.bf16.msra.mxu0 %v1400_v33  ;;  %v1289_v33 = vunpack.c.l.s8.bf16 %v777_v21 }
 0x48f   : > { %v8737_v48 = vadd.f32 %v3225_v47, %v3184_v29  ;;  %3520 = vmatpush1.bf16.msra.mxu1 %v1656_v34  ;;  %v3186_v39 = vpop.f32.mrf.mxu0  ;;  %3480 = vmatprep.subr.bf16.mxu0 %v1385_v36  ;;  %v1545_v34 = vunpack.c.l.s8.bf16 %v905_v22  ;;  %v889_v36 = vld [vmem:[%s8101_s16 + $0x3f8] sm:$0xff] }
 0x490   : > { %v3227_v51 = vpop.f32.mrf.mxu1  ;;  %3521 = vmatprep.subr.bf16.mxu1 %v1641_v38  ;;  %3510 = vmatprep.mubr.bf16.mxu0 %v8155_v4  ;;  %v1352_v4 = vunpack.c.l.s8.bf16 %v808_v54  ;;  %v1017_v38 = vld [vmem:[%s8101_s16 + $0x7f8] sm:$0xff]  ;;  %v1529_v29 = vunpack.c.h.s8.bf16 %v889_v36 }
 0x491   : > { %v8741_v56 = vadd.f32 %v3227_v51, %v3186_v39  ;;  %3551 = vmatprep.mubr.bf16.mxu1 %v8159_v6  ;;  %v3188_v43 = vpop.f32.mrf.mxu0  ;;  %v1608_v6 = vunpack.c.l.s8.bf16 %v936_v55  ;;  %v1785_v47 = vunpack.c.h.s8.bf16 %v1017_v38  ;;  %v873_v54 = vld [vmem:[%s8101_s16 + $0x378] sm:$0xff] }
 0x492   : > { %v3229_v58 = vpop.f32.mrf.mxu1  ;;  %3481 = vmatpush1.bf16.msra.mxu0 %v1384_v44  ;;  %v888_v44 = vld [vmem:[%s8101_s16 + $0x3f0] sm:$0xff]  ;;  %v1001_v55 = vld [vmem:[%s8101_s16 + $0x778] sm:$0xff]  ;;  %v1481_v17 = vunpack.c.l.s8.bf16 %v873_v54 }
 0x493   : > { %3522 = vmatpush1.bf16.msra.mxu1 %v1640_v20  ;;  %v3189_v1 = vpop.f32.mrf.mxu0  ;;  %3482 = vmatprep.subr.bf16.mxu0 %v1369_v32  ;;  %v1016_v20 = vld [vmem:[%s8101_s16 + $0x7f0] sm:$0xff]  ;;  %v1528_v39 = vunpack.c.h.s8.bf16 %v888_v44  ;;  %v1513_v32 = vunpack.c.l.s8.bf16 %v889_v36  ;;  %v1512_v43 = vunpack.c.l.s8.bf16 %v888_v44  ;;  %v1737_v7 = vunpack.c.l.s8.bf16 %v1001_v55 }
 0x494   : > { %v3230_v2 = vpop.f32.mrf.mxu1  ;;  %3523 = vmatprep.subr.bf16.mxu1 %v1625_v52  ;;  %v1784_v51 = vunpack.c.h.s8.bf16 %v1016_v20  ;;  %v1769_v52 = vunpack.c.l.s8.bf16 %v1017_v38  ;;  %v1768_v58 = vunpack.c.l.s8.bf16 %v1016_v20  ;;  %v872_v1 = vld [vmem:[%s8101_s16 + $0x370] sm:$0xff] }
 0x495   : > { %v1000_v2 = vld [vmem:[%s8101_s16 + $0x770] sm:$0xff] }
 0x496   : > { %3483 = vmatpush1.bf16.msra.mxu0 %v1368_v61  ;;  %v1497_v61 = vunpack.c.h.s8.bf16 %v873_v54 }
 0x497   : > { %3524 = vmatpush1.bf16.msra.mxu1 %v1624_v62  ;;  %3484 = vmatprep.subr.bf16.mxu0 %v1353_v3  ;;  %v1753_v62 = vunpack.c.h.s8.bf16 %v1001_v55  ;;  %v1496_v3 = vunpack.c.h.s8.bf16 %v872_v1 }
 0x498   : > { %3525 = vmatprep.subr.bf16.mxu1 %v1609_v5  ;;  %v1752_v5 = vunpack.c.h.s8.bf16 %v1000_v2 }
 0x49a   : > { %3485 = vmatpush1.bf16.msra.mxu0 %v1352_v4  ;;  %v857_v4 = vld [vmem:[%s8101_s16 + $0x2f8] sm:$0xff] }
 0x49b   : > { %3526 = vmatpush1.bf16.msra.mxu1 %v1608_v6  ;;  %3486 = vmatprep.subr.bf16.mxu0 %v1337_v8  ;;  %v985_v6 = vld [vmem:[%s8101_s16 + $0x6f8] sm:$0xff]  ;;  %v1480_v8 = vunpack.c.l.s8.bf16 %v872_v1  ;;  %v1465_v11 = vunpack.c.h.s8.bf16 %v857_v4  ;;  %v1449_v21 = vunpack.c.l.s8.bf16 %v857_v4 }
 0x49c   : > { %3527 = vmatprep.subr.bf16.mxu1 %v1593_v10  ;;  %v1736_v10 = vunpack.c.l.s8.bf16 %v1000_v2  ;;  %v1721_v12 = vunpack.c.h.s8.bf16 %v985_v6  ;;  %v1705_v22 = vunpack.c.l.s8.bf16 %v985_v6 }
 0x49e   : > { %3487 = vmatpush1.bf16.msra.mxu0 %v1336_v13  ;;  %v856_v13 = vld [vmem:[%s8101_s16 + $0x2f0] sm:$0xff] }
 0x49f   : > { %3528 = vmatpush1.bf16.msra.mxu1 %v1592_v57  ;;  %3488 = vmatprep.subr.bf16.mxu0 %v1321_v14  ;;  %v984_v57 = vld [vmem:[%s8101_s16 + $0x6f0] sm:$0xff]  ;;  %v1464_v14 = vunpack.c.h.s8.bf16 %v856_v13 }
 0x4a0   : > { %3529 = vmatprep.subr.bf16.mxu1 %v1577_v19  ;;  %v1720_v19 = vunpack.c.h.s8.bf16 %v984_v57 }
 0x4a2   : > { %3489 = vmatpush1.bf16.msra.mxu0 %v1320_v63  ;;  %v841_v63 = vld [vmem:[%s8101_s16 + $0x278] sm:$0xff] }
 0x4a3   : > { %3530 = vmatpush1.bf16.msra.mxu1 %v1576_v23  ;;  %3490 = vmatprep.subr.bf16.mxu0 %v1305_v25  ;;  %v969_v23 = vld [vmem:[%s8101_s16 + $0x678] sm:$0xff]  ;;  %v1448_v25 = vunpack.c.l.s8.bf16 %v856_v13  ;;  %v1433_v27 = vunpack.c.h.s8.bf16 %v841_v63  ;;  %v1417_v36 = vunpack.c.l.s8.bf16 %v841_v63 }
 0x4a4   : > { %3531 = vmatprep.subr.bf16.mxu1 %v1561_v26  ;;  %v1704_v26 = vunpack.c.l.s8.bf16 %v984_v57  ;;  %v1689_v28 = vunpack.c.h.s8.bf16 %v969_v23  ;;  %v1673_v38 = vunpack.c.l.s8.bf16 %v969_v23 }
 0x4a6   : > { %3491 = vmatpush1.bf16.msra.mxu0 %v1304_v30  ;;  %v840_v30 = vld [vmem:[%s8101_s16 + $0x270] sm:$0xff] }
 0x4a7   : > { %3532 = vmatpush1.bf16.msra.mxu1 %v1560_v31  ;;  %3492 = vmatprep.subr.bf16.mxu0 %v1289_v33  ;;  %v968_v31 = vld [vmem:[%s8101_s16 + $0x670] sm:$0xff]  ;;  %v1432_v33 = vunpack.c.h.s8.bf16 %v840_v30 }
 0x4a8   : > { %3533 = vmatprep.subr.bf16.mxu1 %v1545_v34  ;;  %v1688_v34 = vunpack.c.h.s8.bf16 %v968_v31 }
 0x4aa   : > { %3493 = vmatpush1.bf16.msra.mxu0 %v1288_v49  ;;  %v1081_v49 = vld [vmem:[%s8101_s16 + $0x9f8] sm:$0xff] }
 0x4ab   : > { %3534 = vmatpush1.bf16.msra.mxu1 %v1544_v40  ;;  %3494 = vmatprep.subr.bf16.mxu0 %v1529_v29  ;;  %v1209_v40 = vld [vmem:[%s8101_s16 + $0xdf8] sm:$0xff]  ;;  %v1416_v29 = vunpack.c.l.s8.bf16 %v840_v30  ;;  %v1913_v44 = vunpack.c.h.s8.bf16 %v1081_v49  ;;  %v1897_v55 = vunpack.c.l.s8.bf16 %v1081_v49 }
 0x4ac   : > { %3535 = vmatprep.subr.bf16.mxu1 %v1785_v47  ;;  %v1672_v47 = vunpack.c.l.s8.bf16 %v968_v31  ;;  %v2169_v20 = vunpack.c.h.s8.bf16 %v1209_v40  ;;  %v8807_v31 = vld [vmem:[%s477_s21] sm:$0xff] }
 0x4ae   : > { %3495 = vmatpush2.bf16.msra.mxu0 %v1528_v39  ;;  %v1080_v39 = vld [vmem:[%s8101_s16 + $0x9f0] sm:$0xff] }
 0x4af   : > { %3536 = vmatpush2.bf16.msra.mxu1 %v1784_v51  ;;  %3496 = vmatprep.subr.bf16.mxu0 %v1513_v32  ;;  %v1208_v51 = vld [vmem:[%s8101_s16 + $0xdf0] sm:$0xff]  ;;  %v3646_v32 = vlaneseq }
 0x4b0   : > { %3537 = vmatprep.subr.bf16.mxu1 %v1769_v52  ;;  %v1912_v52 = vunpack.c.h.s8.bf16 %v1080_v39  ;;  %v2168_v54 = vunpack.c.h.s8.bf16 %v1208_v51 }
 0x4b1   : > { %v8777_v2 = vshrl.u32 %v3646_v32, 7 }
 0x4b2   : > { %3497 = vmatpush2.bf16.msra.mxu0 %v1512_v43  ;;  %v2153_v43 = vunpack.c.l.s8.bf16 %v1209_v40 }
 0x4b3   : > { %3538 = vmatpush2.bf16.msra.mxu1 %v1768_v58  ;;  %3498 = vmatprep.subr.bf16.mxu0 %v1497_v61  ;;  %v1065_v58 = vld [vmem:[%s8101_s16 + $0x978] sm:$0xff] }
 0x4b4   : > { %3539 = vmatprep.subr.bf16.mxu1 %v1753_v62  ;;  %v1193_v61 = vld [vmem:[%s8101_s16 + $0xd78] sm:$0xff]  ;;  %v1881_v6 = vunpack.c.h.s8.bf16 %v1065_v58 }
 0x4b5   : > { %v2121_v63 = vunpack.c.l.s8.bf16 %v1193_v61 }
 0x4b6   : > { %3499 = vmatpush2.bf16.msra.mxu0 %v1496_v3 }
 0x4b7   : > { %3540 = vmatpush2.bf16.msra.mxu1 %v1752_v5  ;;  %3500 = vmatprep.subr.bf16.mxu0 %v1481_v17  ;;  %v1896_v5 = vunpack.c.l.s8.bf16 %v1080_v39  ;;  %v2152_v17 = vunpack.c.l.s8.bf16 %v1208_v51 }
 0x4b8   : > { %3541 = vmatprep.subr.bf16.mxu1 %v1737_v7 }
 0x4ba   : > { %3501 = vmatpush2.bf16.msra.mxu0 %v1480_v8  ;;  %v2137_v8 = vunpack.c.h.s8.bf16 %v1193_v61  ;;  %v1032_v61 = vld [vmem:[%s8101_s16 + $0x870] sm:$0xff] }
 0x4bb   : > { %3542 = vmatpush2.bf16.msra.mxu1 %v1736_v10  ;;  %3502 = vmatprep.subr.bf16.mxu0 %v1465_v11  ;;  %v1064_v10 = vld [vmem:[%s8101_s16 + $0x970] sm:$0xff] }
 0x4bc   : > { %3543 = vmatprep.subr.bf16.mxu1 %v1721_v12  ;;  %v1192_v11 = vld [vmem:[%s8101_s16 + $0xd70] sm:$0xff]  ;;  %v8791_v12 = vsub.s32 3, %v8777_v2 }
 0x4bd   : > { %v2120_v30 = vunpack.c.l.s8.bf16 %v1192_v11 }
 0x4be   : > { %3503 = vmatpush2.bf16.msra.mxu0 %v1464_v14 }
 0x4bf   : > { %3544 = vmatpush2.bf16.msra.mxu1 %v1720_v19  ;;  %3504 = vmatprep.subr.bf16.mxu0 %v1449_v21  ;;  %v1880_v19 = vunpack.c.h.s8.bf16 %v1064_v10  ;;  %v2136_v21 = vunpack.c.h.s8.bf16 %v1192_v11 }
 0x4c0   : > { %3545 = vmatprep.subr.bf16.mxu1 %v1705_v22 }
 0x4c2   : > { %3505 = vmatpush2.bf16.msra.mxu0 %v1448_v25  ;;  %v1049_v25 = vld [vmem:[%s8101_s16 + $0x8f8] sm:$0xff] }
 0x4c3   : > { %3546 = vmatpush2.bf16.msra.mxu1 %v1704_v26  ;;  %3506 = vmatprep.subr.bf16.mxu0 %v1433_v27  ;;  %v1177_v26 = vld [vmem:[%s8101_s16 + $0xcf8] sm:$0xff]  ;;  %v1833_v39 = vunpack.c.l.s8.bf16 %v1049_v25 }
 0x4c4   : > { %3547 = vmatprep.subr.bf16.mxu1 %v1689_v28  ;;  %v1864_v28 = vunpack.c.l.s8.bf16 %v1064_v10  ;;  %v2089_v51 = vunpack.c.l.s8.bf16 %v1177_v26  ;;  %v1800_v10 = vunpack.c.l.s8.bf16 %v1032_v61 }
 0x4c6   : > { %3507 = vmatpush2.bf16.msra.mxu0 %v1432_v33  ;;  %v1849_v33 = vunpack.c.h.s8.bf16 %v1049_v25 }
 0x4c7   : > { %3548 = vmatpush2.bf16.msra.mxu1 %v1688_v34  ;;  %3508 = vmatprep.subr.bf16.mxu0 %v1417_v36  ;;  %v2105_v34 = vunpack.c.h.s8.bf16 %v1177_v26  ;;  %v1048_v36 = vld [vmem:[%s8101_s16 + $0x8f0] sm:$0xff] }
 0x4c8   : > { %3549 = vmatprep.subr.bf16.mxu1 %v1673_v38  ;;  %v1176_v38 = vld [vmem:[%s8101_s16 + $0xcf0] sm:$0xff] }
 0x4ca   : > { %3509 = vmatpush2.bf16.msra.mxu0 %v1416_v29 }
 0x4cb   : > { %3550 = vmatpush2.bf16.msra.mxu1 %v1672_v47  ;;  %3560 = vmatprep.subr.bf16.mxu0 %v1913_v44  ;;  %v3761_v47 = vrot.slane %v8807_v31, %v8791_v12  ;;  %v1848_v44 = vunpack.c.h.s8.bf16 %v1048_v36 }
 0x4cc   : > { %3601 = vmatprep.subr.bf16.mxu1 %v2169_v20  ;;  %v2104_v20 = vunpack.c.h.s8.bf16 %v1176_v38 }
 0x4cd   : > { %v3266_v62 = vpop.f32.mrf.mxu0  ;;  %3511 = vmatmul.mubr.bf16.vlgmr.msra.gmra.mxu0 %v8189_v15  ;;  %v8783_v15 = vsub.s32 1, %v8777_v2 }
 0x4ce   : > { %v3307_v1 = vpop.f32.mrf.mxu1  ;;  %3552 = vmatmul.mubr.bf16.vlgmr.msra.gmra.mxu1 %v8193_v16  ;;  %v3267_v3 = vadd.f32 %v3266_v62, %v8737_v48  ;;  %3561 = vmatpush1.bf16.msra.mxu0 %v1912_v52  ;;  %v1161_v52 = vld [vmem:[%s8101_s16 + $0xc78] sm:$0xff]  ;;  %v1160_v62 = vld [vmem:[%s8101_s16 + $0xc70] sm:$0xff] }
 0x4cf   : > { %3602 = vmatpush1.bf16.msra.mxu1 %v2168_v54  ;;  %v3268_v7 = vpop.f32.mrf.mxu0  ;;  %3562 = vmatprep.subr.bf16.mxu0 %v1897_v55  ;;  %v3753_v40 = vrot.slane %v8807_v31, %v8783_v15  ;;  %v2088_v55 = vunpack.c.l.s8.bf16 %v1176_v38  ;;  %v2056_v11 = vunpack.c.l.s8.bf16 %v1160_v62 }
 0x4d0   : > { %v3309_v4 = vpop.f32.mrf.mxu1  ;;  %3603 = vmatprep.subr.bf16.mxu1 %v2153_v43  ;;  %v8785_v16 = vadd.f32 %v3307_v1, %v3267_v3  ;;  %v3269_v48 = vadd.f32 %v3268_v7, %v8741_v56  ;;  %3592 = vmatprep.mubr.bf16.mxu0 %v8203_v0  ;;  %v8797_v56 = vld [vmem:[%s468_s19] sm:$0xff] }
 0x4d1   : > { %3633 = vmatprep.mubr.bf16.mxu1 %v8207_v24  ;;  %v3270_v13 = vpop.f32.mrf.mxu0  ;;  %v1865_v24 = vunpack.c.l.s8.bf16 %v1065_v58  ;;  %v3653_v23 = vrot.slane %v8797_v56, %v8783_v15  ;;  %v3661_v27 = vrot.slane %v8797_v56, %v8791_v12  ;;  %v2073_v58 = vunpack.c.h.s8.bf16 %v1161_v52 }
 0x4d2   : > { %v3311_v57 = vpop.f32.mrf.mxu1  ;;  %v8793_v14 = vadd.f32 %v3309_v4, %v3269_v48  ;;  %3563 = vmatpush1.bf16.msra.mxu0 %v1896_v5  ;;  %v1816_v5 = vunpack.c.h.s8.bf16 %v1032_v61  ;;  %v2057_v4 = vunpack.c.l.s8.bf16 %v1161_v52 }
 0x4d3   : > { %3604 = vmatpush1.bf16.msra.mxu1 %v2152_v17  ;;  %v3271_v0 = vpop.f32.mrf.mxu0  ;;  %3564 = vmatprep.subr.bf16.mxu0 %v1881_v6  ;;  %v3727_v49 = vmul.f32 %v3653_v23, %v8375_v45  ;;  %v3729_v29 = vmul.f32 %v3661_v27, %v8457_v46  ;;  %v1033_v45 = vld [vmem:[%s8101_s16 + $0x878] sm:$0xff]  ;;  %v1832_v46 = vunpack.c.l.s8.bf16 %v1048_v36  ;;  %v2072_v17 = vunpack.c.h.s8.bf16 %v1160_v62  ;;  %v1144_v57 = vld [vmem:[%s8101_s16 + $0xbf0] sm:$0xff] }
 0x4d4   : > { %v3312_v22 = vpop.f32.mrf.mxu1  ;;  %3605 = vmatprep.subr.bf16.mxu1 %v2137_v8  ;;  %v1817_v43 = vunpack.c.h.s8.bf16 %v1033_v45  ;;  %v1801_v7 = vunpack.c.l.s8.bf16 %v1033_v45  ;;  %v1145_v6 = vld [vmem:[%s8101_s16 + $0xbf8] sm:$0xff]  ;;  %v2024_v25 = vunpack.c.l.s8.bf16 %v1144_v57 }
 0x4d5   : > { %v8817_v32 = vadd.f32 %v3753_v40, %v3727_v49  ;;  %v8821_v54 = vadd.f32 %v3761_v47, %v3729_v29  ;;  %v1273_v8 = vld [vmem:[%s8101_s16 + $0xff8] sm:$0xff]  ;;  %v2041_v48 = vunpack.c.h.s8.bf16 %v1145_v6  ;;  %v2025_v22 = vunpack.c.l.s8.bf16 %v1145_v6 }
 0x4d6   : > { %3565 = vmatpush1.bf16.msra.mxu0 %v1880_v19  ;;  %v2297_v13 = vunpack.c.h.s8.bf16 %v1273_v8  ;;  %v1272_v19 = vld [vmem:[%s8101_s16 + $0xff0] sm:$0xff]  ;;  %v1257_v23 = vld [vmem:[%s8101_s16 + $0xf78] sm:$0xff] }
 0x4d7   : > { %3606 = vmatpush1.bf16.msra.mxu1 %v2136_v21  ;;  %3566 = vmatprep.subr.bf16.mxu0 %v1865_v24  ;;  %v7140_v1 = vmul.f32 -1.442695, %v8817_v32  ;;  %v7142_v3 = vmul.f32 -1.442695, %v8821_v54  ;;  %v2040_v21 = vunpack.c.h.s8.bf16 %v1144_v57  ;;  %v2296_v0 = vunpack.c.h.s8.bf16 %v1272_v19 }
 0x4d8   : > { %3607 = vmatprep.subr.bf16.mxu1 %v2121_v63  ;;  %v2281_v24 = vunpack.c.l.s8.bf16 %v1273_v8  ;;  %v1129_v63 = vld [vmem:[%s8101_s16 + $0xb78] sm:$0xff]  ;;  %v2280_v26 = vunpack.c.l.s8.bf16 %v1272_v19  ;;  %v2249_v29 = vunpack.c.l.s8.bf16 %v1257_v23  ;;  %v1096_v8 = vld [vmem:[%s8101_s16 + $0xa70] sm:$0xff]  ;;  %v3995_v19 = vld [vmem:[%s8115_s14 + $0xc8] sm:$0xff] }
 0x4d9   : > { %7346 = vpow2.f32 %v7140_v1  ;;  %v2009_v27 = vunpack.c.h.s8.bf16 %v1129_v63  ;;  %v1993_v40 = vunpack.c.l.s8.bf16 %v1129_v63 }
 0x4da   : > { %3567 = vmatpush1.bf16.msra.mxu0 %v1864_v28  ;;  %7348 = vpow2.f32 %v7142_v3  ;;  %v2265_v28 = vunpack.c.h.s8.bf16 %v1257_v23  ;;  %v1097_v3 = vld [vmem:[%s8101_s16 + $0xa78] sm:$0xff]  ;;  %v4539_v23 = vunpack.c.h.s8.bf16 %v3995_v19 }
 0x4db   : > { %3608 = vmatpush1.bf16.msra.mxu1 %v2120_v30  ;;  %3568 = vmatprep.subr.bf16.mxu0 %v1849_v33  ;;  %v1128_v30 = vld [vmem:[%s8101_s16 + $0xb70] sm:$0xff] }
 0x4dc   : > { %3609 = vmatprep.subr.bf16.mxu1 %v2105_v34  ;;  %v1256_v33 = vld [vmem:[%s8101_s16 + $0xf70] sm:$0xff]  ;;  %v2008_v38 = vunpack.c.h.s8.bf16 %v1128_v30 }
 0x4dd   : > { %v2264_v49 = vunpack.c.h.s8.bf16 %v1256_v33  ;;  %v2248_v45 = vunpack.c.l.s8.bf16 %v1256_v33 }
 0x4de   : > { %3569 = vmatpush1.bf16.msra.mxu0 %v1848_v44  ;;  %v1113_v44 = vld [vmem:[%s8101_s16 + $0xaf8] sm:$0xff] }
 0x4df   : > { %3610 = vmatpush1.bf16.msra.mxu1 %v2104_v20  ;;  %3570 = vmatprep.subr.bf16.mxu0 %v1833_v39  ;;  %v1241_v20 = vld [vmem:[%s8101_s16 + $0xef8] sm:$0xff]  ;;  %v1977_v52 = vunpack.c.h.s8.bf16 %v1113_v44  ;;  %v1961_v62 = vunpack.c.l.s8.bf16 %v1113_v44 }
 0x4e0   : > { %3611 = vmatprep.subr.bf16.mxu1 %v2089_v51  ;;  %v1992_v51 = vunpack.c.l.s8.bf16 %v1128_v30  ;;  %v2217_v1 = vunpack.c.l.s8.bf16 %v1241_v20 }
 0x4e2   : > { %3571 = vmatpush1.bf16.msra.mxu0 %v1832_v46  ;;  %v2233_v46 = vunpack.c.h.s8.bf16 %v1241_v20 }
 0x4e3   : > { %3612 = vmatpush1.bf16.msra.mxu1 %v2088_v55  ;;  %3572 = vmatprep.subr.bf16.mxu0 %v1817_v43  ;;  %v1112_v55 = vld [vmem:[%s8101_s16 + $0xaf0] sm:$0xff] }
 0x4e4   : > { %3613 = vmatprep.subr.bf16.mxu1 %v2073_v58  ;;  %v1240_v43 = vld [vmem:[%s8101_s16 + $0xef0] sm:$0xff]  ;;  %v1976_v58 = vunpack.c.h.s8.bf16 %v1112_v55 }
 0x4e5   : > { %v2232_v61 = vunpack.c.h.s8.bf16 %v1240_v43 }
 0x4e6   : > { %3573 = vmatpush1.bf16.msra.mxu0 %v1816_v5  ;;  %v7347_v34 = vpop.eup %7346  ;;  %v1225_v5 = vld [vmem:[%s8101_s16 + $0xe78] sm:$0xff] }
 0x4e7   : > { %3614 = vmatpush1.bf16.msra.mxu1 %v2072_v17  ;;  %3574 = vmatprep.subr.bf16.mxu0 %v1801_v7  ;;  %v7349_v36 = vpop.eup %7348  ;;  %v3891_v47 = vadd.f32 1.0, %v7347_v34  ;;  %v1960_v17 = vunpack.c.l.s8.bf16 %v1112_v55  ;;  %v2216_v7 = vunpack.c.l.s8.bf16 %v1240_v43  ;;  %v2201_v6 = vunpack.c.h.s8.bf16 %v1225_v5 }
 0x4e8   : > { %3615 = vmatprep.subr.bf16.mxu1 %v2057_v4  ;;  %v3893_v39 = vadd.f32 1.0, %v7349_v36  ;;  %v1945_v4 = vunpack.c.h.s8.bf16 %v1097_v3  ;;  %v2185_v57 = vunpack.c.l.s8.bf16 %v1225_v5 }
 0x4e9   : > { %7350 = vrcp.f32 %v3891_v47 }
 0x4ea   : > { %3575 = vmatpush1.bf16.msra.mxu0 %v1800_v10  ;;  %7352 = vrcp.f32 %v3893_v39  ;;  %v1224_v10 = vld [vmem:[%s8101_s16 + $0xe70] sm:$0xff]  ;;  %v8861_v39 = vsub.s32 0, %v8777_v2 }
 0x4eb   : > { %3616 = vmatpush1.bf16.msra.mxu1 %v2056_v11  ;;  %3576 = vmatprep.subr.bf16.mxu0 %v2041_v48  ;;  %v1944_v11 = vunpack.c.h.s8.bf16 %v1096_v8  ;;  %v2200_v48 = vunpack.c.h.s8.bf16 %v1224_v10  ;;  %v2184_v63 = vunpack.c.l.s8.bf16 %v1224_v10 }
 0x4ec   : > { %3617 = vmatprep.subr.bf16.mxu1 %v2297_v13  ;;  %v1929_v13 = vunpack.c.l.s8.bf16 %v1097_v3  ;;  %v8875_v3 = vsub.s32 7, %v8777_v2 }
 0x4ee   : > { %3577 = vmatpush2.bf16.msra.mxu0 %v2040_v21  ;;  %v4059_v21 = vld [vmem:[%s8115_s14 + $0x2c8] sm:$0xff] }
 0x4ef   : > { %3618 = vmatpush2.bf16.msra.mxu1 %v2296_v0  ;;  %3578 = vmatprep.subr.bf16.mxu0 %v2025_v22 }
 0x4f0   : > { %3619 = vmatprep.subr.bf16.mxu1 %v2281_v24  ;;  %v1928_v24 = vunpack.c.l.s8.bf16 %v1096_v8 }
 0x4f2   : > { %3579 = vmatpush2.bf16.msra.mxu0 %v2024_v25  ;;  %v4667_v25 = vunpack.c.h.s8.bf16 %v4059_v21 }
 0x4f3   : > { %3620 = vmatpush2.bf16.msra.mxu1 %v2280_v26  ;;  %3580 = vmatprep.subr.bf16.mxu0 %v2009_v27  ;;  %v3994_v26 = vld [vmem:[%s8115_s14 + $0xc0] sm:$0xff] }
 0x4f4   : > { %3621 = vmatprep.subr.bf16.mxu1 %v2265_v28  ;;  %v4058_v28 = vld [vmem:[%s8115_s14 + $0x2c0] sm:$0xff]  ;;  %v4538_v33 = vunpack.c.h.s8.bf16 %v3994_v26  ;;  %v4530_v20 = vunpack.c.l.s8.bf16 %v3994_v26 }
 0x4f5   : > { %v4666_v34 = vunpack.c.h.s8.bf16 %v4058_v28 }
 0x4f6   : > { %3581 = vmatpush2.bf16.msra.mxu0 %v2008_v38  ;;  %v7351_v0 = vpop.eup %7350  ;;  %v4531_v38 = vunpack.c.l.s8.bf16 %v3995_v19  ;;  %v3677_v19 = vrot.slane %v8797_v56, %v8875_v3 }
 0x4f7   : > { %3622 = vmatpush2.bf16.msra.mxu1 %v2264_v49  ;;  %3582 = vmatprep.subr.bf16.mxu0 %v1993_v40  ;;  %v7353_v22 = vpop.eup %7352  ;;  %v3939_v27 = vmul.f32 %v7351_v0, %v8817_v32  ;;  %v4659_v49 = vunpack.c.l.s8.bf16 %v4059_v21  ;;  %v3987_v40 = vld [vmem:[%s8115_s14 + $0x88] sm:$0xff] }
 0x4f8   : > { %3623 = vmatprep.subr.bf16.mxu1 %v2249_v29  ;;  %v3941_v30 = vmul.f32 %v7353_v22, %v8821_v54  ;;  %v4051_v54 = vld [vmem:[%s8115_s14 + $0x288] sm:$0xff]  ;;  %v4515_v8 = vunpack.c.l.s8.bf16 %v3987_v40  ;;  %v3749_v22 = vrot.slane %v8807_v31, %v8861_v39 }
 0x4f9   : > { %v8849_v36 = vpack.c.bf16 %v3939_v27, %v3939_v27  ;;  %v4651_v43 = vunpack.c.h.s8.bf16 %v4051_v54 }
 0x4fa   : > { %3583 = vmatpush2.bf16.msra.mxu0 %v1992_v51  ;;  %v8852_v29 = vpack.c.bf16 %v3941_v30, %v3941_v30 }
 0x4fb   : > { %3624 = vmatpush2.bf16.msra.mxu1 %v2248_v45  ;;  %3584 = vmatprep.subr.bf16.mxu0 %v1977_v52  ;;  %v4658_v52 = vunpack.c.l.s8.bf16 %v4058_v28  ;;  %v4042_v28 = vld [vmem:[%s8115_s14 + $0x240] sm:$0xff] }
 0x4fc   : > { %3625 = vmatprep.subr.bf16.mxu1 %v2233_v46  ;;  %v3986_v46 = vld [vmem:[%s8115_s14 + $0x80] sm:$0xff] }
 0x4fd   : > { %v4522_v5 = vunpack.c.h.s8.bf16 %v3986_v46  ;;  %v4514_v21 = vunpack.c.l.s8.bf16 %v3986_v46  ;;  %v3970_v46 = vld [vmem:[%s8115_s14] sm:$0xff] }
 0x4fe   : > { %3585 = vmatpush2.bf16.msra.mxu0 %v1976_v58  ;;  %v4050_v58 = vld [vmem:[%s8115_s14 + $0x280] sm:$0xff] }
 0x4ff   : > { %3626 = vmatpush2.bf16.msra.mxu1 %v2232_v61  ;;  %3586 = vmatprep.subr.bf16.mxu0 %v1961_v62  ;;  %v8872_v61 = vsub.s32 5, %v8777_v2 }
 0x500   : > { %3627 = vmatprep.subr.bf16.mxu1 %v2217_v1 }
 0x502   : > { %3587 = vmatpush2.bf16.msra.mxu0 %v1960_v17  ;;  %v3649_v17 = vrot.slane %v8797_v56, %v8861_v39 }
 0x503   : > { %3628 = vmatpush2.bf16.msra.mxu1 %v2216_v7  ;;  %3588 = vmatprep.subr.bf16.mxu0 %v1945_v4 }
 0x504   : > { %3629 = vmatprep.subr.bf16.mxu1 %v2201_v6  ;;  %v4650_v6 = vunpack.c.h.s8.bf16 %v4050_v58  ;;  %v3726_v0 = vmul.f32 %v3649_v17, %v8370_v41  ;;  %v3769_v41 = vrot.slane %v8807_v31, %v8872_v61  ;;  %v4490_v17 = vunpack.c.h.s8.bf16 %v3970_v46 }
 0x506   : > { %3589 = vmatpush2.bf16.msra.mxu0 %v1944_v11  ;;  %v4643_v11 = vunpack.c.l.s8.bf16 %v4051_v54 }
 0x507   : > { %3630 = vmatpush2.bf16.msra.mxu1 %v2200_v48  ;;  %3590 = vmatprep.subr.bf16.mxu0 %v1929_v13  ;;  %v3979_v48 = vld [vmem:[%s8115_s14 + $0x48] sm:$0xff]  ;;  %v3669_v13 = vrot.slane %v8797_v56, %v8872_v61 }
 0x508   : > { %3631 = vmatprep.subr.bf16.mxu1 %v2185_v57  ;;  %v4043_v57 = vld [vmem:[%s8115_s14 + $0x248] sm:$0xff] }
 0x509   : > { %v4635_v27 = vunpack.c.h.s8.bf16 %v4043_v57  ;;  %v3731_v30 = vmul.f32 %v3669_v13, %v8539_v53  ;;  %v4627_v53 = vunpack.c.l.s8.bf16 %v4043_v57  ;;  %v4026_v57 = vld [vmem:[%s8115_s14 + $0x1c0] sm:$0xff] }
 0x50a   : > { %3591 = vmatpush2.bf16.msra.mxu0 %v1928_v24  ;;  %v4642_v24 = vunpack.c.l.s8.bf16 %v4050_v58 }
 0x50b   : > { %3632 = vmatpush2.bf16.msra.mxu1 %v2184_v63  ;;  %5514 = vmatprep.subr.bf16.mxu0 %v4539_v23  ;;  %v4507_v63 = vunpack.c.h.s8.bf16 %v3979_v48  ;;  %v3978_v23 = vld [vmem:[%s8115_s14 + $0x40] sm:$0xff]  ;;  %v8906_v54 = vadd.f32 %v3769_v41, %v3731_v30 }
 0x50c   : > { %5555 = vmatprep.subr.bf16.mxu1 %v4667_v25  ;;  %v4018_v30 = vld [vmem:[%s8115_s14 + $0x180] sm:$0xff] }
 0x50d   : > { %v3348_v47 = vpop.f32.mrf.mxu0  ;;  %3593 = vmatmul.mubr.bf16.vlgmr.msra.gmra.mxu0 %v8245_v59  ;;  %v4523_v59 = vunpack.c.h.s8.bf16 %v3987_v40  ;;  %v4499_v40 = vunpack.c.l.s8.bf16 %v3979_v48 }
 0x50e   : > { %v3389_v32 = vpop.f32.mrf.mxu1  ;;  %3634 = vmatmul.mubr.bf16.vlgmr.msra.gmra.mxu1 %v8249_v60  ;;  %5515 = vmatpush1.bf16.msra.mxu0 %v4538_v33  ;;  %v8866_v60 = vsub.s32 2, %v8777_v2  ;;  %v3733_v33 = vmul.f32 %v3677_v19, %v8621_v9  ;;  %v4035_v9 = vld [vmem:[%s8115_s14 + $0x208] sm:$0xff] }
 0x50f   : > { %v8857_v44 = vadd.f32 %v3389_v32, %v3348_v47  ;;  %5546 = vmatprep.mubr.bf16.mxu0 %v8849_v36  ;;  %5556 = vmatpush1.bf16.msra.mxu1 %v4666_v34  ;;  %v3350_v51 = vpop.f32.mrf.mxu0  ;;  %v3777_v34 = vrot.slane %v8807_v31, %v8875_v3  ;;  %v3971_v32 = vld [vmem:[%s8115_s14 + $0x8] sm:$0xff]  ;;  %v4619_v58 = vunpack.c.h.s8.bf16 %v4035_v9 }
 0x510   : > { %5587 = vmatprep.mubr.bf16.mxu1 %v8852_v29  ;;  %v3391_v45 = vpop.f32.mrf.mxu1  ;;  %5516 = vmatprep.subr.bf16.mxu0 %v4531_v38  ;;  %v3657_v10 = vrot.slane %v8797_v56, %v8866_v60  ;;  %v3757_v26 = vrot.slane %v8807_v31, %v8866_v60  ;;  %v8901_v38 = vadd.f32 %v3749_v22, %v3726_v0  ;;  %v4602_v0 = vunpack.c.h.s8.bf16 %v4026_v57 }
 0x511   : > { %v8868_v55 = vadd.f32 %v3391_v45, %v3350_v51  ;;  %5557 = vmatprep.subr.bf16.mxu1 %v4659_v49  ;;  %v3352_v62 = vpop.f32.mrf.mxu0  ;;  %v4634_v49 = vunpack.c.h.s8.bf16 %v4042_v28  ;;  %v4498_v51 = vunpack.c.l.s8.bf16 %v3978_v23 }
 0x512   : > { %v3393_v1 = vpop.f32.mrf.mxu1  ;;  %5517 = vmatpush1.bf16.msra.mxu0 %v4530_v20  ;;  %v3728_v25 = vmul.f32 %v3657_v10, %v8452_v42  ;;  %v4506_v42 = vunpack.c.h.s8.bf16 %v3978_v23  ;;  %v8909_v20 = vadd.f32 %v3777_v34, %v3733_v33  ;;  %v7139_v45 = vmul.f32 -1.442695, %v8901_v38  ;;  %v4034_v62 = vld [vmem:[%s8115_s14 + $0x200] sm:$0xff]  ;;  %v4091_v10 = vld [vmem:[%s8115_s14 + $0x3c8] sm:$0xff] }
 0x513   : > { %5558 = vmatpush1.bf16.msra.mxu1 %v4658_v52  ;;  %v3353_v7 = vpop.f32.mrf.mxu0  ;;  %5518 = vmatprep.subr.bf16.mxu0 %v4523_v59  ;;  %v4626_v52 = vunpack.c.l.s8.bf16 %v4042_v28  ;;  %v4491_v59 = vunpack.c.h.s8.bf16 %v3971_v32  ;;  %v7144_v1 = vmul.f32 -1.442695, %v8906_v54  ;;  %v4610_v48 = vunpack.c.l.s8.bf16 %v4034_v62  ;;  %v4019_v23 = vld [vmem:[%s8115_s14 + $0x188] sm:$0xff]  ;;  %v4082_v34 = vld [vmem:[%s8115_s14 + $0x380] sm:$0xff] }
 0x514   : > { %v3394_v4 = vpop.f32.mrf.mxu1  ;;  %5559 = vmatprep.subr.bf16.mxu1 %v4651_v43  ;;  %v8903_v47 = vadd.f32 %v3757_v26, %v3728_v25  ;;  %7354 = vpow2.f32 %v7139_v45  ;;  %v4618_v7 = vunpack.c.h.s8.bf16 %v4034_v62  ;;  %v4731_v19 = vunpack.c.h.s8.bf16 %v4091_v10  ;;  %v4083_v25 = vld [vmem:[%s8115_s14 + $0x388] sm:$0xff] }
 0x515   : > { %v4483_v4 = vunpack.c.l.s8.bf16 %v3971_v32  ;;  %v4594_v26 = vunpack.c.l.s8.bf16 %v4026_v57  ;;  %v4587_v28 = vunpack.c.h.s8.bf16 %v4019_v23  ;;  %v4715_v33 = vunpack.c.h.s8.bf16 %v4083_v25 }
 0x516   : > { %5519 = vmatpush1.bf16.msra.mxu0 %v4522_v5  ;;  %v7141_v43 = vmul.f32 -1.442695, %v8903_v47  ;;  %v7146_v5 = vmul.f32 -1.442695, %v8909_v20  ;;  %v4578_v62 = vunpack.c.l.s8.bf16 %v4018_v30 }
 0x517   : > { %5560 = vmatpush1.bf16.msra.mxu1 %v4650_v6  ;;  %5520 = vmatprep.subr.bf16.mxu0 %v4515_v8  ;;  %v4611_v6 = vunpack.c.l.s8.bf16 %v4035_v9  ;;  %v4027_v8 = vld [vmem:[%s8115_s14 + $0x1c8] sm:$0xff]  ;;  %v4714_v9 = vunpack.c.h.s8.bf16 %v4082_v34 }
 0x518   : > { %5561 = vmatprep.subr.bf16.mxu1 %v4643_v11  ;;  %7356 = vpow2.f32 %v7141_v43  ;;  %v4482_v11 = vunpack.c.l.s8.bf16 %v3970_v46  ;;  %v4603_v13 = vunpack.c.h.s8.bf16 %v4027_v8  ;;  %v4075_v43 = vld [vmem:[%s8115_s14 + $0x348] sm:$0xff] }
 0x519   : > { %7358 = vpow2.f32 %v7144_v1  ;;  %v4706_v1 = vunpack.c.l.s8.bf16 %v4082_v34 }
 0x51a   : > { %5521 = vmatpush1.bf16.msra.mxu0 %v4514_v21  ;;  %7360 = vpow2.f32 %v7146_v5  ;;  %v4090_v21 = vld [vmem:[%s8115_s14 + $0x3c0] sm:$0xff] }
 0x51b   : > { %5562 = vmatpush1.bf16.msra.mxu1 %v4642_v24  ;;  %5522 = vmatprep.subr.bf16.mxu0 %v4507_v63  ;;  %v4730_v22 = vunpack.c.h.s8.bf16 %v4090_v21  ;;  %v4595_v24 = vunpack.c.l.s8.bf16 %v4027_v8  ;;  %v4723_v63 = vunpack.c.l.s8.bf16 %v4091_v10 }
 0x51c   : > { %5563 = vmatprep.subr.bf16.mxu1 %v4635_v27  ;;  %v4722_v27 = vunpack.c.l.s8.bf16 %v4090_v21 }
 0x51e   : > { %5523 = vmatpush1.bf16.msra.mxu0 %v4506_v42 }
 0x51f   : > { %5564 = vmatpush1.bf16.msra.mxu1 %v4634_v49  ;;  %5524 = vmatprep.subr.bf16.mxu0 %v4499_v40  ;;  %v4586_v40 = vunpack.c.h.s8.bf16 %v4018_v30 }
 0x520   : > { %5565 = vmatprep.subr.bf16.mxu1 %v4627_v53 }
 0x521   : > { %v7355_v41 = vpop.eup %7354 }
 0x522   : > { %5525 = vmatpush1.bf16.msra.mxu0 %v4498_v51  ;;  %v3890_v32 = vadd.f32 1.0, %v7355_v41  ;;  %v4579_v51 = vunpack.c.l.s8.bf16 %v4019_v23  ;;  %v4187_v41 = vld [vmem:[%s8115_s14 + $0x6c8] sm:$0xff] }
 0x523   : > { %5566 = vmatpush1.bf16.msra.mxu1 %v4626_v52  ;;  %5526 = vmatprep.subr.bf16.mxu0 %v4491_v59  ;;  %v4707_v52 = vunpack.c.l.s8.bf16 %v4083_v25  ;;  %v4011_v59 = vld [vmem:[%s8115_s14 + $0x148] sm:$0xff] }
 0x524   : > { %5567 = vmatprep.subr.bf16.mxu1 %v4619_v58  ;;  %7362 = vrcp.f32 %v3890_v32  ;;  %v4571_v5 = vunpack.c.h.s8.bf16 %v4011_v59  ;;  %v4563_v10 = vunpack.c.l.s8.bf16 %v4011_v59  ;;  %v4122_v32 = vld [vmem:[%s8115_s14 + $0x4c0] sm:$0xff] }
 0x525   : > { %v7357_v42 = vpop.eup %7356 }
 0x526   : > { %5527 = vmatpush1.bf16.msra.mxu0 %v4490_v17  ;;  %v7359_v49 = vpop.eup %7358  ;;  %v3892_v45 = vadd.f32 1.0, %v7357_v42  ;;  %v4010_v17 = vld [vmem:[%s8115_s14 + $0x140] sm:$0xff] }
 0x527   : > { %5568 = vmatpush1.bf16.msra.mxu1 %v4618_v7  ;;  %5528 = vmatprep.subr.bf16.mxu0 %v4483_v4  ;;  %v7361_v53 = vpop.eup %7360  ;;  %v3895_v46 = vadd.f32 1.0, %v7359_v49  ;;  %v4699_v7 = vunpack.c.h.s8.bf16 %v4075_v43  ;;  %v4074_v4 = vld [vmem:[%s8115_s14 + $0x340] sm:$0xff]  ;;  %v4562_v57 = vunpack.c.l.s8.bf16 %v4010_v17 }
 0x528   : > { %5569 = vmatprep.subr.bf16.mxu1 %v4611_v6  ;;  %v3897_v58 = vadd.f32 1.0, %v7361_v53  ;;  %7364 = vrcp.f32 %v3892_v45  ;;  %v4570_v6 = vunpack.c.h.s8.bf16 %v4010_v17  ;;  %v4698_v8 = vunpack.c.h.s8.bf16 %v4074_v4  ;;  %v4186_v45 = vld [vmem:[%s8115_s14 + $0x6c0] sm:$0xff] }
 0x529   : > { %7366 = vrcp.f32 %v3895_v46  ;;  %v4794_v46 = vunpack.c.h.s8.bf16 %v4122_v32 }
 0x52a   : > { %5529 = vmatpush1.bf16.msra.mxu0 %v4482_v11  ;;  %7368 = vrcp.f32 %v3897_v58  ;;  %v4691_v11 = vunpack.c.l.s8.bf16 %v4075_v43 }
 0x52b   : > { %5570 = vmatpush1.bf16.msra.mxu1 %v4610_v48  ;;  %5530 = vmatprep.subr.bf16.mxu0 %v4603_v13  ;;  %v4003_v48 = vld [vmem:[%s8115_s14 + $0x108] sm:$0xff] }
 0x52c   : > { %5571 = vmatprep.subr.bf16.mxu1 %v4731_v19  ;;  %v4067_v13 = vld [vmem:[%s8115_s14 + $0x308] sm:$0xff]  ;;  %v4690_v19 = vunpack.c.l.s8.bf16 %v4074_v4  ;;  %v4555_v21 = vunpack.c.h.s8.bf16 %v4003_v48  ;;  %v4547_v25 = vunpack.c.l.s8.bf16 %v4003_v48  ;;  %v4914_v48 = vunpack.c.l.s8.bf16 %v4186_v45 }
 0x52e   : > { %5531 = vmatpush2.bf16.msra.mxu0 %v4602_v0  ;;  %v4002_v0 = vld [vmem:[%s8115_s14 + $0x100] sm:$0xff] }
 0x52f   : > { %5572 = vmatpush2.bf16.msra.mxu1 %v4730_v22  ;;  %5532 = vmatprep.subr.bf16.mxu0 %v4595_v24  ;;  %v4683_v22 = vunpack.c.h.s8.bf16 %v4067_v13  ;;  %v4066_v24 = vld [vmem:[%s8115_s14 + $0x300] sm:$0xff]  ;;  %v4546_v34 = vunpack.c.l.s8.bf16 %v4002_v0 }
 0x530   : > { %5573 = vmatprep.subr.bf16.mxu1 %v4723_v63  ;;  %v4554_v63 = vunpack.c.h.s8.bf16 %v4002_v0  ;;  %v4682_v23 = vunpack.c.h.s8.bf16 %v4066_v24 }
 0x532   : > { %5533 = vmatpush2.bf16.msra.mxu0 %v4594_v26  ;;  %v7363_v26 = vpop.eup %7362 }
 0x533   : > { %5574 = vmatpush2.bf16.msra.mxu1 %v4722_v27  ;;  %5534 = vmatprep.subr.bf16.mxu0 %v4587_v28  ;;  %v4675_v27 = vunpack.c.l.s8.bf16 %v4067_v13  ;;  %v4123_v28 = vld [vmem:[%s8115_s14 + $0x4c8] sm:$0xff]  ;;  %v3938_v49 = vmul.f32 %v7363_v26, %v8901_v38  ;;  %v4922_v38 = vunpack.c.h.s8.bf16 %v4186_v45  ;;  %v4106_v45 = vld [vmem:[%s8115_s14 + $0x440] sm:$0xff] }
 0x534   : > { %5575 = vmatprep.subr.bf16.mxu1 %v4715_v33  ;;  %v4795_v53 = vunpack.c.h.s8.bf16 %v4123_v28 }
 0x535   : > { %v7365_v30 = vpop.eup %7364  ;;  %v8941_v43 = vpack.c.bf16 %v3938_v49, %v3938_v49  ;;  %v4171_v49 = vld [vmem:[%s8115_s14 + $0x648] sm:$0xff] }
 0x536   : > { %5535 = vmatpush2.bf16.msra.mxu0 %v4586_v40  ;;  %v7367_v33 = vpop.eup %7366  ;;  %v4674_v40 = vunpack.c.l.s8.bf16 %v4066_v24 }
 0x537   : > { %5576 = vmatpush2.bf16.msra.mxu1 %v4714_v9  ;;  %5536 = vmatprep.subr.bf16.mxu0 %v4579_v51  ;;  %v7369_v42 = vpop.eup %7368  ;;  %v3940_v9 = vmul.f32 %v7365_v30, %v8903_v47  ;;  %v4923_v51 = vunpack.c.h.s8.bf16 %v4187_v41  ;;  %v4115_v47 = vld [vmem:[%s8115_s14 + $0x488] sm:$0xff] }
 0x538   : > { %5577 = vmatprep.subr.bf16.mxu1 %v4707_v52  ;;  %v3943_v52 = vmul.f32 %v7367_v33, %v8906_v54  ;;  %v3945_v59 = vmul.f32 %v7369_v42, %v8909_v20  ;;  %v4915_v54 = vunpack.c.l.s8.bf16 %v4187_v41  ;;  %v4179_v20 = vld [vmem:[%s8115_s14 + $0x688] sm:$0xff]  ;;  %v4779_v13 = vunpack.c.h.s8.bf16 %v4115_v47 }
 0x539   : > { %v8943_v58 = vpack.c.bf16 %v3940_v9, %v3940_v9  ;;  %v4907_v0 = vunpack.c.h.s8.bf16 %v4179_v20  ;;  %v8975_v41 = vld [vmem:[%s468_s19 + $0x8] sm:$0xff]  ;;  %v4899_v33 = vunpack.c.l.s8.bf16 %v4179_v20 }
 0x53a   : > { %5537 = vmatpush2.bf16.msra.mxu0 %v4578_v62  ;;  %v4787_v62 = vunpack.c.l.s8.bf16 %v4123_v28  ;;  %v4771_v28 = vunpack.c.l.s8.bf16 %v4115_v47  ;;  %v3685_v42 = vrot.slane %v8975_v41, %v8783_v15 }
 0x53b   : > { %5578 = vmatpush2.bf16.msra.mxu1 %v4706_v1  ;;  %5538 = vmatprep.subr.bf16.mxu0 %v4571_v5  ;;  %v8946_v1 = vpack.c.bf16 %v3943_v52, %v3943_v52 }
 0x53c   : > { %5579 = vmatprep.subr.bf16.mxu1 %v4699_v7  ;;  %v8950_v7 = vpack.c.bf16 %v3945_v59, %v3945_v59 }
 0x53e   : > { %5539 = vmatpush2.bf16.msra.mxu0 %v4570_v6  ;;  %v4786_v6 = vunpack.c.l.s8.bf16 %v4122_v32 }
 0x53f   : > { %5580 = vmatpush2.bf16.msra.mxu1 %v4698_v8  ;;  %5540 = vmatprep.subr.bf16.mxu0 %v4563_v10  ;;  %v8955_v8 = vsub.s32 4, %v8777_v2 }
 0x540   : > { %5581 = vmatprep.subr.bf16.mxu1 %v4691_v11 }
 0x541   : > { %v3765_v32 = vrot.slane %v8807_v31, %v8955_v8 }
 0x542   : > { %5541 = vmatpush2.bf16.msra.mxu0 %v4562_v57  ;;  %v4114_v57 = vld [vmem:[%s8115_s14 + $0x480] sm:$0xff] }
 0x543   : > { %5582 = vmatpush2.bf16.msra.mxu1 %v4690_v19  ;;  %5542 = vmatprep.subr.bf16.mxu0 %v4555_v21  ;;  %v8960_v19 = vsub.s32 6, %v8777_v2  ;;  %v4778_v2 = vunpack.c.h.s8.bf16 %v4114_v57 }
 0x544   : > { %5583 = vmatprep.subr.bf16.mxu1 %v4683_v22  ;;  %v4178_v22 = vld [vmem:[%s8115_s14 + $0x680] sm:$0xff] }
 0x545   : > { %v3673_v30 = vrot.slane %v8797_v56, %v8960_v19  ;;  %v4898_v9 = vunpack.c.l.s8.bf16 %v4178_v22  ;;  %v3773_v59 = vrot.slane %v8807_v31, %v8960_v19  ;;  %v4762_v31 = vunpack.c.h.s8.bf16 %v4106_v45 }
 0x546   : > { %5543 = vmatpush2.bf16.msra.mxu0 %v4554_v63 }
 0x547   : > { %5584 = vmatpush2.bf16.msra.mxu1 %v4682_v23  ;;  %5544 = vmatprep.subr.bf16.mxu0 %v4547_v25  ;;  %v3665_v25 = vrot.slane %v8797_v56, %v8955_v8  ;;  %v3732_v52 = vmul.f32 %v3673_v30, %v8616_v18 }
 0x548   : > { %5585 = vmatprep.subr.bf16.mxu1 %v4675_v27 }
 0x549   : > { %v3730_v56 = vmul.f32 %v3665_v25, %v8534_v50  ;;  %v4170_v50 = vld [vmem:[%s8115_s14 + $0x640] sm:$0xff] }
 0x54a   : > { %5545 = vmatpush2.bf16.msra.mxu0 %v4546_v34  ;;  %v4107_v34 = vld [vmem:[%s8115_s14 + $0x448] sm:$0xff] }
 0x54b   : > { %5586 = vmatpush2.bf16.msra.mxu1 %v4674_v40  ;;  %5596 = vmatprep.subr.bf16.mxu0 %v4795_v53  ;;  %v3693_v40 = vrot.slane %v8975_v41, %v8791_v12  ;;  %v4770_v53 = vunpack.c.l.s8.bf16 %v4114_v57  ;;  %v4755_v20 = vunpack.c.l.s8.bf16 %v4107_v34  ;;  %v4098_v57 = vld [vmem:[%s8115_s14 + $0x400] sm:$0xff] }
 0x54c   : > { %5637 = vmatprep.subr.bf16.mxu1 %v4923_v51  ;;  %v4763_v51 = vunpack.c.h.s8.bf16 %v4107_v34  ;;  %v4738_v30 = vunpack.c.l.s8.bf16 %v4098_v57 }
 0x54d   : > { %v3430_v5 = vpop.f32.mrf.mxu0  ;;  %5547 = vmatmul.mubr.bf16.vlgmr.msra.gmra.mxu0 %v8941_v43 }
 0x54e   : > { %v3471_v17 = vpop.f32.mrf.mxu1  ;;  %v3431_v4 = vadd.f32 %v3430_v5, %v8857_v44  ;;  %5588 = vmatmul.mubr.bf16.vlgmr.msra.gmra.mxu1 %v8943_v58  ;;  %5597 = vmatpush1.bf16.msra.mxu0 %v4794_v46  ;;  %v8992_v46 = vld [vmem:[%s477_s21 + $0x8] sm:$0xff]  ;;  %v3737_v5 = vmul.f32 %v3693_v40, %v8793_v14  ;;  %v4218_v40 = vld [vmem:[%s8115_s14 + $0x7c0] sm:$0xff] }
 0x54f   : > { %5628 = vmatprep.mubr.bf16.mxu0 %v8946_v1  ;;  %5638 = vmatpush1.bf16.msra.mxu1 %v4922_v38  ;;  %v3432_v10 = vpop.f32.mrf.mxu0  ;;  %v4891_v38 = vunpack.c.h.s8.bf16 %v4171_v49  ;;  %v3785_v47 = vrot.slane %v8992_v46, %v8783_v15  ;;  %v3793_v18 = vrot.slane %v8992_v46, %v8791_v12  ;;  %v4099_v15 = vld [vmem:[%s8115_s14 + $0x408] sm:$0xff]  ;;  %v4754_v12 = vunpack.c.l.s8.bf16 %v4106_v45 }
 0x550   : > { %v3473_v11 = vpop.f32.mrf.mxu1  ;;  %v8962_v44 = vadd.f32 %v3471_v17, %v3431_v4  ;;  %5669 = vmatprep.mubr.bf16.mxu1 %v8950_v7  ;;  %v3433_v21 = vadd.f32 %v3432_v10, %v8868_v55  ;;  %5598 = vmatprep.subr.bf16.mxu0 %v4787_v62  ;;  %v4906_v55 = vunpack.c.h.s8.bf16 %v4178_v22  ;;  %v3735_v62 = vmul.f32 %v3685_v42, %v8703_v35  ;;  %v4163_v14 = vld [vmem:[%s8115_s14 + $0x608] sm:$0xff]  ;;  %v4162_v22 = vld [vmem:[%s8115_s14 + $0x600] sm:$0xff] }
 0x551   : > { %v3434_v24 = vpop.f32.mrf.mxu0  ;;  %5639 = vmatprep.subr.bf16.mxu1 %v4915_v54  ;;  %v9001_v17 = vadd.f32 %v3765_v32, %v3730_v56  ;;  %v4890_v54 = vunpack.c.h.s8.bf16 %v4170_v50  ;;  %v9003_v4 = vadd.f32 %v3773_v59, %v3732_v52  ;;  %v4883_v35 = vunpack.c.l.s8.bf16 %v4171_v49  ;;  %v4154_v42 = vld [vmem:[%s8115_s14 + $0x5c0] sm:$0xff]  ;;  %v4211_v45 = vld [vmem:[%s8115_s14 + $0x788] sm:$0xff] }
 0x552   : > { %v3475_v63 = vpop.f32.mrf.mxu1  ;;  %v8967_v23 = vadd.f32 %v3473_v11, %v3433_v21  ;;  %5599 = vmatpush1.bf16.msra.mxu0 %v4786_v6  ;;  %v9006_v6 = vadd.f32 %v3785_v47, %v3735_v62  ;;  %v9009_v10 = vadd.f32 %v3793_v18, %v3737_v5  ;;  %v4874_v25 = vunpack.c.h.s8.bf16 %v4162_v22  ;;  %v4210_v5 = vld [vmem:[%s8115_s14 + $0x780] sm:$0xff] }
 0x553   : > { %5640 = vmatpush1.bf16.msra.mxu1 %v4914_v48  ;;  %v3435_v26 = vpop.f32.mrf.mxu0  ;;  %5600 = vmatprep.subr.bf16.mxu0 %v4779_v13  ;;  %v7143_v11 = vmul.f32 -1.442695, %v9001_v17  ;;  %v4882_v48 = vunpack.c.l.s8.bf16 %v4170_v50  ;;  %v4747_v13 = vunpack.c.h.s8.bf16 %v4099_v15  ;;  %v7145_v21 = vmul.f32 -1.442695, %v9003_v4  ;;  %v4146_v50 = vld [vmem:[%s8115_s14 + $0x580] sm:$0xff] }
 0x554   : > { %v3476_v27 = vpop.f32.mrf.mxu1  ;;  %5641 = vmatprep.subr.bf16.mxu1 %v4907_v0  ;;  %v4875_v0 = vunpack.c.h.s8.bf16 %v4163_v14  ;;  %v7148_v24 = vmul.f32 -1.442695, %v9006_v6  ;;  %v7150_v63 = vmul.f32 -1.442695, %v9009_v10  ;;  %v4739_v26 = vunpack.c.l.s8.bf16 %v4099_v15 }
 0x555   : > { %7370 = vpow2.f32 %v7143_v11  ;;  %v4867_v27 = vunpack.c.l.s8.bf16 %v4163_v14  ;;  %v4986_v56 = vunpack.c.h.s8.bf16 %v4218_v40  ;;  %v4850_v52 = vunpack.c.l.s8.bf16 %v4154_v42 }
 0x556   : > { %5601 = vmatpush1.bf16.msra.mxu0 %v4778_v2  ;;  %v4746_v2 = vunpack.c.h.s8.bf16 %v4098_v57  ;;  %7372 = vpow2.f32 %v7145_v21  ;;  %v4978_v59 = vunpack.c.l.s8.bf16 %v4218_v40  ;;  %v4971_v47 = vunpack.c.h.s8.bf16 %v4211_v45  ;;  %v4203_v57 = vld [vmem:[%s8115_s14 + $0x748] sm:$0xff]  ;;  %v4130_v40 = vld [vmem:[%s8115_s14 + $0x500] sm:$0xff] }
 0x557   : > { %5642 = vmatpush1.bf16.msra.mxu1 %v4906_v55  ;;  %5602 = vmatprep.subr.bf16.mxu0 %v4771_v28  ;;  %v4155_v55 = vld [vmem:[%s8115_s14 + $0x5c8] sm:$0xff]  ;;  %7374 = vpow2.f32 %v7148_v24  ;;  %v4970_v15 = vunpack.c.h.s8.bf16 %v4210_v5  ;;  %v4963_v11 = vunpack.c.l.s8.bf16 %v4211_v45 }
 0x558   : > { %5643 = vmatprep.subr.bf16.mxu1 %v4899_v33  ;;  %v4219_v28 = vld [vmem:[%s8115_s14 + $0x7c8] sm:$0xff]  ;;  %7376 = vpow2.f32 %v7150_v63  ;;  %v4866_v33 = vunpack.c.l.s8.bf16 %v4162_v22  ;;  %v4859_v34 = vunpack.c.h.s8.bf16 %v4155_v55  ;;  %v4851_v32 = vunpack.c.l.s8.bf16 %v4155_v55  ;;  %v4138_v63 = vld [vmem:[%s8115_s14 + $0x540] sm:$0xff] }
 0x559   : > { %v4987_v49 = vunpack.c.h.s8.bf16 %v4219_v28  ;;  %v4962_v22 = vunpack.c.l.s8.bf16 %v4210_v5 }
 0x55a   : > { %5603 = vmatpush1.bf16.msra.mxu0 %v4770_v53  ;;  %v4858_v53 = vunpack.c.h.s8.bf16 %v4154_v42 }
 0x55b   : > { %5644 = vmatpush1.bf16.msra.mxu1 %v4898_v9  ;;  %5604 = vmatprep.subr.bf16.mxu0 %v4763_v51  ;;  %v4979_v9 = vunpack.c.l.s8.bf16 %v4219_v28  ;;  %v4147_v51 = vld [vmem:[%s8115_s14 + $0x588] sm:$0xff]  ;;  %v4947_v28 = vunpack.c.l.s8.bf16 %v4203_v57 }
 0x55c   : > { %5645 = vmatprep.subr.bf16.mxu1 %v4891_v38  ;;  %v4843_v38 = vunpack.c.h.s8.bf16 %v4147_v51  ;;  %v4835_v14 = vunpack.c.l.s8.bf16 %v4147_v51 }
 0x55e   : > { %5605 = vmatpush1.bf16.msra.mxu0 %v4762_v31 }
 0x55f   : > { %5646 = vmatpush1.bf16.msra.mxu1 %v4890_v54  ;;  %5606 = vmatprep.subr.bf16.mxu0 %v4755_v20  ;;  %v4842_v54 = vunpack.c.h.s8.bf16 %v4146_v50 }
 0x560   : > { %5647 = vmatprep.subr.bf16.mxu1 %v4883_v35 }
 0x562   : > { %5607 = vmatpush1.bf16.msra.mxu0 %v4754_v12  ;;  %v7371_v62 = vpop.eup %7370 }
 0x563   : > { %5648 = vmatpush1.bf16.msra.mxu1 %v4882_v48  ;;  %5608 = vmatprep.subr.bf16.mxu0 %v4747_v13  ;;  %v7373_v18 = vpop.eup %7372  ;;  %v3894_v35 = vadd.f32 1.0, %v7371_v62  ;;  %v4139_v48 = vld [vmem:[%s8115_s14 + $0x548] sm:$0xff] }
 0x564   : > { %5649 = vmatprep.subr.bf16.mxu1 %v4875_v0  ;;  %v7375_v31 = vpop.eup %7374  ;;  %v3896_v12 = vadd.f32 1.0, %v7373_v18  ;;  %v4834_v0 = vunpack.c.l.s8.bf16 %v4146_v50  ;;  %v4827_v24 = vunpack.c.h.s8.bf16 %v4139_v48  ;;  %v4819_v55 = vunpack.c.l.s8.bf16 %v4139_v48  ;;  %v4315_v50 = vld [vmem:[%s8115_s14 + $0xac8] sm:$0xff] }
 0x565   : > { %v7377_v20 = vpop.eup %7376  ;;  %v3899_v13 = vadd.f32 1.0, %v7375_v31  ;;  %7378 = vrcp.f32 %v3894_v35 }
 0x566   : > { %5609 = vmatpush1.bf16.msra.mxu0 %v4746_v2  ;;  %v3901_v21 = vadd.f32 1.0, %v7377_v20  ;;  %7380 = vrcp.f32 %v3896_v12  ;;  %v4955_v2 = vunpack.c.h.s8.bf16 %v4203_v57  ;;  %v4250_v20 = vld [vmem:[%s8115_s14 + $0x8c0] sm:$0xff] }
 0x567   : > { %5650 = vmatpush1.bf16.msra.mxu1 %v4874_v25  ;;  %5610 = vmatprep.subr.bf16.mxu0 %v4739_v26  ;;  %v4202_v25 = vld [vmem:[%s8115_s14 + $0x740] sm:$0xff]  ;;  %7382 = vrcp.f32 %v3899_v13  ;;  %v4826_v26 = vunpack.c.h.s8.bf16 %v4138_v63  ;;  %v5050_v48 = vunpack.c.h.s8.bf16 %v4250_v20 }
 0x568   : > { %5651 = vmatprep.subr.bf16.mxu1 %v4867_v27  ;;  %7384 = vrcp.f32 %v3901_v21  ;;  %v4954_v27 = vunpack.c.h.s8.bf16 %v4202_v25  ;;  %v4946_v42 = vunpack.c.l.s8.bf16 %v4202_v25  ;;  %v5042_v25 = vunpack.c.l.s8.bf16 %v4250_v20 }
 0x56a   : > { %5611 = vmatpush1.bf16.msra.mxu0 %v4738_v30  ;;  %v4131_v30 = vld [vmem:[%s8115_s14 + $0x508] sm:$0xff] }
 0x56b   : > { %5652 = vmatpush1.bf16.msra.mxu1 %v4866_v33  ;;  %5612 = vmatprep.subr.bf16.mxu0 %v4859_v34  ;;  %v4195_v33 = vld [vmem:[%s8115_s14 + $0x708] sm:$0xff]  ;;  %v4818_v34 = vunpack.c.l.s8.bf16 %v4138_v63  ;;  %v4803_v51 = vunpack.c.l.s8.bf16 %v4131_v30 }
 0x56c   : > { %5653 = vmatprep.subr.bf16.mxu1 %v4987_v49  ;;  %v4811_v49 = vunpack.c.h.s8.bf16 %v4131_v30  ;;  %v4242_v30 = vld [vmem:[%s8115_s14 + $0x880] sm:$0xff] }
 0x56e   : > { %5613 = vmatpush2.bf16.msra.mxu0 %v4858_v53  ;;  %v4939_v53 = vunpack.c.h.s8.bf16 %v4195_v33 }
 0x56f   : > { %5654 = vmatpush2.bf16.msra.mxu1 %v4986_v56  ;;  %5614 = vmatprep.subr.bf16.mxu0 %v4851_v32  ;;  %v4194_v56 = vld [vmem:[%s8115_s14 + $0x700] sm:$0xff]  ;;  %v4810_v32 = vunpack.c.h.s8.bf16 %v4130_v40 }
 0x570   : > { %5655 = vmatprep.subr.bf16.mxu1 %v4979_v9  ;;  %v4938_v9 = vunpack.c.h.s8.bf16 %v4194_v56  ;;  %v4930_v31 = vunpack.c.l.s8.bf16 %v4194_v56 }
 0x572   : > { %5615 = vmatpush2.bf16.msra.mxu0 %v4850_v52  ;;  %v7379_v45 = vpop.eup %7378  ;;  %v4931_v52 = vunpack.c.l.s8.bf16 %v4195_v33 }
 0x573   : > { %5656 = vmatpush2.bf16.msra.mxu1 %v4978_v59  ;;  %5616 = vmatprep.subr.bf16.mxu0 %v4843_v38  ;;  %v4251_v59 = vld [vmem:[%s8115_s14 + $0x8c8] sm:$0xff]  ;;  %v7381_v38 = vpop.eup %7380  ;;  %v3942_v18 = vmul.f32 %v7379_v45, %v9001_v17  ;;  %v3689_v45 = vrot.slane %v8975_v41, %v8866_v60 }
 0x574   : > { %5657 = vmatprep.subr.bf16.mxu1 %v4971_v47  ;;  %v7383_v62 = vpop.eup %7382  ;;  %v4802_v47 = vunpack.c.l.s8.bf16 %v4130_v40  ;;  %v3944_v35 = vmul.f32 %v7381_v38, %v9003_v4  ;;  %v5043_v21 = vunpack.c.l.s8.bf16 %v4251_v59  ;;  %v4243_v4 = vld [vmem:[%s8115_s14 + $0x888] sm:$0xff]  ;;  %v5034_v40 = vunpack.c.h.s8.bf16 %v4242_v30 }
 0x575   : > { %v7385_v5 = vpop.eup %7384  ;;  %v3947_v12 = vmul.f32 %v7383_v62, %v9006_v6  ;;  %v9041_v13 = vpack.c.bf16 %v3942_v18, %v3942_v18  ;;  %v3701_v38 = vrot.slane %v8975_v41, %v8872_v61  ;;  %v5026_v62 = vunpack.c.l.s8.bf16 %v4242_v30 }
 0x576   : > { %5617 = vmatpush2.bf16.msra.mxu0 %v4842_v54  ;;  %v5051_v54 = vunpack.c.h.s8.bf16 %v4251_v59  ;;  %v9043_v57 = vpack.c.bf16 %v3944_v35, %v3944_v35  ;;  %v4235_v59 = vld [vmem:[%s8115_s14 + $0x848] sm:$0xff]  ;;  %v3736_v20 = vmul.f32 %v3689_v45, %v8785_v16  ;;  %v3789_v35 = vrot.slane %v8992_v46, %v8866_v60 }
 0x577   : > { %5658 = vmatpush2.bf16.msra.mxu1 %v4970_v15  ;;  %5618 = vmatprep.subr.bf16.mxu0 %v4835_v14  ;;  %v5179_v15 = vunpack.c.h.s8.bf16 %v4315_v50  ;;  %v4314_v14 = vld [vmem:[%s8115_s14 + $0xac0] sm:$0xff] }
 0x578   : > { %5659 = vmatprep.subr.bf16.mxu1 %v4963_v11  ;;  %v3949_v11 = vmul.f32 %v7385_v5, %v9009_v10  ;;  %v5178_v17 = vunpack.c.h.s8.bf16 %v4314_v14  ;;  %v5171_v10 = vunpack.c.l.s8.bf16 %v4315_v50  ;;  %v4299_v50 = vld [vmem:[%s8115_s14 + $0xa48] sm:$0xff]  ;;  %v3781_v5 = vrot.slane %v8992_v46, %v8861_v39 }
 0x579   : > { %v9084_v60 = vadd.f32 %v3789_v35, %v3736_v20  ;;  %v4274_v20 = vld [vmem:[%s8115_s14 + $0x980] sm:$0xff] }
 0x57a   : > { %5619 = vmatpush2.bf16.msra.mxu0 %v4834_v0  ;;  %v9046_v0 = vpack.c.bf16 %v3947_v12, %v3947_v12  ;;  %v9050_v63 = vpack.c.bf16 %v3949_v11, %v3949_v11 }
 0x57b   : > { %5660 = vmatpush2.bf16.msra.mxu1 %v4962_v22  ;;  %5620 = vmatprep.subr.bf16.mxu0 %v4827_v24  ;;  %v4307_v24 = vld [vmem:[%s8115_s14 + $0xa88] sm:$0xff] }
 0x57c   : > { %5661 = vmatprep.subr.bf16.mxu1 %v4955_v2  ;;  %v5163_v33 = vunpack.c.h.s8.bf16 %v4307_v24 }
 0x57e   : > { %5621 = vmatpush2.bf16.msra.mxu0 %v4826_v26 }
 0x57f   : > { %5662 = vmatpush2.bf16.msra.mxu1 %v4954_v27  ;;  %5622 = vmatprep.subr.bf16.mxu0 %v4819_v55  ;;  %v5170_v55 = vunpack.c.l.s8.bf16 %v4314_v14  ;;  %v4298_v14 = vld [vmem:[%s8115_s14 + $0xa40] sm:$0xff] }
 0x580   : > { %5663 = vmatprep.subr.bf16.mxu1 %v4947_v28  ;;  %v5035_v28 = vunpack.c.h.s8.bf16 %v4243_v4  ;;  %v5146_v16 = vunpack.c.h.s8.bf16 %v4298_v14 }
 0x582   : > { %5623 = vmatpush2.bf16.msra.mxu0 %v4818_v34  ;;  %v4306_v34 = vld [vmem:[%s8115_s14 + $0xa80] sm:$0xff] }
 0x583   : > { %5664 = vmatpush2.bf16.msra.mxu1 %v4946_v42  ;;  %5624 = vmatprep.subr.bf16.mxu0 %v4811_v49  ;;  %v5154_v18 = vunpack.c.l.s8.bf16 %v4306_v34 }
 0x584   : > { %5665 = vmatprep.subr.bf16.mxu1 %v4939_v53  ;;  %v3681_v53 = vrot.slane %v8975_v41, %v8861_v39  ;;  %v3801_v39 = vrot.slane %v8992_v46, %v8872_v61 }
 0x586   : > { %5625 = vmatpush2.bf16.msra.mxu0 %v4810_v32 }
 0x587   : > { %5666 = vmatpush2.bf16.msra.mxu1 %v4938_v9  ;;  %5626 = vmatprep.subr.bf16.mxu0 %v4803_v51  ;;  %v5162_v9 = vunpack.c.h.s8.bf16 %v4306_v34  ;;  %v5027_v51 = vunpack.c.l.s8.bf16 %v4243_v4 }
 0x588   : > { %5667 = vmatprep.subr.bf16.mxu1 %v4931_v52  ;;  %v5155_v52 = vunpack.c.l.s8.bf16 %v4307_v24  ;;  %v4226_v24 = vld [vmem:[%s8115_s14 + $0x800] sm:$0xff] }
 0x58a   : > { %5627 = vmatpush2.bf16.msra.mxu0 %v4802_v47  ;;  %v3734_v47 = vmul.f32 %v3681_v53, %v8698_v37  ;;  %v3739_v37 = vmul.f32 %v3701_v38, %v8967_v23  ;;  %v4291_v23 = vld [vmem:[%s8115_s14 + $0xa08] sm:$0xff] }
 0x58b   : > { %5668 = vmatpush2.bf16.msra.mxu1 %v4930_v31  ;;  %5678 = vmatprep.subr.bf16.mxu0 %v5051_v54  ;;  %v5019_v31 = vunpack.c.h.s8.bf16 %v4235_v59  ;;  %v4234_v54 = vld [vmem:[%s8115_s14 + $0x840] sm:$0xff]  ;;  %v4347_v53 = vld [vmem:[%s8115_s14 + $0xbc8] sm:$0xff] }
 0x58c   : > { %5719 = vmatprep.subr.bf16.mxu1 %v5179_v15  ;;  %v5147_v15 = vunpack.c.h.s8.bf16 %v4299_v50  ;;  %v5018_v12 = vunpack.c.h.s8.bf16 %v4234_v54  ;;  %v9082_v11 = vadd.f32 %v3781_v5, %v3734_v47  ;;  %v9087_v4 = vadd.f32 %v3801_v39, %v3739_v37  ;;  %v4275_v47 = vld [vmem:[%s8115_s14 + $0x988] sm:$0xff] }
 0x58d   : > { %v3512_v22 = vpop.f32.mrf.mxu0  ;;  %5629 = vmatmul.mubr.bf16.vlgmr.msra.gmra.mxu0 %v9041_v13  ;;  %v5010_v61 = vunpack.c.l.s8.bf16 %v4234_v54  ;;  %v5243_v45 = vunpack.c.h.s8.bf16 %v4347_v53  ;;  %v4339_v5 = vld [vmem:[%s8115_s14 + $0xb88] sm:$0xff]  ;;  %v5099_v54 = vunpack.c.h.s8.bf16 %v4275_v47 }
 0x58e   : > { %v3553_v6 = vpop.f32.mrf.mxu1  ;;  %5670 = vmatmul.mubr.bf16.vlgmr.msra.gmra.mxu1 %v9043_v57  ;;  %5679 = vmatpush1.bf16.msra.mxu0 %v5050_v48  ;;  %v5011_v48 = vunpack.c.l.s8.bf16 %v4235_v59  ;;  %v7152_v30 = vmul.f32 -1.442695, %v9087_v4 }
 0x58f   : > { %v9052_v2 = vadd.f32 %v3553_v6, %v3512_v22  ;;  %5710 = vmatprep.mubr.bf16.mxu0 %v9046_v0  ;;  %5720 = vmatpush1.bf16.msra.mxu1 %v5178_v17  ;;  %v9056_v26 = vpop.f32.mrf.mxu0  ;;  %v5139_v17 = vunpack.c.l.s8.bf16 %v4299_v50  ;;  %v7147_v22 = vmul.f32 -1.442695, %v9082_v11  ;;  %v5138_v6 = vunpack.c.l.s8.bf16 %v4298_v14  ;;  %v4338_v14 = vld [vmem:[%s8115_s14 + $0xb80] sm:$0xff] }
 0x590   : > { %v9058_v27 = vpop.f32.mrf.mxu1  ;;  %5751 = vmatprep.mubr.bf16.mxu1 %v9050_v63  ;;  %5680 = vmatprep.subr.bf16.mxu0 %v5043_v21  ;;  %v4227_v21 = vld [vmem:[%s8115_s14 + $0x808] sm:$0xff] }
 0x591   : > { %v3516_v42 = vpop.f32.mrf.mxu0  ;;  %5721 = vmatprep.subr.bf16.mxu1 %v5171_v10  ;;  %v5003_v10 = vunpack.c.h.s8.bf16 %v4227_v21  ;;  %7386 = vpow2.f32 %v7147_v22 }
 0x592   : > { %v3557_v49 = vpop.f32.mrf.mxu1  ;;  %5681 = vmatpush1.bf16.msra.mxu0 %v5042_v25  ;;  %v7149_v25 = vmul.f32 -1.442695, %v9084_v60  ;;  %v4995_v42 = vunpack.c.l.s8.bf16 %v4227_v21 }
 0x593   : > { %5722 = vmatpush1.bf16.msra.mxu1 %v5170_v55  ;;  %v3517_v56 = vpop.f32.mrf.mxu0  ;;  %5682 = vmatprep.subr.bf16.mxu0 %v5035_v28  ;;  %v5131_v55 = vunpack.c.h.s8.bf16 %v4291_v23  ;;  %v4290_v28 = vld [vmem:[%s8115_s14 + $0xa00] sm:$0xff]  ;;  %v5123_v49 = vunpack.c.l.s8.bf16 %v4291_v23  ;;  %v5219_v23 = vunpack.c.l.s8.bf16 %v4339_v5 }
 0x594   : > { %v3558_v32 = vpop.f32.mrf.mxu1  ;;  %5723 = vmatprep.subr.bf16.mxu1 %v5163_v33  ;;  %v5002_v33 = vunpack.c.h.s8.bf16 %v4226_v24  ;;  %v5130_v34 = vunpack.c.h.s8.bf16 %v4290_v28  ;;  %7388 = vpow2.f32 %v7149_v25  ;;  %v4994_v56 = vunpack.c.l.s8.bf16 %v4226_v24 }
 0x595   : > { %7390 = vpow2.f32 %v7152_v30  ;;  %v5122_v32 = vunpack.c.l.s8.bf16 %v4290_v28  ;;  %v5218_v24 = vunpack.c.l.s8.bf16 %v4338_v14  ;;  %v4330_v30 = vld [vmem:[%s8115_s14 + $0xb40] sm:$0xff] }
 0x596   : > { %5683 = vmatpush1.bf16.msra.mxu0 %v5034_v40  ;;  %v4283_v40 = vld [vmem:[%s8115_s14 + $0x9c8] sm:$0xff] }
 0x597   : > { %5724 = vmatpush1.bf16.msra.mxu1 %v5162_v9  ;;  %5684 = vmatprep.subr.bf16.mxu0 %v5027_v51  ;;  %v5115_v9 = vunpack.c.h.s8.bf16 %v4283_v40  ;;  %v4282_v51 = vld [vmem:[%s8115_s14 + $0x9c0] sm:$0xff]  ;;  %v5107_v50 = vunpack.c.l.s8.bf16 %v4283_v40  ;;  %v4259_v40 = vld [vmem:[%s8115_s14 + $0x908] sm:$0xff] }
 0x598   : > { %5725 = vmatprep.subr.bf16.mxu1 %v5155_v52  ;;  %v4346_v52 = vld [vmem:[%s8115_s14 + $0xbc0] sm:$0xff]  ;;  %v5114_v59 = vunpack.c.h.s8.bf16 %v4282_v51 }
 0x599   : > { %v5242_v38 = vunpack.c.h.s8.bf16 %v4346_v52 }
 0x59a   : > { %5685 = vmatpush1.bf16.msra.mxu0 %v5026_v62  ;;  %v5235_v62 = vunpack.c.l.s8.bf16 %v4347_v53  ;;  %v4323_v53 = vld [vmem:[%s8115_s14 + $0xb08] sm:$0xff] }
 0x59b   : > { %5726 = vmatpush1.bf16.msra.mxu1 %v5154_v18  ;;  %5686 = vmatprep.subr.bf16.mxu0 %v5019_v31  ;;  %v5106_v18 = vunpack.c.l.s8.bf16 %v4282_v51  ;;  %v5234_v31 = vunpack.c.l.s8.bf16 %v4346_v52  ;;  %v4258_v51 = vld [vmem:[%s8115_s14 + $0x900] sm:$0xff] }
 0x59c   : > { %5727 = vmatprep.subr.bf16.mxu1 %v5147_v15  ;;  %v5227_v15 = vunpack.c.h.s8.bf16 %v4339_v5  ;;  %v4322_v52 = vld [vmem:[%s8115_s14 + $0xb00] sm:$0xff]  ;;  %v4379_v5 = vld [vmem:[%s8115_s14 + $0xcc8] sm:$0xff] }
 0x59e   : > { %5687 = vmatpush1.bf16.msra.mxu0 %v5018_v12  ;;  %v7387_v35 = vpop.eup %7386  ;;  %v5098_v12 = vunpack.c.h.s8.bf16 %v4274_v20 }
 0x59f   : > { %5728 = vmatpush1.bf16.msra.mxu1 %v5146_v16  ;;  %5688 = vmatprep.subr.bf16.mxu0 %v5011_v48  ;;  %v3898_v16 = vadd.f32 1.0, %v7387_v35  ;;  %v5226_v48 = vunpack.c.h.s8.bf16 %v4338_v14  ;;  %v5307_v14 = vunpack.c.h.s8.bf16 %v4379_v5 }
 0x5a0   : > { %5729 = vmatprep.subr.bf16.mxu1 %v5139_v17  ;;  %v5091_v17 = vunpack.c.l.s8.bf16 %v4275_v47  ;;  %v5187_v47 = vunpack.c.l.s8.bf16 %v4323_v53 }
 0x5a1   : > { %v7389_v37 = vpop.eup %7388  ;;  %7392 = vrcp.f32 %v3898_v16  ;;  %v4442_v16 = vld [vmem:[%s8115_s14 + $0xec0] sm:$0xff] }
 0x5a2   : > { %5689 = vmatpush1.bf16.msra.mxu0 %v5010_v61  ;;  %v7391_v39 = vpop.eup %7390  ;;  %v3900_v21 = vadd.f32 1.0, %v7389_v37  ;;  %v4267_v61 = vld [vmem:[%s8115_s14 + $0x948] sm:$0xff]  ;;  %v4378_v37 = vld [vmem:[%s8115_s14 + $0xcc0] sm:$0xff] }
 0x5a3   : > { %5730 = vmatpush1.bf16.msra.mxu1 %v5138_v6  ;;  %5690 = vmatprep.subr.bf16.mxu0 %v5003_v10  ;;  %v3903_v22 = vadd.f32 1.0, %v7391_v39  ;;  %v4331_v6 = vld [vmem:[%s8115_s14 + $0xb48] sm:$0xff]  ;;  %v5090_v10 = vunpack.c.l.s8.bf16 %v4274_v20  ;;  %v5083_v25 = vunpack.c.h.s8.bf16 %v4267_v61  ;;  %v5058_v20 = vunpack.c.l.s8.bf16 %v4258_v51 }
 0x5a4   : > { %5731 = vmatprep.subr.bf16.mxu1 %v5131_v55  ;;  %v4266_v55 = vld [vmem:[%s8115_s14 + $0x940] sm:$0xff]  ;;  %7394 = vrcp.f32 %v3900_v21  ;;  %v5211_v28 = vunpack.c.h.s8.bf16 %v4331_v6 }
 0x5a5   : > { %7396 = vrcp.f32 %v3903_v22 }
 0x5a6   : > { %5691 = vmatpush1.bf16.msra.mxu0 %v5002_v33  ;;  %v5082_v33 = vunpack.c.h.s8.bf16 %v4266_v55 }
 0x5a7   : > { %5732 = vmatpush1.bf16.msra.mxu1 %v5130_v34  ;;  %5692 = vmatprep.subr.bf16.mxu0 %v4995_v42  ;;  %v5210_v34 = vunpack.c.h.s8.bf16 %v4330_v30  ;;  %v5075_v42 = vunpack.c.l.s8.bf16 %v4267_v61  ;;  %v5299_v61 = vunpack.c.l.s8.bf16 %v4379_v5 }
 0x5a8   : > { %5733 = vmatprep.subr.bf16.mxu1 %v5123_v49  ;;  %v5203_v49 = vunpack.c.l.s8.bf16 %v4331_v6  ;;  %v4371_v6 = vld [vmem:[%s8115_s14 + $0xc88] sm:$0xff] }
 0x5aa   : > { %5693 = vmatpush1.bf16.msra.mxu0 %v4994_v56  ;;  %v5074_v56 = vunpack.c.l.s8.bf16 %v4266_v55  ;;  %v5298_v55 = vunpack.c.l.s8.bf16 %v4378_v37 }
 0x5ab   : > { %5734 = vmatpush1.bf16.msra.mxu1 %v5122_v32  ;;  %5694 = vmatprep.subr.bf16.mxu0 %v5115_v9  ;;  %v5202_v32 = vunpack.c.l.s8.bf16 %v4330_v30  ;;  %v5067_v9 = vunpack.c.h.s8.bf16 %v4259_v40 }
 0x5ac   : > { %5735 = vmatprep.subr.bf16.mxu1 %v5243_v45  ;;  %v5195_v45 = vunpack.c.h.s8.bf16 %v4323_v53  ;;  %v3709_v53 = vrot.slane %v8975_v41, %v8875_v3 }
 0x5ae   : > { %5695 = vmatpush2.bf16.msra.mxu0 %v5114_v59  ;;  %v5066_v59 = vunpack.c.h.s8.bf16 %v4258_v51  ;;  %v3809_v51 = vrot.slane %v8992_v46, %v8875_v3 }
 0x5af   : > { %5736 = vmatpush2.bf16.msra.mxu1 %v5242_v38  ;;  %5696 = vmatprep.subr.bf16.mxu0 %v5107_v50  ;;  %v5194_v38 = vunpack.c.h.s8.bf16 %v4322_v52  ;;  %v5059_v50 = vunpack.c.l.s8.bf16 %v4259_v40 }
 0x5b0   : > { %5737 = vmatprep.subr.bf16.mxu1 %v5235_v62  ;;  %v7393_v62 = vpop.eup %7392 }
 0x5b1   : > { %v3946_v35 = vmul.f32 %v7393_v62, %v9082_v11  ;;  %v5434_v11 = vunpack.c.h.s8.bf16 %v4442_v16 }
 0x5b2   : > { %5697 = vmatpush2.bf16.msra.mxu0 %v5106_v18  ;;  %v7395_v18 = vpop.eup %7394 }
 0x5b3   : > { %5738 = vmatpush2.bf16.msra.mxu1 %v5234_v31  ;;  %5698 = vmatprep.subr.bf16.mxu0 %v5099_v54  ;;  %v4443_v31 = vld [vmem:[%s8115_s14 + $0xec8] sm:$0xff]  ;;  %v7397_v54 = vpop.eup %7396  ;;  %v3948_v39 = vmul.f32 %v7395_v18, %v9084_v60  ;;  %v9118_v21 = vpack.c.bf16 %v3946_v35, %v3946_v35 }
 0x5b4   : > { %5739 = vmatprep.subr.bf16.mxu1 %v5227_v15  ;;  %v5186_v15 = vunpack.c.l.s8.bf16 %v4322_v52  ;;  %v5427_v22 = vunpack.c.l.s8.bf16 %v4443_v31  ;;  %v4363_v18 = vld [vmem:[%s8115_s14 + $0xc48] sm:$0xff] }
 0x5b6   : > { %5699 = vmatpush2.bf16.msra.mxu0 %v5098_v12  ;;  %v5435_v12 = vunpack.c.h.s8.bf16 %v4443_v31  ;;  %v4427_v31 = vld [vmem:[%s8115_s14 + $0xe48] sm:$0xff] }
 0x5b7   : > { %5740 = vmatpush2.bf16.msra.mxu1 %v5226_v48  ;;  %5700 = vmatprep.subr.bf16.mxu0 %v5091_v17  ;;  %v3951_v48 = vmul.f32 %v7397_v54, %v9087_v4  ;;  %v5306_v17 = vunpack.c.h.s8.bf16 %v4378_v37  ;;  %v4435_v4 = vld [vmem:[%s8115_s14 + $0xe88] sm:$0xff]  ;;  %v5275_v37 = vunpack.c.h.s8.bf16 %v4363_v18 }
 0x5b8   : > { %5741 = vmatprep.subr.bf16.mxu1 %v5219_v23  ;;  %v9120_v23 = vpack.c.bf16 %v3948_v39, %v3948_v39  ;;  %v5411_v3 = vunpack.c.l.s8.bf16 %v4435_v4 }
 0x5b9   : > { %v9123_v60 = vpack.c.bf16 %v3951_v48, %v3951_v48  ;;  %v5403_v48 = vunpack.c.h.s8.bf16 %v4427_v31 }
 0x5ba   : > { %5701 = vmatpush2.bf16.msra.mxu0 %v5090_v10 }
 0x5bb   : > { %5742 = vmatpush2.bf16.msra.mxu1 %v5218_v24  ;;  %5702 = vmatprep.subr.bf16.mxu0 %v5083_v25  ;;  %v3556_v25 = vadd.f32 %v9058_v27, %v9056_v26  ;;  %v5419_v26 = vunpack.c.h.s8.bf16 %v4435_v4  ;;  %v4434_v27 = vld [vmem:[%s8115_s14 + $0xe80] sm:$0xff] }
 0x5bc   : > { %5743 = vmatprep.subr.bf16.mxu1 %v5211_v28 }
 0x5be   : > { %5703 = vmatpush2.bf16.msra.mxu0 %v5082_v33  ;;  %v5426_v33 = vunpack.c.l.s8.bf16 %v4442_v16 }
 0x5bf   : > { %5744 = vmatpush2.bf16.msra.mxu1 %v5210_v34  ;;  %5704 = vmatprep.subr.bf16.mxu0 %v5075_v42  ;;  %v5291_v34 = vunpack.c.h.s8.bf16 %v4371_v6  ;;  %v4370_v42 = vld [vmem:[%s8115_s14 + $0xc80] sm:$0xff] }
 0x5c0   : > { %5745 = vmatprep.subr.bf16.mxu1 %v5203_v49 }
 0x5c2   : > { %5705 = vmatpush2.bf16.msra.mxu0 %v5074_v56 }
 0x5c3   : > { %5746 = vmatpush2.bf16.msra.mxu1 %v5202_v32  ;;  %5706 = vmatprep.subr.bf16.mxu0 %v5067_v9 }
 0x5c4   : > { %5747 = vmatprep.subr.bf16.mxu1 %v5195_v45  ;;  %v5290_v45 = vunpack.c.h.s8.bf16 %v4370_v42 }
 0x5c6   : > { %5707 = vmatpush2.bf16.msra.mxu0 %v5066_v59 }
 0x5c7   : > { %5748 = vmatpush2.bf16.msra.mxu1 %v5194_v38  ;;  %5708 = vmatprep.subr.bf16.mxu0 %v5059_v50  ;;  %v5418_v38 = vunpack.c.h.s8.bf16 %v4434_v27  ;;  %v5283_v50 = vunpack.c.l.s8.bf16 %v4371_v6  ;;  %v4419_v6 = vld [vmem:[%s8115_s14 + $0xe08] sm:$0xff] }
 0x5c8   : > { %5749 = vmatprep.subr.bf16.mxu1 %v5187_v47  ;;  %v3705_v47 = vrot.slane %v8975_v41, %v8960_v19 }
 0x5ca   : > { %5709 = vmatpush2.bf16.msra.mxu0 %v5058_v20  ;;  %v5282_v20 = vunpack.c.l.s8.bf16 %v4370_v42 }
 0x5cb   : > { %5750 = vmatpush2.bf16.msra.mxu1 %v5186_v15  ;;  %5760 = vmatprep.subr.bf16.mxu0 %v5307_v14  ;;  %v3797_v15 = vrot.slane %v8992_v46, %v8955_v8  ;;  %v5410_v14 = vunpack.c.l.s8.bf16 %v4434_v27 }
 0x5cc   : > { %5801 = vmatprep.subr.bf16.mxu1 %v5435_v12  ;;  %v3805_v12 = vrot.slane %v8992_v46, %v8960_v19  ;;  %v5395_v19 = vunpack.c.l.s8.bf16 %v4427_v31  ;;  %v4355_v46 = vld [vmem:[%s8115_s14 + $0xc08] sm:$0xff] }
 0x5cd   : > { %v3594_v10 = vpop.f32.mrf.mxu0  ;;  %5711 = vmatmul.mubr.bf16.vlgmr.msra.gmra.mxu0 %v9118_v21 }
 0x5ce   : > { %v3635_v24 = vpop.f32.mrf.mxu1  ;;  %5752 = vmatmul.mubr.bf16.vlgmr.msra.gmra.mxu1 %v9120_v23  ;;  %5761 = vmatpush1.bf16.msra.mxu0 %v5306_v17  ;;  %v3595_v49 = vadd.f32 %v3594_v10, %v9052_v2  ;;  %v3697_v2 = vrot.slane %v8975_v41, %v8955_v8  ;;  %v4362_v41 = vld [vmem:[%s8115_s14 + $0xc40] sm:$0xff] }
 0x5cf   : > { %5792 = vmatprep.mubr.bf16.mxu0 %v9123_v60  ;;  %5802 = vmatpush1.bf16.msra.mxu1 %v5434_v11  ;;  %v3596_v28 = vpop.f32.mrf.mxu0  ;;  %v4426_v17 = vld [vmem:[%s8115_s14 + $0xe40] sm:$0xff]  ;;  %v5266_v10 = vunpack.c.l.s8.bf16 %v4362_v41 }
 0x5d0   : > { %v3637_v30 = vpop.f32.mrf.mxu1  ;;  %v3597_v40 = vadd.f32 %v3596_v28, %v3556_v25  ;;  %5762 = vmatprep.subr.bf16.mxu0 %v5299_v61  ;;  %5803 = vmatprep.subr.bf16.mxu1 %v5427_v22  ;;  %v3636_v62 = vadd.f32 %v3635_v24, %v3595_v49  ;;  %v3738_v35 = vmul.f32 %v3697_v2, %v8962_v44  ;;  %v5274_v44 = vunpack.c.h.s8.bf16 %v4362_v41 }
 0x5d1   : > { %v3598_v56 = vpop.f32.mrf.mxu0  ;;  %v5402_v11 = vunpack.c.h.s8.bf16 %v4426_v17  ;;  %v5267_v61 = vunpack.c.l.s8.bf16 %v4363_v18  ;;  %v5394_v4 = vunpack.c.l.s8.bf16 %v4426_v17  ;;  %v5259_v25 = vunpack.c.h.s8.bf16 %v4355_v46 }
 0x5d2   : > { %v3639_v32 = vpop.f32.mrf.mxu1  ;;  %v3638_v9 = vadd.f32 %v3637_v30, %v3597_v40  ;;  %5763 = vmatpush1.bf16.msra.mxu0 %v5298_v55  ;;  %v3740_v39 = vmul.f32 %v3705_v47, %v3636_v62  ;;  %v9154_v8 = vadd.f32 %v3797_v15, %v3738_v35  ;;  %v4354_v55 = vld [vmem:[%s8115_s14 + $0xc00] sm:$0xff]  ;;  %v5387_v30 = vunpack.c.h.s8.bf16 %v4419_v6  ;;  %v4403_v47 = vld [vmem:[%s8115_s14 + $0xd88] sm:$0xff] }
 0x5d3   : > { %5804 = vmatpush1.bf16.msra.mxu1 %v5426_v33  ;;  %v3599_v52 = vpop.f32.mrf.mxu0  ;;  %5764 = vmatprep.subr.bf16.mxu0 %v5291_v34  ;;  %v4418_v33 = vld [vmem:[%s8115_s14 + $0xe00] sm:$0xff]  ;;  %v5258_v34 = vunpack.c.h.s8.bf16 %v4354_v55  ;;  %v5251_v49 = vunpack.c.l.s8.bf16 %v4355_v46  ;;  %v5379_v40 = vunpack.c.l.s8.bf16 %v4419_v6  ;;  %v5250_v27 = vunpack.c.l.s8.bf16 %v4354_v55 }
 0x5d4   : > { %v3640_v59 = vpop.f32.mrf.mxu1  ;;  %v3741_v5 = vmul.f32 %v3709_v53, %v3638_v9  ;;  %5805 = vmatprep.subr.bf16.mxu1 %v5419_v26  ;;  %v9156_v22 = vadd.f32 %v3805_v12, %v3740_v39  ;;  %v7151_v24 = vmul.f32 -1.442695, %v9154_v8  ;;  %v5386_v42 = vunpack.c.h.s8.bf16 %v4418_v33  ;;  %v4411_v53 = vld [vmem:[%s8115_s14 + $0xdc8] sm:$0xff]  ;;  %v4474_v52 = vld [vmem:[%s8115_s14 + $0xfc0] sm:$0xff] }
 0x5d5   : > { %v4475_v26 = vld [vmem:[%s8115_s14 + $0xfc8] sm:$0xff]  ;;  %v5378_v32 = vunpack.c.l.s8.bf16 %v4418_v33  ;;  %v5371_v9 = vunpack.c.h.s8.bf16 %v4411_v53  ;;  %v5490_v18 = vunpack.c.l.s8.bf16 %v4474_v52  ;;  %v5355_v31 = vunpack.c.h.s8.bf16 %v4403_v47 }
 0x5d6   : > { %v9144_v54 = vadd.f32 %v3809_v51, %v3741_v5  ;;  %5765 = vmatpush1.bf16.msra.mxu0 %v5290_v45  ;;  %v7153_v28 = vmul.f32 -1.442695, %v9156_v22  ;;  %v4410_v51 = vld [vmem:[%s8115_s14 + $0xdc0] sm:$0xff]  ;;  %v5499_v2 = vunpack.c.h.s8.bf16 %v4475_v26  ;;  %v5491_v62 = vunpack.c.l.s8.bf16 %v4475_v26  ;;  %v4467_v5 = vld [vmem:[%s8115_s14 + $0xf88] sm:$0xff] }
 0x5d7   : > { %5806 = vmatpush1.bf16.msra.mxu1 %v5418_v38  ;;  %5766 = vmatprep.subr.bf16.mxu0 %v5283_v50  ;;  %v5370_v59 = vunpack.c.h.s8.bf16 %v4410_v51  ;;  %v5498_v38 = vunpack.c.h.s8.bf16 %v4474_v52  ;;  %v5363_v50 = vunpack.c.l.s8.bf16 %v4411_v53  ;;  %v5483_v15 = vunpack.c.h.s8.bf16 %v4467_v5  ;;  %v4386_v26 = vld [vmem:[%s8115_s14 + $0xd00] sm:$0xff]  ;;  %v3997_v52 = vld [vmem:[%s8115_s14 + $0xd8] sm:$0xff] }
 0x5d8   : > { %v7154_v16 = vmul.f32 -1.442695, %v9144_v54  ;;  %5807 = vmatprep.subr.bf16.mxu1 %v5411_v3  ;;  %v5362_v3 = vunpack.c.l.s8.bf16 %v4410_v51  ;;  %v5475_v17 = vunpack.c.l.s8.bf16 %v4467_v5  ;;  %v4541_v5 = vunpack.c.h.s8.bf16 %v3997_v52 }
 0x5da   : > { %7398 = vpow2.f32 %v7154_v16  ;;  %5767 = vmatpush1.bf16.msra.mxu0 %v5282_v20  ;;  %v4402_v20 = vld [vmem:[%s8115_s14 + $0xd80] sm:$0xff]  ;;  %v5347_v16 = vunpack.c.l.s8.bf16 %v4403_v47 }
 0x5db   : > { %5808 = vmatpush1.bf16.msra.mxu1 %v5410_v14  ;;  %5768 = vmatprep.subr.bf16.mxu0 %v5275_v37  ;;  %7400 = vpow2.f32 %v7151_v24  ;;  %v4466_v14 = vld [vmem:[%s8115_s14 + $0xf80] sm:$0xff]  ;;  %v5354_v41 = vunpack.c.h.s8.bf16 %v4402_v20 }
 0x5dc   : > { %5809 = vmatprep.subr.bf16.mxu1 %v5403_v48  ;;  %7402 = vpow2.f32 %v7153_v28  ;;  %v5482_v12 = vunpack.c.h.s8.bf16 %v4466_v14  ;;  %v5474_v46 = vunpack.c.l.s8.bf16 %v4466_v14 }
 0x5de   : > { %5769 = vmatpush1.bf16.msra.mxu0 %v5274_v44  ;;  %v4395_v44 = vld [vmem:[%s8115_s14 + $0xd48] sm:$0xff] }
 0x5df   : > { %5810 = vmatpush1.bf16.msra.mxu1 %v5402_v11  ;;  %5770 = vmatprep.subr.bf16.mxu0 %v5267_v61  ;;  %v4459_v11 = vld [vmem:[%s8115_s14 + $0xf48] sm:$0xff]  ;;  %v5346_v61 = vunpack.c.l.s8.bf16 %v4402_v20  ;;  %v5339_v6 = vunpack.c.h.s8.bf16 %v4395_v44  ;;  %v5331_v33 = vunpack.c.l.s8.bf16 %v4395_v44  ;;  %v4060_v20 = vld [vmem:[%s8115_s14 + $0x2d0] sm:$0xff] }
 0x5e0   : > { %5811 = vmatprep.subr.bf16.mxu1 %v5395_v19  ;;  %v4668_v14 = vunpack.c.h.s8.bf16 %v4060_v20 }
 0x5e2   : > { %5771 = vmatpush1.bf16.msra.mxu0 %v5266_v10  ;;  %v4394_v10 = vld [vmem:[%s8115_s14 + $0xd40] sm:$0xff] }
 0x5e3   : > { %5812 = vmatpush1.bf16.msra.mxu1 %v5394_v4  ;;  %5772 = vmatprep.subr.bf16.mxu0 %v5259_v25  ;;  %v5467_v4 = vunpack.c.h.s8.bf16 %v4459_v11  ;;  %v4458_v25 = vld [vmem:[%s8115_s14 + $0xf40] sm:$0xff]  ;;  %v5338_v28 = vunpack.c.h.s8.bf16 %v4394_v10 }
 0x5e4   : > { %5813 = vmatprep.subr.bf16.mxu1 %v5387_v30  ;;  %v5466_v30 = vunpack.c.h.s8.bf16 %v4458_v25 }
 0x5e6   : > { %5773 = vmatpush1.bf16.msra.mxu0 %v5258_v34  ;;  %v5459_v34 = vunpack.c.l.s8.bf16 %v4459_v11  ;;  %v4660_v11 = vunpack.c.l.s8.bf16 %v4060_v20 }
 0x5e7   : > { %v7399_v56 = vpop.eup %7398  ;;  %5814 = vmatpush1.bf16.msra.mxu1 %v5386_v42  ;;  %5774 = vmatprep.subr.bf16.mxu0 %v5251_v49  ;;  %v4387_v42 = vld [vmem:[%s8115_s14 + $0xd08] sm:$0xff] }
 0x5e8   : > { %v3905_v45 = vadd.f32 1.0, %v7399_v56  ;;  %5815 = vmatprep.subr.bf16.mxu1 %v5379_v40  ;;  %v7401_v35 = vpop.eup %7400  ;;  %v4451_v49 = vld [vmem:[%s8115_s14 + $0xf08] sm:$0xff]  ;;  %v5458_v40 = vunpack.c.l.s8.bf16 %v4458_v25  ;;  %v5323_v53 = vunpack.c.h.s8.bf16 %v4387_v42  ;;  %v4450_v56 = vld [vmem:[%s8115_s14 + $0xf00] sm:$0xff]  ;;  %v5315_v51 = vunpack.c.l.s8.bf16 %v4387_v42 }
 0x5e9   : > { %v7403_v37 = vpop.eup %7402  ;;  %v3902_v39 = vadd.f32 1.0, %v7401_v35  ;;  %v5442_v47 = vunpack.c.l.s8.bf16 %v4450_v56 }
 0x5ea   : > { %7404 = vrcp.f32 %v3905_v45  ;;  %5775 = vmatpush1.bf16.msra.mxu0 %v5250_v27  ;;  %v3904_v48 = vadd.f32 1.0, %v7403_v37  ;;  %v5451_v27 = vunpack.c.h.s8.bf16 %v4451_v49  ;;  %v4533_v37 = vunpack.c.l.s8.bf16 %v3997_v52 }
 0x5eb   : > { %5816 = vmatpush1.bf16.msra.mxu1 %v5378_v32  ;;  %5776 = vmatprep.subr.bf16.mxu0 %v5371_v9  ;;  %7406 = vrcp.f32 %v3902_v39  ;;  %v5322_v32 = vunpack.c.h.s8.bf16 %v4386_v26  ;;  %v5450_v9 = vunpack.c.h.s8.bf16 %v4450_v56  ;;  %v3980_v56 = vld [vmem:[%s8115_s14 + $0x50] sm:$0xff] }
 0x5ec   : > { %5817 = vmatprep.subr.bf16.mxu1 %v5499_v2  ;;  %7408 = vrcp.f32 %v3904_v48  ;;  %v5443_v2 = vunpack.c.l.s8.bf16 %v4451_v49 }
 0x5ee   : > { %5777 = vmatpush2.bf16.msra.mxu0 %v5370_v59 }
 0x5ef   : > { %5818 = vmatpush2.bf16.msra.mxu1 %v5498_v38  ;;  %5778 = vmatprep.subr.bf16.mxu0 %v5363_v50  ;;  %v4061_v38 = vld [vmem:[%s8115_s14 + $0x2d8] sm:$0xff]  ;;  %v5314_v50 = vunpack.c.l.s8.bf16 %v4386_v26 }
 0x5f0   : > { %5819 = vmatprep.subr.bf16.mxu1 %v5491_v62 }
 0x5f2   : > { %5779 = vmatpush2.bf16.msra.mxu0 %v5362_v3  ;;  %v3996_v3 = vld [vmem:[%s8115_s14 + $0xd0] sm:$0xff] }
 0x5f3   : > { %5820 = vmatpush2.bf16.msra.mxu1 %v5490_v18  ;;  %5780 = vmatprep.subr.bf16.mxu0 %v5355_v31  ;;  %v4669_v31 = vunpack.c.h.s8.bf16 %v4061_v38  ;;  %v4540_v35 = vunpack.c.h.s8.bf16 %v3996_v3  ;;  %v4532_v48 = vunpack.c.l.s8.bf16 %v3996_v3 }
 0x5f4   : > { %5821 = vmatprep.subr.bf16.mxu1 %v5483_v15 }
 0x5f6   : > { %5781 = vmatpush2.bf16.msra.mxu0 %v5354_v41  ;;  %v3989_v41 = vld [vmem:[%s8115_s14 + $0x98] sm:$0xff] }
 0x5f7   : > { %v7405_v19 = vpop.eup %7404  ;;  %5822 = vmatpush2.bf16.msra.mxu1 %v5482_v12  ;;  %5782 = vmatprep.subr.bf16.mxu0 %v5347_v16  ;;  %v4053_v12 = vld [vmem:[%s8115_s14 + $0x298] sm:$0xff] }
 0x5f8   : > { %v3953_v24 = vmul.f32 %v7405_v19, %v9144_v54  ;;  %5823 = vmatprep.subr.bf16.mxu1 %v5475_v17  ;;  %v5330_v54 = vunpack.c.l.s8.bf16 %v4394_v10  ;;  %v7407_v45 = vpop.eup %7406  ;;  %v3988_v19 = vld [vmem:[%s8115_s14 + $0x90] sm:$0xff]  ;;  %v4645_v49 = vunpack.c.l.s8.bf16 %v4053_v12 }
 0x5f9   : > { %v7409_v59 = vpop.eup %7408  ;;  %v3950_v62 = vmul.f32 %v7407_v45, %v9154_v8  ;;  %v4052_v10 = vld [vmem:[%s8115_s14 + $0x290] sm:$0xff] }
 0x5fa   : > { %v9177_v55 = vpack.c.bf16 %v3953_v24, %v3953_v24  ;;  %5783 = vmatpush2.bf16.msra.mxu0 %v5346_v61  ;;  %v3952_v18 = vmul.f32 %v7409_v59, %v9156_v22  ;;  %v4661_v22 = vunpack.c.l.s8.bf16 %v4061_v38  ;;  %v4525_v61 = vunpack.c.h.s8.bf16 %v3989_v41  ;;  %v3973_v59 = vld [vmem:[%s8115_s14 + $0x18] sm:$0xff] }
 0x5fb   : > { %5824 = vmatpush2.bf16.msra.mxu1 %v5474_v46  ;;  %5784 = vmatprep.subr.bf16.mxu0 %v5339_v6  ;;  %v9190_v15 = vpack.c.bf16 %v3950_v62, %v3950_v62  ;;  %v4653_v6 = vunpack.c.h.s8.bf16 %v4053_v12  ;;  %v4644_v26 = vunpack.c.l.s8.bf16 %v4052_v10  ;;  %v4037_v38 = vld [vmem:[%s8115_s14 + $0x218] sm:$0xff] }
 0x5fc   : > { %5833 = vmatprep.mubr.bf16.mxu1 %v9177_v55  ;;  %5825 = vmatprep.subr.bf16.mxu1 %v5467_v4  ;;  %v9192_v8 = vpack.c.bf16 %v3952_v18, %v3952_v18  ;;  %v4621_v3 = vunpack.c.h.s8.bf16 %v4037_v38  ;;  %v4036_v18 = vld [vmem:[%s8115_s14 + $0x210] sm:$0xff] }
 0x5fd   : > { %v4620_v20 = vunpack.c.h.s8.bf16 %v4036_v18 }
 0x5fe   : > { %5785 = vmatpush2.bf16.msra.mxu0 %v5338_v28  ;;  %v4524_v28 = vunpack.c.h.s8.bf16 %v3988_v19 }
 0x5ff   : > { %5826 = vmatpush2.bf16.msra.mxu1 %v5466_v30  ;;  %5786 = vmatprep.subr.bf16.mxu0 %v5331_v33  ;;  %v4652_v33 = vunpack.c.h.s8.bf16 %v4052_v10  ;;  %v4085_v10 = vld [vmem:[%s8115_s14 + $0x398] sm:$0xff] }
 0x600   : > { %5827 = vmatprep.subr.bf16.mxu1 %v5459_v34  ;;  %v4517_v34 = vunpack.c.l.s8.bf16 %v3989_v41  ;;  %v4093_v41 = vld [vmem:[%s8115_s14 + $0x3d8] sm:$0xff] }
 0x602   : > { %5787 = vmatpush2.bf16.msra.mxu0 %v5330_v54  ;;  %v3981_v54 = vld [vmem:[%s8115_s14 + $0x58] sm:$0xff] }
 0x603   : > { %5828 = vmatpush2.bf16.msra.mxu1 %v5458_v40  ;;  %5788 = vmatprep.subr.bf16.mxu0 %v5323_v53  ;;  %v4045_v40 = vld [vmem:[%s8115_s14 + $0x258] sm:$0xff]  ;;  %v4516_v53 = vunpack.c.l.s8.bf16 %v3988_v19 }
 0x604   : > { %5829 = vmatprep.subr.bf16.mxu1 %v5451_v27  ;;  %v4509_v27 = vunpack.c.h.s8.bf16 %v3981_v54  ;;  %v4629_v52 = vunpack.c.l.s8.bf16 %v4045_v40 }
 0x606   : > { %5789 = vmatpush2.bf16.msra.mxu0 %v5322_v32  ;;  %v4637_v32 = vunpack.c.h.s8.bf16 %v4045_v40  ;;  %v4709_v40 = vunpack.c.l.s8.bf16 %v4085_v10 }
 0x607   : > { %5830 = vmatpush2.bf16.msra.mxu1 %v5450_v9  ;;  %5790 = vmatprep.subr.bf16.mxu0 %v5315_v51  ;;  %v4044_v9 = vld [vmem:[%s8115_s14 + $0x250] sm:$0xff]  ;;  %v4508_v51 = vunpack.c.h.s8.bf16 %v3980_v56 }
 0x608   : > { %5831 = vmatprep.subr.bf16.mxu1 %v5443_v2  ;;  %v4636_v45 = vunpack.c.h.s8.bf16 %v4044_v9  ;;  %v4501_v2 = vunpack.c.l.s8.bf16 %v3981_v54  ;;  %v4628_v62 = vunpack.c.l.s8.bf16 %v4044_v9  ;;  %v4012_v9 = vld [vmem:[%s8115_s14 + $0x150] sm:$0xff] }
 0x60a   : > { %5791 = vmatpush2.bf16.msra.mxu0 %v5314_v50  ;;  %v4500_v50 = vunpack.c.l.s8.bf16 %v3980_v56 }
 0x60b   : > { %5832 = vmatpush2.bf16.msra.mxu1 %v5442_v47  ;;  %5842 = vmatprep.subr.bf16.mxu0 %v4541_v5  ;;  %v4493_v47 = vunpack.c.h.s8.bf16 %v3973_v59  ;;  %v3972_v5 = vld [vmem:[%s8115_s14 + $0x10] sm:$0xff] }
 0x60c   : > { %5883 = vmatprep.subr.bf16.mxu1 %v4669_v31  ;;  %v4492_v31 = vunpack.c.h.s8.bf16 %v3972_v5 }
 0x60d   : > { %v5548_v39 = vpop.f32.mrf.mxu0  ;;  %5793 = vmatmul.mubr.bf16.vlgmr.msra.gmra.mxu0 %v9190_v15 }
 0x60e   : > { %v5589_v16 = vpop.f32.mrf.mxu1  ;;  %5834 = vmatmul.mubr.bf16.vlgmr.msra.gmra.mxu1 %v9192_v8  ;;  %5843 = vmatpush1.bf16.msra.mxu0 %v4540_v35  ;;  %v4485_v35 = vunpack.c.l.s8.bf16 %v3973_v59 }
 0x60f   : > { %v9198_v17 = vadd.f32 %v5589_v16, %v5548_v39  ;;  %5874 = vmatprep.mubr.bf16.mxu0 %v8849_v36  ;;  %5884 = vmatpush1.bf16.msra.mxu1 %v4668_v14  ;;  %v5550_v44 = vpop.f32.mrf.mxu0  ;;  %v4613_v14 = vunpack.c.l.s8.bf16 %v4037_v38  ;;  %v4484_v39 = vunpack.c.l.s8.bf16 %v3972_v5  ;;  %v4028_v16 = vld [vmem:[%s8115_s14 + $0x1d0] sm:$0xff] }
 0x610   : > { %5915 = vmatprep.mubr.bf16.mxu1 %v8852_v29  ;;  %v5591_v46 = vpop.f32.mrf.mxu1  ;;  %5844 = vmatprep.subr.bf16.mxu0 %v4533_v37  ;;  %v4029_v37 = vld [vmem:[%s8115_s14 + $0x1d8] sm:$0xff] }
 0x611   : > { %v9204_v24 = vadd.f32 %v5591_v46, %v5550_v44  ;;  %v5552_v4 = vpop.f32.mrf.mxu0  ;;  %5885 = vmatprep.subr.bf16.mxu1 %v4661_v22  ;;  %v4612_v22 = vunpack.c.l.s8.bf16 %v4036_v18  ;;  %v4605_v12 = vunpack.c.h.s8.bf16 %v4029_v37  ;;  %v4092_v44 = vld [vmem:[%s8115_s14 + $0x3d0] sm:$0xff]  ;;  %v4597_v19 = vunpack.c.l.s8.bf16 %v4029_v37 }
 0x612   : > { %v5593_v25 = vpop.f32.mrf.mxu1  ;;  %5845 = vmatpush1.bf16.msra.mxu0 %v4532_v48  ;;  %v4733_v48 = vunpack.c.h.s8.bf16 %v4093_v41  ;;  %v4725_v46 = vunpack.c.l.s8.bf16 %v4093_v41  ;;  %v4596_v4 = vunpack.c.l.s8.bf16 %v4028_v16  ;;  %v4004_v18 = vld [vmem:[%s8115_s14 + $0x110] sm:$0xff] }
 0x613   : > { %5886 = vmatpush1.bf16.msra.mxu1 %v4660_v11  ;;  %v5553_v30 = vpop.f32.mrf.mxu0  ;;  %5846 = vmatprep.subr.bf16.mxu0 %v4525_v61  ;;  %v4604_v11 = vunpack.c.h.s8.bf16 %v4028_v16  ;;  %v4732_v61 = vunpack.c.h.s8.bf16 %v4092_v44  ;;  %v4724_v25 = vunpack.c.l.s8.bf16 %v4092_v44  ;;  %v4124_v44 = vld [vmem:[%s8115_s14 + $0x4d0] sm:$0xff] }
 0x614   : > { %v5594_v42 = vpop.f32.mrf.mxu1  ;;  %5887 = vmatprep.subr.bf16.mxu1 %v4653_v6  ;;  %v4021_v6 = vld [vmem:[%s8115_s14 + $0x198] sm:$0xff]  ;;  %v4020_v30 = vld [vmem:[%s8115_s14 + $0x190] sm:$0xff] }
 0x615   : > { %v4588_v42 = vunpack.c.h.s8.bf16 %v4020_v30  ;;  %v4581_v54 = vunpack.c.l.s8.bf16 %v4021_v6 }
 0x616   : > { %5847 = vmatpush1.bf16.msra.mxu0 %v4524_v28  ;;  %v4589_v28 = vunpack.c.h.s8.bf16 %v4021_v6 }
 0x617   : > { %5888 = vmatpush1.bf16.msra.mxu1 %v4652_v33  ;;  %5848 = vmatprep.subr.bf16.mxu0 %v4517_v34  ;;  %v4717_v33 = vunpack.c.h.s8.bf16 %v4085_v10  ;;  %v4084_v34 = vld [vmem:[%s8115_s14 + $0x390] sm:$0xff]  ;;  %v4117_v10 = vld [vmem:[%s8115_s14 + $0x498] sm:$0xff] }
 0x618   : > { %5889 = vmatprep.subr.bf16.mxu1 %v4645_v49  ;;  %v4716_v49 = vunpack.c.h.s8.bf16 %v4084_v34  ;;  %v4708_v56 = vunpack.c.l.s8.bf16 %v4084_v34  ;;  %v4788_v34 = vunpack.c.l.s8.bf16 %v4124_v44 }
 0x61a   : > { %5849 = vmatpush1.bf16.msra.mxu0 %v4516_v53  ;;  %v4013_v53 = vld [vmem:[%s8115_s14 + $0x158] sm:$0xff] }
 0x61b   : > { %5890 = vmatpush1.bf16.msra.mxu1 %v4644_v26  ;;  %5850 = vmatprep.subr.bf16.mxu0 %v4509_v27  ;;  %v4077_v26 = vld [vmem:[%s8115_s14 + $0x358] sm:$0xff]  ;;  %v4580_v27 = vunpack.c.l.s8.bf16 %v4020_v30  ;;  %v4565_v59 = vunpack.c.l.s8.bf16 %v4013_v53 }
 0x61c   : > { %5891 = vmatprep.subr.bf16.mxu1 %v4637_v32  ;;  %v4573_v32 = vunpack.c.h.s8.bf16 %v4013_v53  ;;  %v4693_v38 = vunpack.c.l.s8.bf16 %v4077_v26 }
 0x61e   : > { %5851 = vmatpush1.bf16.msra.mxu0 %v4508_v51  ;;  %v4701_v51 = vunpack.c.h.s8.bf16 %v4077_v26 }
 0x61f   : > { %5892 = vmatpush1.bf16.msra.mxu1 %v4636_v45  ;;  %5852 = vmatprep.subr.bf16.mxu0 %v4501_v2  ;;  %v4076_v45 = vld [vmem:[%s8115_s14 + $0x350] sm:$0xff]  ;;  %v4572_v2 = vunpack.c.h.s8.bf16 %v4012_v9 }
 0x620   : > { %5893 = vmatprep.subr.bf16.mxu1 %v4629_v52  ;;  %v4700_v52 = vunpack.c.h.s8.bf16 %v4076_v45  ;;  %v4692_v5 = vunpack.c.l.s8.bf16 %v4076_v45 }
 0x622   : > { %5853 = vmatpush1.bf16.msra.mxu0 %v4500_v50  ;;  %v4005_v50 = vld [vmem:[%s8115_s14 + $0x118] sm:$0xff] }
 0x623   : > { %5894 = vmatpush1.bf16.msra.mxu1 %v4628_v62  ;;  %5854 = vmatprep.subr.bf16.mxu0 %v4493_v47  ;;  %v4069_v62 = vld [vmem:[%s8115_s14 + $0x318] sm:$0xff]  ;;  %v4564_v47 = vunpack.c.l.s8.bf16 %v4012_v9  ;;  %v4549_v37 = vunpack.c.l.s8.bf16 %v4005_v50 }
 0x624   : > { %5895 = vmatprep.subr.bf16.mxu1 %v4621_v3  ;;  %v4557_v3 = vunpack.c.h.s8.bf16 %v4005_v50  ;;  %v4677_v41 = vunpack.c.l.s8.bf16 %v4069_v62  ;;  %v4109_v50 = vld [vmem:[%s8115_s14 + $0x458] sm:$0xff] }
 0x626   : > { %5855 = vmatpush1.bf16.msra.mxu0 %v4492_v31  ;;  %v4685_v31 = vunpack.c.h.s8.bf16 %v4069_v62  ;;  %v4173_v62 = vld [vmem:[%s8115_s14 + $0x658] sm:$0xff] }
 0x627   : > { %5896 = vmatpush1.bf16.msra.mxu1 %v4620_v20  ;;  %5856 = vmatprep.subr.bf16.mxu0 %v4485_v35  ;;  %v4068_v20 = vld [vmem:[%s8115_s14 + $0x310] sm:$0xff]  ;;  %v4556_v35 = vunpack.c.h.s8.bf16 %v4004_v18 }
 0x628   : > { %5897 = vmatprep.subr.bf16.mxu1 %v4613_v14  ;;  %v4684_v14 = vunpack.c.h.s8.bf16 %v4068_v20  ;;  %v4676_v16 = vunpack.c.l.s8.bf16 %v4068_v20  ;;  %v4172_v20 = vld [vmem:[%s8115_s14 + $0x650] sm:$0xff] }
 0x62a   : > { %5857 = vmatpush1.bf16.msra.mxu0 %v4484_v39  ;;  %v4125_v39 = vld [vmem:[%s8115_s14 + $0x4d8] sm:$0xff] }
 0x62b   : > { %5898 = vmatpush1.bf16.msra.mxu1 %v4612_v22  ;;  %5858 = vmatprep.subr.bf16.mxu0 %v4605_v12  ;;  %v4189_v22 = vld [vmem:[%s8115_s14 + $0x6d8] sm:$0xff]  ;;  %v4548_v12 = vunpack.c.l.s8.bf16 %v4004_v18  ;;  %v4789_v6 = vunpack.c.l.s8.bf16 %v4125_v39  ;;  %v4108_v18 = vld [vmem:[%s8115_s14 + $0x450] sm:$0xff] }
 0x62c   : > { %5899 = vmatprep.subr.bf16.mxu1 %v4733_v48  ;;  %v4797_v48 = vunpack.c.h.s8.bf16 %v4125_v39  ;;  %v4101_v39 = vld [vmem:[%s8115_s14 + $0x418] sm:$0xff] }
 0x62e   : > { %5859 = vmatpush2.bf16.msra.mxu0 %v4604_v11  ;;  %v4925_v11 = vunpack.c.h.s8.bf16 %v4189_v22 }
 0x62f   : > { %5900 = vmatpush2.bf16.msra.mxu1 %v4732_v61  ;;  %5860 = vmatprep.subr.bf16.mxu0 %v4597_v19  ;;  %v4188_v61 = vld [vmem:[%s8115_s14 + $0x6d0] sm:$0xff]  ;;  %v4796_v19 = vunpack.c.h.s8.bf16 %v4124_v44 }
 0x630   : > { %5901 = vmatprep.subr.bf16.mxu1 %v4725_v46  ;;  %v4924_v46 = vunpack.c.h.s8.bf16 %v4188_v61  ;;  %v4100_v44 = vld [vmem:[%s8115_s14 + $0x410] sm:$0xff] }
 0x632   : > { %5861 = vmatpush2.bf16.msra.mxu0 %v4596_v4 }
 0x633   : > { %5902 = vmatpush2.bf16.msra.mxu1 %v4724_v25  ;;  %5862 = vmatprep.subr.bf16.mxu0 %v4589_v28  ;;  %v4917_v25 = vunpack.c.l.s8.bf16 %v4189_v22  ;;  %v4181_v28 = vld [vmem:[%s8115_s14 + $0x698] sm:$0xff] }
 0x634   : > { %5903 = vmatprep.subr.bf16.mxu1 %v4717_v33  ;;  %v4165_v22 = vld [vmem:[%s8115_s14 + $0x618] sm:$0xff] }
 0x636   : > { %5863 = vmatpush2.bf16.msra.mxu0 %v4588_v42 }
 0x637   : > { %5904 = vmatpush2.bf16.msra.mxu1 %v4716_v49  ;;  %5864 = vmatprep.subr.bf16.mxu0 %v4581_v54  ;;  %v4916_v49 = vunpack.c.l.s8.bf16 %v4188_v61  ;;  %v4781_v54 = vunpack.c.h.s8.bf16 %v4117_v10  ;;  %v4164_v61 = vld [vmem:[%s8115_s14 + $0x610] sm:$0xff] }
 0x638   : > { %5905 = vmatprep.subr.bf16.mxu1 %v4709_v40  ;;  %v4116_v40 = vld [vmem:[%s8115_s14 + $0x490] sm:$0xff] }
 0x639   : > { %v4780_v45 = vunpack.c.h.s8.bf16 %v4116_v40 }
 0x63a   : > { %5865 = vmatpush2.bf16.msra.mxu0 %v4580_v27  ;;  %v4909_v27 = vunpack.c.h.s8.bf16 %v4181_v28 }
 0x63b   : > { %5906 = vmatpush2.bf16.msra.mxu1 %v4708_v56  ;;  %5866 = vmatprep.subr.bf16.mxu0 %v4573_v32  ;;  %v4180_v56 = vld [vmem:[%s8115_s14 + $0x690] sm:$0xff] }
 0x63c   : > { %5907 = vmatprep.subr.bf16.mxu1 %v4701_v51 }
 0x63e   : > { %5867 = vmatpush2.bf16.msra.mxu0 %v4572_v2 }
 0x63f   : > { %5908 = vmatpush2.bf16.msra.mxu1 %v4700_v52  ;;  %5868 = vmatprep.subr.bf16.mxu0 %v4565_v59  ;;  %v4908_v52 = vunpack.c.h.s8.bf16 %v4180_v56 }
 0x640   : > { %5909 = vmatprep.subr.bf16.mxu1 %v4693_v38  ;;  %v4901_v38 = vunpack.c.l.s8.bf16 %v4181_v28  ;;  %v4740_v28 = vunpack.c.l.s8.bf16 %v4100_v44 }
 0x642   : > { %5869 = vmatpush2.bf16.msra.mxu0 %v4564_v47  ;;  %v4772_v47 = vunpack.c.l.s8.bf16 %v4116_v40 }
 0x643   : > { %5910 = vmatpush2.bf16.msra.mxu1 %v4692_v5  ;;  %5870 = vmatprep.subr.bf16.mxu0 %v4557_v3  ;;  %v4900_v5 = vunpack.c.l.s8.bf16 %v4180_v56  ;;  %v4765_v3 = vunpack.c.h.s8.bf16 %v4109_v50  ;;  %v4213_v56 = vld [vmem:[%s8115_s14 + $0x798] sm:$0xff] }
 0x644   : > { %5911 = vmatprep.subr.bf16.mxu1 %v4685_v31  ;;  %v4893_v31 = vunpack.c.h.s8.bf16 %v4173_v62 }
 0x646   : > { %5871 = vmatpush2.bf16.msra.mxu0 %v4556_v35  ;;  %v4764_v35 = vunpack.c.h.s8.bf16 %v4108_v18 }
 0x647   : > { %5912 = vmatpush2.bf16.msra.mxu1 %v4684_v14  ;;  %5872 = vmatprep.subr.bf16.mxu0 %v4549_v37  ;;  %v4892_v14 = vunpack.c.h.s8.bf16 %v4172_v20  ;;  %v4757_v37 = vunpack.c.l.s8.bf16 %v4109_v50 }
 0x648   : > { %5913 = vmatprep.subr.bf16.mxu1 %v4677_v41  ;;  %v4885_v41 = vunpack.c.l.s8.bf16 %v4173_v62  ;;  %v4965_v62 = vunpack.c.l.s8.bf16 %v4213_v56 }
 0x64a   : > { %5873 = vmatpush2.bf16.msra.mxu0 %v4548_v12  ;;  %v4756_v12 = vunpack.c.l.s8.bf16 %v4108_v18 }
 0x64b   : > { %5914 = vmatpush2.bf16.msra.mxu1 %v4676_v16  ;;  %5924 = vmatprep.subr.bf16.mxu0 %v4797_v48  ;;  %v4884_v16 = vunpack.c.l.s8.bf16 %v4172_v20  ;;  %v4749_v48 = vunpack.c.h.s8.bf16 %v4101_v39  ;;  %v4140_v20 = vld [vmem:[%s8115_s14 + $0x550] sm:$0xff] }
 0x64c   : > { %5965 = vmatprep.subr.bf16.mxu1 %v4925_v11  ;;  %v4877_v11 = vunpack.c.h.s8.bf16 %v4165_v22 }
 0x64d   : > { %v5630_v4 = vpop.f32.mrf.mxu0  ;;  %5875 = vmatmul.mubr.bf16.vlgmr.msra.gmra.mxu0 %v8941_v43 }
 0x64e   : > { %v5631_v30 = vadd.f32 %v5630_v4, %v9198_v17  ;;  %v5671_v33 = vpop.f32.mrf.mxu1  ;;  %5916 = vmatmul.mubr.bf16.vlgmr.msra.gmra.mxu1 %v8943_v58  ;;  %5925 = vmatpush1.bf16.msra.mxu0 %v4796_v19  ;;  %v4748_v19 = vunpack.c.h.s8.bf16 %v4100_v44  ;;  %v4157_v4 = vld [vmem:[%s8115_s14 + $0x5d8] sm:$0xff] }
 0x64f   : > { %5956 = vmatprep.mubr.bf16.mxu0 %v8946_v1  ;;  %5966 = vmatpush1.bf16.msra.mxu1 %v4924_v46  ;;  %v5632_v42 = vpop.f32.mrf.mxu0  ;;  %v4876_v46 = vunpack.c.h.s8.bf16 %v4164_v61 }
 0x650   : > { %v9241_v53 = vadd.f32 %v5671_v33, %v5631_v30  ;;  %5997 = vmatprep.mubr.bf16.mxu1 %v8950_v7  ;;  %v5633_v26 = vadd.f32 %v5632_v42, %v9204_v24  ;;  %v5673_v17 = vpop.f32.mrf.mxu1  ;;  %5926 = vmatprep.subr.bf16.mxu0 %v4789_v6  ;;  %v4773_v24 = vunpack.c.l.s8.bf16 %v4117_v10  ;;  %v4741_v6 = vunpack.c.l.s8.bf16 %v4101_v39 }
 0x651   : > { %v5634_v32 = vpop.f32.mrf.mxu0  ;;  %5967 = vmatprep.subr.bf16.mxu1 %v4917_v25  ;;  %v4869_v10 = vunpack.c.l.s8.bf16 %v4165_v22  ;;  %v4221_v25 = vld [vmem:[%s8115_s14 + $0x7d8] sm:$0xff]  ;;  %v4868_v30 = vunpack.c.l.s8.bf16 %v4164_v61  ;;  %v4861_v33 = vunpack.c.h.s8.bf16 %v4157_v4  ;;  %v4132_v61 = vld [vmem:[%s8115_s14 + $0x510] sm:$0xff] }
 0x652   : > { %v9246_v9 = vadd.f32 %v5673_v17, %v5633_v26  ;;  %v5675_v51 = vpop.f32.mrf.mxu1  ;;  %5927 = vmatpush1.bf16.msra.mxu0 %v4788_v34  ;;  %v4156_v34 = vld [vmem:[%s8115_s14 + $0x5d0] sm:$0xff]  ;;  %v4989_v42 = vunpack.c.h.s8.bf16 %v4221_v25  ;;  %v4853_v26 = vunpack.c.l.s8.bf16 %v4157_v4  ;;  %v4981_v17 = vunpack.c.l.s8.bf16 %v4221_v25 }
 0x653   : > { %5968 = vmatpush1.bf16.msra.mxu1 %v4916_v49  ;;  %v5635_v2 = vpop.f32.mrf.mxu0  ;;  %5928 = vmatprep.subr.bf16.mxu0 %v4781_v54  ;;  %v4220_v49 = vld [vmem:[%s8115_s14 + $0x7d0] sm:$0xff]  ;;  %v4860_v54 = vunpack.c.h.s8.bf16 %v4156_v34  ;;  %v4852_v32 = vunpack.c.l.s8.bf16 %v4156_v34 }
 0x654   : > { %v5676_v59 = vpop.f32.mrf.mxu1  ;;  %5969 = vmatprep.subr.bf16.mxu1 %v4909_v27  ;;  %v4988_v40 = vunpack.c.h.s8.bf16 %v4220_v49  ;;  %v4149_v27 = vld [vmem:[%s8115_s14 + $0x598] sm:$0xff]  ;;  %v4980_v51 = vunpack.c.l.s8.bf16 %v4220_v49  ;;  %v4148_v2 = vld [vmem:[%s8115_s14 + $0x590] sm:$0xff] }
 0x655   : > { %v4844_v59 = vunpack.c.h.s8.bf16 %v4148_v2  ;;  %v4837_v50 = vunpack.c.l.s8.bf16 %v4149_v27  ;;  %v4252_v49 = vld [vmem:[%s8115_s14 + $0x8d0] sm:$0xff] }
 0x656   : > { %5929 = vmatpush1.bf16.msra.mxu0 %v4780_v45  ;;  %v4845_v45 = vunpack.c.h.s8.bf16 %v4149_v27 }
 0x657   : > { %5970 = vmatpush1.bf16.msra.mxu1 %v4908_v52  ;;  %5930 = vmatprep.subr.bf16.mxu0 %v4773_v24  ;;  %v4973_v52 = vunpack.c.h.s8.bf16 %v4213_v56  ;;  %v4212_v24 = vld [vmem:[%s8115_s14 + $0x790] sm:$0xff]  ;;  %v4245_v56 = vld [vmem:[%s8115_s14 + $0x898] sm:$0xff] }
 0x658   : > { %5971 = vmatprep.subr.bf16.mxu1 %v4901_v38  ;;  %v4972_v38 = vunpack.c.h.s8.bf16 %v4212_v24  ;;  %v4964_v18 = vunpack.c.l.s8.bf16 %v4212_v24 }
 0x65a   : > { %5931 = vmatpush1.bf16.msra.mxu0 %v4772_v47  ;;  %v4141_v47 = vld [vmem:[%s8115_s14 + $0x558] sm:$0xff] }
 0x65b   : > { %5972 = vmatpush1.bf16.msra.mxu1 %v4900_v5  ;;  %5932 = vmatprep.subr.bf16.mxu0 %v4765_v3  ;;  %v4205_v5 = vld [vmem:[%s8115_s14 + $0x758] sm:$0xff]  ;;  %v4836_v3 = vunpack.c.l.s8.bf16 %v4148_v2  ;;  %v4821_v39 = vunpack.c.l.s8.bf16 %v4141_v47 }
 0x65c   : > { %5973 = vmatprep.subr.bf16.mxu1 %v4893_v31  ;;  %v4829_v31 = vunpack.c.h.s8.bf16 %v4141_v47  ;;  %v4949_v22 = vunpack.c.l.s8.bf16 %v4205_v5 }
 0x65e   : > { %5933 = vmatpush1.bf16.msra.mxu0 %v4764_v35  ;;  %v4957_v35 = vunpack.c.h.s8.bf16 %v4205_v5  ;;  %v4308_v5 = vld [vmem:[%s8115_s14 + $0xa90] sm:$0xff] }
 0x65f   : > { %5974 = vmatpush1.bf16.msra.mxu1 %v4892_v14  ;;  %5934 = vmatprep.subr.bf16.mxu0 %v4757_v37  ;;  %v4204_v14 = vld [vmem:[%s8115_s14 + $0x750] sm:$0xff]  ;;  %v4828_v37 = vunpack.c.h.s8.bf16 %v4140_v20 }
 0x660   : > { %5975 = vmatprep.subr.bf16.mxu1 %v4885_v41  ;;  %v4956_v41 = vunpack.c.h.s8.bf16 %v4204_v14  ;;  %v4948_v44 = vunpack.c.l.s8.bf16 %v4204_v14  ;;  %v5029_v14 = vunpack.c.l.s8.bf16 %v4245_v56 }
 0x662   : > { %5935 = vmatpush1.bf16.msra.mxu0 %v4756_v12  ;;  %v4133_v12 = vld [vmem:[%s8115_s14 + $0x518] sm:$0xff] }
 0x663   : > { %5976 = vmatpush1.bf16.msra.mxu1 %v4884_v16  ;;  %5936 = vmatprep.subr.bf16.mxu0 %v4749_v48  ;;  %v4197_v16 = vld [vmem:[%s8115_s14 + $0x718] sm:$0xff]  ;;  %v4820_v48 = vunpack.c.l.s8.bf16 %v4140_v20  ;;  %v4805_v4 = vunpack.c.l.s8.bf16 %v4133_v12 }
 0x664   : > { %5977 = vmatprep.subr.bf16.mxu1 %v4877_v11  ;;  %v4813_v11 = vunpack.c.h.s8.bf16 %v4133_v12  ;;  %v4933_v25 = vunpack.c.l.s8.bf16 %v4197_v16 }
 0x666   : > { %5937 = vmatpush1.bf16.msra.mxu0 %v4748_v19  ;;  %v4941_v19 = vunpack.c.h.s8.bf16 %v4197_v16  ;;  %v5156_v16 = vunpack.c.l.s8.bf16 %v4308_v5 }
 0x667   : > { %5978 = vmatpush1.bf16.msra.mxu1 %v4876_v46  ;;  %5938 = vmatprep.subr.bf16.mxu0 %v4741_v6  ;;  %v4196_v46 = vld [vmem:[%s8115_s14 + $0x710] sm:$0xff]  ;;  %v4812_v6 = vunpack.c.h.s8.bf16 %v4132_v61 }
 0x668   : > { %5979 = vmatprep.subr.bf16.mxu1 %v4869_v10  ;;  %v4940_v10 = vunpack.c.h.s8.bf16 %v4196_v46  ;;  %v4932_v34 = vunpack.c.l.s8.bf16 %v4196_v46 }
 0x66a   : > { %5939 = vmatpush1.bf16.msra.mxu0 %v4740_v28  ;;  %v4253_v28 = vld [vmem:[%s8115_s14 + $0x8d8] sm:$0xff] }
 0x66b   : > { %5980 = vmatpush1.bf16.msra.mxu1 %v4868_v30  ;;  %5940 = vmatprep.subr.bf16.mxu0 %v4861_v33  ;;  %v4317_v30 = vld [vmem:[%s8115_s14 + $0xad8] sm:$0xff]  ;;  %v4804_v33 = vunpack.c.l.s8.bf16 %v4132_v61  ;;  %v5045_v27 = vunpack.c.l.s8.bf16 %v4253_v28  ;;  %v4300_v61 = vld [vmem:[%s8115_s14 + $0xa50] sm:$0xff] }
 0x66c   : > { %5981 = vmatprep.subr.bf16.mxu1 %v4989_v42  ;;  %v5053_v42 = vunpack.c.h.s8.bf16 %v4253_v28  ;;  %v5148_v46 = vunpack.c.h.s8.bf16 %v4300_v61 }
 0x66e   : > { %5941 = vmatpush2.bf16.msra.mxu0 %v4860_v54  ;;  %v5181_v54 = vunpack.c.h.s8.bf16 %v4317_v30 }
 0x66f   : > { %5982 = vmatpush2.bf16.msra.mxu1 %v4988_v40  ;;  %5942 = vmatprep.subr.bf16.mxu0 %v4853_v26  ;;  %v4316_v40 = vld [vmem:[%s8115_s14 + $0xad0] sm:$0xff]  ;;  %v5052_v26 = vunpack.c.h.s8.bf16 %v4252_v49 }
 0x670   : > { %5983 = vmatprep.subr.bf16.mxu1 %v4981_v17  ;;  %v5180_v17 = vunpack.c.h.s8.bf16 %v4316_v40 }
 0x672   : > { %5943 = vmatpush2.bf16.msra.mxu0 %v4852_v32 }
 0x673   : > { %5984 = vmatpush2.bf16.msra.mxu1 %v4980_v51  ;;  %5944 = vmatprep.subr.bf16.mxu0 %v4845_v45  ;;  %v5173_v51 = vunpack.c.l.s8.bf16 %v4317_v30  ;;  %v4309_v45 = vld [vmem:[%s8115_s14 + $0xa98] sm:$0xff]  ;;  %v5140_v30 = vunpack.c.l.s8.bf16 %v4300_v61 }
 0x674   : > { %5985 = vmatprep.subr.bf16.mxu1 %v4973_v52  ;;  %v5044_v52 = vunpack.c.l.s8.bf16 %v4252_v49  ;;  %v5165_v47 = vunpack.c.h.s8.bf16 %v4309_v45  ;;  %v4292_v49 = vld [vmem:[%s8115_s14 + $0xa10] sm:$0xff]  ;;  %v4333_v61 = vld [vmem:[%s8115_s14 + $0xb58] sm:$0xff] }
 0x676   : > { %5945 = vmatpush2.bf16.msra.mxu0 %v4844_v59  ;;  %v5172_v59 = vunpack.c.l.s8.bf16 %v4316_v40  ;;  %v5132_v40 = vunpack.c.h.s8.bf16 %v4292_v49 }
 0x677   : > { %5986 = vmatpush2.bf16.msra.mxu1 %v4972_v38  ;;  %5946 = vmatprep.subr.bf16.mxu0 %v4837_v50  ;;  %v5037_v38 = vunpack.c.h.s8.bf16 %v4245_v56  ;;  %v4244_v50 = vld [vmem:[%s8115_s14 + $0x890] sm:$0xff]  ;;  %v4349_v56 = vld [vmem:[%s8115_s14 + $0xbd8] sm:$0xff] }
 0x678   : > { %5987 = vmatprep.subr.bf16.mxu1 %v4965_v62  ;;  %v5028_v12 = vunpack.c.l.s8.bf16 %v4244_v50 }
 0x67a   : > { %5947 = vmatpush2.bf16.msra.mxu0 %v4836_v3 }
 0x67b   : > { %5988 = vmatpush2.bf16.msra.mxu1 %v4964_v18  ;;  %5948 = vmatprep.subr.bf16.mxu0 %v4829_v31  ;;  %v5036_v31 = vunpack.c.h.s8.bf16 %v4244_v50  ;;  %v4348_v50 = vld [vmem:[%s8115_s14 + $0xbd0] sm:$0xff] }
 0x67c   : > { %5989 = vmatprep.subr.bf16.mxu1 %v4957_v35  ;;  %v5164_v35 = vunpack.c.h.s8.bf16 %v4308_v5  ;;  %v5244_v5 = vunpack.c.h.s8.bf16 %v4348_v50 }
 0x67e   : > { %5949 = vmatpush2.bf16.msra.mxu0 %v4828_v37 }
 0x67f   : > { %5990 = vmatpush2.bf16.msra.mxu1 %v4956_v41  ;;  %5950 = vmatprep.subr.bf16.mxu0 %v4821_v39  ;;  %v5157_v41 = vunpack.c.l.s8.bf16 %v4309_v45  ;;  %v4237_v39 = vld [vmem:[%s8115_s14 + $0x858] sm:$0xff]  ;;  %v5124_v45 = vunpack.c.l.s8.bf16 %v4292_v49 }
 0x680   : > { %5991 = vmatprep.subr.bf16.mxu1 %v4949_v22  ;;  %v4301_v22 = vld [vmem:[%s8115_s14 + $0xa58] sm:$0xff] }
 0x681   : > { %v4325_v49 = vld [vmem:[%s8115_s14 + $0xb18] sm:$0xff] }
 0x682   : > { %5951 = vmatpush2.bf16.msra.mxu0 %v4820_v48  ;;  %v5021_v48 = vunpack.c.h.s8.bf16 %v4237_v39 }
 0x683   : > { %5992 = vmatpush2.bf16.msra.mxu1 %v4948_v44  ;;  %5952 = vmatprep.subr.bf16.mxu0 %v4813_v11  ;;  %v4236_v44 = vld [vmem:[%s8115_s14 + $0x850] sm:$0xff]  ;;  %v5149_v11 = vunpack.c.h.s8.bf16 %v4301_v22 }
 0x684   : > { %5993 = vmatprep.subr.bf16.mxu1 %v4941_v19  ;;  %v5020_v19 = vunpack.c.h.s8.bf16 %v4236_v44  ;;  %v5012_v28 = vunpack.c.l.s8.bf16 %v4236_v44 }
 0x686   : > { %5953 = vmatpush2.bf16.msra.mxu0 %v4812_v6  ;;  %v5013_v6 = vunpack.c.l.s8.bf16 %v4237_v39 }
 0x687   : > { %5994 = vmatpush2.bf16.msra.mxu1 %v4940_v10  ;;  %5954 = vmatprep.subr.bf16.mxu0 %v4805_v4  ;;  %v5141_v10 = vunpack.c.l.s8.bf16 %v4301_v22  ;;  %v4229_v4 = vld [vmem:[%s8115_s14 + $0x818] sm:$0xff]  ;;  %v4340_v22 = vld [vmem:[%s8115_s14 + $0xb90] sm:$0xff] }
 0x688   : > { %5995 = vmatprep.subr.bf16.mxu1 %v4933_v25  ;;  %v4293_v25 = vld [vmem:[%s8115_s14 + $0xa18] sm:$0xff] }
 0x68a   : > { %5955 = vmatpush2.bf16.msra.mxu0 %v4804_v33  ;;  %v5005_v33 = vunpack.c.h.s8.bf16 %v4229_v4 }
 0x68b   : > { %5996 = vmatpush2.bf16.msra.mxu1 %v4932_v34  ;;  %6006 = vmatprep.subr.bf16.mxu0 %v5053_v42  ;;  %v4228_v34 = vld [vmem:[%s8115_s14 + $0x810] sm:$0xff]  ;;  %v5133_v42 = vunpack.c.h.s8.bf16 %v4293_v25 }
 0x68c   : > { %6047 = vmatprep.subr.bf16.mxu1 %v5181_v54  ;;  %v5004_v54 = vunpack.c.h.s8.bf16 %v4228_v34 }
 0x68d   : > { %v9277_v32 = vpop.f32.mrf.mxu0  ;;  %5957 = vmatmul.mubr.bf16.vlgmr.msra.gmra.mxu0 %v9041_v13 }
 0x68e   : > { %v9281_v2 = vpop.f32.mrf.mxu1  ;;  %5998 = vmatmul.mubr.bf16.vlgmr.msra.gmra.mxu1 %v9043_v57  ;;  %6007 = vmatpush1.bf16.msra.mxu0 %v5052_v26  ;;  %v4997_v26 = vunpack.c.l.s8.bf16 %v4229_v4  ;;  %v5213_v4 = vunpack.c.h.s8.bf16 %v4333_v61 }
 0x68f   : > { %6038 = vmatprep.mubr.bf16.mxu0 %v9046_v0  ;;  %6048 = vmatpush1.bf16.msra.mxu1 %v5180_v17  ;;  %v9285_v24 = vpop.f32.mrf.mxu0  ;;  %v5125_v17 = vunpack.c.l.s8.bf16 %v4293_v25  ;;  %v4332_v25 = vld [vmem:[%s8115_s14 + $0xb50] sm:$0xff] }
 0x690   : > { %6079 = vmatprep.mubr.bf16.mxu1 %v9050_v63  ;;  %v9289_v62 = vpop.f32.mrf.mxu1  ;;  %6008 = vmatprep.subr.bf16.mxu0 %v5045_v27  ;;  %v4285_v27 = vld [vmem:[%s8115_s14 + $0x9d8] sm:$0xff] }
 0x691   : > { %v5716_v3 = vpop.f32.mrf.mxu0  ;;  %6049 = vmatprep.subr.bf16.mxu1 %v5173_v51  ;;  %v4996_v51 = vunpack.c.l.s8.bf16 %v4228_v34  ;;  %v5205_v34 = vunpack.c.l.s8.bf16 %v4333_v61 }
 0x692   : > { %v5757_v18 = vpop.f32.mrf.mxu1  ;;  %6009 = vmatpush1.bf16.msra.mxu0 %v5044_v52  ;;  %v5117_v52 = vunpack.c.h.s8.bf16 %v4285_v27  ;;  %v5109_v3 = vunpack.c.l.s8.bf16 %v4285_v27  ;;  %v5197_v27 = vunpack.c.h.s8.bf16 %v4325_v49 }
 0x693   : > { %6050 = vmatpush1.bf16.msra.mxu1 %v5172_v59  ;;  %v5717_v20 = vpop.f32.mrf.mxu0  ;;  %6010 = vmatprep.subr.bf16.mxu0 %v5037_v38  ;;  %v4284_v59 = vld [vmem:[%s8115_s14 + $0x9d0] sm:$0xff]  ;;  %v5245_v38 = vunpack.c.h.s8.bf16 %v4349_v56  ;;  %v5237_v18 = vunpack.c.l.s8.bf16 %v4349_v56 }
 0x694   : > { %v5758_v37 = vpop.f32.mrf.mxu1  ;;  %6051 = vmatprep.subr.bf16.mxu1 %v5165_v47  ;;  %v5116_v47 = vunpack.c.h.s8.bf16 %v4284_v59  ;;  %v4341_v20 = vld [vmem:[%s8115_s14 + $0xb98] sm:$0xff]  ;;  %v4324_v56 = vld [vmem:[%s8115_s14 + $0xb10] sm:$0xff] }
 0x695   : > { %v5229_v39 = vunpack.c.h.s8.bf16 %v4341_v20  ;;  %v5221_v44 = vunpack.c.l.s8.bf16 %v4341_v20 }
 0x696   : > { %6011 = vmatpush1.bf16.msra.mxu0 %v5036_v31  ;;  %v4277_v31 = vld [vmem:[%s8115_s14 + $0x998] sm:$0xff] }
 0x697   : > { %6052 = vmatpush1.bf16.msra.mxu1 %v5164_v35  ;;  %6012 = vmatprep.subr.bf16.mxu0 %v5029_v14  ;;  %v5108_v35 = vunpack.c.l.s8.bf16 %v4284_v59  ;;  %v5236_v14 = vunpack.c.l.s8.bf16 %v4348_v50  ;;  %v5101_v37 = vunpack.c.h.s8.bf16 %v4277_v31  ;;  %v5189_v59 = vunpack.c.l.s8.bf16 %v4325_v49  ;;  %v4445_v50 = vld [vmem:[%s8115_s14 + $0xed8] sm:$0xff] }
 0x698   : > { %6053 = vmatprep.subr.bf16.mxu1 %v5157_v41  ;;  %v4276_v41 = vld [vmem:[%s8115_s14 + $0x990] sm:$0xff]  ;;  %v5437_v20 = vunpack.c.h.s8.bf16 %v4445_v50 }
 0x69a   : > { %6013 = vmatpush1.bf16.msra.mxu0 %v5028_v12  ;;  %v5100_v12 = vunpack.c.h.s8.bf16 %v4276_v41 }
 0x69b   : > { %6054 = vmatpush1.bf16.msra.mxu1 %v5156_v16  ;;  %6014 = vmatprep.subr.bf16.mxu0 %v5021_v48  ;;  %v5228_v16 = vunpack.c.h.s8.bf16 %v4340_v22  ;;  %v5093_v48 = vunpack.c.l.s8.bf16 %v4277_v31  ;;  %v5713_v31 = vadd.f32 %v9277_v32, %v9241_v53  ;;  %v5429_v53 = vunpack.c.l.s8.bf16 %v4445_v50  ;;  %v4437_v32 = vld [vmem:[%s8115_s14 + $0xe98] sm:$0xff]  ;;  %v4364_v50 = vld [vmem:[%s8115_s14 + $0xc50] sm:$0xff] }
 0x69c   : > { %6055 = vmatprep.subr.bf16.mxu1 %v5149_v11  ;;  %v4269_v11 = vld [vmem:[%s8115_s14 + $0x958] sm:$0xff] }
 0x69e   : > { %6015 = vmatpush1.bf16.msra.mxu0 %v5020_v19  ;;  %v5092_v19 = vunpack.c.l.s8.bf16 %v4276_v41 }
 0x69f   : > { %6056 = vmatpush1.bf16.msra.mxu1 %v5148_v46  ;;  %6016 = vmatprep.subr.bf16.mxu0 %v5013_v6  ;;  %v5220_v46 = vunpack.c.l.s8.bf16 %v4340_v22  ;;  %v5085_v6 = vunpack.c.h.s8.bf16 %v4269_v11 }
 0x6a0   : > { %6057 = vmatprep.subr.bf16.mxu1 %v5141_v10  ;;  %v4268_v10 = vld [vmem:[%s8115_s14 + $0x950] sm:$0xff] }
 0x6a2   : > { %6017 = vmatpush1.bf16.msra.mxu0 %v5012_v28  ;;  %v5084_v28 = vunpack.c.h.s8.bf16 %v4268_v10 }
 0x6a3   : > { %6058 = vmatpush1.bf16.msra.mxu1 %v5140_v30  ;;  %6018 = vmatprep.subr.bf16.mxu0 %v5005_v33  ;;  %v5212_v30 = vunpack.c.h.s8.bf16 %v4332_v25  ;;  %v5077_v33 = vunpack.c.l.s8.bf16 %v4269_v11 }
 0x6a4   : > { %6059 = vmatprep.subr.bf16.mxu1 %v5133_v42  ;;  %v4261_v42 = vld [vmem:[%s8115_s14 + $0x918] sm:$0xff] }
 0x6a6   : > { %6019 = vmatpush1.bf16.msra.mxu0 %v5004_v54  ;;  %v5076_v54 = vunpack.c.l.s8.bf16 %v4268_v10 }
 0x6a7   : > { %6060 = vmatpush1.bf16.msra.mxu1 %v5132_v40  ;;  %6020 = vmatprep.subr.bf16.mxu0 %v4997_v26  ;;  %v5204_v40 = vunpack.c.l.s8.bf16 %v4332_v25  ;;  %v5069_v26 = vunpack.c.h.s8.bf16 %v4261_v42  ;;  %v4436_v25 = vld [vmem:[%s8115_s14 + $0xe90] sm:$0xff] }
 0x6a8   : > { %6061 = vmatprep.subr.bf16.mxu1 %v5125_v17  ;;  %v4260_v17 = vld [vmem:[%s8115_s14 + $0x910] sm:$0xff] }
 0x6aa   : > { %6021 = vmatpush1.bf16.msra.mxu0 %v4996_v51  ;;  %v5068_v51 = vunpack.c.h.s8.bf16 %v4260_v17 }
 0x6ab   : > { %6062 = vmatpush1.bf16.msra.mxu1 %v5124_v45  ;;  %6022 = vmatprep.subr.bf16.mxu0 %v5117_v52  ;;  %v5196_v45 = vunpack.c.h.s8.bf16 %v4324_v56  ;;  %v5061_v52 = vunpack.c.l.s8.bf16 %v4261_v42 }
 0x6ac   : > { %6063 = vmatprep.subr.bf16.mxu1 %v5245_v38  ;;  %v4381_v38 = vld [vmem:[%s8115_s14 + $0xcd8] sm:$0xff] }
 0x6ad   : > { %v5301_v22 = vunpack.c.l.s8.bf16 %v4381_v38 }
 0x6ae   : > { %6023 = vmatpush2.bf16.msra.mxu0 %v5116_v47  ;;  %v5060_v47 = vunpack.c.l.s8.bf16 %v4260_v17 }
 0x6af   : > { %6064 = vmatpush2.bf16.msra.mxu1 %v5244_v5  ;;  %6024 = vmatprep.subr.bf16.mxu0 %v5109_v3  ;;  %v5188_v5 = vunpack.c.l.s8.bf16 %v4324_v56  ;;  %v5309_v3 = vunpack.c.h.s8.bf16 %v4381_v38  ;;  %v5413_v56 = vunpack.c.l.s8.bf16 %v4437_v32 }
 0x6b0   : > { %6065 = vmatprep.subr.bf16.mxu1 %v5237_v18  ;;  %v4380_v18 = vld [vmem:[%s8115_s14 + $0xcd0] sm:$0xff] }
 0x6b2   : > { %6025 = vmatpush2.bf16.msra.mxu0 %v5108_v35  ;;  %v4444_v35 = vld [vmem:[%s8115_s14 + $0xed0] sm:$0xff] }
 0x6b3   : > { %6066 = vmatpush2.bf16.msra.mxu1 %v5236_v14  ;;  %6026 = vmatprep.subr.bf16.mxu0 %v5101_v37  ;;  %v5715_v14 = vadd.f32 %v9285_v24, %v9246_v9  ;;  %v5308_v37 = vunpack.c.h.s8.bf16 %v4380_v18  ;;  %v5436_v41 = vunpack.c.h.s8.bf16 %v4444_v35  ;;  %v5428_v61 = vunpack.c.l.s8.bf16 %v4444_v35  ;;  %v4357_v35 = vld [vmem:[%s8115_s14 + $0xc18] sm:$0xff] }
 0x6b4   : > { %6067 = vmatprep.subr.bf16.mxu1 %v5229_v39  ;;  %v5754_v39 = vadd.f32 %v9281_v2, %v5713_v31  ;;  %v5506_v2 = vld [vmem:[%s8117_s11] sm:$0xff] }
 0x6b6   : > { %6027 = vmatpush2.bf16.msra.mxu0 %v5100_v12  ;;  %v4373_v12 = vld [vmem:[%s8115_s14 + $0xc98] sm:$0xff] }
 0x6b7   : > { %6068 = vmatpush2.bf16.msra.mxu1 %v5228_v16  ;;  %6028 = vmatprep.subr.bf16.mxu0 %v5093_v48  ;;  %v5756_v48 = vadd.f32 %v9289_v62, %v5715_v14  ;;  %v4421_v14 = vld [vmem:[%s8115_s14 + $0xe18] sm:$0xff] }
 0x6b8   : > { %6069 = vmatprep.subr.bf16.mxu1 %v5221_v44  ;;  %v5300_v44 = vunpack.c.l.s8.bf16 %v4380_v18 }
 0x6ba   : > { %6029 = vmatpush2.bf16.msra.mxu0 %v5092_v19  ;;  %v5293_v19 = vunpack.c.h.s8.bf16 %v4373_v12 }
 0x6bb   : > { %6070 = vmatpush2.bf16.msra.mxu1 %v5220_v46  ;;  %6030 = vmatprep.subr.bf16.mxu0 %v5085_v6  ;;  %v4372_v46 = vld [vmem:[%s8115_s14 + $0xc90] sm:$0xff] }
 0x6bc   : > { %6071 = vmatprep.subr.bf16.mxu1 %v5213_v4  ;;  %v5421_v4 = vunpack.c.h.s8.bf16 %v4437_v32  ;;  %v5292_v49 = vunpack.c.h.s8.bf16 %v4372_v46 }
 0x6be   : > { %6031 = vmatpush2.bf16.msra.mxu0 %v5084_v28  ;;  %v5507_v28 = vld [vmem:[%s8117_s11 + $0x8] sm:$0xff] }
 0x6bf   : > { %6072 = vmatpush2.bf16.msra.mxu1 %v5212_v30  ;;  %6032 = vmatprep.subr.bf16.mxu0 %v5077_v33 }
 0x6c0   : > { %6073 = vmatprep.subr.bf16.mxu1 %v5205_v34 }
 0x6c2   : > { %6033 = vmatpush2.bf16.msra.mxu0 %v5076_v54 }
 0x6c3   : > { %6074 = vmatpush2.bf16.msra.mxu1 %v5204_v40  ;;  %6034 = vmatprep.subr.bf16.mxu0 %v5069_v26  ;;  %v5420_v40 = vunpack.c.h.s8.bf16 %v4436_v25  ;;  %v5285_v26 = vunpack.c.l.s8.bf16 %v4373_v12  ;;  %v5389_v12 = vunpack.c.h.s8.bf16 %v4421_v14 }
 0x6c4   : > { %6075 = vmatprep.subr.bf16.mxu1 %v5197_v27 }
 0x6c6   : > { %6035 = vmatpush2.bf16.msra.mxu0 %v5068_v51  ;;  %v4365_v51 = vld [vmem:[%s8115_s14 + $0xc58] sm:$0xff] }
 0x6c7   : > { %6076 = vmatpush2.bf16.msra.mxu1 %v5196_v45  ;;  %6036 = vmatprep.subr.bf16.mxu0 %v5061_v52  ;;  %v4429_v45 = vld [vmem:[%s8115_s14 + $0xe58] sm:$0xff]  ;;  %v5284_v52 = vunpack.c.l.s8.bf16 %v4372_v46  ;;  %v5277_v38 = vunpack.c.h.s8.bf16 %v4365_v51  ;;  %v5269_v31 = vunpack.c.l.s8.bf16 %v4365_v51 }
 0x6c8   : > { %6077 = vmatprep.subr.bf16.mxu1 %v5189_v59  ;;  %v5412_v59 = vunpack.c.l.s8.bf16 %v4436_v25  ;;  %v4397_v51 = vld [vmem:[%s8115_s14 + $0xd58] sm:$0xff] }
 0x6ca   : > { %6037 = vmatpush2.bf16.msra.mxu0 %v5060_v47  ;;  %v5405_v47 = vunpack.c.h.s8.bf16 %v4429_v45 }
 0x6cb   : > { %6078 = vmatpush2.bf16.msra.mxu1 %v5188_v5  ;;  %6088 = vmatprep.subr.bf16.mxu0 %v5309_v3  ;;  %v4428_v5 = vld [vmem:[%s8115_s14 + $0xe50] sm:$0xff]  ;;  %v5276_v3 = vunpack.c.h.s8.bf16 %v4364_v50 }
 0x6cc   : > { %6129 = vmatprep.subr.bf16.mxu1 %v5437_v20  ;;  %v5404_v18 = vunpack.c.h.s8.bf16 %v4428_v5  ;;  %v5397_v20 = vunpack.c.l.s8.bf16 %v4429_v45  ;;  %v4461_v45 = vld [vmem:[%s8115_s14 + $0xf58] sm:$0xff] }
 0x6cd   : > { %v5794_v16 = vpop.f32.mrf.mxu0  ;;  %6039 = vmatmul.mubr.bf16.vlgmr.msra.gmra.mxu0 %v9118_v21 }
 0x6ce   : > { %v5795_v9 = vadd.f32 %v5794_v16, %v5754_v39  ;;  %v5835_v24 = vpop.f32.mrf.mxu1  ;;  %6080 = vmatmul.mubr.bf16.vlgmr.msra.gmra.mxu1 %v9120_v23  ;;  %6089 = vmatpush1.bf16.msra.mxu0 %v5308_v37  ;;  %v5268_v37 = vunpack.c.l.s8.bf16 %v4364_v50  ;;  %v5261_v39 = vunpack.c.h.s8.bf16 %v4357_v35  ;;  %v4420_v16 = vld [vmem:[%s8115_s14 + $0xe10] sm:$0xff] }
 0x6cf   : > { %6120 = vmatprep.mubr.bf16.mxu0 %v9123_v60  ;;  %6130 = vmatpush1.bf16.msra.mxu1 %v5436_v41  ;;  %v5796_v11 = vpop.f32.mrf.mxu0  ;;  %v5396_v41 = vunpack.c.l.s8.bf16 %v4428_v5  ;;  %v5388_v32 = vunpack.c.h.s8.bf16 %v4420_v16  ;;  %v4396_v50 = vld [vmem:[%s8115_s14 + $0xd50] sm:$0xff] }
 0x6d0   : > { %v5836_v6 = vadd.f32 %v5835_v24, %v5795_v9  ;;  %6161 = vmatprep.mubr.bf16.mxu1 %v9177_v55  ;;  %v5797_v62 = vadd.f32 %v5796_v11, %v5756_v48  ;;  %v5837_v10 = vpop.f32.mrf.mxu1  ;;  %6090 = vmatprep.subr.bf16.mxu0 %v5301_v22  ;;  %v4356_v22 = vld [vmem:[%s8115_s14 + $0xc10] sm:$0xff]  ;;  %v5253_v48 = vunpack.c.l.s8.bf16 %v4357_v35  ;;  %v5381_v9 = vunpack.c.l.s8.bf16 %v4421_v14  ;;  %v4413_v24 = vld [vmem:[%s8115_s14 + $0xdd8] sm:$0xff] }
 0x6d1   : > { %v5798_v30 = vpop.f32.mrf.mxu0  ;;  %6131 = vmatprep.subr.bf16.mxu1 %v5429_v53  ;;  %v5260_v53 = vunpack.c.h.s8.bf16 %v4356_v22  ;;  %v5380_v11 = vunpack.c.l.s8.bf16 %v4420_v16  ;;  %v4460_v5 = vld [vmem:[%s8115_s14 + $0xf50] sm:$0xff]  ;;  %v4389_v35 = vld [vmem:[%s8115_s14 + $0xd18] sm:$0xff] }
 0x6d2   : > { %v6826_v33 = vadd.f32 %v5836_v6, %v5506_v2  ;;  %v5838_v34 = vadd.f32 %v5837_v10, %v5797_v62  ;;  %v5839_v42 = vpop.f32.mrf.mxu1  ;;  %6091 = vmatpush1.bf16.msra.mxu0 %v5300_v44  ;;  %v4477_v44 = vld [vmem:[%s8115_s14 + $0xfd8] sm:$0xff]  ;;  %v5252_v2 = vunpack.c.l.s8.bf16 %v4356_v22  ;;  %v4476_v6 = vld [vmem:[%s8115_s14 + $0xfd0] sm:$0xff] }
 0x6d3   : > { %6132 = vmatpush1.bf16.msra.mxu1 %v5428_v61  ;;  %v5799_v54 = vpop.f32.mrf.mxu0  ;;  %6092 = vmatprep.subr.bf16.mxu0 %v5293_v19  ;;  %v5373_v61 = vunpack.c.h.s8.bf16 %v4413_v24  ;;  %v4412_v19 = vld [vmem:[%s8115_s14 + $0xdd0] sm:$0xff]  ;;  %v5501_v46 = vunpack.c.h.s8.bf16 %v4477_v44  ;;  %v5500_v10 = vunpack.c.h.s8.bf16 %v4476_v6  ;;  %v5493_v25 = vunpack.c.l.s8.bf16 %v4477_v44  ;;  %v4469_v30 = vld [vmem:[%s8115_s14 + $0xf98] sm:$0xff]  ;;  %v4063_v44 = vld [vmem:[%s8115_s14 + $0x2e8] sm:$0xff] }
 0x6d4   : > { %6834 = vst [vmem:[%s8117_s11] sm:$0xff] %v6826_v33  ;;  %v6827_v17 = vadd.f32 %v5838_v34, %v5507_v28  ;;  %v5840_v27 = vpop.f32.mrf.mxu1  ;;  %6133 = vmatprep.subr.bf16.mxu1 %v5421_v4  ;;  %v5372_v62 = vunpack.c.h.s8.bf16 %v4412_v19  ;;  %v5365_v4 = vunpack.c.l.s8.bf16 %v4413_v24  ;;  %v4405_v28 = vld [vmem:[%s8115_s14 + $0xd98] sm:$0xff]  ;;  %v5364_v33 = vunpack.c.l.s8.bf16 %v4412_v19  ;;  %v4388_v22 = vld [vmem:[%s8115_s14 + $0xd10] sm:$0xff]  ;;  %v3999_v24 = vld [vmem:[%s8115_s14 + $0xe8] sm:$0xff] }
 0x6d5   : > { %v5492_v34 = vunpack.c.l.s8.bf16 %v4476_v6  ;;  %v5357_v42 = vunpack.c.h.s8.bf16 %v4405_v28  ;;  %v5485_v54 = vunpack.c.h.s8.bf16 %v4469_v30  ;;  %v5349_v27 = vunpack.c.l.s8.bf16 %v4405_v28  ;;  %v4453_v14 = vld [vmem:[%s8115_s14 + $0xf18] sm:$0xff]  ;;  %v4452_v16 = vld [vmem:[%s8115_s14 + $0xf10] sm:$0xff]  ;;  %v3998_v19 = vld [vmem:[%s8115_s14 + $0xe0] sm:$0xff] }
 0x6d6   : > { %6835 = vst [vmem:[%s8117_s11 + $0x8] sm:$0xff] %v6827_v17  ;;  %6093 = vmatpush1.bf16.msra.mxu0 %v5292_v49  ;;  %v4404_v49 = vld [vmem:[%s8115_s14 + $0xd90] sm:$0xff]  ;;  %v4062_v6 = vld [vmem:[%s8115_s14 + $0x2e0] sm:$0xff] }
 0x6d7   : > { %6134 = vmatpush1.bf16.msra.mxu1 %v5420_v40  ;;  %6094 = vmatprep.subr.bf16.mxu0 %v5285_v26  ;;  %v4468_v40 = vld [vmem:[%s8115_s14 + $0xf90] sm:$0xff]  ;;  %v5356_v26 = vunpack.c.h.s8.bf16 %v4404_v49 }
 0x6d8   : > { %6135 = vmatprep.subr.bf16.mxu1 %v5413_v56  ;;  %v5484_v17 = vunpack.c.h.s8.bf16 %v4468_v40  ;;  %v5477_v56 = vunpack.c.l.s8.bf16 %v4469_v30  ;;  %v4663_v30 = vunpack.c.l.s8.bf16 %v4063_v44 }
 0x6da   : > { %6095 = vmatpush1.bf16.msra.mxu0 %v5284_v52  ;;  %v5348_v52 = vunpack.c.l.s8.bf16 %v4404_v49 }
 0x6db   : > { %6136 = vmatpush1.bf16.msra.mxu1 %v5412_v59  ;;  %6096 = vmatprep.subr.bf16.mxu0 %v5277_v38  ;;  %v5476_v59 = vunpack.c.l.s8.bf16 %v4468_v40  ;;  %v5341_v38 = vunpack.c.h.s8.bf16 %v4397_v51  ;;  %v4662_v40 = vunpack.c.l.s8.bf16 %v4062_v6 }
 0x6dc   : > { %6137 = vmatprep.subr.bf16.mxu1 %v5405_v47  ;;  %v5469_v47 = vunpack.c.h.s8.bf16 %v4461_v45 }
 0x6de   : > { %6097 = vmatpush1.bf16.msra.mxu0 %v5276_v3  ;;  %v5340_v3 = vunpack.c.h.s8.bf16 %v4396_v50 }
 0x6df   : > { %6138 = vmatpush1.bf16.msra.mxu1 %v5404_v18  ;;  %6098 = vmatprep.subr.bf16.mxu0 %v5269_v31  ;;  %v5468_v18 = vunpack.c.h.s8.bf16 %v4460_v5  ;;  %v5333_v31 = vunpack.c.l.s8.bf16 %v4397_v51  ;;  %v4054_v51 = vld [vmem:[%s8115_s14 + $0x2a0] sm:$0xff] }
 0x6e0   : > { %6139 = vmatprep.subr.bf16.mxu1 %v5397_v20  ;;  %v5461_v20 = vunpack.c.l.s8.bf16 %v4461_v45 }
 0x6e2   : > { %6099 = vmatpush1.bf16.msra.mxu0 %v5268_v37  ;;  %v5332_v37 = vunpack.c.l.s8.bf16 %v4396_v50 }
 0x6e3   : > { %6140 = vmatpush1.bf16.msra.mxu1 %v5396_v41  ;;  %6100 = vmatprep.subr.bf16.mxu0 %v5261_v39  ;;  %v5460_v41 = vunpack.c.l.s8.bf16 %v4460_v5  ;;  %v5325_v39 = vunpack.c.h.s8.bf16 %v4389_v35 }
 0x6e4   : > { %6141 = vmatprep.subr.bf16.mxu1 %v5389_v12  ;;  %v5453_v12 = vunpack.c.h.s8.bf16 %v4453_v14 }
 0x6e6   : > { %6101 = vmatpush1.bf16.msra.mxu0 %v5260_v53  ;;  %v5324_v53 = vunpack.c.h.s8.bf16 %v4388_v22 }
 0x6e7   : > { %6142 = vmatpush1.bf16.msra.mxu1 %v5388_v32  ;;  %6102 = vmatprep.subr.bf16.mxu0 %v5253_v48  ;;  %v5452_v32 = vunpack.c.h.s8.bf16 %v4452_v16  ;;  %v5317_v48 = vunpack.c.l.s8.bf16 %v4389_v35 }
 0x6e8   : > { %6143 = vmatprep.subr.bf16.mxu1 %v5381_v9  ;;  %v5445_v9 = vunpack.c.l.s8.bf16 %v4453_v14  ;;  %v4646_v14 = vunpack.c.l.s8.bf16 %v4054_v51 }
 0x6ea   : > { %6103 = vmatpush1.bf16.msra.mxu0 %v5252_v2  ;;  %v5316_v2 = vunpack.c.l.s8.bf16 %v4388_v22  ;;  %v4046_v22 = vld [vmem:[%s8115_s14 + $0x260] sm:$0xff] }
 0x6eb   : > { %6144 = vmatpush1.bf16.msra.mxu1 %v5380_v11  ;;  %6104 = vmatprep.subr.bf16.mxu0 %v5373_v61  ;;  %v5444_v11 = vunpack.c.l.s8.bf16 %v4452_v16  ;;  %v4543_v61 = vunpack.c.h.s8.bf16 %v3999_v24  ;;  %v4638_v16 = vunpack.c.h.s8.bf16 %v4046_v22 }
 0x6ec   : > { %6145 = vmatprep.subr.bf16.mxu1 %v5501_v46  ;;  %v4671_v46 = vunpack.c.h.s8.bf16 %v4063_v44  ;;  %v4630_v44 = vunpack.c.l.s8.bf16 %v4046_v22  ;;  %v4014_v22 = vld [vmem:[%s8115_s14 + $0x160] sm:$0xff] }
 0x6ee   : > { %6105 = vmatpush2.bf16.msra.mxu0 %v5372_v62  ;;  %v4542_v62 = vunpack.c.h.s8.bf16 %v3998_v19 }
 0x6ef   : > { %6146 = vmatpush2.bf16.msra.mxu1 %v5500_v10  ;;  %6106 = vmatprep.subr.bf16.mxu0 %v5365_v4  ;;  %v4670_v10 = vunpack.c.h.s8.bf16 %v4062_v6  ;;  %v4535_v4 = vunpack.c.l.s8.bf16 %v3999_v24 }
 0x6f0   : > { %6147 = vmatprep.subr.bf16.mxu1 %v5493_v25  ;;  %v3991_v25 = vld [vmem:[%s8115_s14 + $0xa8] sm:$0xff] }
 0x6f1   : > { %v4519_v5 = vunpack.c.l.s8.bf16 %v3991_v25 }
 0x6f2   : > { %6107 = vmatpush2.bf16.msra.mxu0 %v5364_v33  ;;  %v4055_v33 = vld [vmem:[%s8115_s14 + $0x2a8] sm:$0xff] }
 0x6f3   : > { %6148 = vmatpush2.bf16.msra.mxu1 %v5492_v34  ;;  %6108 = vmatprep.subr.bf16.mxu0 %v5357_v42  ;;  %v4534_v42 = vunpack.c.l.s8.bf16 %v3998_v19  ;;  %v4038_v19 = vld [vmem:[%s8115_s14 + $0x220] sm:$0xff] }
 0x6f4   : > { %6149 = vmatprep.subr.bf16.mxu1 %v5485_v54  ;;  %v4622_v6 = vunpack.c.h.s8.bf16 %v4038_v19 }
 0x6f6   : > { %6109 = vmatpush2.bf16.msra.mxu0 %v5356_v26  ;;  %v4527_v26 = vunpack.c.h.s8.bf16 %v3991_v25  ;;  %v4095_v25 = vld [vmem:[%s8115_s14 + $0x3e8] sm:$0xff] }
 0x6f7   : > { %6150 = vmatpush2.bf16.msra.mxu1 %v5484_v17  ;;  %6110 = vmatprep.subr.bf16.mxu0 %v5349_v27  ;;  %v3990_v17 = vld [vmem:[%s8115_s14 + $0xa0] sm:$0xff] }
 0x6f8   : > { %6151 = vmatprep.subr.bf16.mxu1 %v5477_v56  ;;  %v4655_v56 = vunpack.c.h.s8.bf16 %v4055_v33  ;;  %v4518_v35 = vunpack.c.l.s8.bf16 %v3990_v17 }
 0x6fa   : > { %6111 = vmatpush2.bf16.msra.mxu0 %v5348_v52 }
 0x6fb   : > { %6152 = vmatpush2.bf16.msra.mxu1 %v5476_v59  ;;  %6112 = vmatprep.subr.bf16.mxu0 %v5341_v38  ;;  %v4526_v38 = vunpack.c.h.s8.bf16 %v3990_v17 }
 0x6fc   : > { %6153 = vmatprep.subr.bf16.mxu1 %v5469_v47  ;;  %v4654_v47 = vunpack.c.h.s8.bf16 %v4054_v51  ;;  %v4087_v51 = vld [vmem:[%s8115_s14 + $0x3a8] sm:$0xff] }
 0x6fe   : > { %6113 = vmatpush2.bf16.msra.mxu0 %v5340_v3 }
 0x6ff   : > { %6154 = vmatpush2.bf16.msra.mxu1 %v5468_v18  ;;  %6114 = vmatprep.subr.bf16.mxu0 %v5333_v31  ;;  %v4647_v18 = vunpack.c.l.s8.bf16 %v4055_v33  ;;  %v3983_v31 = vld [vmem:[%s8115_s14 + $0x68] sm:$0xff] }
 0x700   : > { %6155 = vmatprep.subr.bf16.mxu1 %v5461_v20  ;;  %v4047_v20 = vld [vmem:[%s8115_s14 + $0x268] sm:$0xff] }
 0x702   : > { %6115 = vmatpush2.bf16.msra.mxu0 %v5332_v37  ;;  %v4511_v37 = vunpack.c.h.s8.bf16 %v3983_v31 }
 0x703   : > { %6156 = vmatpush2.bf16.msra.mxu1 %v5460_v41  ;;  %6116 = vmatprep.subr.bf16.mxu0 %v5325_v39  ;;  %v3982_v41 = vld [vmem:[%s8115_s14 + $0x60] sm:$0xff]  ;;  %v4639_v39 = vunpack.c.h.s8.bf16 %v4047_v20 }
 0x704   : > { %6157 = vmatprep.subr.bf16.mxu1 %v5453_v12  ;;  %v4510_v12 = vunpack.c.h.s8.bf16 %v3982_v41  ;;  %v4502_v24 = vunpack.c.l.s8.bf16 %v3982_v41 }
 0x706   : > { %6117 = vmatpush2.bf16.msra.mxu0 %v5324_v53  ;;  %v4503_v53 = vunpack.c.l.s8.bf16 %v3983_v31 }
 0x707   : > { %6158 = vmatpush2.bf16.msra.mxu1 %v5452_v32  ;;  %6118 = vmatprep.subr.bf16.mxu0 %v5317_v48  ;;  %v4631_v32 = vunpack.c.l.s8.bf16 %v4047_v20  ;;  %v3975_v48 = vld [vmem:[%s8115_s14 + $0x28] sm:$0xff]  ;;  %v4711_v20 = vunpack.c.l.s8.bf16 %v4087_v51 }
 0x708   : > { %6159 = vmatprep.subr.bf16.mxu1 %v5445_v9  ;;  %v4039_v9 = vld [vmem:[%s8115_s14 + $0x228] sm:$0xff] }
 0x70a   : > { %6119 = vmatpush2.bf16.msra.mxu0 %v5316_v2  ;;  %v4495_v2 = vunpack.c.h.s8.bf16 %v3975_v48 }
 0x70b   : > { %6160 = vmatpush2.bf16.msra.mxu1 %v5444_v11  ;;  %6170 = vmatprep.subr.bf16.mxu0 %v4543_v61  ;;  %v3974_v11 = vld [vmem:[%s8115_s14 + $0x20] sm:$0xff]  ;;  %v4623_v61 = vunpack.c.h.s8.bf16 %v4039_v9 }
 0x70c   : > { %6211 = vmatprep.subr.bf16.mxu1 %v4671_v46  ;;  %v4494_v46 = vunpack.c.h.s8.bf16 %v3974_v11 }
 0x70d   : > { %v5876_v28 = vpop.f32.mrf.mxu0  ;;  %6121 = vmatmul.mubr.bf16.vlgmr.msra.gmra.mxu0 %v9190_v15 }
 0x70e   : > { %v5917_v34 = vpop.f32.mrf.mxu1  ;;  %6162 = vmatmul.mubr.bf16.vlgmr.msra.gmra.mxu1 %v9192_v8  ;;  %6171 = vmatpush1.bf16.msra.mxu0 %v4542_v62  ;;  %v4487_v62 = vunpack.c.l.s8.bf16 %v3975_v48 }
 0x70f   : > { %v9370_v49 = vadd.f32 %v5917_v34, %v5876_v28  ;;  %6202 = vmatprep.mubr.bf16.mxu0 %v8849_v36  ;;  %6212 = vmatpush1.bf16.msra.mxu1 %v4670_v10  ;;  %v5878_v54 = vpop.f32.mrf.mxu0  ;;  %v4615_v10 = vunpack.c.l.s8.bf16 %v4039_v9  ;;  %v4486_v28 = vunpack.c.l.s8.bf16 %v3974_v11  ;;  %v4030_v34 = vld [vmem:[%s8115_s14 + $0x1e0] sm:$0xff] }
 0x710   : > { %6243 = vmatprep.mubr.bf16.mxu1 %v8852_v29  ;;  %v5919_v27 = vpop.f32.mrf.mxu1  ;;  %6172 = vmatprep.subr.bf16.mxu0 %v4535_v4  ;;  %v4031_v4 = vld [vmem:[%s8115_s14 + $0x1e8] sm:$0xff] }
 0x711   : > { %v9376_v45 = vadd.f32 %v5919_v27, %v5878_v54  ;;  %v5880_v52 = vpop.f32.mrf.mxu0  ;;  %6213 = vmatprep.subr.bf16.mxu1 %v4663_v30  ;;  %v4614_v30 = vunpack.c.l.s8.bf16 %v4038_v19  ;;  %v4607_v33 = vunpack.c.h.s8.bf16 %v4031_v4  ;;  %v4094_v54 = vld [vmem:[%s8115_s14 + $0x3e0] sm:$0xff]  ;;  %v4599_v17 = vunpack.c.l.s8.bf16 %v4031_v4 }
 0x712   : > { %v5921_v59 = vpop.f32.mrf.mxu1  ;;  %6173 = vmatpush1.bf16.msra.mxu0 %v4534_v42  ;;  %v4735_v42 = vunpack.c.h.s8.bf16 %v4095_v25  ;;  %v4727_v27 = vunpack.c.l.s8.bf16 %v4095_v25  ;;  %v4598_v52 = vunpack.c.l.s8.bf16 %v4030_v34  ;;  %v4006_v19 = vld [vmem:[%s8115_s14 + $0x120] sm:$0xff] }
 0x713   : > { %6214 = vmatpush1.bf16.msra.mxu1 %v4662_v40  ;;  %v5881_v50 = vpop.f32.mrf.mxu0  ;;  %6174 = vmatprep.subr.bf16.mxu0 %v4527_v26  ;;  %v4606_v40 = vunpack.c.h.s8.bf16 %v4030_v34  ;;  %v4734_v26 = vunpack.c.h.s8.bf16 %v4094_v54  ;;  %v4726_v59 = vunpack.c.l.s8.bf16 %v4094_v54  ;;  %v4126_v54 = vld [vmem:[%s8115_s14 + $0x4e0] sm:$0xff] }
 0x714   : > { %v5922_v3 = vpop.f32.mrf.mxu1  ;;  %6215 = vmatprep.subr.bf16.mxu1 %v4655_v56  ;;  %v4023_v56 = vld [vmem:[%s8115_s14 + $0x1a8] sm:$0xff]  ;;  %v4022_v50 = vld [vmem:[%s8115_s14 + $0x1a0] sm:$0xff] }
 0x715   : > { %v4590_v3 = vunpack.c.h.s8.bf16 %v4022_v50  ;;  %v4583_v31 = vunpack.c.l.s8.bf16 %v4023_v56 }
 0x716   : > { %6175 = vmatpush1.bf16.msra.mxu0 %v4526_v38  ;;  %v4591_v38 = vunpack.c.h.s8.bf16 %v4023_v56 }
 0x717   : > { %6216 = vmatpush1.bf16.msra.mxu1 %v4654_v47  ;;  %6176 = vmatprep.subr.bf16.mxu0 %v4519_v5  ;;  %v4719_v47 = vunpack.c.h.s8.bf16 %v4087_v51  ;;  %v4086_v5 = vld [vmem:[%s8115_s14 + $0x3a0] sm:$0xff]  ;;  %v4119_v51 = vld [vmem:[%s8115_s14 + $0x4a8] sm:$0xff] }
 0x718   : > { %6217 = vmatprep.subr.bf16.mxu1 %v4647_v18  ;;  %v4718_v18 = vunpack.c.h.s8.bf16 %v4086_v5  ;;  %v4710_v41 = vunpack.c.l.s8.bf16 %v4086_v5  ;;  %v4790_v5 = vunpack.c.l.s8.bf16 %v4126_v54 }
 0x71a   : > { %6177 = vmatpush1.bf16.msra.mxu0 %v4518_v35  ;;  %v4015_v35 = vld [vmem:[%s8115_s14 + $0x168] sm:$0xff] }
 0x71b   : > { %6218 = vmatpush1.bf16.msra.mxu1 %v4646_v14  ;;  %6178 = vmatprep.subr.bf16.mxu0 %v4511_v37  ;;  %v4079_v14 = vld [vmem:[%s8115_s14 + $0x368] sm:$0xff]  ;;  %v4582_v37 = vunpack.c.l.s8.bf16 %v4022_v50  ;;  %v4567_v48 = vunpack.c.l.s8.bf16 %v4015_v35 }
 0x71c   : > { %6219 = vmatprep.subr.bf16.mxu1 %v4639_v39  ;;  %v4575_v39 = vunpack.c.h.s8.bf16 %v4015_v35  ;;  %v4695_v9 = vunpack.c.l.s8.bf16 %v4079_v14 }
 0x71e   : > { %6179 = vmatpush1.bf16.msra.mxu0 %v4510_v12  ;;  %v4703_v12 = vunpack.c.h.s8.bf16 %v4079_v14 }
 0x71f   : > { %6220 = vmatpush1.bf16.msra.mxu1 %v4638_v16  ;;  %6180 = vmatprep.subr.bf16.mxu0 %v4503_v53  ;;  %v4078_v16 = vld [vmem:[%s8115_s14 + $0x360] sm:$0xff]  ;;  %v4574_v53 = vunpack.c.h.s8.bf16 %v4014_v22 }
 0x720   : > { %6221 = vmatprep.subr.bf16.mxu1 %v4631_v32  ;;  %v4702_v32 = vunpack.c.h.s8.bf16 %v4078_v16  ;;  %v4694_v11 = vunpack.c.l.s8.bf16 %v4078_v16 }
 0x722   : > { %6181 = vmatpush1.bf16.msra.mxu0 %v4502_v24  ;;  %v4007_v24 = vld [vmem:[%s8115_s14 + $0x128] sm:$0xff] }
 0x723   : > { %6222 = vmatpush1.bf16.msra.mxu1 %v4630_v44  ;;  %6182 = vmatprep.subr.bf16.mxu0 %v4495_v2  ;;  %v4071_v44 = vld [vmem:[%s8115_s14 + $0x328] sm:$0xff]  ;;  %v4566_v2 = vunpack.c.l.s8.bf16 %v4014_v22  ;;  %v4551_v4 = vunpack.c.l.s8.bf16 %v4007_v24 }
 0x724   : > { %6223 = vmatprep.subr.bf16.mxu1 %v4623_v61  ;;  %v4559_v61 = vunpack.c.h.s8.bf16 %v4007_v24  ;;  %v4679_v25 = vunpack.c.l.s8.bf16 %v4071_v44  ;;  %v4111_v24 = vld [vmem:[%s8115_s14 + $0x468] sm:$0xff] }
 0x726   : > { %6183 = vmatpush1.bf16.msra.mxu0 %v4494_v46  ;;  %v4687_v46 = vunpack.c.h.s8.bf16 %v4071_v44  ;;  %v4175_v44 = vld [vmem:[%s8115_s14 + $0x668] sm:$0xff] }
 0x727   : > { %6224 = vmatpush1.bf16.msra.mxu1 %v4622_v6  ;;  %6184 = vmatprep.subr.bf16.mxu0 %v4487_v62  ;;  %v4070_v6 = vld [vmem:[%s8115_s14 + $0x320] sm:$0xff]  ;;  %v4558_v62 = vunpack.c.h.s8.bf16 %v4006_v19 }
 0x728   : > { %6225 = vmatprep.subr.bf16.mxu1 %v4615_v10  ;;  %v4686_v10 = vunpack.c.h.s8.bf16 %v4070_v6  ;;  %v4678_v34 = vunpack.c.l.s8.bf16 %v4070_v6  ;;  %v4174_v6 = vld [vmem:[%s8115_s14 + $0x660] sm:$0xff] }
 0x72a   : > { %6185 = vmatpush1.bf16.msra.mxu0 %v4486_v28  ;;  %v4127_v28 = vld [vmem:[%s8115_s14 + $0x4e8] sm:$0xff] }
 0x72b   : > { %6226 = vmatpush1.bf16.msra.mxu1 %v4614_v30  ;;  %6186 = vmatprep.subr.bf16.mxu0 %v4607_v33  ;;  %v4191_v30 = vld [vmem:[%s8115_s14 + $0x6e8] sm:$0xff]  ;;  %v4550_v33 = vunpack.c.l.s8.bf16 %v4006_v19  ;;  %v4791_v56 = vunpack.c.l.s8.bf16 %v4127_v28  ;;  %v4110_v19 = vld [vmem:[%s8115_s14 + $0x460] sm:$0xff] }
 0x72c   : > { %6227 = vmatprep.subr.bf16.mxu1 %v4735_v42  ;;  %v4799_v42 = vunpack.c.h.s8.bf16 %v4127_v28  ;;  %v4103_v28 = vld [vmem:[%s8115_s14 + $0x428] sm:$0xff] }
 0x72e   : > { %6187 = vmatpush2.bf16.msra.mxu0 %v4606_v40  ;;  %v4927_v40 = vunpack.c.h.s8.bf16 %v4191_v30 }
 0x72f   : > { %6228 = vmatpush2.bf16.msra.mxu1 %v4734_v26  ;;  %6188 = vmatprep.subr.bf16.mxu0 %v4599_v17  ;;  %v4190_v26 = vld [vmem:[%s8115_s14 + $0x6e0] sm:$0xff]  ;;  %v4798_v17 = vunpack.c.h.s8.bf16 %v4126_v54 }
 0x730   : > { %6229 = vmatprep.subr.bf16.mxu1 %v4727_v27  ;;  %v4926_v27 = vunpack.c.h.s8.bf16 %v4190_v26  ;;  %v4102_v54 = vld [vmem:[%s8115_s14 + $0x420] sm:$0xff] }
 0x732   : > { %6189 = vmatpush2.bf16.msra.mxu0 %v4598_v52 }
 0x733   : > { %6230 = vmatpush2.bf16.msra.mxu1 %v4726_v59  ;;  %6190 = vmatprep.subr.bf16.mxu0 %v4591_v38  ;;  %v4919_v59 = vunpack.c.l.s8.bf16 %v4191_v30  ;;  %v4183_v38 = vld [vmem:[%s8115_s14 + $0x6a8] sm:$0xff] }
 0x734   : > { %6231 = vmatprep.subr.bf16.mxu1 %v4719_v47  ;;  %v4167_v30 = vld [vmem:[%s8115_s14 + $0x628] sm:$0xff] }
 0x736   : > { %6191 = vmatpush2.bf16.msra.mxu0 %v4590_v3 }
 0x737   : > { %6232 = vmatpush2.bf16.msra.mxu1 %v4718_v18  ;;  %6192 = vmatprep.subr.bf16.mxu0 %v4583_v31  ;;  %v4918_v18 = vunpack.c.l.s8.bf16 %v4190_v26  ;;  %v4783_v31 = vunpack.c.h.s8.bf16 %v4119_v51  ;;  %v4166_v26 = vld [vmem:[%s8115_s14 + $0x620] sm:$0xff] }
 0x738   : > { %6233 = vmatprep.subr.bf16.mxu1 %v4711_v20  ;;  %v4118_v20 = vld [vmem:[%s8115_s14 + $0x4a0] sm:$0xff] }
 0x739   : > { %v4782_v16 = vunpack.c.h.s8.bf16 %v4118_v20 }
 0x73a   : > { %6193 = vmatpush2.bf16.msra.mxu0 %v4582_v37  ;;  %v4911_v37 = vunpack.c.h.s8.bf16 %v4183_v38 }
 0x73b   : > { %6234 = vmatpush2.bf16.msra.mxu1 %v4710_v41  ;;  %6194 = vmatprep.subr.bf16.mxu0 %v4575_v39  ;;  %v4182_v41 = vld [vmem:[%s8115_s14 + $0x6a0] sm:$0xff] }
 0x73c   : > { %6235 = vmatprep.subr.bf16.mxu1 %v4703_v12 }
 0x73e   : > { %6195 = vmatpush2.bf16.msra.mxu0 %v4574_v53 }
 0x73f   : > { %6236 = vmatpush2.bf16.msra.mxu1 %v4702_v32  ;;  %6196 = vmatprep.subr.bf16.mxu0 %v4567_v48  ;;  %v4910_v32 = vunpack.c.h.s8.bf16 %v4182_v41 }
 0x740   : > { %6237 = vmatprep.subr.bf16.mxu1 %v4695_v9  ;;  %v4903_v9 = vunpack.c.l.s8.bf16 %v4183_v38  ;;  %v4742_v38 = vunpack.c.l.s8.bf16 %v4102_v54 }
 0x742   : > { %6197 = vmatpush2.bf16.msra.mxu0 %v4566_v2  ;;  %v4774_v2 = vunpack.c.l.s8.bf16 %v4118_v20 }
 0x743   : > { %6238 = vmatpush2.bf16.msra.mxu1 %v4694_v11  ;;  %6198 = vmatprep.subr.bf16.mxu0 %v4559_v61  ;;  %v4902_v11 = vunpack.c.l.s8.bf16 %v4182_v41  ;;  %v4767_v61 = vunpack.c.h.s8.bf16 %v4111_v24  ;;  %v4215_v41 = vld [vmem:[%s8115_s14 + $0x7a8] sm:$0xff] }
 0x744   : > { %6239 = vmatprep.subr.bf16.mxu1 %v4687_v46  ;;  %v4895_v46 = vunpack.c.h.s8.bf16 %v4175_v44 }
 0x746   : > { %6199 = vmatpush2.bf16.msra.mxu0 %v4558_v62  ;;  %v4766_v62 = vunpack.c.h.s8.bf16 %v4110_v19 }
 0x747   : > { %6240 = vmatpush2.bf16.msra.mxu1 %v4686_v10  ;;  %6200 = vmatprep.subr.bf16.mxu0 %v4551_v4  ;;  %v4894_v10 = vunpack.c.h.s8.bf16 %v4174_v6  ;;  %v4759_v4 = vunpack.c.l.s8.bf16 %v4111_v24 }
 0x748   : > { %6241 = vmatprep.subr.bf16.mxu1 %v4679_v25  ;;  %v4887_v25 = vunpack.c.l.s8.bf16 %v4175_v44  ;;  %v4967_v44 = vunpack.c.l.s8.bf16 %v4215_v41 }
 0x74a   : > { %6201 = vmatpush2.bf16.msra.mxu0 %v4550_v33  ;;  %v4758_v33 = vunpack.c.l.s8.bf16 %v4110_v19 }
 0x74b   : > { %6242 = vmatpush2.bf16.msra.mxu1 %v4678_v34  ;;  %6252 = vmatprep.subr.bf16.mxu0 %v4799_v42  ;;  %v4886_v34 = vunpack.c.l.s8.bf16 %v4174_v6  ;;  %v4751_v42 = vunpack.c.h.s8.bf16 %v4103_v28  ;;  %v4142_v6 = vld [vmem:[%s8115_s14 + $0x560] sm:$0xff] }
 0x74c   : > { %6293 = vmatprep.subr.bf16.mxu1 %v4927_v40  ;;  %v4879_v40 = vunpack.c.h.s8.bf16 %v4167_v30 }
 0x74d   : > { %v5958_v52 = vpop.f32.mrf.mxu0  ;;  %6203 = vmatmul.mubr.bf16.vlgmr.msra.gmra.mxu0 %v8941_v43 }
 0x74e   : > { %v5959_v50 = vadd.f32 %v5958_v52, %v9370_v49  ;;  %v5999_v47 = vpop.f32.mrf.mxu1  ;;  %6244 = vmatmul.mubr.bf16.vlgmr.msra.gmra.mxu1 %v8943_v58  ;;  %6253 = vmatpush1.bf16.msra.mxu0 %v4798_v17  ;;  %v4750_v17 = vunpack.c.h.s8.bf16 %v4102_v54  ;;  %v4159_v52 = vld [vmem:[%s8115_s14 + $0x5e8] sm:$0xff] }
 0x74f   : > { %6284 = vmatprep.mubr.bf16.mxu0 %v8946_v1  ;;  %6294 = vmatpush1.bf16.msra.mxu1 %v4926_v27  ;;  %v5960_v3 = vpop.f32.mrf.mxu0  ;;  %v4878_v27 = vunpack.c.h.s8.bf16 %v4166_v26 }
 0x750   : > { %v9413_v35 = vadd.f32 %v5999_v47, %v5959_v50  ;;  %6325 = vmatprep.mubr.bf16.mxu1 %v8950_v7  ;;  %v5961_v14 = vadd.f32 %v5960_v3, %v9376_v45  ;;  %v6001_v49 = vpop.f32.mrf.mxu1  ;;  %6254 = vmatprep.subr.bf16.mxu0 %v4791_v56  ;;  %v4775_v45 = vunpack.c.l.s8.bf16 %v4119_v51  ;;  %v4743_v56 = vunpack.c.l.s8.bf16 %v4103_v28 }
 0x751   : > { %v5962_v39 = vpop.f32.mrf.mxu0  ;;  %6295 = vmatprep.subr.bf16.mxu1 %v4919_v59  ;;  %v4871_v51 = vunpack.c.l.s8.bf16 %v4167_v30  ;;  %v4223_v59 = vld [vmem:[%s8115_s14 + $0x7e8] sm:$0xff]  ;;  %v4870_v50 = vunpack.c.l.s8.bf16 %v4166_v26  ;;  %v4863_v47 = vunpack.c.h.s8.bf16 %v4159_v52  ;;  %v4134_v26 = vld [vmem:[%s8115_s14 + $0x520] sm:$0xff] }
 0x752   : > { %v9418_v22 = vadd.f32 %v6001_v49, %v5961_v14  ;;  %v6003_v12 = vpop.f32.mrf.mxu1  ;;  %6255 = vmatpush1.bf16.msra.mxu0 %v4790_v5  ;;  %v4158_v5 = vld [vmem:[%s8115_s14 + $0x5e0] sm:$0xff]  ;;  %v4991_v3 = vunpack.c.h.s8.bf16 %v4223_v59  ;;  %v4855_v14 = vunpack.c.l.s8.bf16 %v4159_v52  ;;  %v4983_v49 = vunpack.c.l.s8.bf16 %v4223_v59 }
 0x753   : > { %6296 = vmatpush1.bf16.msra.mxu1 %v4918_v18  ;;  %v5963_v53 = vpop.f32.mrf.mxu0  ;;  %6256 = vmatprep.subr.bf16.mxu0 %v4783_v31  ;;  %v4222_v18 = vld [vmem:[%s8115_s14 + $0x7e0] sm:$0xff]  ;;  %v4862_v31 = vunpack.c.h.s8.bf16 %v4158_v5  ;;  %v4854_v39 = vunpack.c.l.s8.bf16 %v4158_v5 }
 0x754   : > { %v6004_v48 = vpop.f32.mrf.mxu1  ;;  %6297 = vmatprep.subr.bf16.mxu1 %v4911_v37  ;;  %v4990_v20 = vunpack.c.h.s8.bf16 %v4222_v18  ;;  %v4151_v37 = vld [vmem:[%s8115_s14 + $0x5a8] sm:$0xff]  ;;  %v4982_v12 = vunpack.c.l.s8.bf16 %v4222_v18  ;;  %v4150_v53 = vld [vmem:[%s8115_s14 + $0x5a0] sm:$0xff] }
 0x755   : > { %v4846_v48 = vunpack.c.h.s8.bf16 %v4150_v53  ;;  %v4839_v24 = vunpack.c.l.s8.bf16 %v4151_v37  ;;  %v4254_v18 = vld [vmem:[%s8115_s14 + $0x8e0] sm:$0xff] }
 0x756   : > { %6257 = vmatpush1.bf16.msra.mxu0 %v4782_v16  ;;  %v4847_v16 = vunpack.c.h.s8.bf16 %v4151_v37 }
 0x757   : > { %6298 = vmatpush1.bf16.msra.mxu1 %v4910_v32  ;;  %6258 = vmatprep.subr.bf16.mxu0 %v4775_v45  ;;  %v4975_v32 = vunpack.c.h.s8.bf16 %v4215_v41  ;;  %v4214_v45 = vld [vmem:[%s8115_s14 + $0x7a0] sm:$0xff]  ;;  %v4247_v41 = vld [vmem:[%s8115_s14 + $0x8a8] sm:$0xff] }
 0x758   : > { %6299 = vmatprep.subr.bf16.mxu1 %v4903_v9  ;;  %v4974_v9 = vunpack.c.h.s8.bf16 %v4214_v45  ;;  %v4966_v19 = vunpack.c.l.s8.bf16 %v4214_v45 }
 0x75a   : > { %6259 = vmatpush1.bf16.msra.mxu0 %v4774_v2  ;;  %v4143_v2 = vld [vmem:[%s8115_s14 + $0x568] sm:$0xff] }
 0x75b   : > { %6300 = vmatpush1.bf16.msra.mxu1 %v4902_v11  ;;  %6260 = vmatprep.subr.bf16.mxu0 %v4767_v61  ;;  %v4207_v11 = vld [vmem:[%s8115_s14 + $0x768] sm:$0xff]  ;;  %v4838_v61 = vunpack.c.l.s8.bf16 %v4150_v53  ;;  %v4823_v28 = vunpack.c.l.s8.bf16 %v4143_v2 }
 0x75c   : > { %6301 = vmatprep.subr.bf16.mxu1 %v4895_v46  ;;  %v4831_v46 = vunpack.c.h.s8.bf16 %v4143_v2  ;;  %v4951_v30 = vunpack.c.l.s8.bf16 %v4207_v11 }
 0x75e   : > { %6261 = vmatpush1.bf16.msra.mxu0 %v4766_v62  ;;  %v4959_v62 = vunpack.c.h.s8.bf16 %v4207_v11  ;;  %v4310_v11 = vld [vmem:[%s8115_s14 + $0xaa0] sm:$0xff] }
 0x75f   : > { %6302 = vmatpush1.bf16.msra.mxu1 %v4894_v10  ;;  %6262 = vmatprep.subr.bf16.mxu0 %v4759_v4  ;;  %v4206_v10 = vld [vmem:[%s8115_s14 + $0x760] sm:$0xff]  ;;  %v4830_v4 = vunpack.c.h.s8.bf16 %v4142_v6 }
 0x760   : > { %6303 = vmatprep.subr.bf16.mxu1 %v4887_v25  ;;  %v4958_v25 = vunpack.c.h.s8.bf16 %v4206_v10  ;;  %v4950_v54 = vunpack.c.l.s8.bf16 %v4206_v10  ;;  %v5031_v10 = vunpack.c.l.s8.bf16 %v4247_v41 }
 0x762   : > { %6263 = vmatpush1.bf16.msra.mxu0 %v4758_v33  ;;  %v4135_v33 = vld [vmem:[%s8115_s14 + $0x528] sm:$0xff] }
 0x763   : > { %6304 = vmatpush1.bf16.msra.mxu1 %v4886_v34  ;;  %6264 = vmatprep.subr.bf16.mxu0 %v4751_v42  ;;  %v4199_v34 = vld [vmem:[%s8115_s14 + $0x728] sm:$0xff]  ;;  %v4822_v42 = vunpack.c.l.s8.bf16 %v4142_v6  ;;  %v4807_v52 = vunpack.c.l.s8.bf16 %v4135_v33 }
 0x764   : > { %6305 = vmatprep.subr.bf16.mxu1 %v4879_v40  ;;  %v4815_v40 = vunpack.c.h.s8.bf16 %v4135_v33  ;;  %v4935_v59 = vunpack.c.l.s8.bf16 %v4199_v34 }
 0x766   : > { %6265 = vmatpush1.bf16.msra.mxu0 %v4750_v17  ;;  %v4943_v17 = vunpack.c.h.s8.bf16 %v4199_v34  ;;  %v5158_v34 = vunpack.c.l.s8.bf16 %v4310_v11 }
 0x767   : > { %6306 = vmatpush1.bf16.msra.mxu1 %v4878_v27  ;;  %6266 = vmatprep.subr.bf16.mxu0 %v4743_v56  ;;  %v4198_v27 = vld [vmem:[%s8115_s14 + $0x720] sm:$0xff]  ;;  %v4814_v56 = vunpack.c.h.s8.bf16 %v4134_v26 }
 0x768   : > { %6307 = vmatprep.subr.bf16.mxu1 %v4871_v51  ;;  %v4942_v51 = vunpack.c.h.s8.bf16 %v4198_v27  ;;  %v4934_v5 = vunpack.c.l.s8.bf16 %v4198_v27 }
 0x76a   : > { %6267 = vmatpush1.bf16.msra.mxu0 %v4742_v38  ;;  %v4255_v38 = vld [vmem:[%s8115_s14 + $0x8e8] sm:$0xff] }
 0x76b   : > { %6308 = vmatpush1.bf16.msra.mxu1 %v4870_v50  ;;  %6268 = vmatprep.subr.bf16.mxu0 %v4863_v47  ;;  %v4319_v50 = vld [vmem:[%s8115_s14 + $0xae8] sm:$0xff]  ;;  %v4806_v47 = vunpack.c.l.s8.bf16 %v4134_v26  ;;  %v5047_v37 = vunpack.c.l.s8.bf16 %v4255_v38  ;;  %v4302_v26 = vld [vmem:[%s8115_s14 + $0xa60] sm:$0xff] }
 0x76c   : > { %6309 = vmatprep.subr.bf16.mxu1 %v4991_v3  ;;  %v5055_v3 = vunpack.c.h.s8.bf16 %v4255_v38  ;;  %v5150_v27 = vunpack.c.h.s8.bf16 %v4302_v26 }
 0x76e   : > { %6269 = vmatpush2.bf16.msra.mxu0 %v4862_v31  ;;  %v5183_v31 = vunpack.c.h.s8.bf16 %v4319_v50 }
 0x76f   : > { %6310 = vmatpush2.bf16.msra.mxu1 %v4990_v20  ;;  %6270 = vmatprep.subr.bf16.mxu0 %v4855_v14  ;;  %v4318_v20 = vld [vmem:[%s8115_s14 + $0xae0] sm:$0xff]  ;;  %v5054_v14 = vunpack.c.h.s8.bf16 %v4254_v18 }
 0x770   : > { %6311 = vmatprep.subr.bf16.mxu1 %v4983_v49  ;;  %v5182_v49 = vunpack.c.h.s8.bf16 %v4318_v20 }
 0x772   : > { %6271 = vmatpush2.bf16.msra.mxu0 %v4854_v39 }
 0x773   : > { %6312 = vmatpush2.bf16.msra.mxu1 %v4982_v12  ;;  %6272 = vmatprep.subr.bf16.mxu0 %v4847_v16  ;;  %v5175_v12 = vunpack.c.l.s8.bf16 %v4319_v50  ;;  %v4311_v16 = vld [vmem:[%s8115_s14 + $0xaa8] sm:$0xff]  ;;  %v5142_v50 = vunpack.c.l.s8.bf16 %v4302_v26 }
 0x774   : > { %6313 = vmatprep.subr.bf16.mxu1 %v4975_v32  ;;  %v5046_v32 = vunpack.c.l.s8.bf16 %v4254_v18  ;;  %v5167_v2 = vunpack.c.h.s8.bf16 %v4311_v16  ;;  %v4294_v18 = vld [vmem:[%s8115_s14 + $0xa20] sm:$0xff]  ;;  %v4335_v26 = vld [vmem:[%s8115_s14 + $0xb68] sm:$0xff] }
 0x776   : > { %6273 = vmatpush2.bf16.msra.mxu0 %v4846_v48  ;;  %v5174_v48 = vunpack.c.l.s8.bf16 %v4318_v20  ;;  %v5134_v20 = vunpack.c.h.s8.bf16 %v4294_v18 }
 0x777   : > { %6314 = vmatpush2.bf16.msra.mxu1 %v4974_v9  ;;  %6274 = vmatprep.subr.bf16.mxu0 %v4839_v24  ;;  %v5039_v9 = vunpack.c.h.s8.bf16 %v4247_v41  ;;  %v4246_v24 = vld [vmem:[%s8115_s14 + $0x8a0] sm:$0xff]  ;;  %v4351_v41 = vld [vmem:[%s8115_s14 + $0xbe8] sm:$0xff] }
 0x778   : > { %6315 = vmatprep.subr.bf16.mxu1 %v4967_v44  ;;  %v5030_v33 = vunpack.c.l.s8.bf16 %v4246_v24 }
 0x77a   : > { %6275 = vmatpush2.bf16.msra.mxu0 %v4838_v61 }
 0x77b   : > { %6316 = vmatpush2.bf16.msra.mxu1 %v4966_v19  ;;  %6276 = vmatprep.subr.bf16.mxu0 %v4831_v46  ;;  %v5038_v46 = vunpack.c.h.s8.bf16 %v4246_v24  ;;  %v4350_v24 = vld [vmem:[%s8115_s14 + $0xbe0] sm:$0xff] }
 0x77c   : > { %6317 = vmatprep.subr.bf16.mxu1 %v4959_v62  ;;  %v5166_v62 = vunpack.c.h.s8.bf16 %v4310_v11  ;;  %v5246_v11 = vunpack.c.h.s8.bf16 %v4350_v24 }
 0x77e   : > { %6277 = vmatpush2.bf16.msra.mxu0 %v4830_v4 }
 0x77f   : > { %6318 = vmatpush2.bf16.msra.mxu1 %v4958_v25  ;;  %6278 = vmatprep.subr.bf16.mxu0 %v4823_v28  ;;  %v5159_v25 = vunpack.c.l.s8.bf16 %v4311_v16  ;;  %v4239_v28 = vld [vmem:[%s8115_s14 + $0x868] sm:$0xff]  ;;  %v5126_v16 = vunpack.c.l.s8.bf16 %v4294_v18 }
 0x780   : > { %6319 = vmatprep.subr.bf16.mxu1 %v4951_v30  ;;  %v4303_v30 = vld [vmem:[%s8115_s14 + $0xa68] sm:$0xff] }
 0x781   : > { %v4327_v18 = vld [vmem:[%s8115_s14 + $0xb28] sm:$0xff] }
 0x782   : > { %6279 = vmatpush2.bf16.msra.mxu0 %v4822_v42  ;;  %v5023_v42 = vunpack.c.h.s8.bf16 %v4239_v28 }
 0x783   : > { %6320 = vmatpush2.bf16.msra.mxu1 %v4950_v54  ;;  %6280 = vmatprep.subr.bf16.mxu0 %v4815_v40  ;;  %v4238_v54 = vld [vmem:[%s8115_s14 + $0x860] sm:$0xff]  ;;  %v5151_v40 = vunpack.c.h.s8.bf16 %v4303_v30 }
 0x784   : > { %6321 = vmatprep.subr.bf16.mxu1 %v4943_v17  ;;  %v5022_v17 = vunpack.c.h.s8.bf16 %v4238_v54  ;;  %v5014_v38 = vunpack.c.l.s8.bf16 %v4238_v54 }
 0x786   : > { %6281 = vmatpush2.bf16.msra.mxu0 %v4814_v56  ;;  %v5015_v56 = vunpack.c.l.s8.bf16 %v4239_v28 }
 0x787   : > { %6322 = vmatpush2.bf16.msra.mxu1 %v4942_v51  ;;  %6282 = vmatprep.subr.bf16.mxu0 %v4807_v52  ;;  %v5143_v51 = vunpack.c.l.s8.bf16 %v4303_v30  ;;  %v4231_v52 = vld [vmem:[%s8115_s14 + $0x828] sm:$0xff]  ;;  %v4342_v30 = vld [vmem:[%s8115_s14 + $0xba0] sm:$0xff] }
 0x788   : > { %6323 = vmatprep.subr.bf16.mxu1 %v4935_v59  ;;  %v4295_v59 = vld [vmem:[%s8115_s14 + $0xa28] sm:$0xff] }
 0x78a   : > { %6283 = vmatpush2.bf16.msra.mxu0 %v4806_v47  ;;  %v5007_v47 = vunpack.c.h.s8.bf16 %v4231_v52 }
 0x78b   : > { %6324 = vmatpush2.bf16.msra.mxu1 %v4934_v5  ;;  %6334 = vmatprep.subr.bf16.mxu0 %v5055_v3  ;;  %v4230_v5 = vld [vmem:[%s8115_s14 + $0x820] sm:$0xff]  ;;  %v5135_v3 = vunpack.c.h.s8.bf16 %v4295_v59 }
 0x78c   : > { %6375 = vmatprep.subr.bf16.mxu1 %v5183_v31  ;;  %v5006_v31 = vunpack.c.h.s8.bf16 %v4230_v5 }
 0x78d   : > { %v9449_v39 = vpop.f32.mrf.mxu0  ;;  %6285 = vmatmul.mubr.bf16.vlgmr.msra.gmra.mxu0 %v9041_v13 }
 0x78e   : > { %v9453_v53 = vpop.f32.mrf.mxu1  ;;  %6326 = vmatmul.mubr.bf16.vlgmr.msra.gmra.mxu1 %v9043_v57  ;;  %6335 = vmatpush1.bf16.msra.mxu0 %v5054_v14  ;;  %v4999_v14 = vunpack.c.l.s8.bf16 %v4231_v52  ;;  %v5215_v52 = vunpack.c.h.s8.bf16 %v4335_v26 }
 0x78f   : > { %6366 = vmatprep.mubr.bf16.mxu0 %v9046_v0  ;;  %6376 = vmatpush1.bf16.msra.mxu1 %v5182_v49  ;;  %v9457_v45 = vpop.f32.mrf.mxu0  ;;  %v5127_v49 = vunpack.c.l.s8.bf16 %v4295_v59  ;;  %v4334_v59 = vld [vmem:[%s8115_s14 + $0xb60] sm:$0xff] }
 0x790   : > { %6407 = vmatprep.mubr.bf16.mxu1 %v9050_v63  ;;  %v9461_v44 = vpop.f32.mrf.mxu1  ;;  %6336 = vmatprep.subr.bf16.mxu0 %v5047_v37  ;;  %v4287_v37 = vld [vmem:[%s8115_s14 + $0x9e8] sm:$0xff] }
 0x791   : > { %v6044_v61 = vpop.f32.mrf.mxu0  ;;  %6377 = vmatprep.subr.bf16.mxu1 %v5175_v12  ;;  %v4998_v12 = vunpack.c.l.s8.bf16 %v4230_v5  ;;  %v5207_v5 = vunpack.c.l.s8.bf16 %v4335_v26 }
 0x792   : > { %v6085_v19 = vpop.f32.mrf.mxu1  ;;  %6337 = vmatpush1.bf16.msra.mxu0 %v5046_v32  ;;  %v5119_v32 = vunpack.c.h.s8.bf16 %v4287_v37  ;;  %v5111_v61 = vunpack.c.l.s8.bf16 %v4287_v37  ;;  %v5199_v37 = vunpack.c.h.s8.bf16 %v4327_v18 }
 0x793   : > { %6378 = vmatpush1.bf16.msra.mxu1 %v5174_v48  ;;  %v6045_v6 = vpop.f32.mrf.mxu0  ;;  %6338 = vmatprep.subr.bf16.mxu0 %v5039_v9  ;;  %v4286_v48 = vld [vmem:[%s8115_s14 + $0x9e0] sm:$0xff]  ;;  %v5247_v9 = vunpack.c.h.s8.bf16 %v4351_v41  ;;  %v5239_v19 = vunpack.c.l.s8.bf16 %v4351_v41 }
 0x794   : > { %v6086_v4 = vpop.f32.mrf.mxu1  ;;  %6379 = vmatprep.subr.bf16.mxu1 %v5167_v2  ;;  %v5118_v2 = vunpack.c.h.s8.bf16 %v4286_v48  ;;  %v4343_v6 = vld [vmem:[%s8115_s14 + $0xba8] sm:$0xff]  ;;  %v4326_v41 = vld [vmem:[%s8115_s14 + $0xb20] sm:$0xff] }
 0x795   : > { %v5231_v28 = vunpack.c.h.s8.bf16 %v4343_v6  ;;  %v5223_v54 = vunpack.c.l.s8.bf16 %v4343_v6 }
 0x796   : > { %6339 = vmatpush1.bf16.msra.mxu0 %v5038_v46  ;;  %v4279_v46 = vld [vmem:[%s8115_s14 + $0x9a8] sm:$0xff] }
 0x797   : > { %6380 = vmatpush1.bf16.msra.mxu1 %v5166_v62  ;;  %6340 = vmatprep.subr.bf16.mxu0 %v5031_v10  ;;  %v5110_v62 = vunpack.c.l.s8.bf16 %v4286_v48  ;;  %v5238_v10 = vunpack.c.l.s8.bf16 %v4350_v24  ;;  %v5103_v4 = vunpack.c.h.s8.bf16 %v4279_v46  ;;  %v5191_v48 = vunpack.c.l.s8.bf16 %v4327_v18  ;;  %v4447_v24 = vld [vmem:[%s8115_s14 + $0xee8] sm:$0xff] }
 0x798   : > { %6381 = vmatprep.subr.bf16.mxu1 %v5159_v25  ;;  %v4278_v25 = vld [vmem:[%s8115_s14 + $0x9a0] sm:$0xff]  ;;  %v5439_v6 = vunpack.c.h.s8.bf16 %v4447_v24 }
 0x79a   : > { %6341 = vmatpush1.bf16.msra.mxu0 %v5030_v33  ;;  %v5102_v33 = vunpack.c.h.s8.bf16 %v4278_v25 }
 0x79b   : > { %6382 = vmatpush1.bf16.msra.mxu1 %v5158_v34  ;;  %6342 = vmatprep.subr.bf16.mxu0 %v5023_v42  ;;  %v5230_v34 = vunpack.c.h.s8.bf16 %v4342_v30  ;;  %v5095_v42 = vunpack.c.l.s8.bf16 %v4279_v46  ;;  %v6041_v46 = vadd.f32 %v9449_v39, %v9413_v35  ;;  %v5431_v35 = vunpack.c.l.s8.bf16 %v4447_v24  ;;  %v4439_v39 = vld [vmem:[%s8115_s14 + $0xea8] sm:$0xff]  ;;  %v4366_v24 = vld [vmem:[%s8115_s14 + $0xc60] sm:$0xff] }
 0x79c   : > { %6383 = vmatprep.subr.bf16.mxu1 %v5151_v40  ;;  %v4271_v40 = vld [vmem:[%s8115_s14 + $0x968] sm:$0xff] }
 0x79e   : > { %6343 = vmatpush1.bf16.msra.mxu0 %v5022_v17  ;;  %v5094_v17 = vunpack.c.l.s8.bf16 %v4278_v25 }
 0x79f   : > { %6384 = vmatpush1.bf16.msra.mxu1 %v5150_v27  ;;  %6344 = vmatprep.subr.bf16.mxu0 %v5015_v56  ;;  %v5222_v27 = vunpack.c.l.s8.bf16 %v4342_v30  ;;  %v5087_v56 = vunpack.c.h.s8.bf16 %v4271_v40 }
 0x7a0   : > { %6385 = vmatprep.subr.bf16.mxu1 %v5143_v51  ;;  %v4270_v51 = vld [vmem:[%s8115_s14 + $0x960] sm:$0xff] }
 0x7a2   : > { %6345 = vmatpush1.bf16.msra.mxu0 %v5014_v38  ;;  %v5086_v38 = vunpack.c.h.s8.bf16 %v4270_v51 }
 0x7a3   : > { %6386 = vmatpush1.bf16.msra.mxu1 %v5142_v50  ;;  %6346 = vmatprep.subr.bf16.mxu0 %v5007_v47  ;;  %v5214_v50 = vunpack.c.h.s8.bf16 %v4334_v59  ;;  %v5079_v47 = vunpack.c.l.s8.bf16 %v4271_v40 }
 0x7a4   : > { %6387 = vmatprep.subr.bf16.mxu1 %v5135_v3  ;;  %v4263_v3 = vld [vmem:[%s8115_s14 + $0x928] sm:$0xff] }
 0x7a6   : > { %6347 = vmatpush1.bf16.msra.mxu0 %v5006_v31  ;;  %v5078_v31 = vunpack.c.l.s8.bf16 %v4270_v51 }
 0x7a7   : > { %6388 = vmatpush1.bf16.msra.mxu1 %v5134_v20  ;;  %6348 = vmatprep.subr.bf16.mxu0 %v4999_v14  ;;  %v5206_v20 = vunpack.c.l.s8.bf16 %v4334_v59  ;;  %v5071_v14 = vunpack.c.h.s8.bf16 %v4263_v3  ;;  %v4438_v59 = vld [vmem:[%s8115_s14 + $0xea0] sm:$0xff] }
 0x7a8   : > { %6389 = vmatprep.subr.bf16.mxu1 %v5127_v49  ;;  %v4262_v49 = vld [vmem:[%s8115_s14 + $0x920] sm:$0xff] }
 0x7aa   : > { %6349 = vmatpush1.bf16.msra.mxu0 %v4998_v12  ;;  %v5070_v12 = vunpack.c.h.s8.bf16 %v4262_v49 }
 0x7ab   : > { %6390 = vmatpush1.bf16.msra.mxu1 %v5126_v16  ;;  %6350 = vmatprep.subr.bf16.mxu0 %v5119_v32  ;;  %v5198_v16 = vunpack.c.h.s8.bf16 %v4326_v41  ;;  %v5063_v32 = vunpack.c.l.s8.bf16 %v4263_v3 }
 0x7ac   : > { %6391 = vmatprep.subr.bf16.mxu1 %v5247_v9  ;;  %v4383_v9 = vld [vmem:[%s8115_s14 + $0xce8] sm:$0xff] }
 0x7ad   : > { %v5303_v30 = vunpack.c.l.s8.bf16 %v4383_v9 }
 0x7ae   : > { %6351 = vmatpush2.bf16.msra.mxu0 %v5118_v2  ;;  %v5062_v2 = vunpack.c.l.s8.bf16 %v4262_v49 }
 0x7af   : > { %6392 = vmatpush2.bf16.msra.mxu1 %v5246_v11  ;;  %6352 = vmatprep.subr.bf16.mxu0 %v5111_v61  ;;  %v5190_v11 = vunpack.c.l.s8.bf16 %v4326_v41  ;;  %v5311_v61 = vunpack.c.h.s8.bf16 %v4383_v9  ;;  %v5415_v41 = vunpack.c.l.s8.bf16 %v4439_v39 }
 0x7b0   : > { %6393 = vmatprep.subr.bf16.mxu1 %v5239_v19  ;;  %v4382_v19 = vld [vmem:[%s8115_s14 + $0xce0] sm:$0xff] }
 0x7b2   : > { %6353 = vmatpush2.bf16.msra.mxu0 %v5110_v62  ;;  %v4446_v62 = vld [vmem:[%s8115_s14 + $0xee0] sm:$0xff] }
 0x7b3   : > { %6394 = vmatpush2.bf16.msra.mxu1 %v5238_v10  ;;  %6354 = vmatprep.subr.bf16.mxu0 %v5103_v4  ;;  %v6043_v10 = vadd.f32 %v9457_v45, %v9418_v22  ;;  %v5310_v4 = vunpack.c.h.s8.bf16 %v4382_v19  ;;  %v5438_v25 = vunpack.c.h.s8.bf16 %v4446_v62  ;;  %v5430_v26 = vunpack.c.l.s8.bf16 %v4446_v62  ;;  %v4359_v62 = vld [vmem:[%s8115_s14 + $0xc28] sm:$0xff] }
 0x7b4   : > { %6395 = vmatprep.subr.bf16.mxu1 %v5231_v28  ;;  %v6082_v28 = vadd.f32 %v9453_v53, %v6041_v46  ;;  %v5508_v53 = vld [vmem:[%s8117_s11 + $0x10] sm:$0xff] }
 0x7b6   : > { %6355 = vmatpush2.bf16.msra.mxu0 %v5102_v33  ;;  %v4375_v33 = vld [vmem:[%s8115_s14 + $0xca8] sm:$0xff] }
 0x7b7   : > { %6396 = vmatpush2.bf16.msra.mxu1 %v5230_v34  ;;  %6356 = vmatprep.subr.bf16.mxu0 %v5095_v42  ;;  %v6084_v42 = vadd.f32 %v9461_v44, %v6043_v10  ;;  %v4423_v10 = vld [vmem:[%s8115_s14 + $0xe28] sm:$0xff] }
 0x7b8   : > { %6397 = vmatprep.subr.bf16.mxu1 %v5223_v54  ;;  %v5302_v54 = vunpack.c.l.s8.bf16 %v4382_v19 }
 0x7ba   : > { %6357 = vmatpush2.bf16.msra.mxu0 %v5094_v17  ;;  %v5295_v17 = vunpack.c.h.s8.bf16 %v4375_v33 }
 0x7bb   : > { %6398 = vmatpush2.bf16.msra.mxu1 %v5222_v27  ;;  %6358 = vmatprep.subr.bf16.mxu0 %v5087_v56  ;;  %v4374_v27 = vld [vmem:[%s8115_s14 + $0xca0] sm:$0xff] }
 0x7bc   : > { %6399 = vmatprep.subr.bf16.mxu1 %v5215_v52  ;;  %v5423_v52 = vunpack.c.h.s8.bf16 %v4439_v39  ;;  %v5294_v18 = vunpack.c.h.s8.bf16 %v4374_v27 }
 0x7be   : > { %6359 = vmatpush2.bf16.msra.mxu0 %v5086_v38  ;;  %v5509_v38 = vld [vmem:[%s8117_s11 + $0x18] sm:$0xff] }
 0x7bf   : > { %6400 = vmatpush2.bf16.msra.mxu1 %v5214_v50  ;;  %6360 = vmatprep.subr.bf16.mxu0 %v5079_v47 }
 0x7c0   : > { %6401 = vmatprep.subr.bf16.mxu1 %v5207_v5 }
 0x7c2   : > { %6361 = vmatpush2.bf16.msra.mxu0 %v5078_v31 }
 0x7c3   : > { %6402 = vmatpush2.bf16.msra.mxu1 %v5206_v20  ;;  %6362 = vmatprep.subr.bf16.mxu0 %v5071_v14  ;;  %v5422_v20 = vunpack.c.h.s8.bf16 %v4438_v59  ;;  %v5287_v14 = vunpack.c.l.s8.bf16 %v4375_v33  ;;  %v5391_v33 = vunpack.c.h.s8.bf16 %v4423_v10 }
 0x7c4   : > { %6403 = vmatprep.subr.bf16.mxu1 %v5199_v37 }
 0x7c6   : > { %6363 = vmatpush2.bf16.msra.mxu0 %v5070_v12  ;;  %v4367_v12 = vld [vmem:[%s8115_s14 + $0xc68] sm:$0xff] }
 0x7c7   : > { %6404 = vmatpush2.bf16.msra.mxu1 %v5198_v16  ;;  %6364 = vmatprep.subr.bf16.mxu0 %v5063_v32  ;;  %v4431_v16 = vld [vmem:[%s8115_s14 + $0xe68] sm:$0xff]  ;;  %v5286_v32 = vunpack.c.l.s8.bf16 %v4374_v27  ;;  %v5279_v9 = vunpack.c.h.s8.bf16 %v4367_v12  ;;  %v5271_v46 = vunpack.c.l.s8.bf16 %v4367_v12 }
 0x7c8   : > { %6405 = vmatprep.subr.bf16.mxu1 %v5191_v48  ;;  %v5414_v48 = vunpack.c.l.s8.bf16 %v4438_v59  ;;  %v4399_v12 = vld [vmem:[%s8115_s14 + $0xd68] sm:$0xff] }
 0x7ca   : > { %6365 = vmatpush2.bf16.msra.mxu0 %v5062_v2  ;;  %v5407_v2 = vunpack.c.h.s8.bf16 %v4431_v16 }
 0x7cb   : > { %6406 = vmatpush2.bf16.msra.mxu1 %v5190_v11  ;;  %6416 = vmatprep.subr.bf16.mxu0 %v5311_v61  ;;  %v4430_v11 = vld [vmem:[%s8115_s14 + $0xe60] sm:$0xff]  ;;  %v5278_v61 = vunpack.c.h.s8.bf16 %v4366_v24 }
 0x7cc   : > { %6457 = vmatprep.subr.bf16.mxu1 %v5439_v6  ;;  %v5406_v19 = vunpack.c.h.s8.bf16 %v4430_v11  ;;  %v5399_v6 = vunpack.c.l.s8.bf16 %v4431_v16  ;;  %v4463_v16 = vld [vmem:[%s8115_s14 + $0xf68] sm:$0xff] }
 0x7cd   : > { %v6122_v34 = vpop.f32.mrf.mxu0  ;;  %6367 = vmatmul.mubr.bf16.vlgmr.msra.gmra.mxu0 %v9118_v21 }
 0x7ce   : > { %v6123_v22 = vadd.f32 %v6122_v34, %v6082_v28  ;;  %v6163_v45 = vpop.f32.mrf.mxu1  ;;  %6408 = vmatmul.mubr.bf16.vlgmr.msra.gmra.mxu1 %v9120_v23  ;;  %6417 = vmatpush1.bf16.msra.mxu0 %v5310_v4  ;;  %v5270_v4 = vunpack.c.l.s8.bf16 %v4366_v24  ;;  %v5263_v28 = vunpack.c.h.s8.bf16 %v4359_v62  ;;  %v4422_v34 = vld [vmem:[%s8115_s14 + $0xe20] sm:$0xff] }
 0x7cf   : > { %6448 = vmatprep.mubr.bf16.mxu0 %v9123_v60  ;;  %6458 = vmatpush1.bf16.msra.mxu1 %v5438_v25  ;;  %v6124_v40 = vpop.f32.mrf.mxu0  ;;  %v5398_v25 = vunpack.c.l.s8.bf16 %v4430_v11  ;;  %v5390_v39 = vunpack.c.h.s8.bf16 %v4422_v34  ;;  %v4398_v24 = vld [vmem:[%s8115_s14 + $0xd60] sm:$0xff] }
 0x7d0   : > { %v6164_v56 = vadd.f32 %v6163_v45, %v6123_v22  ;;  %6489 = vmatprep.mubr.bf16.mxu1 %v9177_v55  ;;  %v6125_v44 = vadd.f32 %v6124_v40, %v6084_v42  ;;  %v6165_v51 = vpop.f32.mrf.mxu1  ;;  %6418 = vmatprep.subr.bf16.mxu0 %v5303_v30  ;;  %v4358_v30 = vld [vmem:[%s8115_s14 + $0xc20] sm:$0xff]  ;;  %v5255_v42 = vunpack.c.l.s8.bf16 %v4359_v62  ;;  %v5383_v22 = vunpack.c.l.s8.bf16 %v4423_v10  ;;  %v4415_v45 = vld [vmem:[%s8115_s14 + $0xde8] sm:$0xff] }
 0x7d1   : > { %v6126_v50 = vpop.f32.mrf.mxu0  ;;  %6459 = vmatprep.subr.bf16.mxu1 %v5431_v35  ;;  %v5262_v35 = vunpack.c.h.s8.bf16 %v4358_v30  ;;  %v5382_v40 = vunpack.c.l.s8.bf16 %v4422_v34  ;;  %v4462_v11 = vld [vmem:[%s8115_s14 + $0xf60] sm:$0xff]  ;;  %v4391_v62 = vld [vmem:[%s8115_s14 + $0xd28] sm:$0xff] }
 0x7d2   : > { %v6828_v47 = vadd.f32 %v6164_v56, %v5508_v53  ;;  %v6166_v5 = vadd.f32 %v6165_v51, %v6125_v44  ;;  %v6167_v3 = vpop.f32.mrf.mxu1  ;;  %6419 = vmatpush1.bf16.msra.mxu0 %v5302_v54  ;;  %v4479_v54 = vld [vmem:[%s8115_s14 + $0xfe8] sm:$0xff]  ;;  %v5254_v53 = vunpack.c.l.s8.bf16 %v4358_v30  ;;  %v4478_v56 = vld [vmem:[%s8115_s14 + $0xfe0] sm:$0xff] }
 0x7d3   : > { %6460 = vmatpush1.bf16.msra.mxu1 %v5430_v26  ;;  %v6127_v31 = vpop.f32.mrf.mxu0  ;;  %6420 = vmatprep.subr.bf16.mxu0 %v5295_v17  ;;  %v5375_v26 = vunpack.c.h.s8.bf16 %v4415_v45  ;;  %v4414_v17 = vld [vmem:[%s8115_s14 + $0xde0] sm:$0xff]  ;;  %v5503_v27 = vunpack.c.h.s8.bf16 %v4479_v54  ;;  %v5502_v51 = vunpack.c.h.s8.bf16 %v4478_v56  ;;  %v5495_v59 = vunpack.c.l.s8.bf16 %v4479_v54  ;;  %v4471_v50 = vld [vmem:[%s8115_s14 + $0xfa8] sm:$0xff]  ;;  %v4065_v54 = vld [vmem:[%s8115_s14 + $0x2f8] sm:$0xff] }
 0x7d4   : > { %6836 = vst [vmem:[%s8117_s11 + $0x10] sm:$0xff] %v6828_v47  ;;  %v6829_v49 = vadd.f32 %v6166_v5, %v5509_v38  ;;  %v6168_v37 = vpop.f32.mrf.mxu1  ;;  %6461 = vmatprep.subr.bf16.mxu1 %v5423_v52  ;;  %v5374_v44 = vunpack.c.h.s8.bf16 %v4414_v17  ;;  %v5367_v52 = vunpack.c.l.s8.bf16 %v4415_v45  ;;  %v4407_v38 = vld [vmem:[%s8115_s14 + $0xda8] sm:$0xff]  ;;  %v5366_v47 = vunpack.c.l.s8.bf16 %v4414_v17  ;;  %v4390_v30 = vld [vmem:[%s8115_s14 + $0xd20] sm:$0xff]  ;;  %v4001_v45 = vld [vmem:[%s8115_s14 + $0xf8] sm:$0xff] }
 0x7d5   : > { %v5494_v5 = vunpack.c.l.s8.bf16 %v4478_v56  ;;  %v5359_v3 = vunpack.c.h.s8.bf16 %v4407_v38  ;;  %v5487_v31 = vunpack.c.h.s8.bf16 %v4471_v50  ;;  %v5351_v37 = vunpack.c.l.s8.bf16 %v4407_v38  ;;  %v4455_v10 = vld [vmem:[%s8115_s14 + $0xf28] sm:$0xff]  ;;  %v4454_v34 = vld [vmem:[%s8115_s14 + $0xf20] sm:$0xff]  ;;  %v4000_v17 = vld [vmem:[%s8115_s14 + $0xf0] sm:$0xff] }
 0x7d6   : > { %6837 = vst [vmem:[%s8117_s11 + $0x18] sm:$0xff] %v6829_v49  ;;  %6421 = vmatpush1.bf16.msra.mxu0 %v5294_v18  ;;  %v4406_v18 = vld [vmem:[%s8115_s14 + $0xda0] sm:$0xff]  ;;  %v4064_v56 = vld [vmem:[%s8115_s14 + $0x2f0] sm:$0xff] }
 0x7d7   : > { %6462 = vmatpush1.bf16.msra.mxu1 %v5422_v20  ;;  %6422 = vmatprep.subr.bf16.mxu0 %v5287_v14  ;;  %v4470_v20 = vld [vmem:[%s8115_s14 + $0xfa0] sm:$0xff]  ;;  %v5358_v14 = vunpack.c.h.s8.bf16 %v4406_v18 }
 0x7d8   : > { %6463 = vmatprep.subr.bf16.mxu1 %v5415_v41  ;;  %v5486_v49 = vunpack.c.h.s8.bf16 %v4470_v20  ;;  %v5479_v41 = vunpack.c.l.s8.bf16 %v4471_v50  ;;  %v4665_v50 = vunpack.c.l.s8.bf16 %v4065_v54 }
 0x7da   : > { %6423 = vmatpush1.bf16.msra.mxu0 %v5286_v32  ;;  %v5350_v32 = vunpack.c.l.s8.bf16 %v4406_v18 }
 0x7db   : > { %6464 = vmatpush1.bf16.msra.mxu1 %v5414_v48  ;;  %6424 = vmatprep.subr.bf16.mxu0 %v5279_v9  ;;  %v5478_v48 = vunpack.c.l.s8.bf16 %v4470_v20  ;;  %v5343_v9 = vunpack.c.h.s8.bf16 %v4399_v12  ;;  %v4664_v20 = vunpack.c.l.s8.bf16 %v4064_v56 }
 0x7dc   : > { %6465 = vmatprep.subr.bf16.mxu1 %v5407_v2  ;;  %v5471_v2 = vunpack.c.h.s8.bf16 %v4463_v16 }
 0x7de   : > { %6425 = vmatpush1.bf16.msra.mxu0 %v5278_v61  ;;  %v5342_v61 = vunpack.c.h.s8.bf16 %v4398_v24 }
 0x7df   : > { %6466 = vmatpush1.bf16.msra.mxu1 %v5406_v19  ;;  %6426 = vmatprep.subr.bf16.mxu0 %v5271_v46  ;;  %v5470_v19 = vunpack.c.h.s8.bf16 %v4462_v11  ;;  %v5335_v46 = vunpack.c.l.s8.bf16 %v4399_v12  ;;  %v4056_v12 = vld [vmem:[%s8115_s14 + $0x2b0] sm:$0xff] }
 0x7e0   : > { %6467 = vmatprep.subr.bf16.mxu1 %v5399_v6  ;;  %v5463_v6 = vunpack.c.l.s8.bf16 %v4463_v16 }
 0x7e2   : > { %6427 = vmatpush1.bf16.msra.mxu0 %v5270_v4  ;;  %v5334_v4 = vunpack.c.l.s8.bf16 %v4398_v24  ;;  %v4656_v24 = vunpack.c.h.s8.bf16 %v4056_v12 }
 0x7e3   : > { %6468 = vmatpush1.bf16.msra.mxu1 %v5398_v25  ;;  %6428 = vmatprep.subr.bf16.mxu0 %v5263_v28  ;;  %v5462_v25 = vunpack.c.l.s8.bf16 %v4462_v11  ;;  %v5327_v28 = vunpack.c.h.s8.bf16 %v4391_v62 }
 0x7e4   : > { %6469 = vmatprep.subr.bf16.mxu1 %v5391_v33  ;;  %v5455_v33 = vunpack.c.h.s8.bf16 %v4455_v10 }
 0x7e6   : > { %6429 = vmatpush1.bf16.msra.mxu0 %v5262_v35  ;;  %v5326_v35 = vunpack.c.h.s8.bf16 %v4390_v30 }
 0x7e7   : > { %6470 = vmatpush1.bf16.msra.mxu1 %v5390_v39  ;;  %6430 = vmatprep.subr.bf16.mxu0 %v5255_v42  ;;  %v5454_v39 = vunpack.c.h.s8.bf16 %v4454_v34  ;;  %v5319_v42 = vunpack.c.l.s8.bf16 %v4391_v62 }
 0x7e8   : > { %6471 = vmatprep.subr.bf16.mxu1 %v5383_v22  ;;  %v5447_v22 = vunpack.c.l.s8.bf16 %v4455_v10  ;;  %v3984_v10 = vld [vmem:[%s8115_s14 + $0x70] sm:$0xff] }
 0x7ea   : > { %6431 = vmatpush1.bf16.msra.mxu0 %v5254_v53  ;;  %v5318_v53 = vunpack.c.l.s8.bf16 %v4390_v30 }
 0x7eb   : > { %6472 = vmatpush1.bf16.msra.mxu1 %v5382_v40  ;;  %6432 = vmatprep.subr.bf16.mxu0 %v5375_v26  ;;  %v5446_v40 = vunpack.c.l.s8.bf16 %v4454_v34  ;;  %v4545_v26 = vunpack.c.h.s8.bf16 %v4001_v45 }
 0x7ec   : > { %6473 = vmatprep.subr.bf16.mxu1 %v5503_v27  ;;  %v4673_v27 = vunpack.c.h.s8.bf16 %v4065_v54  ;;  %v3976_v54 = vld [vmem:[%s8115_s14 + $0x30] sm:$0xff] }
 0x7ee   : > { %6433 = vmatpush2.bf16.msra.mxu0 %v5374_v44  ;;  %v4544_v44 = vunpack.c.h.s8.bf16 %v4000_v17 }
 0x7ef   : > { %6474 = vmatpush2.bf16.msra.mxu1 %v5502_v51  ;;  %6434 = vmatprep.subr.bf16.mxu0 %v5367_v52  ;;  %v4672_v51 = vunpack.c.h.s8.bf16 %v4064_v56  ;;  %v4537_v52 = vunpack.c.l.s8.bf16 %v4001_v45 }
 0x7f0   : > { %6475 = vmatprep.subr.bf16.mxu1 %v5495_v59  ;;  %v3993_v59 = vld [vmem:[%s8115_s14 + $0xb8] sm:$0xff] }
 0x7f2   : > { %6435 = vmatpush2.bf16.msra.mxu0 %v5366_v47  ;;  %v4057_v47 = vld [vmem:[%s8115_s14 + $0x2b8] sm:$0xff] }
 0x7f3   : > { %6476 = vmatpush2.bf16.msra.mxu1 %v5494_v5  ;;  %6436 = vmatprep.subr.bf16.mxu0 %v5359_v3  ;;  %v4536_v3 = vunpack.c.l.s8.bf16 %v4000_v17  ;;  %v4649_v11 = vunpack.c.l.s8.bf16 %v4057_v47 }
 0x7f4   : > { %6477 = vmatprep.subr.bf16.mxu1 %v5487_v31 }
 0x7f6   : > { %6437 = vmatpush2.bf16.msra.mxu0 %v5358_v14  ;;  %v4529_v14 = vunpack.c.h.s8.bf16 %v3993_v59 }
 0x7f7   : > { %6478 = vmatpush2.bf16.msra.mxu1 %v5486_v49  ;;  %6438 = vmatprep.subr.bf16.mxu0 %v5351_v37  ;;  %v3992_v49 = vld [vmem:[%s8115_s14 + $0xb0] sm:$0xff] }
 0x7f8   : > { %6479 = vmatprep.subr.bf16.mxu1 %v5479_v41  ;;  %v4657_v41 = vunpack.c.h.s8.bf16 %v4057_v47 }
 0x7fa   : > { %6439 = vmatpush2.bf16.msra.mxu0 %v5350_v32 }
 0x7fb   : > { %6480 = vmatpush2.bf16.msra.mxu1 %v5478_v48  ;;  %6440 = vmatprep.subr.bf16.mxu0 %v5343_v9 }
 0x7fc   : > { %6481 = vmatprep.subr.bf16.mxu1 %v5471_v2 }
 0x7fe   : > { %6441 = vmatpush2.bf16.msra.mxu0 %v5342_v61  ;;  %v3985_v61 = vld [vmem:[%s8115_s14 + $0x78] sm:$0xff] }
 0x7ff   : > { %6482 = vmatpush2.bf16.msra.mxu1 %v5470_v19  ;;  %6442 = vmatprep.subr.bf16.mxu0 %v5335_v46  ;;  %v4049_v19 = vld [vmem:[%s8115_s14 + $0x278] sm:$0xff]  ;;  %v4520_v46 = vunpack.c.l.s8.bf16 %v3992_v49  ;;  %v4513_v62 = vunpack.c.h.s8.bf16 %v3985_v61 }
 0x800   : > { %6483 = vmatprep.subr.bf16.mxu1 %v5463_v6  ;;  %v4648_v6 = vunpack.c.l.s8.bf16 %v4056_v12  ;;  %v4633_v34 = vunpack.c.l.s8.bf16 %v4049_v19 }
 0x802   : > { %6443 = vmatpush2.bf16.msra.mxu0 %v5334_v4  ;;  %v4641_v4 = vunpack.c.h.s8.bf16 %v4049_v19  ;;  %v4081_v19 = vld [vmem:[%s8115_s14 + $0x378] sm:$0xff] }
 0x803   : > { %6484 = vmatpush2.bf16.msra.mxu1 %v5462_v25  ;;  %6444 = vmatprep.subr.bf16.mxu0 %v5327_v28  ;;  %v4048_v25 = vld [vmem:[%s8115_s14 + $0x270] sm:$0xff]  ;;  %v4512_v28 = vunpack.c.h.s8.bf16 %v3984_v10 }
 0x804   : > { %6485 = vmatprep.subr.bf16.mxu1 %v5455_v33  ;;  %v4640_v30 = vunpack.c.h.s8.bf16 %v4048_v25  ;;  %v4505_v33 = vunpack.c.l.s8.bf16 %v3985_v61  ;;  %v4017_v61 = vld [vmem:[%s8115_s14 + $0x178] sm:$0xff] }
 0x806   : > { %6445 = vmatpush2.bf16.msra.mxu0 %v5326_v35  ;;  %v3977_v35 = vld [vmem:[%s8115_s14 + $0x38] sm:$0xff] }
 0x807   : > { %6486 = vmatpush2.bf16.msra.mxu1 %v5454_v39  ;;  %6446 = vmatprep.subr.bf16.mxu0 %v5319_v42  ;;  %v4041_v39 = vld [vmem:[%s8115_s14 + $0x238] sm:$0xff]  ;;  %v4504_v42 = vunpack.c.l.s8.bf16 %v3984_v10  ;;  %v4497_v45 = vunpack.c.h.s8.bf16 %v3977_v35  ;;  %v4016_v10 = vld [vmem:[%s8115_s14 + $0x170] sm:$0xff] }
 0x808   : > { %6487 = vmatprep.subr.bf16.mxu1 %v5447_v22  ;;  %v4632_v22 = vunpack.c.l.s8.bf16 %v4048_v25  ;;  %v4617_v56 = vunpack.c.l.s8.bf16 %v4041_v39  ;;  %v4080_v25 = vld [vmem:[%s8115_s14 + $0x370] sm:$0xff] }
 0x80a   : > { %6447 = vmatpush2.bf16.msra.mxu0 %v5318_v53  ;;  %v4625_v53 = vunpack.c.h.s8.bf16 %v4041_v39  ;;  %v4073_v39 = vld [vmem:[%s8115_s14 + $0x338] sm:$0xff] }
 0x80b   : > { %6488 = vmatpush2.bf16.msra.mxu1 %v5446_v40  ;;  %6498 = vmatprep.subr.bf16.mxu0 %v4545_v26  ;;  %v4040_v40 = vld [vmem:[%s8115_s14 + $0x230] sm:$0xff]  ;;  %v4496_v26 = vunpack.c.h.s8.bf16 %v3976_v54 }
 0x80c   : > { %6539 = vmatprep.subr.bf16.mxu1 %v4673_v27  ;;  %v4624_v17 = vunpack.c.h.s8.bf16 %v4040_v40  ;;  %v4489_v27 = vunpack.c.l.s8.bf16 %v3977_v35  ;;  %v4009_v35 = vld [vmem:[%s8115_s14 + $0x138] sm:$0xff] }
 0x80d   : > { %v6204_v38 = vpop.f32.mrf.mxu0  ;;  %6449 = vmatmul.mubr.bf16.vlgmr.msra.gmra.mxu0 %v9190_v15 }
 0x80e   : > { %v6245_v5 = vpop.f32.mrf.mxu1  ;;  %6490 = vmatmul.mubr.bf16.vlgmr.msra.gmra.mxu1 %v9192_v8  ;;  %6499 = vmatpush1.bf16.msra.mxu0 %v4544_v44  ;;  %v4033_v44 = vld [vmem:[%s8115_s14 + $0x1f8] sm:$0xff] }
 0x80f   : > { %v9542_v18 = vadd.f32 %v6245_v5, %v6204_v38  ;;  %6530 = vmatprep.mubr.bf16.mxu0 %v8849_v36  ;;  %6540 = vmatpush1.bf16.msra.mxu1 %v4672_v51  ;;  %v6206_v31 = vpop.f32.mrf.mxu0  ;;  %v4528_v36 = vunpack.c.h.s8.bf16 %v3992_v49  ;;  %v4097_v51 = vld [vmem:[%s8115_s14 + $0x3f8] sm:$0xff]  ;;  %v4609_v38 = vunpack.c.h.s8.bf16 %v4033_v44  ;;  %v4096_v5 = vld [vmem:[%s8115_s14 + $0x3f0] sm:$0xff] }
 0x810   : > { %6571 = vmatprep.mubr.bf16.mxu1 %v8852_v29  ;;  %v6247_v37 = vpop.f32.mrf.mxu1  ;;  %6500 = vmatprep.subr.bf16.mxu0 %v4537_v52  ;;  %v4521_v29 = vunpack.c.l.s8.bf16 %v3993_v59  ;;  %v4488_v52 = vunpack.c.l.s8.bf16 %v3976_v54  ;;  %v4616_v59 = vunpack.c.l.s8.bf16 %v4040_v40  ;;  %v4737_v47 = vunpack.c.h.s8.bf16 %v4097_v51  ;;  %v4025_v49 = vld [vmem:[%s8115_s14 + $0x1b8] sm:$0xff]  ;;  %v4008_v54 = vld [vmem:[%s8115_s14 + $0x130] sm:$0xff] }
 0x811   : > { %v9548_v16 = vadd.f32 %v6247_v37, %v6206_v31  ;;  %v6208_v32 = vpop.f32.mrf.mxu0  ;;  %6541 = vmatprep.subr.bf16.mxu1 %v4665_v50  ;;  %v4032_v50 = vld [vmem:[%s8115_s14 + $0x1f0] sm:$0xff]  ;;  %v4736_v31 = vunpack.c.h.s8.bf16 %v4096_v5  ;;  %v4089_v37 = vld [vmem:[%s8115_s14 + $0x3b8] sm:$0xff]  ;;  %v4728_v12 = vunpack.c.l.s8.bf16 %v4096_v5 }
 0x812   : > { %v6249_v48 = vpop.f32.mrf.mxu1  ;;  %6501 = vmatpush1.bf16.msra.mxu0 %v4536_v3  ;;  %v4608_v3 = vunpack.c.h.s8.bf16 %v4032_v50  ;;  %v4593_v32 = vunpack.c.h.s8.bf16 %v4025_v49  ;;  %v4072_v40 = vld [vmem:[%s8115_s14 + $0x330] sm:$0xff] }
 0x813   : > { %6542 = vmatpush1.bf16.msra.mxu1 %v4664_v20  ;;  %v6209_v9 = vpop.f32.mrf.mxu0  ;;  %6502 = vmatprep.subr.bf16.mxu0 %v4529_v14  ;;  %v4601_v20 = vunpack.c.l.s8.bf16 %v4033_v44  ;;  %v4729_v14 = vunpack.c.l.s8.bf16 %v4097_v51  ;;  %v4024_v48 = vld [vmem:[%s8115_s14 + $0x1b0] sm:$0xff]  ;;  %v4129_v44 = vld [vmem:[%s8115_s14 + $0x4f8] sm:$0xff] }
 0x814   : > { %v6250_v2 = vpop.f32.mrf.mxu1  ;;  %6543 = vmatprep.subr.bf16.mxu1 %v4657_v41  ;;  %v4600_v41 = vunpack.c.l.s8.bf16 %v4032_v50  ;;  %v4088_v9 = vld [vmem:[%s8115_s14 + $0x3b0] sm:$0xff]  ;;  %v4193_v51 = vld [vmem:[%s8115_s14 + $0x6f8] sm:$0xff] }
 0x815   : > { %v4585_v2 = vunpack.c.l.s8.bf16 %v4025_v49  ;;  %v4128_v50 = vld [vmem:[%s8115_s14 + $0x4f0] sm:$0xff] }
 0x816   : > { %6503 = vmatpush1.bf16.msra.mxu0 %v4528_v36  ;;  %v4721_v36 = vunpack.c.h.s8.bf16 %v4089_v37  ;;  %v4192_v5 = vld [vmem:[%s8115_s14 + $0x6f0] sm:$0xff] }
 0x817   : > { %6544 = vmatpush1.bf16.msra.mxu1 %v4656_v24  ;;  %6504 = vmatprep.subr.bf16.mxu0 %v4521_v29  ;;  %v4592_v24 = vunpack.c.h.s8.bf16 %v4024_v48  ;;  %v4720_v29 = vunpack.c.h.s8.bf16 %v4088_v9 }
 0x818   : > { %6545 = vmatprep.subr.bf16.mxu1 %v4649_v11  ;;  %v4713_v11 = vunpack.c.l.s8.bf16 %v4089_v37  ;;  %v4921_v37 = vunpack.c.l.s8.bf16 %v4193_v51 }
 0x81a   : > { %6505 = vmatpush1.bf16.msra.mxu0 %v4520_v46  ;;  %v4584_v46 = vunpack.c.l.s8.bf16 %v4024_v48  ;;  %v4792_v48 = vunpack.c.l.s8.bf16 %v4128_v50 }
 0x81b   : > { %6546 = vmatpush1.bf16.msra.mxu1 %v4648_v6  ;;  %6506 = vmatprep.subr.bf16.mxu0 %v4513_v62  ;;  %v4712_v6 = vunpack.c.l.s8.bf16 %v4088_v9  ;;  %v4577_v62 = vunpack.c.h.s8.bf16 %v4017_v61  ;;  %v4920_v9 = vunpack.c.l.s8.bf16 %v4192_v5 }
 0x81c   : > { %6547 = vmatprep.subr.bf16.mxu1 %v4641_v4  ;;  %v4705_v4 = vunpack.c.h.s8.bf16 %v4081_v19 }
 0x81e   : > { %6507 = vmatpush1.bf16.msra.mxu0 %v4512_v28  ;;  %v4576_v28 = vunpack.c.h.s8.bf16 %v4016_v10 }
 0x81f   : > { %6548 = vmatpush1.bf16.msra.mxu1 %v4640_v30  ;;  %6508 = vmatprep.subr.bf16.mxu0 %v4505_v33  ;;  %v4704_v30 = vunpack.c.h.s8.bf16 %v4080_v25  ;;  %v4569_v33 = vunpack.c.l.s8.bf16 %v4017_v61 }
 0x820   : > { %6549 = vmatprep.subr.bf16.mxu1 %v4633_v34  ;;  %v4697_v34 = vunpack.c.l.s8.bf16 %v4081_v19 }
 0x822   : > { %6509 = vmatpush1.bf16.msra.mxu0 %v4504_v42  ;;  %v4568_v42 = vunpack.c.l.s8.bf16 %v4016_v10 }
 0x823   : > { %6550 = vmatpush1.bf16.msra.mxu1 %v4632_v22  ;;  %6510 = vmatprep.subr.bf16.mxu0 %v4497_v45  ;;  %v4696_v22 = vunpack.c.l.s8.bf16 %v4080_v25  ;;  %v4561_v45 = vunpack.c.h.s8.bf16 %v4009_v35  ;;  %v4177_v25 = vld [vmem:[%s8115_s14 + $0x678] sm:$0xff] }
 0x824   : > { %6551 = vmatprep.subr.bf16.mxu1 %v4625_v53  ;;  %v4689_v53 = vunpack.c.h.s8.bf16 %v4073_v39 }
 0x826   : > { %6511 = vmatpush1.bf16.msra.mxu0 %v4496_v26  ;;  %v4560_v26 = vunpack.c.h.s8.bf16 %v4008_v54 }
 0x827   : > { %6552 = vmatpush1.bf16.msra.mxu1 %v4624_v17  ;;  %6512 = vmatprep.subr.bf16.mxu0 %v4489_v27  ;;  %v4688_v17 = vunpack.c.h.s8.bf16 %v4072_v40  ;;  %v4553_v27 = vunpack.c.l.s8.bf16 %v4009_v35  ;;  %v4897_v35 = vunpack.c.h.s8.bf16 %v4177_v25 }
 0x828   : > { %6553 = vmatprep.subr.bf16.mxu1 %v4617_v56  ;;  %v4681_v56 = vunpack.c.l.s8.bf16 %v4073_v39  ;;  %v4176_v39 = vld [vmem:[%s8115_s14 + $0x670] sm:$0xff] }
 0x82a   : > { %6513 = vmatpush1.bf16.msra.mxu0 %v4488_v52  ;;  %v4552_v52 = vunpack.c.l.s8.bf16 %v4008_v54  ;;  %v4889_v54 = vunpack.c.l.s8.bf16 %v4177_v25  ;;  %v4144_v25 = vld [vmem:[%s8115_s14 + $0x570] sm:$0xff] }
 0x82b   : > { %6554 = vmatpush1.bf16.msra.mxu1 %v4616_v59  ;;  %6514 = vmatprep.subr.bf16.mxu0 %v4609_v38  ;;  %v4680_v59 = vunpack.c.l.s8.bf16 %v4072_v40  ;;  %v4801_v38 = vunpack.c.h.s8.bf16 %v4129_v44  ;;  %v4169_v40 = vld [vmem:[%s8115_s14 + $0x638] sm:$0xff] }
 0x82c   : > { %6555 = vmatprep.subr.bf16.mxu1 %v4737_v47  ;;  %v4929_v47 = vunpack.c.h.s8.bf16 %v4193_v51  ;;  %v4168_v51 = vld [vmem:[%s8115_s14 + $0x630] sm:$0xff] }
 0x82e   : > { %6515 = vmatpush2.bf16.msra.mxu0 %v4608_v3  ;;  %v4800_v3 = vunpack.c.h.s8.bf16 %v4128_v50  ;;  %v4873_v50 = vunpack.c.l.s8.bf16 %v4169_v40 }
 0x82f   : > { %6556 = vmatpush2.bf16.msra.mxu1 %v4736_v31  ;;  %6516 = vmatprep.subr.bf16.mxu0 %v4601_v20  ;;  %v4928_v31 = vunpack.c.h.s8.bf16 %v4192_v5  ;;  %v4793_v20 = vunpack.c.l.s8.bf16 %v4129_v44  ;;  %v4881_v44 = vunpack.c.h.s8.bf16 %v4169_v40  ;;  %v4225_v5 = vld [vmem:[%s8115_s14 + $0x7f8] sm:$0xff]  ;;  %v4136_v40 = vld [vmem:[%s8115_s14 + $0x530] sm:$0xff] }
 0x830   : > { %6557 = vmatprep.subr.bf16.mxu1 %v4729_v14  ;;  %v4121_v14 = vld [vmem:[%s8115_s14 + $0x4b8] sm:$0xff] }
 0x832   : > { %6517 = vmatpush2.bf16.msra.mxu0 %v4600_v41  ;;  %v4185_v41 = vld [vmem:[%s8115_s14 + $0x6b8] sm:$0xff] }
 0x833   : > { %6558 = vmatpush2.bf16.msra.mxu1 %v4728_v12  ;;  %6518 = vmatprep.subr.bf16.mxu0 %v4593_v32  ;;  %v4905_v10 = vunpack.c.l.s8.bf16 %v4185_v41 }
 0x834   : > { %6559 = vmatprep.subr.bf16.mxu1 %v4721_v36 }
 0x836   : > { %6519 = vmatpush2.bf16.msra.mxu0 %v4592_v24  ;;  %v4785_v24 = vunpack.c.h.s8.bf16 %v4121_v14 }
 0x837   : > { %6560 = vmatpush2.bf16.msra.mxu1 %v4720_v29  ;;  %6520 = vmatprep.subr.bf16.mxu0 %v4585_v2  ;;  %v4120_v29 = vld [vmem:[%s8115_s14 + $0x4b0] sm:$0xff] }
 0x838   : > { %6561 = vmatprep.subr.bf16.mxu1 %v4713_v11  ;;  %v4913_v11 = vunpack.c.h.s8.bf16 %v4185_v41 }
 0x83a   : > { %6521 = vmatpush2.bf16.msra.mxu0 %v4584_v46  ;;  %v4784_v46 = vunpack.c.h.s8.bf16 %v4120_v29 }
 0x83b   : > { %6562 = vmatpush2.bf16.msra.mxu1 %v4712_v6  ;;  %6522 = vmatprep.subr.bf16.mxu0 %v4577_v62 }
 0x83c   : > { %6563 = vmatprep.subr.bf16.mxu1 %v4705_v4  ;;  %v4113_v4 = vld [vmem:[%s8115_s14 + $0x478] sm:$0xff] }
 0x83e   : > { %6523 = vmatpush2.bf16.msra.mxu0 %v4576_v28  ;;  %v4776_v28 = vunpack.c.l.s8.bf16 %v4120_v29 }
 0x83f   : > { %6564 = vmatpush2.bf16.msra.mxu1 %v4704_v30  ;;  %6524 = vmatprep.subr.bf16.mxu0 %v4569_v33  ;;  %v4769_v33 = vunpack.c.h.s8.bf16 %v4113_v4 }
 0x840   : > { %6565 = vmatprep.subr.bf16.mxu1 %v4697_v34  ;;  %v4112_v34 = vld [vmem:[%s8115_s14 + $0x470] sm:$0xff] }
 0x842   : > { %6525 = vmatpush2.bf16.msra.mxu0 %v4568_v42  ;;  %v4768_v42 = vunpack.c.h.s8.bf16 %v4112_v34 }
 0x843   : > { %6566 = vmatpush2.bf16.msra.mxu1 %v4696_v22  ;;  %6526 = vmatprep.subr.bf16.mxu0 %v4561_v45  ;;  %v4896_v22 = vunpack.c.h.s8.bf16 %v4176_v39  ;;  %v4761_v45 = vunpack.c.l.s8.bf16 %v4113_v4 }
 0x844   : > { %6567 = vmatprep.subr.bf16.mxu1 %v4689_v53  ;;  %v4105_v53 = vld [vmem:[%s8115_s14 + $0x438] sm:$0xff] }
 0x846   : > { %6527 = vmatpush2.bf16.msra.mxu0 %v4560_v26  ;;  %v4760_v26 = vunpack.c.l.s8.bf16 %v4112_v34 }
 0x847   : > { %6568 = vmatpush2.bf16.msra.mxu1 %v4688_v17  ;;  %6528 = vmatprep.subr.bf16.mxu0 %v4553_v27  ;;  %v4888_v17 = vunpack.c.l.s8.bf16 %v4176_v39  ;;  %v4753_v27 = vunpack.c.h.s8.bf16 %v4105_v53 }
 0x848   : > { %6569 = vmatprep.subr.bf16.mxu1 %v4681_v56  ;;  %v4104_v56 = vld [vmem:[%s8115_s14 + $0x430] sm:$0xff] }
 0x84a   : > { %6529 = vmatpush2.bf16.msra.mxu0 %v4552_v52  ;;  %v4752_v52 = vunpack.c.h.s8.bf16 %v4104_v56 }
 0x84b   : > { %6570 = vmatpush2.bf16.msra.mxu1 %v4680_v59  ;;  %6580 = vmatprep.subr.bf16.mxu0 %v4801_v38  ;;  %v4880_v59 = vunpack.c.h.s8.bf16 %v4168_v51  ;;  %v4745_v38 = vunpack.c.l.s8.bf16 %v4105_v53 }
 0x84c   : > { %6621 = vmatprep.subr.bf16.mxu1 %v4929_v47  ;;  %v4161_v47 = vld [vmem:[%s8115_s14 + $0x5f8] sm:$0xff] }
 0x84d   : > { %v6286_v49 = vpop.f32.mrf.mxu0  ;;  %6531 = vmatmul.mubr.bf16.vlgmr.msra.gmra.mxu0 %v8941_v43 }
 0x84e   : > { %v6287_v12 = vadd.f32 %v6286_v49, %v9542_v18  ;;  %v6327_v32 = vpop.f32.mrf.mxu1  ;;  %6572 = vmatmul.mubr.bf16.vlgmr.msra.gmra.mxu1 %v8943_v58  ;;  %6581 = vmatpush1.bf16.msra.mxu0 %v4800_v3  ;;  %v4184_v58 = vld [vmem:[%s8115_s14 + $0x6b0] sm:$0xff]  ;;  %v4744_v3 = vunpack.c.l.s8.bf16 %v4104_v56  ;;  %v4993_v49 = vunpack.c.h.s8.bf16 %v4225_v5 }
 0x84f   : > { %6612 = vmatprep.mubr.bf16.mxu0 %v8946_v1  ;;  %6622 = vmatpush1.bf16.msra.mxu1 %v4928_v31  ;;  %v6288_v36 = vpop.f32.mrf.mxu0  ;;  %v4904_v30 = vunpack.c.l.s8.bf16 %v4184_v58  ;;  %v4872_v31 = vunpack.c.l.s8.bf16 %v4168_v51 }
 0x850   : > { %v9585_v2 = vadd.f32 %v6327_v32, %v6287_v12  ;;  %6653 = vmatprep.mubr.bf16.mxu1 %v8950_v7  ;;  %v6289_v43 = vadd.f32 %v6288_v36, %v9548_v16  ;;  %v6329_v18 = vpop.f32.mrf.mxu1  ;;  %6582 = vmatprep.subr.bf16.mxu0 %v4793_v20  ;;  %v4912_v7 = vunpack.c.h.s8.bf16 %v4184_v58  ;;  %v4777_v16 = vunpack.c.l.s8.bf16 %v4121_v14  ;;  %v4160_v14 = vld [vmem:[%s8115_s14 + $0x5f0] sm:$0xff]  ;;  %v4153_v36 = vld [vmem:[%s8115_s14 + $0x5b8] sm:$0xff] }
 0x851   : > { %v6290_v61 = vpop.f32.mrf.mxu0  ;;  %6623 = vmatprep.subr.bf16.mxu1 %v4921_v37  ;;  %v4865_v20 = vunpack.c.h.s8.bf16 %v4161_v47  ;;  %v4224_v37 = vld [vmem:[%s8115_s14 + $0x7f0] sm:$0xff]  ;;  %v4864_v41 = vunpack.c.h.s8.bf16 %v4160_v14  ;;  %v4857_v32 = vunpack.c.l.s8.bf16 %v4161_v47 }
 0x852   : > { %v9590_v1 = vadd.f32 %v6329_v18, %v6289_v43  ;;  %v6331_v19 = vpop.f32.mrf.mxu1  ;;  %6583 = vmatpush1.bf16.msra.mxu0 %v4792_v48  ;;  %v4992_v12 = vunpack.c.h.s8.bf16 %v4224_v37  ;;  %v4985_v48 = vunpack.c.l.s8.bf16 %v4225_v5  ;;  %v4984_v29 = vunpack.c.l.s8.bf16 %v4224_v37  ;;  %v4152_v18 = vld [vmem:[%s8115_s14 + $0x5b0] sm:$0xff]  ;;  %v4249_v37 = vld [vmem:[%s8115_s14 + $0x8b8] sm:$0xff] }
 0x853   : > { %6624 = vmatpush1.bf16.msra.mxu1 %v4920_v9  ;;  %v6291_v6 = vpop.f32.mrf.mxu0  ;;  %6584 = vmatprep.subr.bf16.mxu0 %v4785_v24  ;;  %v4217_v9 = vld [vmem:[%s8115_s14 + $0x7b8] sm:$0xff]  ;;  %v4856_v24 = vunpack.c.l.s8.bf16 %v4160_v14  ;;  %v4849_v43 = vunpack.c.h.s8.bf16 %v4153_v36  ;;  %v4216_v58 = vld [vmem:[%s8115_s14 + $0x7b0] sm:$0xff]  ;;  %v4848_v61 = vunpack.c.h.s8.bf16 %v4152_v18 }
 0x854   : > { %v6332_v62 = vpop.f32.mrf.mxu1  ;;  %6625 = vmatprep.subr.bf16.mxu1 %v4913_v11  ;;  %v4977_v11 = vunpack.c.h.s8.bf16 %v4217_v9  ;;  %v4976_v19 = vunpack.c.h.s8.bf16 %v4216_v58  ;;  %v4969_v6 = vunpack.c.l.s8.bf16 %v4217_v9  ;;  %v4256_v5 = vld [vmem:[%s8115_s14 + $0x8f0] sm:$0xff] }
 0x855   : > { %v4840_v62 = vunpack.c.l.s8.bf16 %v4152_v18 }
 0x856   : > { %6585 = vmatpush1.bf16.msra.mxu0 %v4784_v46  ;;  %v4841_v46 = vunpack.c.l.s8.bf16 %v4153_v36  ;;  %v5048_v36 = vunpack.c.l.s8.bf16 %v4256_v5 }
 0x857   : > { %6626 = vmatpush1.bf16.msra.mxu1 %v4912_v7  ;;  %6586 = vmatprep.subr.bf16.mxu0 %v4777_v16  ;;  %v4145_v7 = vld [vmem:[%s8115_s14 + $0x578] sm:$0xff] }
 0x858   : > { %6627 = vmatprep.subr.bf16.mxu1 %v4905_v10  ;;  %v4209_v16 = vld [vmem:[%s8115_s14 + $0x778] sm:$0xff]  ;;  %v4968_v10 = vunpack.c.l.s8.bf16 %v4216_v58  ;;  %v4833_v4 = vunpack.c.h.s8.bf16 %v4145_v7 }
 0x859   : > { %v4953_v39 = vunpack.c.l.s8.bf16 %v4209_v16 }
 0x85a   : > { %6587 = vmatpush1.bf16.msra.mxu0 %v4776_v28  ;;  %v4961_v28 = vunpack.c.h.s8.bf16 %v4209_v16  ;;  %v4305_v16 = vld [vmem:[%s8115_s14 + $0xa78] sm:$0xff] }
 0x85b   : > { %6628 = vmatpush1.bf16.msra.mxu1 %v4904_v30  ;;  %6588 = vmatprep.subr.bf16.mxu0 %v4769_v33  ;;  %v4208_v30 = vld [vmem:[%s8115_s14 + $0x770] sm:$0xff]  ;;  %v4832_v33 = vunpack.c.h.s8.bf16 %v4144_v25 }
 0x85c   : > { %6629 = vmatprep.subr.bf16.mxu1 %v4897_v35  ;;  %v4960_v34 = vunpack.c.h.s8.bf16 %v4208_v30  ;;  %v4825_v35 = vunpack.c.l.s8.bf16 %v4145_v7  ;;  %v4241_v7 = vld [vmem:[%s8115_s14 + $0x878] sm:$0xff] }
 0x85e   : > { %6589 = vmatpush1.bf16.msra.mxu0 %v4768_v42  ;;  %v4137_v42 = vld [vmem:[%s8115_s14 + $0x538] sm:$0xff] }
 0x85f   : > { %6630 = vmatpush1.bf16.msra.mxu1 %v4896_v22  ;;  %6590 = vmatprep.subr.bf16.mxu0 %v4761_v45  ;;  %v4201_v22 = vld [vmem:[%s8115_s14 + $0x738] sm:$0xff]  ;;  %v4824_v45 = vunpack.c.l.s8.bf16 %v4144_v25  ;;  %v4817_v53 = vunpack.c.h.s8.bf16 %v4137_v42  ;;  %v4240_v25 = vld [vmem:[%s8115_s14 + $0x870] sm:$0xff] }
 0x860   : > { %6631 = vmatprep.subr.bf16.mxu1 %v4889_v54  ;;  %v4952_v54 = vunpack.c.l.s8.bf16 %v4208_v30  ;;  %v4937_v51 = vunpack.c.l.s8.bf16 %v4201_v22  ;;  %v4304_v30 = vld [vmem:[%s8115_s14 + $0xa70] sm:$0xff] }
 0x862   : > { %6591 = vmatpush1.bf16.msra.mxu0 %v4760_v26  ;;  %v4945_v26 = vunpack.c.h.s8.bf16 %v4201_v22  ;;  %v4297_v22 = vld [vmem:[%s8115_s14 + $0xa38] sm:$0xff] }
 0x863   : > { %6632 = vmatpush1.bf16.msra.mxu1 %v4888_v17  ;;  %6592 = vmatprep.subr.bf16.mxu0 %v4753_v27  ;;  %v4200_v17 = vld [vmem:[%s8115_s14 + $0x730] sm:$0xff]  ;;  %v4816_v27 = vunpack.c.h.s8.bf16 %v4136_v40 }
 0x864   : > { %6633 = vmatprep.subr.bf16.mxu1 %v4881_v44  ;;  %v4944_v56 = vunpack.c.h.s8.bf16 %v4200_v17  ;;  %v4809_v44 = vunpack.c.l.s8.bf16 %v4137_v42  ;;  %v4233_v42 = vld [vmem:[%s8115_s14 + $0x838] sm:$0xff] }
 0x866   : > { %6593 = vmatpush1.bf16.msra.mxu0 %v4752_v52  ;;  %v4257_v52 = vld [vmem:[%s8115_s14 + $0x8f8] sm:$0xff] }
 0x867   : > { %6634 = vmatpush1.bf16.msra.mxu1 %v4880_v59  ;;  %6594 = vmatprep.subr.bf16.mxu0 %v4745_v38  ;;  %v4321_v59 = vld [vmem:[%s8115_s14 + $0xaf8] sm:$0xff]  ;;  %v4808_v38 = vunpack.c.l.s8.bf16 %v4136_v40  ;;  %v5057_v47 = vunpack.c.h.s8.bf16 %v4257_v52  ;;  %v4232_v40 = vld [vmem:[%s8115_s14 + $0x830] sm:$0xff] }
 0x868   : > { %6635 = vmatprep.subr.bf16.mxu1 %v4873_v50  ;;  %v4936_v50 = vunpack.c.l.s8.bf16 %v4200_v17  ;;  %v4296_v17 = vld [vmem:[%s8115_s14 + $0xa30] sm:$0xff] }
 0x86a   : > { %6595 = vmatpush1.bf16.msra.mxu0 %v4744_v3  ;;  %v5185_v3 = vunpack.c.h.s8.bf16 %v4321_v59 }
 0x86b   : > { %6636 = vmatpush1.bf16.msra.mxu1 %v4872_v31  ;;  %6596 = vmatprep.subr.bf16.mxu0 %v4865_v20  ;;  %v4320_v31 = vld [vmem:[%s8115_s14 + $0xaf0] sm:$0xff]  ;;  %v5056_v20 = vunpack.c.h.s8.bf16 %v4256_v5 }
 0x86c   : > { %6637 = vmatprep.subr.bf16.mxu1 %v4993_v49  ;;  %v5184_v14 = vunpack.c.h.s8.bf16 %v4320_v31  ;;  %v5049_v49 = vunpack.c.l.s8.bf16 %v4257_v52  ;;  %v4289_v52 = vld [vmem:[%s8115_s14 + $0x9f8] sm:$0xff]  ;;  %v4288_v5 = vld [vmem:[%s8115_s14 + $0x9f0] sm:$0xff] }
 0x86e   : > { %6597 = vmatpush2.bf16.msra.mxu0 %v4864_v41 }
 0x86f   : > { %6638 = vmatpush2.bf16.msra.mxu1 %v4992_v12  ;;  %6598 = vmatprep.subr.bf16.mxu0 %v4857_v32  ;;  %v5177_v12 = vunpack.c.l.s8.bf16 %v4321_v59  ;;  %v4313_v32 = vld [vmem:[%s8115_s14 + $0xab8] sm:$0xff] }
 0x870   : > { %6639 = vmatprep.subr.bf16.mxu1 %v4985_v48  ;;  %v5169_v18 = vunpack.c.h.s8.bf16 %v4313_v32  ;;  %v4353_v59 = vld [vmem:[%s8115_s14 + $0xbf8] sm:$0xff] }
 0x872   : > { %6599 = vmatpush2.bf16.msra.mxu0 %v4856_v24  ;;  %v5176_v24 = vunpack.c.l.s8.bf16 %v4320_v31  ;;  %v4352_v31 = vld [vmem:[%s8115_s14 + $0xbf0] sm:$0xff] }
 0x873   : > { %6640 = vmatpush2.bf16.msra.mxu1 %v4984_v29  ;;  %6600 = vmatprep.subr.bf16.mxu0 %v4849_v43  ;;  %v5041_v29 = vunpack.c.h.s8.bf16 %v4249_v37  ;;  %v4248_v43 = vld [vmem:[%s8115_s14 + $0x8b0] sm:$0xff] }
 0x874   : > { %6641 = vmatprep.subr.bf16.mxu1 %v4977_v11  ;;  %v4312_v11 = vld [vmem:[%s8115_s14 + $0xab0] sm:$0xff] }
 0x876   : > { %6601 = vmatpush2.bf16.msra.mxu0 %v4848_v61 }
 0x877   : > { %6642 = vmatpush2.bf16.msra.mxu1 %v4976_v19  ;;  %6602 = vmatprep.subr.bf16.mxu0 %v4841_v46  ;;  %v5168_v19 = vunpack.c.h.s8.bf16 %v4312_v11  ;;  %v5033_v46 = vunpack.c.l.s8.bf16 %v4249_v37  ;;  %v5241_v37 = vunpack.c.l.s8.bf16 %v4353_v59 }
 0x878   : > { %6643 = vmatprep.subr.bf16.mxu1 %v4969_v6  ;;  %v5161_v6 = vunpack.c.l.s8.bf16 %v4313_v32  ;;  %v4345_v32 = vld [vmem:[%s8115_s14 + $0xbb8] sm:$0xff] }
 0x87a   : > { %6603 = vmatpush2.bf16.msra.mxu0 %v4840_v62  ;;  %v5032_v62 = vunpack.c.l.s8.bf16 %v4248_v43 }
 0x87b   : > { %6644 = vmatpush2.bf16.msra.mxu1 %v4968_v10  ;;  %6604 = vmatprep.subr.bf16.mxu0 %v4833_v4  ;;  %v5160_v10 = vunpack.c.l.s8.bf16 %v4312_v11  ;;  %v5025_v4 = vunpack.c.h.s8.bf16 %v4241_v7  ;;  %v4344_v11 = vld [vmem:[%s8115_s14 + $0xbb0] sm:$0xff] }
 0x87c   : > { %6645 = vmatprep.subr.bf16.mxu1 %v4961_v28  ;;  %v5153_v28 = vunpack.c.h.s8.bf16 %v4305_v16 }
 0x87e   : > { %6605 = vmatpush2.bf16.msra.mxu0 %v4832_v33  ;;  %v5024_v33 = vunpack.c.h.s8.bf16 %v4240_v25 }
 0x87f   : > { %6646 = vmatpush2.bf16.msra.mxu1 %v4960_v34  ;;  %6606 = vmatprep.subr.bf16.mxu0 %v4825_v35  ;;  %v5152_v34 = vunpack.c.h.s8.bf16 %v4304_v30  ;;  %v5017_v35 = vunpack.c.l.s8.bf16 %v4241_v7 }
 0x880   : > { %6647 = vmatprep.subr.bf16.mxu1 %v4953_v39  ;;  %v5145_v39 = vunpack.c.l.s8.bf16 %v4305_v16  ;;  %v4272_v16 = vld [vmem:[%s8115_s14 + $0x970] sm:$0xff] }
 0x882   : > { %6607 = vmatpush2.bf16.msra.mxu0 %v4824_v45  ;;  %v5016_v45 = vunpack.c.l.s8.bf16 %v4240_v25 }
 0x883   : > { %6648 = vmatpush2.bf16.msra.mxu1 %v4952_v54  ;;  %6608 = vmatprep.subr.bf16.mxu0 %v4817_v53  ;;  %v5144_v54 = vunpack.c.l.s8.bf16 %v4304_v30  ;;  %v5009_v53 = vunpack.c.h.s8.bf16 %v4233_v42 }
 0x884   : > { %6649 = vmatprep.subr.bf16.mxu1 %v4945_v26  ;;  %v5137_v26 = vunpack.c.h.s8.bf16 %v4297_v22 }
 0x886   : > { %6609 = vmatpush2.bf16.msra.mxu0 %v4816_v27  ;;  %v5008_v27 = vunpack.c.h.s8.bf16 %v4232_v40 }
 0x887   : > { %6650 = vmatpush2.bf16.msra.mxu1 %v4944_v56  ;;  %6610 = vmatprep.subr.bf16.mxu0 %v4809_v44  ;;  %v5136_v56 = vunpack.c.h.s8.bf16 %v4296_v17  ;;  %v5001_v44 = vunpack.c.l.s8.bf16 %v4233_v42 }
 0x888   : > { %6651 = vmatprep.subr.bf16.mxu1 %v4937_v51  ;;  %v5129_v51 = vunpack.c.l.s8.bf16 %v4297_v22  ;;  %v4264_v22 = vld [vmem:[%s8115_s14 + $0x930] sm:$0xff] }
 0x88a   : > { %6611 = vmatpush2.bf16.msra.mxu0 %v4808_v38  ;;  %v5000_v38 = vunpack.c.l.s8.bf16 %v4232_v40 }
 0x88b   : > { %6652 = vmatpush2.bf16.msra.mxu1 %v4936_v50  ;;  %6662 = vmatprep.subr.bf16.mxu0 %v5057_v47  ;;  %v5128_v50 = vunpack.c.l.s8.bf16 %v4296_v17  ;;  %v5121_v47 = vunpack.c.h.s8.bf16 %v4289_v52 }
 0x88c   : > { %6703 = vmatprep.subr.bf16.mxu1 %v5185_v3  ;;  %v5249_v3 = vunpack.c.h.s8.bf16 %v4353_v59  ;;  %v4384_v59 = vld [vmem:[%s8115_s14 + $0xcf0] sm:$0xff] }
 0x88d   : > { %v9621_v41 = vpop.f32.mrf.mxu0  ;;  %6613 = vmatmul.mubr.bf16.vlgmr.msra.gmra.mxu0 %v9041_v13 }
 0x88e   : > { %v9625_v48 = vpop.f32.mrf.mxu1  ;;  %6654 = vmatmul.mubr.bf16.vlgmr.msra.gmra.mxu1 %v9043_v57  ;;  %6663 = vmatpush1.bf16.msra.mxu0 %v5056_v20  ;;  %v5120_v20 = vunpack.c.h.s8.bf16 %v4288_v5 }
 0x88f   : > { %6694 = vmatprep.mubr.bf16.mxu0 %v9046_v0  ;;  %6704 = vmatpush1.bf16.msra.mxu1 %v5184_v14  ;;  %v9629_v9 = vpop.f32.mrf.mxu0  ;;  %v5040_v0 = vunpack.c.h.s8.bf16 %v4248_v43  ;;  %v5248_v14 = vunpack.c.h.s8.bf16 %v4352_v31  ;;  %v4280_v43 = vld [vmem:[%s8115_s14 + $0x9b0] sm:$0xff] }
 0x890   : > { %6735 = vmatprep.mubr.bf16.mxu1 %v9050_v63  ;;  %v9633_v13 = vpop.f32.mrf.mxu1  ;;  %6664 = vmatprep.subr.bf16.mxu0 %v5049_v49  ;;  %v5113_v49 = vunpack.c.l.s8.bf16 %v4289_v52 }
 0x891   : > { %v6372_v57 = vpop.f32.mrf.mxu0  ;;  %6705 = vmatprep.subr.bf16.mxu1 %v5177_v12  ;;  %v4281_v12 = vld [vmem:[%s8115_s14 + $0x9b8] sm:$0xff] }
 0x892   : > { %v6413_v58 = vpop.f32.mrf.mxu1  ;;  %6665 = vmatpush1.bf16.msra.mxu0 %v5048_v36  ;;  %v5112_v36 = vunpack.c.l.s8.bf16 %v4288_v5  ;;  %v5104_v57 = vunpack.c.h.s8.bf16 %v4280_v43  ;;  %v6371_v5 = vadd.f32 %v9629_v9, %v9590_v1 }
 0x893   : > { %6706 = vmatpush1.bf16.msra.mxu1 %v5176_v24  ;;  %v6373_v61 = vpop.f32.mrf.mxu0  ;;  %6666 = vmatprep.subr.bf16.mxu0 %v5041_v29  ;;  %v5240_v24 = vunpack.c.l.s8.bf16 %v4352_v31  ;;  %v5105_v29 = vunpack.c.h.s8.bf16 %v4281_v12  ;;  %v5232_v58 = vunpack.c.h.s8.bf16 %v4344_v11 }
 0x894   : > { %v6414_v63 = vpop.f32.mrf.mxu1  ;;  %6707 = vmatprep.subr.bf16.mxu1 %v5169_v18  ;;  %v5233_v18 = vunpack.c.h.s8.bf16 %v4345_v32  ;;  %v5225_v61 = vunpack.c.l.s8.bf16 %v4345_v32  ;;  %v5304_v32 = vunpack.c.l.s8.bf16 %v4384_v59 }
 0x895   : > { %v5096_v63 = vunpack.c.l.s8.bf16 %v4280_v43 }
 0x896   : > { %6667 = vmatpush1.bf16.msra.mxu0 %v5040_v0  ;;  %v5097_v0 = vunpack.c.l.s8.bf16 %v4281_v12  ;;  %v6412_v12 = vadd.f32 %v9633_v13, %v6371_v5 }
 0x897   : > { %6708 = vmatpush1.bf16.msra.mxu1 %v5168_v19  ;;  %6668 = vmatprep.subr.bf16.mxu0 %v5033_v46  ;;  %v4273_v19 = vld [vmem:[%s8115_s14 + $0x978] sm:$0xff] }
 0x898   : > { %6709 = vmatprep.subr.bf16.mxu1 %v5161_v6  ;;  %v4337_v46 = vld [vmem:[%s8115_s14 + $0xb78] sm:$0xff]  ;;  %v5224_v6 = vunpack.c.l.s8.bf16 %v4344_v11  ;;  %v5089_v7 = vunpack.c.h.s8.bf16 %v4273_v19  ;;  %v4440_v11 = vld [vmem:[%s8115_s14 + $0xeb0] sm:$0xff] }
 0x899   : > { %v5209_v30 = vunpack.c.l.s8.bf16 %v4337_v46 }
 0x89a   : > { %6669 = vmatpush1.bf16.msra.mxu0 %v5032_v62  ;;  %v5217_v62 = vunpack.c.h.s8.bf16 %v4337_v46 }
 0x89b   : > { %6710 = vmatpush1.bf16.msra.mxu1 %v5160_v10  ;;  %6670 = vmatprep.subr.bf16.mxu0 %v5025_v4  ;;  %v4336_v10 = vld [vmem:[%s8115_s14 + $0xb70] sm:$0xff]  ;;  %v5088_v4 = vunpack.c.h.s8.bf16 %v4272_v16 }
 0x89c   : > { %6711 = vmatprep.subr.bf16.mxu1 %v5153_v28  ;;  %v5216_v25 = vunpack.c.h.s8.bf16 %v4336_v10  ;;  %v5081_v28 = vunpack.c.l.s8.bf16 %v4273_v19 }
 0x89e   : > { %6671 = vmatpush1.bf16.msra.mxu0 %v5024_v33  ;;  %v4265_v33 = vld [vmem:[%s8115_s14 + $0x938] sm:$0xff] }
 0x89f   : > { %6712 = vmatpush1.bf16.msra.mxu1 %v5152_v34  ;;  %6672 = vmatprep.subr.bf16.mxu0 %v5017_v35  ;;  %v4329_v34 = vld [vmem:[%s8115_s14 + $0xb38] sm:$0xff]  ;;  %v5080_v35 = vunpack.c.l.s8.bf16 %v4272_v16  ;;  %v5073_v42 = vunpack.c.h.s8.bf16 %v4265_v33 }
 0x8a0   : > { %6713 = vmatprep.subr.bf16.mxu1 %v5145_v39  ;;  %v5208_v39 = vunpack.c.l.s8.bf16 %v4336_v10  ;;  %v5193_v17 = vunpack.c.l.s8.bf16 %v4329_v34  ;;  %v4433_v10 = vld [vmem:[%s8115_s14 + $0xe78] sm:$0xff] }
 0x8a2   : > { %6673 = vmatpush1.bf16.msra.mxu0 %v5016_v45  ;;  %v5201_v45 = vunpack.c.h.s8.bf16 %v4329_v34  ;;  %v4432_v34 = vld [vmem:[%s8115_s14 + $0xe70] sm:$0xff] }
 0x8a3   : > { %6714 = vmatpush1.bf16.msra.mxu1 %v5144_v54  ;;  %6674 = vmatprep.subr.bf16.mxu0 %v5009_v53  ;;  %v4328_v54 = vld [vmem:[%s8115_s14 + $0xb30] sm:$0xff]  ;;  %v5072_v53 = vunpack.c.h.s8.bf16 %v4264_v22 }
 0x8a4   : > { %6715 = vmatprep.subr.bf16.mxu1 %v5137_v26  ;;  %v5200_v40 = vunpack.c.h.s8.bf16 %v4328_v54  ;;  %v5065_v26 = vunpack.c.l.s8.bf16 %v4265_v33  ;;  %v5409_v33 = vunpack.c.h.s8.bf16 %v4433_v10 }
 0x8a6   : > { %6675 = vmatpush1.bf16.msra.mxu0 %v5008_v27  ;;  %v4385_v27 = vld [vmem:[%s8115_s14 + $0xcf8] sm:$0xff] }
 0x8a7   : > { %6716 = vmatpush1.bf16.msra.mxu1 %v5136_v56  ;;  %6676 = vmatprep.subr.bf16.mxu0 %v5001_v44  ;;  %v4449_v56 = vld [vmem:[%s8115_s14 + $0xef8] sm:$0xff]  ;;  %v5064_v44 = vunpack.c.l.s8.bf16 %v4264_v22  ;;  %v5313_v52 = vunpack.c.h.s8.bf16 %v4385_v27  ;;  %v5401_v22 = vunpack.c.l.s8.bf16 %v4433_v10 }
 0x8a8   : > { %6717 = vmatprep.subr.bf16.mxu1 %v5129_v51  ;;  %v5192_v51 = vunpack.c.l.s8.bf16 %v4328_v54  ;;  %v4425_v54 = vld [vmem:[%s8115_s14 + $0xe38] sm:$0xff] }
 0x8aa   : > { %6677 = vmatpush1.bf16.msra.mxu0 %v5000_v38  ;;  %v6369_v38 = vadd.f32 %v9621_v41, %v9585_v2  ;;  %v5433_v2 = vunpack.c.l.s8.bf16 %v4449_v56  ;;  %v4441_v41 = vld [vmem:[%s8115_s14 + $0xeb8] sm:$0xff] }
 0x8ab   : > { %6718 = vmatpush1.bf16.msra.mxu1 %v5128_v50  ;;  %6678 = vmatprep.subr.bf16.mxu0 %v5121_v47  ;;  %v5441_v50 = vunpack.c.h.s8.bf16 %v4449_v56  ;;  %v4448_v47 = vld [vmem:[%s8115_s14 + $0xef0] sm:$0xff]  ;;  %v5417_v16 = vunpack.c.l.s8.bf16 %v4441_v41 }
 0x8ac   : > { %6719 = vmatprep.subr.bf16.mxu1 %v5249_v3  ;;  %v5312_v3 = vunpack.c.h.s8.bf16 %v4384_v59  ;;  %v5440_v31 = vunpack.c.h.s8.bf16 %v4448_v47  ;;  %v4424_v56 = vld [vmem:[%s8115_s14 + $0xe30] sm:$0xff]  ;;  %v5385_v59 = vunpack.c.l.s8.bf16 %v4425_v54 }
 0x8ad   : > { %v5384_v5 = vunpack.c.l.s8.bf16 %v4424_v56 }
 0x8ae   : > { %6679 = vmatpush2.bf16.msra.mxu0 %v5120_v20  ;;  %v6410_v20 = vadd.f32 %v9625_v48, %v6369_v38  ;;  %v5510_v48 = vld [vmem:[%s8117_s11 + $0x20] sm:$0xff]  ;;  %v4417_v38 = vld [vmem:[%s8115_s14 + $0xdf8] sm:$0xff] }
 0x8af   : > { %6720 = vmatpush2.bf16.msra.mxu1 %v5248_v14  ;;  %6680 = vmatprep.subr.bf16.mxu0 %v5113_v49  ;;  %v5305_v14 = vunpack.c.l.s8.bf16 %v4385_v27  ;;  %v4377_v49 = vld [vmem:[%s8115_s14 + $0xcb8] sm:$0xff]  ;;  %v5393_v27 = vunpack.c.h.s8.bf16 %v4425_v54 }
 0x8b0   : > { %6721 = vmatprep.subr.bf16.mxu1 %v5241_v37 }
 0x8b2   : > { %6681 = vmatpush2.bf16.msra.mxu0 %v5112_v36 }
 0x8b3   : > { %6722 = vmatpush2.bf16.msra.mxu1 %v5240_v24  ;;  %6682 = vmatprep.subr.bf16.mxu0 %v5105_v29  ;;  %v5432_v24 = vunpack.c.l.s8.bf16 %v4448_v47  ;;  %v5297_v29 = vunpack.c.h.s8.bf16 %v4377_v49 }
 0x8b4   : > { %6723 = vmatprep.subr.bf16.mxu1 %v5233_v18 }
 0x8b6   : > { %6683 = vmatpush2.bf16.msra.mxu0 %v5104_v57  ;;  %v5511_v57 = vld [vmem:[%s8117_s11 + $0x28] sm:$0xff] }
 0x8b7   : > { %6724 = vmatpush2.bf16.msra.mxu1 %v5232_v58  ;;  %6684 = vmatprep.subr.bf16.mxu0 %v5097_v0 }
 0x8b8   : > { %6725 = vmatprep.subr.bf16.mxu1 %v5225_v61 }
 0x8ba   : > { %6685 = vmatpush2.bf16.msra.mxu0 %v5096_v63  ;;  %v5289_v63 = vunpack.c.l.s8.bf16 %v4377_v49 }
 0x8bb   : > { %6726 = vmatpush2.bf16.msra.mxu1 %v5224_v6  ;;  %6686 = vmatprep.subr.bf16.mxu0 %v5089_v7 }
 0x8bc   : > { %6727 = vmatprep.subr.bf16.mxu1 %v5217_v62  ;;  %v4369_v62 = vld [vmem:[%s8115_s14 + $0xc78] sm:$0xff] }
 0x8be   : > { %6687 = vmatpush2.bf16.msra.mxu0 %v5088_v4 }
 0x8bf   : > { %6728 = vmatpush2.bf16.msra.mxu1 %v5216_v25  ;;  %6688 = vmatprep.subr.bf16.mxu0 %v5081_v28  ;;  %v5416_v25 = vunpack.c.l.s8.bf16 %v4440_v11  ;;  %v5281_v28 = vunpack.c.h.s8.bf16 %v4369_v62 }
 0x8c0   : > { %6729 = vmatprep.subr.bf16.mxu1 %v5209_v30  ;;  %v4368_v30 = vld [vmem:[%s8115_s14 + $0xc70] sm:$0xff] }
 0x8c2   : > { %6689 = vmatpush2.bf16.msra.mxu0 %v5080_v35  ;;  %v5280_v35 = vunpack.c.h.s8.bf16 %v4368_v30 }
 0x8c3   : > { %6730 = vmatpush2.bf16.msra.mxu1 %v5208_v39  ;;  %6690 = vmatprep.subr.bf16.mxu0 %v5073_v42  ;;  %v5408_v39 = vunpack.c.h.s8.bf16 %v4432_v34  ;;  %v5273_v42 = vunpack.c.l.s8.bf16 %v4369_v62 }
 0x8c4   : > { %6731 = vmatprep.subr.bf16.mxu1 %v5201_v45  ;;  %v4361_v45 = vld [vmem:[%s8115_s14 + $0xc38] sm:$0xff] }
 0x8c6   : > { %6691 = vmatpush2.bf16.msra.mxu0 %v5072_v53  ;;  %v5272_v53 = vunpack.c.l.s8.bf16 %v4368_v30  ;;  %v4456_v30 = vld [vmem:[%s8115_s14 + $0xf30] sm:$0xff] }
 0x8c7   : > { %6732 = vmatpush2.bf16.msra.mxu1 %v5200_v40  ;;  %6692 = vmatprep.subr.bf16.mxu0 %v5065_v26  ;;  %v5400_v40 = vunpack.c.l.s8.bf16 %v4432_v34  ;;  %v5265_v26 = vunpack.c.h.s8.bf16 %v4361_v45  ;;  %v5456_v34 = vunpack.c.h.s8.bf16 %v4456_v30 }
 0x8c8   : > { %6733 = vmatprep.subr.bf16.mxu1 %v5193_v17  ;;  %v4360_v17 = vld [vmem:[%s8115_s14 + $0xc30] sm:$0xff] }
 0x8c9   : > { %v5256_v47 = vunpack.c.l.s8.bf16 %v4360_v17 }
 0x8ca   : > { %6693 = vmatpush2.bf16.msra.mxu0 %v5064_v44  ;;  %v5264_v44 = vunpack.c.h.s8.bf16 %v4360_v17 }
 0x8cb   : > { %6734 = vmatpush2.bf16.msra.mxu1 %v5192_v51  ;;  %6744 = vmatprep.subr.bf16.mxu0 %v5313_v52  ;;  %v5392_v51 = vunpack.c.h.s8.bf16 %v4424_v56  ;;  %v5257_v52 = vunpack.c.l.s8.bf16 %v4361_v45 }
 0x8cc   : > { %6785 = vmatprep.subr.bf16.mxu1 %v5441_v50  ;;  %v4481_v50 = vld [vmem:[%s8115_s14 + $0xff8] sm:$0xff] }
 0x8cd   : > { %v6450_v37 = vpop.f32.mrf.mxu0  ;;  %6695 = vmatmul.mubr.bf16.vlgmr.msra.gmra.mxu0 %v9118_v21  ;;  %v4376_v21 = vld [vmem:[%s8115_s14 + $0xcb0] sm:$0xff] }
 0x8ce   : > { %v6451_v1 = vadd.f32 %v6450_v37, %v6410_v20  ;;  %v6491_v9 = vpop.f32.mrf.mxu1  ;;  %6736 = vmatmul.mubr.bf16.vlgmr.msra.gmra.mxu1 %v9120_v23  ;;  %6745 = vmatpush1.bf16.msra.mxu0 %v5312_v3  ;;  %v5425_v23 = vunpack.c.h.s8.bf16 %v4441_v41  ;;  %v5296_v19 = vunpack.c.h.s8.bf16 %v4376_v21  ;;  %v5288_v4 = vunpack.c.l.s8.bf16 %v4376_v21 }
 0x8cf   : > { %6776 = vmatprep.mubr.bf16.mxu0 %v9123_v60  ;;  %6786 = vmatpush1.bf16.msra.mxu1 %v5440_v31  ;;  %v6452_v36 = vpop.f32.mrf.mxu0  ;;  %v5377_v3 = vunpack.c.h.s8.bf16 %v4417_v38  ;;  %v4416_v31 = vld [vmem:[%s8115_s14 + $0xdf0] sm:$0xff]  ;;  %v5505_v20 = vunpack.c.h.s8.bf16 %v4481_v50  ;;  %v5497_v41 = vunpack.c.l.s8.bf16 %v4481_v50 }
 0x8d0   : > { %v6492_v43 = vadd.f32 %v6491_v9, %v6451_v1  ;;  %6817 = vmatprep.mubr.bf16.mxu1 %v9177_v55  ;;  %v6453_v13 = vadd.f32 %v6452_v36, %v6412_v12  ;;  %v6493_v18 = vpop.f32.mrf.mxu1  ;;  %6746 = vmatprep.subr.bf16.mxu0 %v5305_v14  ;;  %v5424_v55 = vunpack.c.h.s8.bf16 %v4440_v11  ;;  %v4480_v14 = vld [vmem:[%s8115_s14 + $0xff0] sm:$0xff]  ;;  %v5376_v49 = vunpack.c.h.s8.bf16 %v4416_v31  ;;  %v4409_v12 = vld [vmem:[%s8115_s14 + $0xdb8] sm:$0xff] }
 0x8d1   : > { %v6454_v58 = vpop.f32.mrf.mxu0  ;;  %6787 = vmatprep.subr.bf16.mxu1 %v5433_v2  ;;  %v5504_v37 = vunpack.c.h.s8.bf16 %v4480_v14  ;;  %v5369_v2 = vunpack.c.l.s8.bf16 %v4417_v38  ;;  %v4473_v1 = vld [vmem:[%s8115_s14 + $0xfb8] sm:$0xff]  ;;  %v5368_v9 = vunpack.c.l.s8.bf16 %v4416_v31  ;;  %v4408_v36 = vld [vmem:[%s8115_s14 + $0xdb0] sm:$0xff] }
 0x8d2   : > { %v6830_v0 = vadd.f32 %v6492_v43, %v5510_v48  ;;  %v6494_v60 = vadd.f32 %v6493_v18, %v6453_v13  ;;  %v6495_v61 = vpop.f32.mrf.mxu1  ;;  %6747 = vmatpush1.bf16.msra.mxu0 %v5304_v32  ;;  %v5496_v32 = vunpack.c.l.s8.bf16 %v4480_v14  ;;  %v5361_v48 = vunpack.c.h.s8.bf16 %v4409_v12  ;;  %v4465_v11 = vld [vmem:[%s8115_s14 + $0xf78] sm:$0xff] }
 0x8d3   : > { %6788 = vmatpush1.bf16.msra.mxu1 %v5432_v24  ;;  %v6455_v46 = vpop.f32.mrf.mxu0  ;;  %6748 = vmatprep.subr.bf16.mxu0 %v5297_v29  ;;  %v5489_v24 = vunpack.c.h.s8.bf16 %v4473_v1  ;;  %v4472_v29 = vld [vmem:[%s8115_s14 + $0xfb0] sm:$0xff]  ;;  %v5360_v21 = vunpack.c.h.s8.bf16 %v4408_v36  ;;  %v5353_v13 = vunpack.c.l.s8.bf16 %v4409_v12  ;;  %v5481_v18 = vunpack.c.l.s8.bf16 %v4473_v1 }
 0x8d4   : > { %6838 = vst [vmem:[%s8117_s11 + $0x20] sm:$0xff] %v6830_v0  ;;  %v6831_v6 = vadd.f32 %v6494_v60, %v5511_v57  ;;  %v6496_v7 = vpop.f32.mrf.mxu1  ;;  %6789 = vmatprep.subr.bf16.mxu1 %v5425_v23  ;;  %v5488_v43 = vunpack.c.h.s8.bf16 %v4472_v29  ;;  %v4401_v23 = vld [vmem:[%s8115_s14 + $0xd78] sm:$0xff]  ;;  %v5352_v57 = vunpack.c.l.s8.bf16 %v4408_v36  ;;  %v5480_v58 = vunpack.c.l.s8.bf16 %v4472_v29  ;;  %v4400_v60 = vld [vmem:[%s8115_s14 + $0xd70] sm:$0xff] }
 0x8d5   : > { %v5345_v0 = vunpack.c.h.s8.bf16 %v4401_v23  ;;  %v5473_v61 = vunpack.c.h.s8.bf16 %v4465_v11  ;;  %v5344_v46 = vunpack.c.h.s8.bf16 %v4400_v60  ;;  %v4393_v7 = vld [vmem:[%s8115_s14 + $0xd38] sm:$0xff]  ;;  %v5336_v62 = vunpack.c.l.s8.bf16 %v4400_v60 }
 0x8d6   : > { %6839 = vst [vmem:[%s8117_s11 + $0x28] sm:$0xff] %v6831_v6  ;;  %6749 = vmatpush1.bf16.msra.mxu0 %v5296_v19  ;;  %v4464_v19 = vld [vmem:[%s8115_s14 + $0xf70] sm:$0xff]  ;;  %v5465_v6 = vunpack.c.l.s8.bf16 %v4465_v11 }
 0x8d7   : > { %6790 = vmatpush1.bf16.msra.mxu1 %v5424_v55  ;;  %6750 = vmatprep.subr.bf16.mxu0 %v5289_v63  ;;  %v5472_v55 = vunpack.c.h.s8.bf16 %v4464_v19  ;;  %v5337_v63 = vunpack.c.l.s8.bf16 %v4401_v23  ;;  %v5464_v10 = vunpack.c.l.s8.bf16 %v4464_v19 }
 0x8d8   : > { %6791 = vmatprep.subr.bf16.mxu1 %v5417_v16  ;;  %v4457_v16 = vld [vmem:[%s8115_s14 + $0xf38] sm:$0xff] }
 0x8da   : > { %6751 = vmatpush1.bf16.msra.mxu0 %v5288_v4  ;;  %v5329_v4 = vunpack.c.h.s8.bf16 %v4393_v7 }
 0x8db   : > { %6792 = vmatpush1.bf16.msra.mxu1 %v5416_v25  ;;  %6752 = vmatprep.subr.bf16.mxu0 %v5281_v28  ;;  %v4392_v25 = vld [vmem:[%s8115_s14 + $0xd30] sm:$0xff]  ;;  %v5457_v28 = vunpack.c.h.s8.bf16 %v4457_v16 }
 0x8dc   : > { %6793 = vmatprep.subr.bf16.mxu1 %v5409_v33  ;;  %v5328_v33 = vunpack.c.h.s8.bf16 %v4392_v25 }
 0x8de   : > { %6753 = vmatpush1.bf16.msra.mxu0 %v5280_v35  ;;  %v5321_v35 = vunpack.c.l.s8.bf16 %v4393_v7 }
 0x8df   : > { %6794 = vmatpush1.bf16.msra.mxu1 %v5408_v39  ;;  %6754 = vmatprep.subr.bf16.mxu0 %v5273_v42  ;;  %v5449_v39 = vunpack.c.l.s8.bf16 %v4457_v16  ;;  %v5320_v42 = vunpack.c.l.s8.bf16 %v4392_v25 }
 0x8e0   : > { %6795 = vmatprep.subr.bf16.mxu1 %v5401_v22  ;;  %v5448_v22 = vunpack.c.l.s8.bf16 %v4456_v30 }
 0x8e2   : > { %6755 = vmatpush1.bf16.msra.mxu0 %v5272_v53 }
 0x8e3   : > { %6796 = vmatpush1.bf16.msra.mxu1 %v5400_v40  ;;  %6756 = vmatprep.subr.bf16.mxu0 %v5265_v26 }
 0x8e4   : > { %6797 = vmatprep.subr.bf16.mxu1 %v5393_v27 }
 0x8e6   : > { %6757 = vmatpush1.bf16.msra.mxu0 %v5264_v44 }
 0x8e7   : > { %6798 = vmatpush1.bf16.msra.mxu1 %v5392_v51  ;;  %6758 = vmatprep.subr.bf16.mxu0 %v5257_v52 }
 0x8e8   : > { %6799 = vmatprep.subr.bf16.mxu1 %v5385_v59 }
 0x8ea   : > { %6759 = vmatpush1.bf16.msra.mxu0 %v5256_v47 }
 0x8eb   : > { %6800 = vmatpush1.bf16.msra.mxu1 %v5384_v5  ;;  %6760 = vmatprep.subr.bf16.mxu0 %v5377_v3 }
 0x8ec   : > { %6801 = vmatprep.subr.bf16.mxu1 %v5505_v20 }
 0x8ee   : > { %6761 = vmatpush2.bf16.msra.mxu0 %v5376_v49 }
 0x8ef   : > { %6802 = vmatpush2.bf16.msra.mxu1 %v5504_v37  ;;  %6762 = vmatprep.subr.bf16.mxu0 %v5369_v2 }
 0x8f0   : > { %6803 = vmatprep.subr.bf16.mxu1 %v5497_v41 }
 0x8f2   : > { %6763 = vmatpush2.bf16.msra.mxu0 %v5368_v9 }
 0x8f3   : > { %6804 = vmatpush2.bf16.msra.mxu1 %v5496_v32  ;;  %6764 = vmatprep.subr.bf16.mxu0 %v5361_v48 }
 0x8f4   : > { %6805 = vmatprep.subr.bf16.mxu1 %v5489_v24 }
 0x8f6   : > { %6765 = vmatpush2.bf16.msra.mxu0 %v5360_v21 }
 0x8f7   : > { %6806 = vmatpush2.bf16.msra.mxu1 %v5488_v43  ;;  %6766 = vmatprep.subr.bf16.mxu0 %v5353_v13 }
 0x8f8   : > { %6807 = vmatprep.subr.bf16.mxu1 %v5481_v18  ;;  %v5512_v18 = vld [vmem:[%s8117_s11 + $0x30] sm:$0xff] }
 0x8fa   : > { %6767 = vmatpush2.bf16.msra.mxu0 %v5352_v57 }
 0x8fb   : > { %6808 = vmatpush2.bf16.msra.mxu1 %v5480_v58  ;;  %6768 = vmatprep.subr.bf16.mxu0 %v5345_v0  ;;  %v5513_v0 = vld [vmem:[%s8117_s11 + $0x38] sm:$0xff] }
 0x8fc   : > { %6809 = vmatprep.subr.bf16.mxu1 %v5473_v61 }
 0x8fe   : > { %6769 = vmatpush2.bf16.msra.mxu0 %v5344_v46 }
 0x8ff   : > { %6810 = vmatpush2.bf16.msra.mxu1 %v5472_v55  ;;  %6770 = vmatprep.subr.bf16.mxu0 %v5337_v63 }
 0x900   : > { %6811 = vmatprep.subr.bf16.mxu1 %v5465_v6 }
 0x902   : > { %6771 = vmatpush2.bf16.msra.mxu0 %v5336_v62 }
 0x903   : > { %6812 = vmatpush2.bf16.msra.mxu1 %v5464_v10  ;;  %6772 = vmatprep.subr.bf16.mxu0 %v5329_v4 }
 0x904   : > { %6813 = vmatprep.subr.bf16.mxu1 %v5457_v28 }
 0x906   : > { %6773 = vmatpush2.bf16.msra.mxu0 %v5328_v33 }
 0x907   : > { %6814 = vmatpush2.bf16.msra.mxu1 %v5456_v34  ;;  %6774 = vmatprep.subr.bf16.mxu0 %v5321_v35 }
 0x908   : > { %6815 = vmatprep.subr.bf16.mxu1 %v5449_v39 }
 0x90a   : > { %6775 = vmatpush2.bf16.msra.mxu0 %v5320_v42 }
 0x90b   : > { %6816 = vmatpush2.bf16.msra.mxu1 %v5448_v22 }
 0x90d   : > { %v6532_v45 = vpop.f32.mrf.mxu0  ;;  %6777 = vmatmul.mubr.bf16.vlgmr.msra.gmra.mxu0 %v9190_v15 }
 0x90e   : > { %v6573_v54 = vpop.f32.mrf.mxu1  ;;  %6818 = vmatmul.mubr.bf16.vlgmr.msra.gmra.mxu1 %v9192_v8 }
 0x90f   : > { %v6574_v53 = vadd.f32 %v6573_v54, %v6532_v45  ;;  %v6534_v40 = vpop.f32.mrf.mxu0 }
 0x910   : > { %v6575_v26 = vpop.f32.mrf.mxu1 }
 0x911   : > { %v6576_v17 = vadd.f32 %v6575_v26, %v6534_v40  ;;  %v6536_v27 = vpop.f32.mrf.mxu0 }
 0x912   : > { %v6577_v56 = vpop.f32.mrf.mxu1 }
 0x913   : > { %v6537_v44 = vpop.f32.mrf.mxu0 }
 0x914   : > { %v6578_v51 = vpop.f32.mrf.mxu1 }
 0x94d   : > { %v6614_v52 = vpop.f32.mrf.mxu0 }
 0x94e   : > { %v6615_v59 = vadd.f32 %v6614_v52, %v6574_v53  ;;  %v6655_v38 = vpop.f32.mrf.mxu1 }
 0x94f   : > { %v6616_v50 = vpop.f32.mrf.mxu0 }
 0x950   : > { %v6656_v47 = vadd.f32 %v6655_v38, %v6615_v59  ;;  %v6617_v5 = vadd.f32 %v6616_v50, %v6576_v17  ;;  %v6657_v3 = vpop.f32.mrf.mxu1 }
 0x951   : > { %v6618_v31 = vpop.f32.mrf.mxu0 }
 0x952   : > { %v6658_v15 = vadd.f32 %v6657_v3, %v6617_v5  ;;  %v6659_v20 = vpop.f32.mrf.mxu1 }
 0x953   : > { %v6619_v14 = vpop.f32.mrf.mxu0 }
 0x954   : > { %v6660_v8 = vpop.f32.mrf.mxu1 }
 0x98d   : > { %v6696_v49 = vpop.f32.mrf.mxu0 }
 0x98e   : > { %v6737_v37 = vpop.f32.mrf.mxu1  ;;  %v6697_v48 = vadd.f32 %v6696_v49, %v6656_v47 }
 0x98f   : > { %v6698_v2 = vpop.f32.mrf.mxu0 }
 0x990   : > { %v6739_v41 = vpop.f32.mrf.mxu1  ;;  %v6699_v36 = vadd.f32 %v6698_v2, %v6658_v15  ;;  %v6738_v24 = vadd.f32 %v6737_v37, %v6697_v48 }
 0x991   : > { %v6700_v12 = vpop.f32.mrf.mxu0 }
 0x992   : > { %v6741_v1 = vpop.f32.mrf.mxu1  ;;  %v6740_v21 = vadd.f32 %v6739_v41, %v6699_v36 }
 0x993   : > { %v6701_v9 = vpop.f32.mrf.mxu0 }
 0x994   : > { %v6742_v32 = vpop.f32.mrf.mxu1 }
 0x9cd   : > { %v6778_v29 = vpop.f32.mrf.mxu0 }
 0x9ce   : > { %v6779_v43 = vadd.f32 %v6778_v29, %v6738_v24  ;;  %v6819_v13 = vpop.f32.mrf.mxu1 }
 0x9cf   : > { %v6780_v23 = vpop.f32.mrf.mxu0 }
 0x9d0   : > { %v6820_v11 = vadd.f32 %v6819_v13, %v6779_v43  ;;  %v6781_v57 = vadd.f32 %v6780_v23, %v6740_v21  ;;  %v6821_v58 = vpop.f32.mrf.mxu1 }
 0x9d1   : > { %v6782_v60 = vpop.f32.mrf.mxu0 }
 0x9d2   : > { %v6832_v61 = vadd.f32 %v6820_v11, %v5512_v18  ;;  %v6822_v19 = vadd.f32 %v6821_v58, %v6781_v57  ;;  %v6823_v46 = vpop.f32.mrf.mxu1 }
 0x9d3   : > { %v6783_v55 = vpop.f32.mrf.mxu0 }
 0x9d4   : > { %6840 = vst [vmem:[%s8117_s11 + $0x30] sm:$0xff] %v6832_v61  ;;  %v6833_v63 = vadd.f32 %v6822_v19, %v5513_v0  ;;  %v6824_v6 = vpop.f32.mrf.mxu1 }
 0x9d6   : > { %6841 = vst [vmem:[%s8117_s11 + $0x38] sm:$0xff] %v6833_v63 }
 0x9d7   : > { %7619 = shalt.err (!%p7616_p5)
}
 0x9d8   : > { %s7620_s3 = scalar_lea.hbm %s6855_s25, 1024  ;;  %s7624_s12 = scalar_lea.hbm %s9857_s2, 4096 }
 0x9d9   : > { %p7621_p9 = scmp.ne.s32.totalorder %s6855_s25, %s7620_s3  ;;  %p7625_p3 = scmp.lt.s32.totalorder %s6855_s25, %s9857_s2 }
 0x9da   : > { %p7626_p8 = scmp.lt.s32.totalorder %s7624_s12, %s7620_s3 }
 0x9db   : > { %p7622_p13 = pnand %p7621_p9, %p7885_p12 }
 0x9dc   : > { %p7627_p2 = por %p7626_p8, %p7625_p3 }
 0x9dd   : > { %p7623_p0 = pneg %p7622_p13 }
 0x9df   : > { %p7628_p11 = pnand %p7627_p2, %p7623_p0 }
 0x9e1   : > { %7631 = shalt.err (!%p7628_p11)
}
 0x9e2   : > { %7183 = dma.vmem_to_hbm [thread:$0]  (%p7885_p12), %s6858_s22, 1024, %s6855_s25, %s6843_s18  }
 0x9e3 PF: > { %s9858_s21 = sld [smem:[#allocation27_spill]] }
 0x9e4   : > { %s9859_s14 = sld [smem:[#allocation22_spill]] }
 0x9e5   : > { %s9860_s11 = sld [smem:[#allocation32_spill]] }
 0x9e9   : > { %p7212_p6 = scmp.ge.s32.totalorder %s9858_s21, 2 }
 0x9ea   : > { %s6869_s23 = sand.u32 1, %s9859_s14  }
 0x9eb   : > { %p9861_p4 = scmp.ne.s32.totalorder %s9860_s11, 0  ;;  %s6870_s28 = scalar_lea.sflag [#allocation5], %s6869_s23 }
 0x9ed   : > { %p7208_p1 = pnand %p7212_p6, %p9861_p4 }
 0x9ef   : > { %p7209_p7 = pneg %p7208_p1 }
 0x9f1   : > { %7693 = dma.done.wait (%p7209_p7), %s6870_s28, 1024  }
 0x9f2   : > { %7695 = vsyncadd (%p7209_p7), %s6870_s28, 4294966272  ;;  %s32_s11 = sadd.s32 1, %s9858_s21   ;;  %s9862_s24 = sld [smem:[#allocation21_spill]] }
 0x9f3   : > { %p29_p10 = scmp.ge.s32.totalorder %s32_s11, 10   ;;  %s9863_s15 = sld [smem:[#allocation37_spill]] }
 0x9f4   : > { %s9864_s27 = sld [smem:[#allocation23_spill]]  ;;  %s9869_s25 = smov %s7706_s26 }
 0x9f5   : > { %s9865_s28 = sld [smem:[#allocation24_spill]]  ;;  %s9871_s30 = smov %s7730_s9 }
 0x9f6   : > { %s9866_s29 = sld [smem:[#allocation36_spill]]  ;;  %s9872_s8 = smov %s7734_s10 }
 0x9f7   : > { %s9867_s20 = sld [smem:[#allocation34_spill]] }
 0x9f8   : > { %s9868_s22 = sld [smem:[#allocation35_spill]] }
 0x9f9   : > { %s9870_s26 = smov %s9863_s15 }
 0x9fa   :  { %31 = sbr.rel (!%p29_p10) target bundleno = 20 (0x14), region = 169 }
 0x9fd   : > { %s9873_s9 = smov %s9867_s20 }
 0x9fe   : > { %s9874_s10 = smov %s9868_s22 }
 0x9ff   :  { %6875 = vsyncpa [#allocation4], 1 }
 0xa00   :  { %6877 = vsyncpa [#allocation4 + $0x1], 1 }
 0xa01   :  { %6878 = vsyncpa [#allocation7], 1 }
 0xa02   :  { %6880 = vsyncpa [#allocation7 + $0x1], 1 }
 0xa03   :  { %6881 = vsyncpa [#allocation10], 1 }
 0xa04   :  { %6883 = vsyncpa [#allocation10 + $0x1], 1 }
 0xa05   :  { %6884 = vsyncpa [#allocation13], 1 }
 0xa06   :  { %6886 = vsyncpa [#allocation13 + $0x1], 1 }
 0xa07   :  { %6887 = vsyncpa [#allocation5], 1 }
 0xa08   :  { %6889 = vsyncpa [#allocation5 + $0x1], 1 }

</bundles_post_ra>
